<compile_context>
chip_gen: v7x
topology: tpu7x:2x2x1
jax: 0.10.0
libtpu: 0.0.40
codegen_flags: <defaults>
</compile_context>

<pallas_src>
import functools

import numpy as np

import jax
import jax.numpy as jnp
from jax import lax
from jax.experimental import pallas as pl
from jax.experimental.pallas import tpu as pltpu

_MXU_DTYPE = jnp.bfloat16      # MXU operand dtype (native on v5e/v6e/v7x)
_ACT_DTYPE = jnp.bfloat16      # inter-layer activation dtype in HBM
_EPS = 1e-5                    # nn.InstanceNorm2d default eps


@functools.lru_cache(maxsize=None)
def _compiler_params():
    """Generation-aware compiler params (~60% of physical VMEM, capped)."""
    try:
        vmem_cap = int(pltpu.get_tpu_info().vmem_capacity_bytes)
    except Exception:                       # no TPU info -> conservative (v7x-sized)
        vmem_cap = 64 * 1024 * 1024
    return pltpu.CompilerParams(
        dimension_semantics=("parallel",),  # batch axis -> both TCs on v7x
        vmem_limit_bytes=min((vmem_cap * 3) // 5, 96 * 1024 * 1024),
    )


# -----------------------------------------------------------------------------
# In-kernel helpers (lane-dense (H, W*C) layout; W*C maps to the 128 lanes)
# -----------------------------------------------------------------------------
def _pad_rows(x, p, *, edge):
    """Pad a lane-dense image by p rows along H (sublane axis) only."""
    if p == 0:
        return x
    h = x.shape[0]
    if edge:   # replicate first/last row (used by the pair-packed stride-2 conv)
        top = [x[0:1]] * p
        bot = [x[h - 1:h]] * p
    else:      # reflect (PyTorch 'reflect': row -1 -> 1, row H -> H-2)
        top = [x[i:i + 1] for i in range(p, 0, -1)]
        bot = [x[h - 1 - i:h - i] for i in range(1, p + 1)]
    return jnp.concatenate(top + [x] + bot, axis=0)


def _conv_in(xp, w_taps, gc, sc, *, do_relu):
    """Banded conv + InstanceNorm (+ReLU) on a lane-dense, H-padded image.

    xp:     (Hp, Kdim) bf16 padded input (W padding/stride folded into w_taps)
    w_taps: list of KH (Kdim, OW*Cout) bf16 banded weights
    gc:     (OW*Cout, Cout) f32  dense-column -> channel gather map
    sc:     (Cout, OW*Cout) f32  channel -> dense-column scatter map
    returns (OH, OW*Cout) f32
    """
    kh_total = len(w_taps)
    owc = w_taps[0].shape[1]
    oh = xp.shape[0] - kh_total + 1
    cout = gc.shape[1]
    ow = owc // cout

    # Convolution: KH dense MXU matmuls, fp32 accumulation (fully unrolled).
    acc = jnp.zeros((oh, owc), jnp.float32)
    for kh in range(kh_total):
        acc = acc + jnp.dot(xp[kh:kh + oh, :], w_taps[kh],
                            preferred_element_type=jnp.float32)

    # InstanceNorm2d (biased variance, eps, no affine), fp32 statistics.
    # Conv bias is exactly cancelled by the mean subtraction, so it is omitted.
    # One-pass stats: one gather matmul (M=2) + one scatter matmul (M=2).
    inv_n = 1.0 / float(oh * ow)
    sums = jnp.concatenate(
        [jnp.sum(acc, axis=0, keepdims=True),
         jnp.sum(acc * acc, axis=0, keepdims=True)], axis=0)          # (2, OWC)
    stats = jnp.dot(sums, gc, preferred_element_type=jnp.float32) * inv_n
    mean = stats[0:1]                                                  # (1, Cout)
    var = stats[1:2] - mean * mean
    scale = lax.rsqrt(var + _EPS)
    shift = -mean * scale
    aff = jnp.dot(jnp.concatenate([scale, shift], axis=0), sc,
                  preferred_element_type=jnp.float32)                  # (2, OWC)
    y = acc * aff[0:1] + aff[1:2]
    if do_relu:
        y = jnp.maximum(y, 0.0)
    return y


# -----------------------------------------------------------------------------
# Kernels
# -----------------------------------------------------------------------------
def _conv_layer_kernel(x_ref, w_ref, gc_ref, sc_ref, o_ref, *, h_pad, edge,
                       do_relu):
    kh = w_ref.shape[0]
    x = x_ref[0].astype(_MXU_DTYPE)          # single cast before the tap loop
    xp = _pad_rows(x, h_pad, edge=edge)
    y = _conv_in(xp, [w_ref[k] for k in range(kh)], gc_ref[...], sc_ref[...],
                 do_relu=do_relu)
    o_ref[0] = y.astype(o_ref.dtype)


def _res_stage_kernel(x_ref, w_ref, gc_ref, sc_ref, o_ref, *, n_res, kh):
    gc = gc_ref[...]
    sc = sc_ref[...]
    x = x_ref[0].astype(jnp.float32)         # skip-add chain stays f32 in VMEM
    for r in range(n_res):
        xp = _pad_rows(x.astype(_MXU_DTYPE), 1, edge=False)
        h = _conv_in(xp, [w_ref[(2 * r) * kh + k] for k in range(kh)],
                     gc, sc, do_relu=True)
        hp = _pad_rows(h.astype(_MXU_DTYPE), 1, edge=False)
        y = _conv_in(hp, [w_ref[(2 * r + 1) * kh + k] for k in range(kh)],
                     gc, sc, do_relu=False)
        x = y + x                            # intermediates never leave VMEM
    o_ref[0] = x.astype(o_ref.dtype)


# -----------------------------------------------------------------------------
# pallas_call wrappers (grid = batch; one sample's whole image per step)
# -----------------------------------------------------------------------------
def conv_layer(x, bw, gc, sc, *, h_pad, edge, do_relu, out_dtype):
    n, hin, kdim = x.shape
    kh, kdim_w, owc = bw.shape
    assert kdim_w == kdim
    oh = hin + 2 * h_pad - kh + 1
    kernel = functools.partial(_conv_layer_kernel, h_pad=h_pad, edge=edge,
                               do_relu=do_relu)
    return pl.pallas_call(
        kernel,
        out_shape=jax.ShapeDtypeStruct((n, oh, owc), out_dtype),
        grid_spec=pltpu.PrefetchScalarGridSpec(
            num_scalar_prefetch=0,
            grid=(n,),
            in_specs=[
                pl.BlockSpec((1, hin, kdim), lambda i: (i, 0, 0)),
                pl.BlockSpec((kh, kdim, owc), lambda i: (0, 0, 0)),
                pl.BlockSpec(gc.shape, lambda i: (0, 0)),
                pl.BlockSpec(sc.shape, lambda i: (0, 0)),
            ],
            out_specs=pl.BlockSpec((1, oh, owc), lambda i: (i, 0, 0)),
        ),
        compiler_params=_compiler_params(),
    )(x, bw, gc, sc)


def res_stage(x, w_all, gc, sc, *, n_res, out_dtype):
    n, h, owc = x.shape
    n_taps, k, owc2 = w_all.shape
    assert owc2 == owc and n_taps % (2 * n_res) == 0
    kh = n_taps // (2 * n_res)
    kernel = functools.partial(_res_stage_kernel, n_res=n_res, kh=kh)
    return pl.pallas_call(
        kernel,
        out_shape=jax.ShapeDtypeStruct((n, h, owc), out_dtype),
        grid_spec=pltpu.PrefetchScalarGridSpec(
            num_scalar_prefetch=0,
            grid=(n,),
            in_specs=[
                pl.BlockSpec((1, h, owc), lambda i: (i, 0, 0)),
                pl.BlockSpec((n_taps, k, owc), lambda i: (0, 0, 0)),
                pl.BlockSpec(gc.shape, lambda i: (0, 0)),
                pl.BlockSpec(sc.shape, lambda i: (0, 0)),
            ],
            out_specs=pl.BlockSpec((1, h, owc), lambda i: (i, 0, 0)),
        ),
        compiler_params=_compiler_params(),
    )(x, w_all, gc, sc)


# -----------------------------------------------------------------------------
# Wrapper-side glue: banded weights (stride + W-reflection folded), channel maps
# -----------------------------------------------------------------------------
def _reflect_np(idx, n):
    idx = np.where(idx < 0, -idx, idx)
    idx = np.where(idx >= n, 2 * n - 2 - idx, idx)
    return idx


def _w_select(kw_size, w_in, ow, stride, pad):
    """sel[kw, j, o] = 1 iff reflect(stride*o + kw - pad, w_in) == j."""
    assert pad < w_in
    o = np.arange(ow)
    kw = np.arange(kw_size)
    src = _reflect_np(stride * o[None, :] + kw[:, None] - pad, w_in)   # (KW, OW)
    sel = (src[:, None, :] == np.arange(w_in)[None, :, None]).astype(np.float32)
    return jnp.asarray(sel)                                            # (KW, W, OW)


def _banded_weight_s1(w, w_in, pad):
    """Stride-1 conv, reflect-pad folded along W.

    w: (KH, KW, Cin, Cout) -> (KH, W*Cin, W*Cout) so that a conv over a
    lane-dense, H-reflect-padded image is  y[oh] = sum_kh x[oh+kh] @ out[kh].
    """
    kh, kw, cin, cout = w.shape
    sel = _w_select(kw, w_in, w_in, 1, pad)
    bw = jnp.einsum("kjo,hkcd->hjcod", sel, w.astype(jnp.float32))
    return bw.reshape(kh, w_in * cin, w_in * cout).astype(_MXU_DTYPE)


def _banded_weight_s2_pair(w, w_in):
    """4x4 stride-2 reflect-pad-1 conv as a 3-tap stride-1 conv over the
    row-pair-packed input (H/2, 2*W*Cin); W stride + reflection live in the band.

    Pair tap t, pair element e covers original kh = 2t + e - 1 (only 0..3 kept);
    the edge-pad of one pair-row reproduces the reflect boundary exactly.
    """
    kh, kw, cin, cout = w.shape
    assert kh == 4 and kw == 4
    ow = w_in // 2
    sel = _w_select(kw, w_in, ow, 2, 1)
    band = jnp.einsum("kjo,hkcd->hjcod", sel, w.astype(jnp.float32))
    band = band.reshape(kh, w_in * cin, ow * cout)
    zero = jnp.zeros_like(band[0])
    taps = []
    for t in range(3):
        parts = []
        for e in range(2):
            k = 2 * t + e - 1
            parts.append(band[k] if 0 <= k < kh else zero)
        taps.append(jnp.concatenate(parts, axis=0))      # (2*W*Cin, OW*Cout)
    return jnp.stack(taps, axis=0).astype(_MXU_DTYPE)    # (3, 2*W*Cin, OW*Cout)


def _channel_maps(ow, c_out):
    eye = jnp.eye(c_out, dtype=jnp.float32)
    return jnp.tile(eye, (ow, 1)), jnp.tile(eye, (1, ow))   # gather, scatter


# -----------------------------------------------------------------------------
# Parameters and forward pass
# -----------------------------------------------------------------------------
def init_encoder_params(key, n_head, n_res, in_channel, n_filter):
    params = {"head": [], "res": []}
    keys = iter(jax.random.split(key, 2 + 2 * n_head + 4 * n_res))

    c_in, c_out = in_channel, n_filter
    params["head"].append({
        "w": 0.1 * jax.random.normal(next(keys), (7, 7, c_in, c_out), jnp.float32),
        "b": 0.1 * jax.random.normal(next(keys), (1, c_out), jnp.float32),
    })
    for _ in range(n_head):
        c_in, c_out = c_out, 2 * c_out
        params["head"].append({
            "w": 0.1 * jax.random.normal(next(keys), (4, 4, c_in, c_out), jnp.float32),
            "b": 0.1 * jax.random.normal(next(keys), (1, c_out), jnp.float32),
        })
    c = c_out
    for _ in range(n_res):
        params["res"].append({
            "w1": 0.1 * jax.random.normal(next(keys), (3, 3, c, c), jnp.float32),
            "b1": 0.1 * jax.random.normal(next(keys), (1, c), jnp.float32),
            "w2": 0.1 * jax.random.normal(next(keys), (3, 3, c, c), jnp.float32),
            "b2": 0.1 * jax.random.normal(next(keys), (1, c), jnp.float32),
        })
    return params


def encoder_forward(params, x_nchw):
    # NCHW (PyTorch convention) -> NHWC -> lane-dense (N, H, W*C).
    # Note: the conv biases (`b*`) are mathematically cancelled by the
    # InstanceNorm that follows every conv, so the kernels do not consume them.
    x = jnp.transpose(x_nchw, (0, 2, 3, 1)).astype(jnp.float32)
    n, h_cur, w_cur, c_cur = x.shape
    y = x.reshape(n, h_cur, w_cur * c_cur)

    # --- front: Conv7x7 s1 reflect-pad3 + IN + ReLU --------------------------
    p0 = params["head"][0]
    c_out = p0["w"].shape[-1]
    gc, sc = _channel_maps(w_cur, c_out)
    y = conv_layer(y, _banded_weight_s1(p0["w"], w_cur, 3), gc, sc,
                   h_pad=3, edge=False, do_relu=True, out_dtype=_ACT_DTYPE)
    c_cur = c_out

    # --- downsampling head: Conv4x4 s2 reflect-pad1 + IN + ReLU --------------
    # H stride via a free contiguous row-pair reshape; W stride + reflection
    # folded into the banded weight; H boundary via in-kernel edge pad.
    for p_i in params["head"][1:]:
        assert h_cur % 2 == 0 and w_cur % 2 == 0, \
            "stride-2 rewrite requires even spatial dims"
        c_in, c_out = c_cur, p_i["w"].shape[-1]
        y = y.reshape(n, h_cur // 2, 2 * w_cur * c_in)       # free reshape
        ow = w_cur // 2
        gc, sc = _channel_maps(ow, c_out)
        y = conv_layer(y, _banded_weight_s2_pair(p_i["w"], w_cur), gc, sc,
                       h_pad=1, edge=True, do_relu=True, out_dtype=_ACT_DTYPE)
        h_cur, w_cur, c_cur = h_cur // 2, w_cur // 2, c_out

    # --- residual stage: ALL blocks fused into one pallas_call ---------------
    if params["res"]:
        gc, sc = _channel_maps(w_cur, c_cur)
        taps = []
        for rb in params["res"]:
            taps.append(_banded_weight_s1(rb["w1"], w_cur, 1))
            taps.append(_banded_weight_s1(rb["w2"], w_cur, 1))
        w_all = jnp.concatenate(taps, axis=0)                # (2*n_res*3, K, OWC)
        y = res_stage(y, w_all, gc, sc, n_res=len(params["res"]),
                      out_dtype=jnp.float32)
    else:
        y = y.astype(jnp.float32)

    out = y.reshape(n, h_cur, w_cur, c_cur)
    return jnp.transpose(out, (0, 3, 1, 2))                  # back to NCHW


# -----------------------------------------------------------------------------
# Pure-JAX/XLA reference (bf16 matmuls, fp32 IN, biases included) for checking
# -----------------------------------------------------------------------------
def _ref_conv(x, w, b, stride, pad):
    if pad:
        x = jnp.pad(x, ((0, 0), (pad, pad), (pad, pad), (0, 0)), mode="reflect")
    y = lax.conv_general_dilated(
        x.astype(_MXU_DTYPE), w.astype(_MXU_DTYPE),
        window_strides=(stride, stride), padding="VALID",
        dimension_numbers=("NHWC", "HWIO", "NHWC"),
        preferred_element_type=jnp.float32)
    return y + b.reshape(1, 1, 1, -1)


def _ref_instance_norm(y):
    m = jnp.mean(y, axis=(1, 2), keepdims=True)
    v = jnp.mean(jnp.square(y - m), axis=(1, 2), keepdims=True)
    return (y - m) * lax.rsqrt(v + _EPS)


def encoder_reference(params, x_nchw):
    x = jnp.transpose(x_nchw, (0, 2, 3, 1)).astype(jnp.float32)
    p0 = params["head"][0]
    x = jnp.maximum(_ref_instance_norm(_ref_conv(x, p0["w"], p0["b"], 1, 3)), 0.)
    for p_i in params["head"][1:]:
        x = jnp.maximum(_ref_instance_norm(_ref_conv(x, p_i["w"], p_i["b"], 2, 1)), 0.)
    for rb in params["res"]:
        h = jnp.maximum(_ref_instance_norm(_ref_conv(x, rb["w1"], rb["b1"], 1, 1)), 0.)
        x = _ref_instance_norm(_ref_conv(h, rb["w2"], rb["b2"], 1, 1)) + x
    return jnp.transpose(x, (0, 3, 1, 2))


if __name__ == "__main__":
    n_head, n_res, in_channel, n_filter = 2, 3, 4, 8
    batch, spatial = 2, 16

    key = jax.random.PRNGKey(0)
    kp, kx = jax.random.split(key)
    params = init_encoder_params(kp, n_head, n_res, in_channel, n_filter)
    x = jax.random.normal(kx, (batch, in_channel, spatial, spatial), jnp.float32)

    fwd = jax.jit(encoder_forward)
    out = fwd(params, x)
    jax.block_until_ready(out)

    out_channel = n_filter * (2 ** n_head)              # 32
    assert out.shape == (batch, out_channel, spatial // (2 ** n_head),
                         spatial // (2 ** n_head)), out.shape
    assert bool(jnp.all(jnp.isfinite(out)))

    # Cross-check against the XLA reference (same bf16 operand rounding).
    ref = jax.jit(encoder_reference)(params, x)
    max_err = float(jnp.max(jnp.abs(out - ref)))
    ref_scale = max(1.0, float(jnp.max(jnp.abs(ref))))
    assert max_err < 0.15, (max_err, ref_scale)              # absolute guard
    assert max_err < 0.04 * ref_scale, (max_err, ref_scale)  # relative metric

    print("KERNEL_OK")
</pallas_src>

<mosaic_0001>
module attributes {stable_mosaic.version = 11 : i64} {
  func.func @_conv_layer_kernel(%arg0: i32, %arg1: memref<1x16x64xf32, #tpu.memory_space<vmem>>, %arg2: memref<7x64x128xbf16, #tpu.memory_space<vmem>>, %arg3: memref<128x8xf32, #tpu.memory_space<vmem>>, %arg4: memref<8x128xf32, #tpu.memory_space<vmem>>, %arg5: memref<1x16x128xbf16, #tpu.memory_space<vmem>>) attributes {dimension_semantics = [#tpu.dimension_semantics<parallel>], iteration_bounds = array<i64: 2>, scalar_prefetch = 0 : i64, scratch_operands = 0 : i64, tpu.core_type = #tpu.core_type<tc>, window_params = [{transform_indices = @transform_0, window_bounds = array<i64: 1, 16, 64>}, {pipeline_mode = #tpu.pipeline_mode<synchronous>, transform_indices = @transform_1, window_bounds = array<i64: 7, 64, 128>}, {pipeline_mode = #tpu.pipeline_mode<synchronous>, transform_indices = @transform_2, window_bounds = array<i64: 128, 8>}, {pipeline_mode = #tpu.pipeline_mode<synchronous>, transform_indices = @transform_3, window_bounds = array<i64: 8, 128>}, {transform_indices = @transform_4, window_bounds = array<i64: 1, 16, 128>}]} {
    %c0 = arith.constant 0 : index
    %c0_0 = arith.constant 0 : index
    %c0_1 = arith.constant 0 : index
    %0 = vector.load %arg1[%c0, %c0_0, %c0_1] : memref<1x16x64xf32, #tpu.memory_space<vmem>>, vector<1x16x64xf32>
    %1 = vector.shape_cast %0 : vector<1x16x64xf32> to vector<16x64xf32>
    %2 = arith.truncf %1 : vector<16x64xf32> to vector<16x64xbf16>
    %3 = vector.extract_strided_slice %2 {offsets = [3, 0], sizes = [1, 64], strides = [1, 1]} : vector<16x64xbf16> to vector<1x64xbf16>
    %4 = vector.extract_strided_slice %2 {offsets = [2, 0], sizes = [1, 64], strides = [1, 1]} : vector<16x64xbf16> to vector<1x64xbf16>
    %5 = vector.extract_strided_slice %2 {offsets = [1, 0], sizes = [1, 64], strides = [1, 1]} : vector<16x64xbf16> to vector<1x64xbf16>
    %6 = vector.extract_strided_slice %2 {offsets = [14, 0], sizes = [1, 64], strides = [1, 1]} : vector<16x64xbf16> to vector<1x64xbf16>
    %7 = vector.extract_strided_slice %2 {offsets = [13, 0], sizes = [1, 64], strides = [1, 1]} : vector<16x64xbf16> to vector<1x64xbf16>
    %8 = vector.extract_strided_slice %2 {offsets = [12, 0], sizes = [1, 64], strides = [1, 1]} : vector<16x64xbf16> to vector<1x64xbf16>
    %9 = tpu.concatenate %3, %4, %5, %2, %6, %7, %8 in 0 : vector<1x64xbf16>, vector<1x64xbf16>, vector<1x64xbf16>, vector<16x64xbf16>, vector<1x64xbf16>, vector<1x64xbf16>, vector<1x64xbf16> -> vector<22x64xbf16>
    %c0_2 = arith.constant 0 : index
    %c0_3 = arith.constant 0 : index
    %c0_4 = arith.constant 0 : index
    %10 = vector.load %arg2[%c0_2, %c0_3, %c0_4] : memref<7x64x128xbf16, #tpu.memory_space<vmem>>, vector<1x64x128xbf16>
    %11 = vector.shape_cast %10 : vector<1x64x128xbf16> to vector<64x128xbf16>
    %c1 = arith.constant 1 : index
    %c0_5 = arith.constant 0 : index
    %c0_6 = arith.constant 0 : index
    %12 = vector.load %arg2[%c1, %c0_5, %c0_6] : memref<7x64x128xbf16, #tpu.memory_space<vmem>>, vector<1x64x128xbf16>
    %13 = vector.shape_cast %12 : vector<1x64x128xbf16> to vector<64x128xbf16>
    %c2 = arith.constant 2 : index
    %c0_7 = arith.constant 0 : index
    %c0_8 = arith.constant 0 : index
    %14 = vector.load %arg2[%c2, %c0_7, %c0_8] : memref<7x64x128xbf16, #tpu.memory_space<vmem>>, vector<1x64x128xbf16>
    %15 = vector.shape_cast %14 : vector<1x64x128xbf16> to vector<64x128xbf16>
    %c3 = arith.constant 3 : index
    %c0_9 = arith.constant 0 : index
    %c0_10 = arith.constant 0 : index
    %16 = vector.load %arg2[%c3, %c0_9, %c0_10] : memref<7x64x128xbf16, #tpu.memory_space<vmem>>, vector<1x64x128xbf16>
    %17 = vector.shape_cast %16 : vector<1x64x128xbf16> to vector<64x128xbf16>
    %c4 = arith.constant 4 : index
    %c0_11 = arith.constant 0 : index
    %c0_12 = arith.constant 0 : index
    %18 = vector.load %arg2[%c4, %c0_11, %c0_12] : memref<7x64x128xbf16, #tpu.memory_space<vmem>>, vector<1x64x128xbf16>
    %19 = vector.shape_cast %18 : vector<1x64x128xbf16> to vector<64x128xbf16>
    %c5 = arith.constant 5 : index
    %c0_13 = arith.constant 0 : index
    %c0_14 = arith.constant 0 : index
    %20 = vector.load %arg2[%c5, %c0_13, %c0_14] : memref<7x64x128xbf16, #tpu.memory_space<vmem>>, vector<1x64x128xbf16>
    %21 = vector.shape_cast %20 : vector<1x64x128xbf16> to vector<64x128xbf16>
    %c6 = arith.constant 6 : index
    %c0_15 = arith.constant 0 : index
    %c0_16 = arith.constant 0 : index
    %22 = vector.load %arg2[%c6, %c0_15, %c0_16] : memref<7x64x128xbf16, #tpu.memory_space<vmem>>, vector<1x64x128xbf16>
    %23 = vector.shape_cast %22 : vector<1x64x128xbf16> to vector<64x128xbf16>
    %c0_17 = arith.constant 0 : index
    %c0_18 = arith.constant 0 : index
    %24 = vector.load %arg3[%c0_17, %c0_18] : memref<128x8xf32, #tpu.memory_space<vmem>>, vector<128x8xf32>
    %c0_19 = arith.constant 0 : index
    %c0_20 = arith.constant 0 : index
    %25 = vector.load %arg4[%c0_19, %c0_20] : memref<8x128xf32, #tpu.memory_space<vmem>>, vector<8x128xf32>
    %cst = arith.constant 0.000000e+00 : f32
    %26 = vector.broadcast %cst : f32 to vector<16x128xf32>
    %27 = vector.extract_strided_slice %9 {offsets = [0, 0], sizes = [16, 64], strides = [1, 1]} : vector<22x64xbf16> to vector<16x64xbf16>
    %cst_21 = arith.constant dense<0.000000e+00> : vector<16x128xf32>
    %28 = tpu.matmul %27, %11, %cst_21 {dimension_numbers = #tpu.dot_dimension_numbers<[1], [0], [0], [1], [0, 0, 1, 1], [], []>} : vector<16x64xbf16>, vector<64x128xbf16>, vector<16x128xf32> -> vector<16x128xf32>
    %29 = arith.addf %26, %28 : vector<16x128xf32>
    %30 = vector.extract_strided_slice %9 {offsets = [1, 0], sizes = [16, 64], strides = [1, 1]} : vector<22x64xbf16> to vector<16x64xbf16>
    %cst_22 = arith.constant dense<0.000000e+00> : vector<16x128xf32>
    %31 = tpu.matmul %30, %13, %cst_22 {dimension_numbers = #tpu.dot_dimension_numbers<[1], [0], [0], [1], [0, 0, 1, 1], [], []>} : vector<16x64xbf16>, vector<64x128xbf16>, vector<16x128xf32> -> vector<16x128xf32>
    %32 = arith.addf %29, %31 : vector<16x128xf32>
    %33 = vector.extract_strided_slice %9 {offsets = [2, 0], sizes = [16, 64], strides = [1, 1]} : vector<22x64xbf16> to vector<16x64xbf16>
    %cst_23 = arith.constant dense<0.000000e+00> : vector<16x128xf32>
    %34 = tpu.matmul %33, %15, %cst_23 {dimension_numbers = #tpu.dot_dimension_numbers<[1], [0], [0], [1], [0, 0, 1, 1], [], []>} : vector<16x64xbf16>, vector<64x128xbf16>, vector<16x128xf32> -> vector<16x128xf32>
    %35 = arith.addf %32, %34 : vector<16x128xf32>
    %36 = vector.extract_strided_slice %9 {offsets = [3, 0], sizes = [16, 64], strides = [1, 1]} : vector<22x64xbf16> to vector<16x64xbf16>
    %cst_24 = arith.constant dense<0.000000e+00> : vector<16x128xf32>
    %37 = tpu.matmul %36, %17, %cst_24 {dimension_numbers = #tpu.dot_dimension_numbers<[1], [0], [0], [1], [0, 0, 1, 1], [], []>} : vector<16x64xbf16>, vector<64x128xbf16>, vector<16x128xf32> -> vector<16x128xf32>
    %38 = arith.addf %35, %37 : vector<16x128xf32>
    %39 = vector.extract_strided_slice %9 {offsets = [4, 0], sizes = [16, 64], strides = [1, 1]} : vector<22x64xbf16> to vector<16x64xbf16>
    %cst_25 = arith.constant dense<0.000000e+00> : vector<16x128xf32>
    %40 = tpu.matmul %39, %19, %cst_25 {dimension_numbers = #tpu.dot_dimension_numbers<[1], [0], [0], [1], [0, 0, 1, 1], [], []>} : vector<16x64xbf16>, vector<64x128xbf16>, vector<16x128xf32> -> vector<16x128xf32>
    %41 = arith.addf %38, %40 : vector<16x128xf32>
    %42 = vector.extract_strided_slice %9 {offsets = [5, 0], sizes = [16, 64], strides = [1, 1]} : vector<22x64xbf16> to vector<16x64xbf16>
    %cst_26 = arith.constant dense<0.000000e+00> : vector<16x128xf32>
    %43 = tpu.matmul %42, %21, %cst_26 {dimension_numbers = #tpu.dot_dimension_numbers<[1], [0], [0], [1], [0, 0, 1, 1], [], []>} : vector<16x64xbf16>, vector<64x128xbf16>, vector<16x128xf32> -> vector<16x128xf32>
    %44 = arith.addf %41, %43 : vector<16x128xf32>
    %45 = vector.extract_strided_slice %9 {offsets = [6, 0], sizes = [16, 64], strides = [1, 1]} : vector<22x64xbf16> to vector<16x64xbf16>
    %cst_27 = arith.constant dense<0.000000e+00> : vector<16x128xf32>
    %46 = tpu.matmul %45, %23, %cst_27 {dimension_numbers = #tpu.dot_dimension_numbers<[1], [0], [0], [1], [0, 0, 1, 1], [], []>} : vector<16x64xbf16>, vector<64x128xbf16>, vector<16x128xf32> -> vector<16x128xf32>
    %47 = arith.addf %44, %46 : vector<16x128xf32>
    %cst_28 = arith.constant dense<0.000000e+00> : vector<128xf32>
    %48 = vector.multi_reduction <add>, %47, %cst_28 [0] : vector<16x128xf32> to vector<128xf32>
    %49 = vector.shape_cast %48 : vector<128xf32> to vector<1x128xf32>
    %50 = arith.mulf %47, %47 : vector<16x128xf32>
    %cst_29 = arith.constant dense<0.000000e+00> : vector<128xf32>
    %51 = vector.multi_reduction <add>, %50, %cst_29 [0] : vector<16x128xf32> to vector<128xf32>
    %52 = vector.shape_cast %51 : vector<128xf32> to vector<1x128xf32>
    %53 = tpu.concatenate %49, %52 in 0 : vector<1x128xf32>, vector<1x128xf32> -> vector<2x128xf32>
    %cst_30 = arith.constant dense<0.000000e+00> : vector<2x8xf32>
    %54 = tpu.matmul %53, %24, %cst_30 {dimension_numbers = #tpu.dot_dimension_numbers<[1], [0], [0], [1], [0, 0, 1, 1], [], []>} : vector<2x128xf32>, vector<128x8xf32>, vector<2x8xf32> -> vector<2x8xf32>
    %cst_31 = arith.constant 3.906250e-03 : f32
    %55 = vector.broadcast %cst_31 : f32 to vector<2x8xf32>
    %56 = arith.mulf %54, %55 : vector<2x8xf32>
    %57 = vector.extract_strided_slice %56 {offsets = [0, 0], sizes = [1, 8], strides = [1, 1]} : vector<2x8xf32> to vector<1x8xf32>
    %58 = vector.extract_strided_slice %56 {offsets = [1, 0], sizes = [1, 8], strides = [1, 1]} : vector<2x8xf32> to vector<1x8xf32>
    %59 = arith.mulf %57, %57 : vector<1x8xf32>
    %60 = arith.subf %58, %59 : vector<1x8xf32>
    %cst_32 = arith.constant 9.99999974E-6 : f32
    %61 = vector.broadcast %cst_32 : f32 to vector<1x8xf32>
    %62 = arith.addf %60, %61 : vector<1x8xf32>
    %63 = math.rsqrt %62 : vector<1x8xf32>
    %cst_33 = arith.constant 0.000000e+00 : f32
    %64 = vector.broadcast %cst_33 : f32 to vector<1x8xf32>
    %65 = arith.subf %64, %57 : vector<1x8xf32>
    %66 = arith.mulf %65, %63 : vector<1x8xf32>
    %67 = tpu.concatenate %63, %66 in 0 : vector<1x8xf32>, vector<1x8xf32> -> vector<2x8xf32>
    %cst_34 = arith.constant dense<0.000000e+00> : vector<2x128xf32>
    %68 = tpu.matmul %67, %25, %cst_34 {dimension_numbers = #tpu.dot_dimension_numbers<[1], [0], [0], [1], [0, 0, 1, 1], [], []>} : vector<2x8xf32>, vector<8x128xf32>, vector<2x128xf32> -> vector<2x128xf32>
    %69 = vector.extract_strided_slice %68 {offsets = [0, 0], sizes = [1, 128], strides = [1, 1]} : vector<2x128xf32> to vector<1x128xf32>
    %70 = vector.broadcast %69 : vector<1x128xf32> to vector<16x128xf32>
    %71 = arith.mulf %47, %70 : vector<16x128xf32>
    %72 = vector.extract_strided_slice %68 {offsets = [1, 0], sizes = [1, 128], strides = [1, 1]} : vector<2x128xf32> to vector<1x128xf32>
    %73 = vector.broadcast %72 : vector<1x128xf32> to vector<16x128xf32>
    %74 = arith.addf %71, %73 : vector<16x128xf32>
    %cst_35 = arith.constant 0.000000e+00 : f32
    %75 = vector.broadcast %cst_35 : f32 to vector<16x128xf32>
    %76 = arith.maximumf %74, %75 : vector<16x128xf32>
    %77 = arith.truncf %76 : vector<16x128xf32> to vector<16x128xbf16>
    %c0_36 = arith.constant 0 : index
    %c0_37 = arith.constant 0 : index
    %c0_38 = arith.constant 0 : index
    %78 = vector.load %arg5[%c0_36, %c0_37, %c0_38] : memref<1x16x128xbf16, #tpu.memory_space<vmem>>, vector<1x16x128xbf16>
    %79 = vector.shape_cast %78 : vector<1x16x128xbf16> to vector<16x128xbf16>
    %80 = vector.shape_cast %77 : vector<16x128xbf16> to vector<1x16x128xbf16>
    tpu.vector_store %arg5[%c0_36, %c0_37, %c0_38], %80 {strides = array<i32>} : memref<1x16x128xbf16, #tpu.memory_space<vmem>>, vector<1x16x128xbf16>,
    return
  }
  func.func @transform_0(%arg0: i32) -> (i32, i32, i32) {
    %c0_i32 = arith.constant 0 : i32
    %c0_i32_0 = arith.constant 0 : i32
    %c0_i32_1 = arith.constant 0 : i32
    return %arg0, %c0_i32, %c0_i32_0 : i32, i32, i32
  }
  func.func @transform_1(%arg0: i32) -> (i32, i32, i32) {
    %c0_i32 = arith.constant 0 : i32
    %c0_i32_0 = arith.constant 0 : i32
    %c0_i32_1 = arith.constant 0 : i32
    %c0_i32_2 = arith.constant 0 : i32
    return %c0_i32, %c0_i32_0, %c0_i32_1 : i32, i32, i32
  }
  func.func @transform_2(%arg0: i32) -> (i32, i32) {
    %c0_i32 = arith.constant 0 : i32
    %c0_i32_0 = arith.constant 0 : i32
    %c0_i32_1 = arith.constant 0 : i32
    return %c0_i32, %c0_i32_0 : i32, i32
  }
  func.func @transform_3(%arg0: i32) -> (i32, i32) {
    %c0_i32 = arith.constant 0 : i32
    %c0_i32_0 = arith.constant 0 : i32
    %c0_i32_1 = arith.constant 0 : i32
    return %c0_i32, %c0_i32_0 : i32, i32
  }
  func.func @transform_4(%arg0: i32) -> (i32, i32, i32) {
    %c0_i32 = arith.constant 0 : i32
    %c0_i32_0 = arith.constant 0 : i32
    %c0_i32_1 = arith.constant 0 : i32
    return %arg0, %c0_i32, %c0_i32_0 : i32, i32, i32
  }
}

module attributes {stable_mosaic.version = 11 : i64} {
  func.func @_conv_layer_kernel(%arg0: i32, %arg1: memref<1x8x256xbf16, #tpu.memory_space<vmem>>, %arg2: memref<3x256x128xbf16, #tpu.memory_space<vmem>>, %arg3: memref<128x16xf32, #tpu.memory_space<vmem>>, %arg4: memref<16x128xf32, #tpu.memory_space<vmem>>, %arg5: memref<1x8x128xbf16, #tpu.memory_space<vmem>>) attributes {dimension_semantics = [#tpu.dimension_semantics<parallel>], iteration_bounds = array<i64: 2>, scalar_prefetch = 0 : i64, scratch_operands = 0 : i64, tpu.core_type = #tpu.core_type<tc>, window_params = [{transform_indices = @transform_0, window_bounds = array<i64: 1, 8, 256>}, {pipeline_mode = #tpu.pipeline_mode<synchronous>, transform_indices = @transform_1, window_bounds = array<i64: 3, 256, 128>}, {pipeline_mode = #tpu.pipeline_mode<synchronous>, transform_indices = @transform_2, window_bounds = array<i64: 128, 16>}, {pipeline_mode = #tpu.pipeline_mode<synchronous>, transform_indices = @transform_3, window_bounds = array<i64: 16, 128>}, {transform_indices = @transform_4, window_bounds = array<i64: 1, 8, 128>}]} {
    %c0 = arith.constant 0 : index
    %c0_0 = arith.constant 0 : index
    %c0_1 = arith.constant 0 : index
    %0 = vector.load %arg1[%c0, %c0_0, %c0_1] : memref<1x8x256xbf16, #tpu.memory_space<vmem>>, vector<1x8x256xbf16>
    %1 = vector.shape_cast %0 : vector<1x8x256xbf16> to vector<8x256xbf16>
    %2 = vector.extract_strided_slice %1 {offsets = [0, 0], sizes = [1, 256], strides = [1, 1]} : vector<8x256xbf16> to vector<1x256xbf16>
    %3 = vector.extract_strided_slice %1 {offsets = [7, 0], sizes = [1, 256], strides = [1, 1]} : vector<8x256xbf16> to vector<1x256xbf16>
    %4 = tpu.concatenate %2, %1, %3 in 0 : vector<1x256xbf16>, vector<8x256xbf16>, vector<1x256xbf16> -> vector<10x256xbf16>
    %c0_2 = arith.constant 0 : index
    %c0_3 = arith.constant 0 : index
    %c0_4 = arith.constant 0 : index
    %5 = vector.load %arg2[%c0_2, %c0_3, %c0_4] : memref<3x256x128xbf16, #tpu.memory_space<vmem>>, vector<1x256x128xbf16>
    %6 = vector.shape_cast %5 : vector<1x256x128xbf16> to vector<256x128xbf16>
    %c1 = arith.constant 1 : index
    %c0_5 = arith.constant 0 : index
    %c0_6 = arith.constant 0 : index
    %7 = vector.load %arg2[%c1, %c0_5, %c0_6] : memref<3x256x128xbf16, #tpu.memory_space<vmem>>, vector<1x256x128xbf16>
    %8 = vector.shape_cast %7 : vector<1x256x128xbf16> to vector<256x128xbf16>
    %c2 = arith.constant 2 : index
    %c0_7 = arith.constant 0 : index
    %c0_8 = arith.constant 0 : index
    %9 = vector.load %arg2[%c2, %c0_7, %c0_8] : memref<3x256x128xbf16, #tpu.memory_space<vmem>>, vector<1x256x128xbf16>
    %10 = vector.shape_cast %9 : vector<1x256x128xbf16> to vector<256x128xbf16>
    %c0_9 = arith.constant 0 : index
    %c0_10 = arith.constant 0 : index
    %11 = vector.load %arg3[%c0_9, %c0_10] : memref<128x16xf32, #tpu.memory_space<vmem>>, vector<128x16xf32>
    %c0_11 = arith.constant 0 : index
    %c0_12 = arith.constant 0 : index
    %12 = vector.load %arg4[%c0_11, %c0_12] : memref<16x128xf32, #tpu.memory_space<vmem>>, vector<16x128xf32>
    %cst = arith.constant 0.000000e+00 : f32
    %13 = vector.broadcast %cst : f32 to vector<8x128xf32>
    %14 = vector.extract_strided_slice %4 {offsets = [0, 0], sizes = [8, 256], strides = [1, 1]} : vector<10x256xbf16> to vector<8x256xbf16>
    %cst_13 = arith.constant dense<0.000000e+00> : vector<8x128xf32>
    %15 = tpu.matmul %14, %6, %cst_13 {dimension_numbers = #tpu.dot_dimension_numbers<[1], [0], [0], [1], [0, 0, 1, 1], [], []>} : vector<8x256xbf16>, vector<256x128xbf16>, vector<8x128xf32> -> vector<8x128xf32>
    %16 = arith.addf %13, %15 : vector<8x128xf32>
    %17 = vector.extract_strided_slice %4 {offsets = [1, 0], sizes = [8, 256], strides = [1, 1]} : vector<10x256xbf16> to vector<8x256xbf16>
    %cst_14 = arith.constant dense<0.000000e+00> : vector<8x128xf32>
    %18 = tpu.matmul %17, %8, %cst_14 {dimension_numbers = #tpu.dot_dimension_numbers<[1], [0], [0], [1], [0, 0, 1, 1], [], []>} : vector<8x256xbf16>, vector<256x128xbf16>, vector<8x128xf32> -> vector<8x128xf32>
    %19 = arith.addf %16, %18 : vector<8x128xf32>
    %20 = vector.extract_strided_slice %4 {offsets = [2, 0], sizes = [8, 256], strides = [1, 1]} : vector<10x256xbf16> to vector<8x256xbf16>
    %cst_15 = arith.constant dense<0.000000e+00> : vector<8x128xf32>
    %21 = tpu.matmul %20, %10, %cst_15 {dimension_numbers = #tpu.dot_dimension_numbers<[1], [0], [0], [1], [0, 0, 1, 1], [], []>} : vector<8x256xbf16>, vector<256x128xbf16>, vector<8x128xf32> -> vector<8x128xf32>
    %22 = arith.addf %19, %21 : vector<8x128xf32>
    %cst_16 = arith.constant dense<0.000000e+00> : vector<128xf32>
    %23 = vector.multi_reduction <add>, %22, %cst_16 [0] : vector<8x128xf32> to vector<128xf32>
    %24 = vector.shape_cast %23 : vector<128xf32> to vector<1x128xf32>
    %25 = arith.mulf %22, %22 : vector<8x128xf32>
    %cst_17 = arith.constant dense<0.000000e+00> : vector<128xf32>
    %26 = vector.multi_reduction <add>, %25, %cst_17 [0] : vector<8x128xf32> to vector<128xf32>
    %27 = vector.shape_cast %26 : vector<128xf32> to vector<1x128xf32>
    %28 = tpu.concatenate %24, %27 in 0 : vector<1x128xf32>, vector<1x128xf32> -> vector<2x128xf32>
    %cst_18 = arith.constant dense<0.000000e+00> : vector<2x16xf32>
    %29 = tpu.matmul %28, %11, %cst_18 {dimension_numbers = #tpu.dot_dimension_numbers<[1], [0], [0], [1], [0, 0, 1, 1], [], []>} : vector<2x128xf32>, vector<128x16xf32>, vector<2x16xf32> -> vector<2x16xf32>
    %cst_19 = arith.constant 1.562500e-02 : f32
    %30 = vector.broadcast %cst_19 : f32 to vector<2x16xf32>
    %31 = arith.mulf %29, %30 : vector<2x16xf32>
    %32 = vector.extract_strided_slice %31 {offsets = [0, 0], sizes = [1, 16], strides = [1, 1]} : vector<2x16xf32> to vector<1x16xf32>
    %33 = vector.extract_strided_slice %31 {offsets = [1, 0], sizes = [1, 16], strides = [1, 1]} : vector<2x16xf32> to vector<1x16xf32>
    %34 = arith.mulf %32, %32 : vector<1x16xf32>
    %35 = arith.subf %33, %34 : vector<1x16xf32>
    %cst_20 = arith.constant 9.99999974E-6 : f32
    %36 = vector.broadcast %cst_20 : f32 to vector<1x16xf32>
    %37 = arith.addf %35, %36 : vector<1x16xf32>
    %38 = math.rsqrt %37 : vector<1x16xf32>
    %cst_21 = arith.constant 0.000000e+00 : f32
    %39 = vector.broadcast %cst_21 : f32 to vector<1x16xf32>
    %40 = arith.subf %39, %32 : vector<1x16xf32>
    %41 = arith.mulf %40, %38 : vector<1x16xf32>
    %42 = tpu.concatenate %38, %41 in 0 : vector<1x16xf32>, vector<1x16xf32> -> vector<2x16xf32>
    %cst_22 = arith.constant dense<0.000000e+00> : vector<2x128xf32>
    %43 = tpu.matmul %42, %12, %cst_22 {dimension_numbers = #tpu.dot_dimension_numbers<[1], [0], [0], [1], [0, 0, 1, 1], [], []>} : vector<2x16xf32>, vector<16x128xf32>, vector<2x128xf32> -> vector<2x128xf32>
    %44 = vector.extract_strided_slice %43 {offsets = [0, 0], sizes = [1, 128], strides = [1, 1]} : vector<2x128xf32> to vector<1x128xf32>
    %45 = vector.broadcast %44 : vector<1x128xf32> to vector<8x128xf32>
    %46 = arith.mulf %22, %45 : vector<8x128xf32>
    %47 = vector.extract_strided_slice %43 {offsets = [1, 0], sizes = [1, 128], strides = [1, 1]} : vector<2x128xf32> to vector<1x128xf32>
    %48 = vector.broadcast %47 : vector<1x128xf32> to vector<8x128xf32>
    %49 = arith.addf %46, %48 : vector<8x128xf32>
    %cst_23 = arith.constant 0.000000e+00 : f32
    %50 = vector.broadcast %cst_23 : f32 to vector<8x128xf32>
    %51 = arith.maximumf %49, %50 : vector<8x128xf32>
    %52 = arith.truncf %51 : vector<8x128xf32> to vector<8x128xbf16>
    %c0_24 = arith.constant 0 : index
    %c0_25 = arith.constant 0 : index
    %c0_26 = arith.constant 0 : index
    %53 = vector.load %arg5[%c0_24, %c0_25, %c0_26] : memref<1x8x128xbf16, #tpu.memory_space<vmem>>, vector<1x8x128xbf16>
    %54 = vector.shape_cast %53 : vector<1x8x128xbf16> to vector<8x128xbf16>
    %55 = vector.shape_cast %52 : vector<8x128xbf16> to vector<1x8x128xbf16>
    tpu.vector_store %arg5[%c0_24, %c0_25, %c0_26], %55 {strides = array<i32>} : memref<1x8x128xbf16, #tpu.memory_space<vmem>>, vector<1x8x128xbf16>,
    return
  }
  func.func @transform_0(%arg0: i32) -> (i32, i32, i32) {
    %c0_i32 = arith.constant 0 : i32
    %c0_i32_0 = arith.constant 0 : i32
    %c0_i32_1 = arith.constant 0 : i32
    return %arg0, %c0_i32, %c0_i32_0 : i32, i32, i32
  }
  func.func @transform_1(%arg0: i32) -> (i32, i32, i32) {
    %c0_i32 = arith.constant 0 : i32
    %c0_i32_0 = arith.constant 0 : i32
    %c0_i32_1 = arith.constant 0 : i32
    %c0_i32_2 = arith.constant 0 : i32
    return %c0_i32, %c0_i32_0, %c0_i32_1 : i32, i32, i32
  }
  func.func @transform_2(%arg0: i32) -> (i32, i32) {
    %c0_i32 = arith.constant 0 : i32
    %c0_i32_0 = arith.constant 0 : i32
    %c0_i32_1 = arith.constant 0 : i32
    return %c0_i32, %c0_i32_0 : i32, i32
  }
  func.func @transform_3(%arg0: i32) -> (i32, i32) {
    %c0_i32 = arith.constant 0 : i32
    %c0_i32_0 = arith.constant 0 : i32
    %c0_i32_1 = arith.constant 0 : i32
    return %c0_i32, %c0_i32_0 : i32, i32
  }
  func.func @transform_4(%arg0: i32) -> (i32, i32, i32) {
    %c0_i32 = arith.constant 0 : i32
    %c0_i32_0 = arith.constant 0 : i32
    %c0_i32_1 = arith.constant 0 : i32
    return %arg0, %c0_i32, %c0_i32_0 : i32, i32, i32
  }
}

module attributes {stable_mosaic.version = 11 : i64} {
  func.func @_conv_layer_kernel(%arg0: i32, %arg1: memref<1x4x256xbf16, #tpu.memory_space<vmem>>, %arg2: memref<3x256x128xbf16, #tpu.memory_space<vmem>>, %arg3: memref<128x32xf32, #tpu.memory_space<vmem>>, %arg4: memref<32x128xf32, #tpu.memory_space<vmem>>, %arg5: memref<1x4x128xbf16, #tpu.memory_space<vmem>>) attributes {dimension_semantics = [#tpu.dimension_semantics<parallel>], iteration_bounds = array<i64: 2>, scalar_prefetch = 0 : i64, scratch_operands = 0 : i64, tpu.core_type = #tpu.core_type<tc>, window_params = [{transform_indices = @transform_0, window_bounds = array<i64: 1, 4, 256>}, {pipeline_mode = #tpu.pipeline_mode<synchronous>, transform_indices = @transform_1, window_bounds = array<i64: 3, 256, 128>}, {pipeline_mode = #tpu.pipeline_mode<synchronous>, transform_indices = @transform_2, window_bounds = array<i64: 128, 32>}, {pipeline_mode = #tpu.pipeline_mode<synchronous>, transform_indices = @transform_3, window_bounds = array<i64: 32, 128>}, {transform_indices = @transform_4, window_bounds = array<i64: 1, 4, 128>}]} {
    %c0 = arith.constant 0 : index
    %c0_0 = arith.constant 0 : index
    %c0_1 = arith.constant 0 : index
    %0 = vector.load %arg1[%c0, %c0_0, %c0_1] : memref<1x4x256xbf16, #tpu.memory_space<vmem>>, vector<1x4x256xbf16>
    %1 = vector.shape_cast %0 : vector<1x4x256xbf16> to vector<4x256xbf16>
    %2 = vector.extract_strided_slice %1 {offsets = [0, 0], sizes = [1, 256], strides = [1, 1]} : vector<4x256xbf16> to vector<1x256xbf16>
    %3 = vector.extract_strided_slice %1 {offsets = [3, 0], sizes = [1, 256], strides = [1, 1]} : vector<4x256xbf16> to vector<1x256xbf16>
    %4 = tpu.concatenate %2, %1, %3 in 0 : vector<1x256xbf16>, vector<4x256xbf16>, vector<1x256xbf16> -> vector<6x256xbf16>
    %c0_2 = arith.constant 0 : index
    %c0_3 = arith.constant 0 : index
    %c0_4 = arith.constant 0 : index
    %5 = vector.load %arg2[%c0_2, %c0_3, %c0_4] : memref<3x256x128xbf16, #tpu.memory_space<vmem>>, vector<1x256x128xbf16>
    %6 = vector.shape_cast %5 : vector<1x256x128xbf16> to vector<256x128xbf16>
    %c1 = arith.constant 1 : index
    %c0_5 = arith.constant 0 : index
    %c0_6 = arith.constant 0 : index
    %7 = vector.load %arg2[%c1, %c0_5, %c0_6] : memref<3x256x128xbf16, #tpu.memory_space<vmem>>, vector<1x256x128xbf16>
    %8 = vector.shape_cast %7 : vector<1x256x128xbf16> to vector<256x128xbf16>
    %c2 = arith.constant 2 : index
    %c0_7 = arith.constant 0 : index
    %c0_8 = arith.constant 0 : index
    %9 = vector.load %arg2[%c2, %c0_7, %c0_8] : memref<3x256x128xbf16, #tpu.memory_space<vmem>>, vector<1x256x128xbf16>
    %10 = vector.shape_cast %9 : vector<1x256x128xbf16> to vector<256x128xbf16>
    %c0_9 = arith.constant 0 : index
    %c0_10 = arith.constant 0 : index
    %11 = vector.load %arg3[%c0_9, %c0_10] : memref<128x32xf32, #tpu.memory_space<vmem>>, vector<128x32xf32>
    %c0_11 = arith.constant 0 : index
    %c0_12 = arith.constant 0 : index
    %12 = vector.load %arg4[%c0_11, %c0_12] : memref<32x128xf32, #tpu.memory_space<vmem>>, vector<32x128xf32>
    %cst = arith.constant 0.000000e+00 : f32
    %13 = vector.broadcast %cst : f32 to vector<4x128xf32>
    %14 = vector.extract_strided_slice %4 {offsets = [0, 0], sizes = [4, 256], strides = [1, 1]} : vector<6x256xbf16> to vector<4x256xbf16>
    %cst_13 = arith.constant dense<0.000000e+00> : vector<4x128xf32>
    %15 = tpu.matmul %14, %6, %cst_13 {dimension_numbers = #tpu.dot_dimension_numbers<[1], [0], [0], [1], [0, 0, 1, 1], [], []>} : vector<4x256xbf16>, vector<256x128xbf16>, vector<4x128xf32> -> vector<4x128xf32>
    %16 = arith.addf %13, %15 : vector<4x128xf32>
    %17 = vector.extract_strided_slice %4 {offsets = [1, 0], sizes = [4, 256], strides = [1, 1]} : vector<6x256xbf16> to vector<4x256xbf16>
    %cst_14 = arith.constant dense<0.000000e+00> : vector<4x128xf32>
    %18 = tpu.matmul %17, %8, %cst_14 {dimension_numbers = #tpu.dot_dimension_numbers<[1], [0], [0], [1], [0, 0, 1, 1], [], []>} : vector<4x256xbf16>, vector<256x128xbf16>, vector<4x128xf32> -> vector<4x128xf32>
    %19 = arith.addf %16, %18 : vector<4x128xf32>
    %20 = vector.extract_strided_slice %4 {offsets = [2, 0], sizes = [4, 256], strides = [1, 1]} : vector<6x256xbf16> to vector<4x256xbf16>
    %cst_15 = arith.constant dense<0.000000e+00> : vector<4x128xf32>
    %21 = tpu.matmul %20, %10, %cst_15 {dimension_numbers = #tpu.dot_dimension_numbers<[1], [0], [0], [1], [0, 0, 1, 1], [], []>} : vector<4x256xbf16>, vector<256x128xbf16>, vector<4x128xf32> -> vector<4x128xf32>
    %22 = arith.addf %19, %21 : vector<4x128xf32>
    %cst_16 = arith.constant dense<0.000000e+00> : vector<128xf32>
    %23 = vector.multi_reduction <add>, %22, %cst_16 [0] : vector<4x128xf32> to vector<128xf32>
    %24 = vector.shape_cast %23 : vector<128xf32> to vector<1x128xf32>
    %25 = arith.mulf %22, %22 : vector<4x128xf32>
    %cst_17 = arith.constant dense<0.000000e+00> : vector<128xf32>
    %26 = vector.multi_reduction <add>, %25, %cst_17 [0] : vector<4x128xf32> to vector<128xf32>
    %27 = vector.shape_cast %26 : vector<128xf32> to vector<1x128xf32>
    %28 = tpu.concatenate %24, %27 in 0 : vector<1x128xf32>, vector<1x128xf32> -> vector<2x128xf32>
    %cst_18 = arith.constant dense<0.000000e+00> : vector<2x32xf32>
    %29 = tpu.matmul %28, %11, %cst_18 {dimension_numbers = #tpu.dot_dimension_numbers<[1], [0], [0], [1], [0, 0, 1, 1], [], []>} : vector<2x128xf32>, vector<128x32xf32>, vector<2x32xf32> -> vector<2x32xf32>
    %cst_19 = arith.constant 6.250000e-02 : f32
    %30 = vector.broadcast %cst_19 : f32 to vector<2x32xf32>
    %31 = arith.mulf %29, %30 : vector<2x32xf32>
    %32 = vector.extract_strided_slice %31 {offsets = [0, 0], sizes = [1, 32], strides = [1, 1]} : vector<2x32xf32> to vector<1x32xf32>
    %33 = vector.extract_strided_slice %31 {offsets = [1, 0], sizes = [1, 32], strides = [1, 1]} : vector<2x32xf32> to vector<1x32xf32>
    %34 = arith.mulf %32, %32 : vector<1x32xf32>
    %35 = arith.subf %33, %34 : vector<1x32xf32>
    %cst_20 = arith.constant 9.99999974E-6 : f32
    %36 = vector.broadcast %cst_20 : f32 to vector<1x32xf32>
    %37 = arith.addf %35, %36 : vector<1x32xf32>
    %38 = math.rsqrt %37 : vector<1x32xf32>
    %cst_21 = arith.constant 0.000000e+00 : f32
    %39 = vector.broadcast %cst_21 : f32 to vector<1x32xf32>
    %40 = arith.subf %39, %32 : vector<1x32xf32>
    %41 = arith.mulf %40, %38 : vector<1x32xf32>
    %42 = tpu.concatenate %38, %41 in 0 : vector<1x32xf32>, vector<1x32xf32> -> vector<2x32xf32>
    %cst_22 = arith.constant dense<0.000000e+00> : vector<2x128xf32>
    %43 = tpu.matmul %42, %12, %cst_22 {dimension_numbers = #tpu.dot_dimension_numbers<[1], [0], [0], [1], [0, 0, 1, 1], [], []>} : vector<2x32xf32>, vector<32x128xf32>, vector<2x128xf32> -> vector<2x128xf32>
    %44 = vector.extract_strided_slice %43 {offsets = [0, 0], sizes = [1, 128], strides = [1, 1]} : vector<2x128xf32> to vector<1x128xf32>
    %45 = vector.broadcast %44 : vector<1x128xf32> to vector<4x128xf32>
    %46 = arith.mulf %22, %45 : vector<4x128xf32>
    %47 = vector.extract_strided_slice %43 {offsets = [1, 0], sizes = [1, 128], strides = [1, 1]} : vector<2x128xf32> to vector<1x128xf32>
    %48 = vector.broadcast %47 : vector<1x128xf32> to vector<4x128xf32>
    %49 = arith.addf %46, %48 : vector<4x128xf32>
    %cst_23 = arith.constant 0.000000e+00 : f32
    %50 = vector.broadcast %cst_23 : f32 to vector<4x128xf32>
    %51 = arith.maximumf %49, %50 : vector<4x128xf32>
    %52 = arith.truncf %51 : vector<4x128xf32> to vector<4x128xbf16>
    %c0_24 = arith.constant 0 : index
    %c0_25 = arith.constant 0 : index
    %c0_26 = arith.constant 0 : index
    %53 = vector.load %arg5[%c0_24, %c0_25, %c0_26] : memref<1x4x128xbf16, #tpu.memory_space<vmem>>, vector<1x4x128xbf16>
    %54 = vector.shape_cast %53 : vector<1x4x128xbf16> to vector<4x128xbf16>
    %55 = vector.shape_cast %52 : vector<4x128xbf16> to vector<1x4x128xbf16>
    tpu.vector_store %arg5[%c0_24, %c0_25, %c0_26], %55 {strides = array<i32>} : memref<1x4x128xbf16, #tpu.memory_space<vmem>>, vector<1x4x128xbf16>,
    return
  }
  func.func @transform_0(%arg0: i32) -> (i32, i32, i32) {
    %c0_i32 = arith.constant 0 : i32
    %c0_i32_0 = arith.constant 0 : i32
    %c0_i32_1 = arith.constant 0 : i32
    return %arg0, %c0_i32, %c0_i32_0 : i32, i32, i32
  }
  func.func @transform_1(%arg0: i32) -> (i32, i32, i32) {
    %c0_i32 = arith.constant 0 : i32
    %c0_i32_0 = arith.constant 0 : i32
    %c0_i32_1 = arith.constant 0 : i32
    %c0_i32_2 = arith.constant 0 : i32
    return %c0_i32, %c0_i32_0, %c0_i32_1 : i32, i32, i32
  }
  func.func @transform_2(%arg0: i32) -> (i32, i32) {
    %c0_i32 = arith.constant 0 : i32
    %c0_i32_0 = arith.constant 0 : i32
    %c0_i32_1 = arith.constant 0 : i32
    return %c0_i32, %c0_i32_0 : i32, i32
  }
  func.func @transform_3(%arg0: i32) -> (i32, i32) {
    %c0_i32 = arith.constant 0 : i32
    %c0_i32_0 = arith.constant 0 : i32
    %c0_i32_1 = arith.constant 0 : i32
    return %c0_i32, %c0_i32_0 : i32, i32
  }
  func.func @transform_4(%arg0: i32) -> (i32, i32, i32) {
    %c0_i32 = arith.constant 0 : i32
    %c0_i32_0 = arith.constant 0 : i32
    %c0_i32_1 = arith.constant 0 : i32
    return %arg0, %c0_i32, %c0_i32_0 : i32, i32, i32
  }
}

module attributes {stable_mosaic.version = 11 : i64} {
  func.func @_res_stage_kernel(%arg0: i32, %arg1: memref<1x4x128xbf16, #tpu.memory_space<vmem>>, %arg2: memref<18x128x128xbf16, #tpu.memory_space<vmem>>, %arg3: memref<128x32xf32, #tpu.memory_space<vmem>>, %arg4: memref<32x128xf32, #tpu.memory_space<vmem>>, %arg5: memref<1x4x128xf32, #tpu.memory_space<vmem>>) attributes {dimension_semantics = [#tpu.dimension_semantics<parallel>], iteration_bounds = array<i64: 2>, scalar_prefetch = 0 : i64, scratch_operands = 0 : i64, tpu.core_type = #tpu.core_type<tc>, window_params = [{transform_indices = @transform_0, window_bounds = array<i64: 1, 4, 128>}, {pipeline_mode = #tpu.pipeline_mode<synchronous>, transform_indices = @transform_1, window_bounds = array<i64: 18, 128, 128>}, {pipeline_mode = #tpu.pipeline_mode<synchronous>, transform_indices = @transform_2, window_bounds = array<i64: 128, 32>}, {pipeline_mode = #tpu.pipeline_mode<synchronous>, transform_indices = @transform_3, window_bounds = array<i64: 32, 128>}, {transform_indices = @transform_4, window_bounds = array<i64: 1, 4, 128>}]} {
    %c0 = arith.constant 0 : index
    %c0_0 = arith.constant 0 : index
    %0 = vector.load %arg3[%c0, %c0_0] : memref<128x32xf32, #tpu.memory_space<vmem>>, vector<128x32xf32>
    %c0_1 = arith.constant 0 : index
    %c0_2 = arith.constant 0 : index
    %1 = vector.load %arg4[%c0_1, %c0_2] : memref<32x128xf32, #tpu.memory_space<vmem>>, vector<32x128xf32>
    %c0_3 = arith.constant 0 : index
    %c0_4 = arith.constant 0 : index
    %c0_5 = arith.constant 0 : index
    %2 = vector.load %arg1[%c0_3, %c0_4, %c0_5] : memref<1x4x128xbf16, #tpu.memory_space<vmem>>, vector<1x4x128xbf16>
    %3 = vector.shape_cast %2 : vector<1x4x128xbf16> to vector<4x128xbf16>
    %4 = arith.extf %3 : vector<4x128xbf16> to vector<4x128xf32>
    %5 = arith.truncf %4 : vector<4x128xf32> to vector<4x128xbf16>
    %6 = vector.extract_strided_slice %5 {offsets = [1, 0], sizes = [1, 128], strides = [1, 1]} : vector<4x128xbf16> to vector<1x128xbf16>
    %7 = vector.extract_strided_slice %5 {offsets = [2, 0], sizes = [1, 128], strides = [1, 1]} : vector<4x128xbf16> to vector<1x128xbf16>
    %8 = tpu.concatenate %6, %5, %7 in 0 : vector<1x128xbf16>, vector<4x128xbf16>, vector<1x128xbf16> -> vector<6x128xbf16>
    %c0_6 = arith.constant 0 : index
    %c0_7 = arith.constant 0 : index
    %c0_8 = arith.constant 0 : index
    %9 = vector.load %arg2[%c0_6, %c0_7, %c0_8] : memref<18x128x128xbf16, #tpu.memory_space<vmem>>, vector<1x128x128xbf16>
    %10 = vector.shape_cast %9 : vector<1x128x128xbf16> to vector<128x128xbf16>
    %c1 = arith.constant 1 : index
    %c0_9 = arith.constant 0 : index
    %c0_10 = arith.constant 0 : index
    %11 = vector.load %arg2[%c1, %c0_9, %c0_10] : memref<18x128x128xbf16, #tpu.memory_space<vmem>>, vector<1x128x128xbf16>
    %12 = vector.shape_cast %11 : vector<1x128x128xbf16> to vector<128x128xbf16>
    %c2 = arith.constant 2 : index
    %c0_11 = arith.constant 0 : index
    %c0_12 = arith.constant 0 : index
    %13 = vector.load %arg2[%c2, %c0_11, %c0_12] : memref<18x128x128xbf16, #tpu.memory_space<vmem>>, vector<1x128x128xbf16>
    %14 = vector.shape_cast %13 : vector<1x128x128xbf16> to vector<128x128xbf16>
    %cst = arith.constant 0.000000e+00 : f32
    %15 = vector.broadcast %cst : f32 to vector<4x128xf32>
    %16 = vector.extract_strided_slice %8 {offsets = [0, 0], sizes = [4, 128], strides = [1, 1]} : vector<6x128xbf16> to vector<4x128xbf16>
    %cst_13 = arith.constant dense<0.000000e+00> : vector<4x128xf32>
    %17 = tpu.matmul %16, %10, %cst_13 {dimension_numbers = #tpu.dot_dimension_numbers<[1], [0], [0], [1], [0, 0, 1, 1], [], []>} : vector<4x128xbf16>, vector<128x128xbf16>, vector<4x128xf32> -> vector<4x128xf32>
    %18 = arith.addf %15, %17 : vector<4x128xf32>
    %19 = vector.extract_strided_slice %8 {offsets = [1, 0], sizes = [4, 128], strides = [1, 1]} : vector<6x128xbf16> to vector<4x128xbf16>
    %cst_14 = arith.constant dense<0.000000e+00> : vector<4x128xf32>
    %20 = tpu.matmul %19, %12, %cst_14 {dimension_numbers = #tpu.dot_dimension_numbers<[1], [0], [0], [1], [0, 0, 1, 1], [], []>} : vector<4x128xbf16>, vector<128x128xbf16>, vector<4x128xf32> -> vector<4x128xf32>
    %21 = arith.addf %18, %20 : vector<4x128xf32>
    %22 = vector.extract_strided_slice %8 {offsets = [2, 0], sizes = [4, 128], strides = [1, 1]} : vector<6x128xbf16> to vector<4x128xbf16>
    %cst_15 = arith.constant dense<0.000000e+00> : vector<4x128xf32>
    %23 = tpu.matmul %22, %14, %cst_15 {dimension_numbers = #tpu.dot_dimension_numbers<[1], [0], [0], [1], [0, 0, 1, 1], [], []>} : vector<4x128xbf16>, vector<128x128xbf16>, vector<4x128xf32> -> vector<4x128xf32>
    %24 = arith.addf %21, %23 : vector<4x128xf32>
    %cst_16 = arith.constant dense<0.000000e+00> : vector<128xf32>
    %25 = vector.multi_reduction <add>, %24, %cst_16 [0] : vector<4x128xf32> to vector<128xf32>
    %26 = vector.shape_cast %25 : vector<128xf32> to vector<1x128xf32>
    %27 = arith.mulf %24, %24 : vector<4x128xf32>
    %cst_17 = arith.constant dense<0.000000e+00> : vector<128xf32>
    %28 = vector.multi_reduction <add>, %27, %cst_17 [0] : vector<4x128xf32> to vector<128xf32>
    %29 = vector.shape_cast %28 : vector<128xf32> to vector<1x128xf32>
    %30 = tpu.concatenate %26, %29 in 0 : vector<1x128xf32>, vector<1x128xf32> -> vector<2x128xf32>
    %cst_18 = arith.constant dense<0.000000e+00> : vector<2x32xf32>
    %31 = tpu.matmul %30, %0, %cst_18 {dimension_numbers = #tpu.dot_dimension_numbers<[1], [0], [0], [1], [0, 0, 1, 1], [], []>} : vector<2x128xf32>, vector<128x32xf32>, vector<2x32xf32> -> vector<2x32xf32>
    %cst_19 = arith.constant 6.250000e-02 : f32
    %32 = vector.broadcast %cst_19 : f32 to vector<2x32xf32>
    %33 = arith.mulf %31, %32 : vector<2x32xf32>
    %34 = vector.extract_strided_slice %33 {offsets = [0, 0], sizes = [1, 32], strides = [1, 1]} : vector<2x32xf32> to vector<1x32xf32>
    %35 = vector.extract_strided_slice %33 {offsets = [1, 0], sizes = [1, 32], strides = [1, 1]} : vector<2x32xf32> to vector<1x32xf32>
    %36 = arith.mulf %34, %34 : vector<1x32xf32>
    %37 = arith.subf %35, %36 : vector<1x32xf32>
    %cst_20 = arith.constant 9.99999974E-6 : f32
    %38 = vector.broadcast %cst_20 : f32 to vector<1x32xf32>
    %39 = arith.addf %37, %38 : vector<1x32xf32>
    %40 = math.rsqrt %39 : vector<1x32xf32>
    %cst_21 = arith.constant 0.000000e+00 : f32
    %41 = vector.broadcast %cst_21 : f32 to vector<1x32xf32>
    %42 = arith.subf %41, %34 : vector<1x32xf32>
    %43 = arith.mulf %42, %40 : vector<1x32xf32>
    %44 = tpu.concatenate %40, %43 in 0 : vector<1x32xf32>, vector<1x32xf32> -> vector<2x32xf32>
    %cst_22 = arith.constant dense<0.000000e+00> : vector<2x128xf32>
    %45 = tpu.matmul %44, %1, %cst_22 {dimension_numbers = #tpu.dot_dimension_numbers<[1], [0], [0], [1], [0, 0, 1, 1], [], []>} : vector<2x32xf32>, vector<32x128xf32>, vector<2x128xf32> -> vector<2x128xf32>
    %46 = vector.extract_strided_slice %45 {offsets = [0, 0], sizes = [1, 128], strides = [1, 1]} : vector<2x128xf32> to vector<1x128xf32>
    %47 = vector.broadcast %46 : vector<1x128xf32> to vector<4x128xf32>
    %48 = arith.mulf %24, %47 : vector<4x128xf32>
    %49 = vector.extract_strided_slice %45 {offsets = [1, 0], sizes = [1, 128], strides = [1, 1]} : vector<2x128xf32> to vector<1x128xf32>
    %50 = vector.broadcast %49 : vector<1x128xf32> to vector<4x128xf32>
    %51 = arith.addf %48, %50 : vector<4x128xf32>
    %cst_23 = arith.constant 0.000000e+00 : f32
    %52 = vector.broadcast %cst_23 : f32 to vector<4x128xf32>
    %53 = arith.maximumf %51, %52 : vector<4x128xf32>
    %54 = arith.truncf %53 : vector<4x128xf32> to vector<4x128xbf16>
    %55 = vector.extract_strided_slice %54 {offsets = [1, 0], sizes = [1, 128], strides = [1, 1]} : vector<4x128xbf16> to vector<1x128xbf16>
    %56 = vector.extract_strided_slice %54 {offsets = [2, 0], sizes = [1, 128], strides = [1, 1]} : vector<4x128xbf16> to vector<1x128xbf16>
    %57 = tpu.concatenate %55, %54, %56 in 0 : vector<1x128xbf16>, vector<4x128xbf16>, vector<1x128xbf16> -> vector<6x128xbf16>
    %c3 = arith.constant 3 : index
    %c0_24 = arith.constant 0 : index
    %c0_25 = arith.constant 0 : index
    %58 = vector.load %arg2[%c3, %c0_24, %c0_25] : memref<18x128x128xbf16, #tpu.memory_space<vmem>>, vector<1x128x128xbf16>
    %59 = vector.shape_cast %58 : vector<1x128x128xbf16> to vector<128x128xbf16>
    %c4 = arith.constant 4 : index
    %c0_26 = arith.constant 0 : index
    %c0_27 = arith.constant 0 : index
    %60 = vector.load %arg2[%c4, %c0_26, %c0_27] : memref<18x128x128xbf16, #tpu.memory_space<vmem>>, vector<1x128x128xbf16>
    %61 = vector.shape_cast %60 : vector<1x128x128xbf16> to vector<128x128xbf16>
    %c5 = arith.constant 5 : index
    %c0_28 = arith.constant 0 : index
    %c0_29 = arith.constant 0 : index
    %62 = vector.load %arg2[%c5, %c0_28, %c0_29] : memref<18x128x128xbf16, #tpu.memory_space<vmem>>, vector<1x128x128xbf16>
    %63 = vector.shape_cast %62 : vector<1x128x128xbf16> to vector<128x128xbf16>
    %cst_30 = arith.constant 0.000000e+00 : f32
    %64 = vector.broadcast %cst_30 : f32 to vector<4x128xf32>
    %65 = vector.extract_strided_slice %57 {offsets = [0, 0], sizes = [4, 128], strides = [1, 1]} : vector<6x128xbf16> to vector<4x128xbf16>
    %cst_31 = arith.constant dense<0.000000e+00> : vector<4x128xf32>
    %66 = tpu.matmul %65, %59, %cst_31 {dimension_numbers = #tpu.dot_dimension_numbers<[1], [0], [0], [1], [0, 0, 1, 1], [], []>} : vector<4x128xbf16>, vector<128x128xbf16>, vector<4x128xf32> -> vector<4x128xf32>
    %67 = arith.addf %64, %66 : vector<4x128xf32>
    %68 = vector.extract_strided_slice %57 {offsets = [1, 0], sizes = [4, 128], strides = [1, 1]} : vector<6x128xbf16> to vector<4x128xbf16>
    %cst_32 = arith.constant dense<0.000000e+00> : vector<4x128xf32>
    %69 = tpu.matmul %68, %61, %cst_32 {dimension_numbers = #tpu.dot_dimension_numbers<[1], [0], [0], [1], [0, 0, 1, 1], [], []>} : vector<4x128xbf16>, vector<128x128xbf16>, vector<4x128xf32> -> vector<4x128xf32>
    %70 = arith.addf %67, %69 : vector<4x128xf32>
    %71 = vector.extract_strided_slice %57 {offsets = [2, 0], sizes = [4, 128], strides = [1, 1]} : vector<6x128xbf16> to vector<4x128xbf16>
    %cst_33 = arith.constant dense<0.000000e+00> : vector<4x128xf32>
    %72 = tpu.matmul %71, %63, %cst_33 {dimension_numbers = #tpu.dot_dimension_numbers<[1], [0], [0], [1], [0, 0, 1, 1], [], []>} : vector<4x128xbf16>, vector<128x128xbf16>, vector<4x128xf32> -> vector<4x128xf32>
    %73 = arith.addf %70, %72 : vector<4x128xf32>
    %cst_34 = arith.constant dense<0.000000e+00> : vector<128xf32>
    %74 = vector.multi_reduction <add>, %73, %cst_34 [0] : vector<4x128xf32> to vector<128xf32>
    %75 = vector.shape_cast %74 : vector<128xf32> to vector<1x128xf32>
    %76 = arith.mulf %73, %73 : vector<4x128xf32>
    %cst_35 = arith.constant dense<0.000000e+00> : vector<128xf32>
    %77 = vector.multi_reduction <add>, %76, %cst_35 [0] : vector<4x128xf32> to vector<128xf32>
    %78 = vector.shape_cast %77 : vector<128xf32> to vector<1x128xf32>
    %79 = tpu.concatenate %75, %78 in 0 : vector<1x128xf32>, vector<1x128xf32> -> vector<2x128xf32>
    %cst_36 = arith.constant dense<0.000000e+00> : vector<2x32xf32>
    %80 = tpu.matmul %79, %0, %cst_36 {dimension_numbers = #tpu.dot_dimension_numbers<[1], [0], [0], [1], [0, 0, 1, 1], [], []>} : vector<2x128xf32>, vector<128x32xf32>, vector<2x32xf32> -> vector<2x32xf32>
    %cst_37 = arith.constant 6.250000e-02 : f32
    %81 = vector.broadcast %cst_37 : f32 to vector<2x32xf32>
    %82 = arith.mulf %80, %81 : vector<2x32xf32>
    %83 = vector.extract_strided_slice %82 {offsets = [0, 0], sizes = [1, 32], strides = [1, 1]} : vector<2x32xf32> to vector<1x32xf32>
    %84 = vector.extract_strided_slice %82 {offsets = [1, 0], sizes = [1, 32], strides = [1, 1]} : vector<2x32xf32> to vector<1x32xf32>
    %85 = arith.mulf %83, %83 : vector<1x32xf32>
    %86 = arith.subf %84, %85 : vector<1x32xf32>
    %cst_38 = arith.constant 9.99999974E-6 : f32
    %87 = vector.broadcast %cst_38 : f32 to vector<1x32xf32>
    %88 = arith.addf %86, %87 : vector<1x32xf32>
    %89 = math.rsqrt %88 : vector<1x32xf32>
    %cst_39 = arith.constant 0.000000e+00 : f32
    %90 = vector.broadcast %cst_39 : f32 to vector<1x32xf32>
    %91 = arith.subf %90, %83 : vector<1x32xf32>
    %92 = arith.mulf %91, %89 : vector<1x32xf32>
    %93 = tpu.concatenate %89, %92 in 0 : vector<1x32xf32>, vector<1x32xf32> -> vector<2x32xf32>
    %cst_40 = arith.constant dense<0.000000e+00> : vector<2x128xf32>
    %94 = tpu.matmul %93, %1, %cst_40 {dimension_numbers = #tpu.dot_dimension_numbers<[1], [0], [0], [1], [0, 0, 1, 1], [], []>} : vector<2x32xf32>, vector<32x128xf32>, vector<2x128xf32> -> vector<2x128xf32>
    %95 = vector.extract_strided_slice %94 {offsets = [0, 0], sizes = [1, 128], strides = [1, 1]} : vector<2x128xf32> to vector<1x128xf32>
    %96 = vector.broadcast %95 : vector<1x128xf32> to vector<4x128xf32>
    %97 = arith.mulf %73, %96 : vector<4x128xf32>
    %98 = vector.extract_strided_slice %94 {offsets = [1, 0], sizes = [1, 128], strides = [1, 1]} : vector<2x128xf32> to vector<1x128xf32>
    %99 = vector.broadcast %98 : vector<1x128xf32> to vector<4x128xf32>
    %100 = arith.addf %97, %99 : vector<4x128xf32>
    %101 = arith.addf %100, %4 : vector<4x128xf32>
    %102 = arith.truncf %101 : vector<4x128xf32> to vector<4x128xbf16>
    %103 = vector.extract_strided_slice %102 {offsets = [1, 0], sizes = [1, 128], strides = [1, 1]} : vector<4x128xbf16> to vector<1x128xbf16>
    %104 = vector.extract_strided_slice %102 {offsets = [2, 0], sizes = [1, 128], strides = [1, 1]} : vector<4x128xbf16> to vector<1x128xbf16>
    %105 = tpu.concatenate %103, %102, %104 in 0 : vector<1x128xbf16>, vector<4x128xbf16>, vector<1x128xbf16> -> vector<6x128xbf16>
    %c6 = arith.constant 6 : index
    %c0_41 = arith.constant 0 : index
    %c0_42 = arith.constant 0 : index
    %106 = vector.load %arg2[%c6, %c0_41, %c0_42] : memref<18x128x128xbf16, #tpu.memory_space<vmem>>, vector<1x128x128xbf16>
    %107 = vector.shape_cast %106 : vector<1x128x128xbf16> to vector<128x128xbf16>
    %c7 = arith.constant 7 : index
    %c0_43 = arith.constant 0 : index
    %c0_44 = arith.constant 0 : index
    %108 = vector.load %arg2[%c7, %c0_43, %c0_44] : memref<18x128x128xbf16, #tpu.memory_space<vmem>>, vector<1x128x128xbf16>
    %109 = vector.shape_cast %108 : vector<1x128x128xbf16> to vector<128x128xbf16>
    %c8 = arith.constant 8 : index
    %c0_45 = arith.constant 0 : index
    %c0_46 = arith.constant 0 : index
    %110 = vector.load %arg2[%c8, %c0_45, %c0_46] : memref<18x128x128xbf16, #tpu.memory_space<vmem>>, vector<1x128x128xbf16>
    %111 = vector.shape_cast %110 : vector<1x128x128xbf16> to vector<128x128xbf16>
    %cst_47 = arith.constant 0.000000e+00 : f32
    %112 = vector.broadcast %cst_47 : f32 to vector<4x128xf32>
    %113 = vector.extract_strided_slice %105 {offsets = [0, 0], sizes = [4, 128], strides = [1, 1]} : vector<6x128xbf16> to vector<4x128xbf16>
    %cst_48 = arith.constant dense<0.000000e+00> : vector<4x128xf32>
    %114 = tpu.matmul %113, %107, %cst_48 {dimension_numbers = #tpu.dot_dimension_numbers<[1], [0], [0], [1], [0, 0, 1, 1], [], []>} : vector<4x128xbf16>, vector<128x128xbf16>, vector<4x128xf32> -> vector<4x128xf32>
    %115 = arith.addf %112, %114 : vector<4x128xf32>
    %116 = vector.extract_strided_slice %105 {offsets = [1, 0], sizes = [4, 128], strides = [1, 1]} : vector<6x128xbf16> to vector<4x128xbf16>
    %cst_49 = arith.constant dense<0.000000e+00> : vector<4x128xf32>
    %117 = tpu.matmul %116, %109, %cst_49 {dimension_numbers = #tpu.dot_dimension_numbers<[1], [0], [0], [1], [0, 0, 1, 1], [], []>} : vector<4x128xbf16>, vector<128x128xbf16>, vector<4x128xf32> -> vector<4x128xf32>
    %118 = arith.addf %115, %117 : vector<4x128xf32>
    %119 = vector.extract_strided_slice %105 {offsets = [2, 0], sizes = [4, 128], strides = [1, 1]} : vector<6x128xbf16> to vector<4x128xbf16>
    %cst_50 = arith.constant dense<0.000000e+00> : vector<4x128xf32>
    %120 = tpu.matmul %119, %111, %cst_50 {dimension_numbers = #tpu.dot_dimension_numbers<[1], [0], [0], [1], [0, 0, 1, 1], [], []>} : vector<4x128xbf16>, vector<128x128xbf16>, vector<4x128xf32> -> vector<4x128xf32>
    %121 = arith.addf %118, %120 : vector<4x128xf32>
    %cst_51 = arith.constant dense<0.000000e+00> : vector<128xf32>
    %122 = vector.multi_reduction <add>, %121, %cst_51 [0] : vector<4x128xf32> to vector<128xf32>
    %123 = vector.shape_cast %122 : vector<128xf32> to vector<1x128xf32>
    %124 = arith.mulf %121, %121 : vector<4x128xf32>
    %cst_52 = arith.constant dense<0.000000e+00> : vector<128xf32>
    %125 = vector.multi_reduction <add>, %124, %cst_52 [0] : vector<4x128xf32> to vector<128xf32>
    %126 = vector.shape_cast %125 : vector<128xf32> to vector<1x128xf32>
    %127 = tpu.concatenate %123, %126 in 0 : vector<1x128xf32>, vector<1x128xf32> -> vector<2x128xf32>
    %cst_53 = arith.constant dense<0.000000e+00> : vector<2x32xf32>
    %128 = tpu.matmul %127, %0, %cst_53 {dimension_numbers = #tpu.dot_dimension_numbers<[1], [0], [0], [1], [0, 0, 1, 1], [], []>} : vector<2x128xf32>, vector<128x32xf32>, vector<2x32xf32> -> vector<2x32xf32>
    %cst_54 = arith.constant 6.250000e-02 : f32
    %129 = vector.broadcast %cst_54 : f32 to vector<2x32xf32>
    %130 = arith.mulf %128, %129 : vector<2x32xf32>
    %131 = vector.extract_strided_slice %130 {offsets = [0, 0], sizes = [1, 32], strides = [1, 1]} : vector<2x32xf32> to vector<1x32xf32>
    %132 = vector.extract_strided_slice %130 {offsets = [1, 0], sizes = [1, 32], strides = [1, 1]} : vector<2x32xf32> to vector<1x32xf32>
    %133 = arith.mulf %131, %131 : vector<1x32xf32>
    %134 = arith.subf %132, %133 : vector<1x32xf32>
    %cst_55 = arith.constant 9.99999974E-6 : f32
    %135 = vector.broadcast %cst_55 : f32 to vector<1x32xf32>
    %136 = arith.addf %134, %135 : vector<1x32xf32>
    %137 = math.rsqrt %136 : vector<1x32xf32>
    %cst_56 = arith.constant 0.000000e+00 : f32
    %138 = vector.broadcast %cst_56 : f32 to vector<1x32xf32>
    %139 = arith.subf %138, %131 : vector<1x32xf32>
    %140 = arith.mulf %139, %137 : vector<1x32xf32>
    %141 = tpu.concatenate %137, %140 in 0 : vector<1x32xf32>, vector<1x32xf32> -> vector<2x32xf32>
    %cst_57 = arith.constant dense<0.000000e+00> : vector<2x128xf32>
    %142 = tpu.matmul %141, %1, %cst_57 {dimension_numbers = #tpu.dot_dimension_numbers<[1], [0], [0], [1], [0, 0, 1, 1], [], []>} : vector<2x32xf32>, vector<32x128xf32>, vector<2x128xf32> -> vector<2x128xf32>
    %143 = vector.extract_strided_slice %142 {offsets = [0, 0], sizes = [1, 128], strides = [1, 1]} : vector<2x128xf32> to vector<1x128xf32>
    %144 = vector.broadcast %143 : vector<1x128xf32> to vector<4x128xf32>
    %145 = arith.mulf %121, %144 : vector<4x128xf32>
    %146 = vector.extract_strided_slice %142 {offsets = [1, 0], sizes = [1, 128], strides = [1, 1]} : vector<2x128xf32> to vector<1x128xf32>
    %147 = vector.broadcast %146 : vector<1x128xf32> to vector<4x128xf32>
    %148 = arith.addf %145, %147 : vector<4x128xf32>
    %cst_58 = arith.constant 0.000000e+00 : f32
    %149 = vector.broadcast %cst_58 : f32 to vector<4x128xf32>
    %150 = arith.maximumf %148, %149 : vector<4x128xf32>
    %151 = arith.truncf %150 : vector<4x128xf32> to vector<4x128xbf16>
    %152 = vector.extract_strided_slice %151 {offsets = [1, 0], sizes = [1, 128], strides = [1, 1]} : vector<4x128xbf16> to vector<1x128xbf16>
    %153 = vector.extract_strided_slice %151 {offsets = [2, 0], sizes = [1, 128], strides = [1, 1]} : vector<4x128xbf16> to vector<1x128xbf16>
    %154 = tpu.concatenate %152, %151, %153 in 0 : vector<1x128xbf16>, vector<4x128xbf16>, vector<1x128xbf16> -> vector<6x128xbf16>
    %c9 = arith.constant 9 : index
    %c0_59 = arith.constant 0 : index
    %c0_60 = arith.constant 0 : index
    %155 = vector.load %arg2[%c9, %c0_59, %c0_60] : memref<18x128x128xbf16, #tpu.memory_space<vmem>>, vector<1x128x128xbf16>
    %156 = vector.shape_cast %155 : vector<1x128x128xbf16> to vector<128x128xbf16>
    %c10 = arith.constant 10 : index
    %c0_61 = arith.constant 0 : index
    %c0_62 = arith.constant 0 : index
    %157 = vector.load %arg2[%c10, %c0_61, %c0_62] : memref<18x128x128xbf16, #tpu.memory_space<vmem>>, vector<1x128x128xbf16>
    %158 = vector.shape_cast %157 : vector<1x128x128xbf16> to vector<128x128xbf16>
    %c11 = arith.constant 11 : index
    %c0_63 = arith.constant 0 : index
    %c0_64 = arith.constant 0 : index
    %159 = vector.load %arg2[%c11, %c0_63, %c0_64] : memref<18x128x128xbf16, #tpu.memory_space<vmem>>, vector<1x128x128xbf16>
    %160 = vector.shape_cast %159 : vector<1x128x128xbf16> to vector<128x128xbf16>
    %cst_65 = arith.constant 0.000000e+00 : f32
    %161 = vector.broadcast %cst_65 : f32 to vector<4x128xf32>
    %162 = vector.extract_strided_slice %154 {offsets = [0, 0], sizes = [4, 128], strides = [1, 1]} : vector<6x128xbf16> to vector<4x128xbf16>
    %cst_66 = arith.constant dense<0.000000e+00> : vector<4x128xf32>
    %163 = tpu.matmul %162, %156, %cst_66 {dimension_numbers = #tpu.dot_dimension_numbers<[1], [0], [0], [1], [0, 0, 1, 1], [], []>} : vector<4x128xbf16>, vector<128x128xbf16>, vector<4x128xf32> -> vector<4x128xf32>
    %164 = arith.addf %161, %163 : vector<4x128xf32>
    %165 = vector.extract_strided_slice %154 {offsets = [1, 0], sizes = [4, 128], strides = [1, 1]} : vector<6x128xbf16> to vector<4x128xbf16>
    %cst_67 = arith.constant dense<0.000000e+00> : vector<4x128xf32>
    %166 = tpu.matmul %165, %158, %cst_67 {dimension_numbers = #tpu.dot_dimension_numbers<[1], [0], [0], [1], [0, 0, 1, 1], [], []>} : vector<4x128xbf16>, vector<128x128xbf16>, vector<4x128xf32> -> vector<4x128xf32>
    %167 = arith.addf %164, %166 : vector<4x128xf32>
    %168 = vector.extract_strided_slice %154 {offsets = [2, 0], sizes = [4, 128], strides = [1, 1]} : vector<6x128xbf16> to vector<4x128xbf16>
    %cst_68 = arith.constant dense<0.000000e+00> : vector<4x128xf32>
    %169 = tpu.matmul %168, %160, %cst_68 {dimension_numbers = #tpu.dot_dimension_numbers<[1], [0], [0], [1], [0, 0, 1, 1], [], []>} : vector<4x128xbf16>, vector<128x128xbf16>, vector<4x128xf32> -> vector<4x128xf32>
    %170 = arith.addf %167, %169 : vector<4x128xf32>
    %cst_69 = arith.constant dense<0.000000e+00> : vector<128xf32>
    %171 = vector.multi_reduction <add>, %170, %cst_69 [0] : vector<4x128xf32> to vector<128xf32>
    %172 = vector.shape_cast %171 : vector<128xf32> to vector<1x128xf32>
    %173 = arith.mulf %170, %170 : vector<4x128xf32>
    %cst_70 = arith.constant dense<0.000000e+00> : vector<128xf32>
    %174 = vector.multi_reduction <add>, %173, %cst_70 [0] : vector<4x128xf32> to vector<128xf32>
    %175 = vector.shape_cast %174 : vector<128xf32> to vector<1x128xf32>
    %176 = tpu.concatenate %172, %175 in 0 : vector<1x128xf32>, vector<1x128xf32> -> vector<2x128xf32>
    %cst_71 = arith.constant dense<0.000000e+00> : vector<2x32xf32>
    %177 = tpu.matmul %176, %0, %cst_71 {dimension_numbers = #tpu.dot_dimension_numbers<[1], [0], [0], [1], [0, 0, 1, 1], [], []>} : vector<2x128xf32>, vector<128x32xf32>, vector<2x32xf32> -> vector<2x32xf32>
    %cst_72 = arith.constant 6.250000e-02 : f32
    %178 = vector.broadcast %cst_72 : f32 to vector<2x32xf32>
    %179 = arith.mulf %177, %178 : vector<2x32xf32>
    %180 = vector.extract_strided_slice %179 {offsets = [0, 0], sizes = [1, 32], strides = [1, 1]} : vector<2x32xf32> to vector<1x32xf32>
    %181 = vector.extract_strided_slice %179 {offsets = [1, 0], sizes = [1, 32], strides = [1, 1]} : vector<2x32xf32> to vector<1x32xf32>
    %182 = arith.mulf %180, %180 : vector<1x32xf32>
    %183 = arith.subf %181, %182 : vector<1x32xf32>
    %cst_73 = arith.constant 9.99999974E-6 : f32
    %184 = vector.broadcast %cst_73 : f32 to vector<1x32xf32>
    %185 = arith.addf %183, %184 : vector<1x32xf32>
    %186 = math.rsqrt %185 : vector<1x32xf32>
    %cst_74 = arith.constant 0.000000e+00 : f32
    %187 = vector.broadcast %cst_74 : f32 to vector<1x32xf32>
    %188 = arith.subf %187, %180 : vector<1x32xf32>
    %189 = arith.mulf %188, %186 : vector<1x32xf32>
    %190 = tpu.concatenate %186, %189 in 0 : vector<1x32xf32>, vector<1x32xf32> -> vector<2x32xf32>
    %cst_75 = arith.constant dense<0.000000e+00> : vector<2x128xf32>
    %191 = tpu.matmul %190, %1, %cst_75 {dimension_numbers = #tpu.dot_dimension_numbers<[1], [0], [0], [1], [0, 0, 1, 1], [], []>} : vector<2x32xf32>, vector<32x128xf32>, vector<2x128xf32> -> vector<2x128xf32>
    %192 = vector.extract_strided_slice %191 {offsets = [0, 0], sizes = [1, 128], strides = [1, 1]} : vector<2x128xf32> to vector<1x128xf32>
    %193 = vector.broadcast %192 : vector<1x128xf32> to vector<4x128xf32>
    %194 = arith.mulf %170, %193 : vector<4x128xf32>
    %195 = vector.extract_strided_slice %191 {offsets = [1, 0], sizes = [1, 128], strides = [1, 1]} : vector<2x128xf32> to vector<1x128xf32>
    %196 = vector.broadcast %195 : vector<1x128xf32> to vector<4x128xf32>
    %197 = arith.addf %194, %196 : vector<4x128xf32>
    %198 = arith.addf %197, %101 : vector<4x128xf32>
    %199 = arith.truncf %198 : vector<4x128xf32> to vector<4x128xbf16>
    %200 = vector.extract_strided_slice %199 {offsets = [1, 0], sizes = [1, 128], strides = [1, 1]} : vector<4x128xbf16> to vector<1x128xbf16>
    %201 = vector.extract_strided_slice %199 {offsets = [2, 0], sizes = [1, 128], strides = [1, 1]} : vector<4x128xbf16> to vector<1x128xbf16>
    %202 = tpu.concatenate %200, %199, %201 in 0 : vector<1x128xbf16>, vector<4x128xbf16>, vector<1x128xbf16> -> vector<6x128xbf16>
    %c12 = arith.constant 12 : index
    %c0_76 = arith.constant 0 : index
    %c0_77 = arith.constant 0 : index
    %203 = vector.load %arg2[%c12, %c0_76, %c0_77] : memref<18x128x128xbf16, #tpu.memory_space<vmem>>, vector<1x128x128xbf16>
    %204 = vector.shape_cast %203 : vector<1x128x128xbf16> to vector<128x128xbf16>
    %c13 = arith.constant 13 : index
    %c0_78 = arith.constant 0 : index
    %c0_79 = arith.constant 0 : index
    %205 = vector.load %arg2[%c13, %c0_78, %c0_79] : memref<18x128x128xbf16, #tpu.memory_space<vmem>>, vector<1x128x128xbf16>
    %206 = vector.shape_cast %205 : vector<1x128x128xbf16> to vector<128x128xbf16>
    %c14 = arith.constant 14 : index
    %c0_80 = arith.constant 0 : index
    %c0_81 = arith.constant 0 : index
    %207 = vector.load %arg2[%c14, %c0_80, %c0_81] : memref<18x128x128xbf16, #tpu.memory_space<vmem>>, vector<1x128x128xbf16>
    %208 = vector.shape_cast %207 : vector<1x128x128xbf16> to vector<128x128xbf16>
    %cst_82 = arith.constant 0.000000e+00 : f32
    %209 = vector.broadcast %cst_82 : f32 to vector<4x128xf32>
    %210 = vector.extract_strided_slice %202 {offsets = [0, 0], sizes = [4, 128], strides = [1, 1]} : vector<6x128xbf16> to vector<4x128xbf16>
    %cst_83 = arith.constant dense<0.000000e+00> : vector<4x128xf32>
    %211 = tpu.matmul %210, %204, %cst_83 {dimension_numbers = #tpu.dot_dimension_numbers<[1], [0], [0], [1], [0, 0, 1, 1], [], []>} : vector<4x128xbf16>, vector<128x128xbf16>, vector<4x128xf32> -> vector<4x128xf32>
    %212 = arith.addf %209, %211 : vector<4x128xf32>
    %213 = vector.extract_strided_slice %202 {offsets = [1, 0], sizes = [4, 128], strides = [1, 1]} : vector<6x128xbf16> to vector<4x128xbf16>
    %cst_84 = arith.constant dense<0.000000e+00> : vector<4x128xf32>
    %214 = tpu.matmul %213, %206, %cst_84 {dimension_numbers = #tpu.dot_dimension_numbers<[1], [0], [0], [1], [0, 0, 1, 1], [], []>} : vector<4x128xbf16>, vector<128x128xbf16>, vector<4x128xf32> -> vector<4x128xf32>
    %215 = arith.addf %212, %214 : vector<4x128xf32>
    %216 = vector.extract_strided_slice %202 {offsets = [2, 0], sizes = [4, 128], strides = [1, 1]} : vector<6x128xbf16> to vector<4x128xbf16>
    %cst_85 = arith.constant dense<0.000000e+00> : vector<4x128xf32>
    %217 = tpu.matmul %216, %208, %cst_85 {dimension_numbers = #tpu.dot_dimension_numbers<[1], [0], [0], [1], [0, 0, 1, 1], [], []>} : vector<4x128xbf16>, vector<128x128xbf16>, vector<4x128xf32> -> vector<4x128xf32>
    %218 = arith.addf %215, %217 : vector<4x128xf32>
    %cst_86 = arith.constant dense<0.000000e+00> : vector<128xf32>
    %219 = vector.multi_reduction <add>, %218, %cst_86 [0] : vector<4x128xf32> to vector<128xf32>
    %220 = vector.shape_cast %219 : vector<128xf32> to vector<1x128xf32>
    %221 = arith.mulf %218, %218 : vector<4x128xf32>
    %cst_87 = arith.constant dense<0.000000e+00> : vector<128xf32>
    %222 = vector.multi_reduction <add>, %221, %cst_87 [0] : vector<4x128xf32> to vector<128xf32>
    %223 = vector.shape_cast %222 : vector<128xf32> to vector<1x128xf32>
    %224 = tpu.concatenate %220, %223 in 0 : vector<1x128xf32>, vector<1x128xf32> -> vector<2x128xf32>
    %cst_88 = arith.constant dense<0.000000e+00> : vector<2x32xf32>
    %225 = tpu.matmul %224, %0, %cst_88 {dimension_numbers = #tpu.dot_dimension_numbers<[1], [0], [0], [1], [0, 0, 1, 1], [], []>} : vector<2x128xf32>, vector<128x32xf32>, vector<2x32xf32> -> vector<2x32xf32>
    %cst_89 = arith.constant 6.250000e-02 : f32
    %226 = vector.broadcast %cst_89 : f32 to vector<2x32xf32>
    %227 = arith.mulf %225, %226 : vector<2x32xf32>
    %228 = vector.extract_strided_slice %227 {offsets = [0, 0], sizes = [1, 32], strides = [1, 1]} : vector<2x32xf32> to vector<1x32xf32>
    %229 = vector.extract_strided_slice %227 {offsets = [1, 0], sizes = [1, 32], strides = [1, 1]} : vector<2x32xf32> to vector<1x32xf32>
    %230 = arith.mulf %228, %228 : vector<1x32xf32>
    %231 = arith.subf %229, %230 : vector<1x32xf32>
    %cst_90 = arith.constant 9.99999974E-6 : f32
    %232 = vector.broadcast %cst_90 : f32 to vector<1x32xf32>
    %233 = arith.addf %231, %232 : vector<1x32xf32>
    %234 = math.rsqrt %233 : vector<1x32xf32>
    %cst_91 = arith.constant 0.000000e+00 : f32
    %235 = vector.broadcast %cst_91 : f32 to vector<1x32xf32>
    %236 = arith.subf %235, %228 : vector<1x32xf32>
    %237 = arith.mulf %236, %234 : vector<1x32xf32>
    %238 = tpu.concatenate %234, %237 in 0 : vector<1x32xf32>, vector<1x32xf32> -> vector<2x32xf32>
    %cst_92 = arith.constant dense<0.000000e+00> : vector<2x128xf32>
    %239 = tpu.matmul %238, %1, %cst_92 {dimension_numbers = #tpu.dot_dimension_numbers<[1], [0], [0], [1], [0, 0, 1, 1], [], []>} : vector<2x32xf32>, vector<32x128xf32>, vector<2x128xf32> -> vector<2x128xf32>
    %240 = vector.extract_strided_slice %239 {offsets = [0, 0], sizes = [1, 128], strides = [1, 1]} : vector<2x128xf32> to vector<1x128xf32>
    %241 = vector.broadcast %240 : vector<1x128xf32> to vector<4x128xf32>
    %242 = arith.mulf %218, %241 : vector<4x128xf32>
    %243 = vector.extract_strided_slice %239 {offsets = [1, 0], sizes = [1, 128], strides = [1, 1]} : vector<2x128xf32> to vector<1x128xf32>
    %244 = vector.broadcast %243 : vector<1x128xf32> to vector<4x128xf32>
    %245 = arith.addf %242, %244 : vector<4x128xf32>
    %cst_93 = arith.constant 0.000000e+00 : f32
    %246 = vector.broadcast %cst_93 : f32 to vector<4x128xf32>
    %247 = arith.maximumf %245, %246 : vector<4x128xf32>
    %248 = arith.truncf %247 : vector<4x128xf32> to vector<4x128xbf16>
    %249 = vector.extract_strided_slice %248 {offsets = [1, 0], sizes = [1, 128], strides = [1, 1]} : vector<4x128xbf16> to vector<1x128xbf16>
    %250 = vector.extract_strided_slice %248 {offsets = [2, 0], sizes = [1, 128], strides = [1, 1]} : vector<4x128xbf16> to vector<1x128xbf16>
    %251 = tpu.concatenate %249, %248, %250 in 0 : vector<1x128xbf16>, vector<4x128xbf16>, vector<1x128xbf16> -> vector<6x128xbf16>
    %c15 = arith.constant 15 : index
    %c0_94 = arith.constant 0 : index
    %c0_95 = arith.constant 0 : index
    %252 = vector.load %arg2[%c15, %c0_94, %c0_95] : memref<18x128x128xbf16, #tpu.memory_space<vmem>>, vector<1x128x128xbf16>
    %253 = vector.shape_cast %252 : vector<1x128x128xbf16> to vector<128x128xbf16>
    %c16 = arith.constant 16 : index
    %c0_96 = arith.constant 0 : index
    %c0_97 = arith.constant 0 : index
    %254 = vector.load %arg2[%c16, %c0_96, %c0_97] : memref<18x128x128xbf16, #tpu.memory_space<vmem>>, vector<1x128x128xbf16>
    %255 = vector.shape_cast %254 : vector<1x128x128xbf16> to vector<128x128xbf16>
    %c17 = arith.constant 17 : index
    %c0_98 = arith.constant 0 : index
    %c0_99 = arith.constant 0 : index
    %256 = vector.load %arg2[%c17, %c0_98, %c0_99] : memref<18x128x128xbf16, #tpu.memory_space<vmem>>, vector<1x128x128xbf16>
    %257 = vector.shape_cast %256 : vector<1x128x128xbf16> to vector<128x128xbf16>
    %cst_100 = arith.constant 0.000000e+00 : f32
    %258 = vector.broadcast %cst_100 : f32 to vector<4x128xf32>
    %259 = vector.extract_strided_slice %251 {offsets = [0, 0], sizes = [4, 128], strides = [1, 1]} : vector<6x128xbf16> to vector<4x128xbf16>
    %cst_101 = arith.constant dense<0.000000e+00> : vector<4x128xf32>
    %260 = tpu.matmul %259, %253, %cst_101 {dimension_numbers = #tpu.dot_dimension_numbers<[1], [0], [0], [1], [0, 0, 1, 1], [], []>} : vector<4x128xbf16>, vector<128x128xbf16>, vector<4x128xf32> -> vector<4x128xf32>
    %261 = arith.addf %258, %260 : vector<4x128xf32>
    %262 = vector.extract_strided_slice %251 {offsets = [1, 0], sizes = [4, 128], strides = [1, 1]} : vector<6x128xbf16> to vector<4x128xbf16>
    %cst_102 = arith.constant dense<0.000000e+00> : vector<4x128xf32>
    %263 = tpu.matmul %262, %255, %cst_102 {dimension_numbers = #tpu.dot_dimension_numbers<[1], [0], [0], [1], [0, 0, 1, 1], [], []>} : vector<4x128xbf16>, vector<128x128xbf16>, vector<4x128xf32> -> vector<4x128xf32>
    %264 = arith.addf %261, %263 : vector<4x128xf32>
    %265 = vector.extract_strided_slice %251 {offsets = [2, 0], sizes = [4, 128], strides = [1, 1]} : vector<6x128xbf16> to vector<4x128xbf16>
    %cst_103 = arith.constant dense<0.000000e+00> : vector<4x128xf32>
    %266 = tpu.matmul %265, %257, %cst_103 {dimension_numbers = #tpu.dot_dimension_numbers<[1], [0], [0], [1], [0, 0, 1, 1], [], []>} : vector<4x128xbf16>, vector<128x128xbf16>, vector<4x128xf32> -> vector<4x128xf32>
    %267 = arith.addf %264, %266 : vector<4x128xf32>
    %cst_104 = arith.constant dense<0.000000e+00> : vector<128xf32>
    %268 = vector.multi_reduction <add>, %267, %cst_104 [0] : vector<4x128xf32> to vector<128xf32>
    %269 = vector.shape_cast %268 : vector<128xf32> to vector<1x128xf32>
    %270 = arith.mulf %267, %267 : vector<4x128xf32>
    %cst_105 = arith.constant dense<0.000000e+00> : vector<128xf32>
    %271 = vector.multi_reduction <add>, %270, %cst_105 [0] : vector<4x128xf32> to vector<128xf32>
    %272 = vector.shape_cast %271 : vector<128xf32> to vector<1x128xf32>
    %273 = tpu.concatenate %269, %272 in 0 : vector<1x128xf32>, vector<1x128xf32> -> vector<2x128xf32>
    %cst_106 = arith.constant dense<0.000000e+00> : vector<2x32xf32>
    %274 = tpu.matmul %273, %0, %cst_106 {dimension_numbers = #tpu.dot_dimension_numbers<[1], [0], [0], [1], [0, 0, 1, 1], [], []>} : vector<2x128xf32>, vector<128x32xf32>, vector<2x32xf32> -> vector<2x32xf32>
    %cst_107 = arith.constant 6.250000e-02 : f32
    %275 = vector.broadcast %cst_107 : f32 to vector<2x32xf32>
    %276 = arith.mulf %274, %275 : vector<2x32xf32>
    %277 = vector.extract_strided_slice %276 {offsets = [0, 0], sizes = [1, 32], strides = [1, 1]} : vector<2x32xf32> to vector<1x32xf32>
    %278 = vector.extract_strided_slice %276 {offsets = [1, 0], sizes = [1, 32], strides = [1, 1]} : vector<2x32xf32> to vector<1x32xf32>
    %279 = arith.mulf %277, %277 : vector<1x32xf32>
    %280 = arith.subf %278, %279 : vector<1x32xf32>
    %cst_108 = arith.constant 9.99999974E-6 : f32
    %281 = vector.broadcast %cst_108 : f32 to vector<1x32xf32>
    %282 = arith.addf %280, %281 : vector<1x32xf32>
    %283 = math.rsqrt %282 : vector<1x32xf32>
    %cst_109 = arith.constant 0.000000e+00 : f32
    %284 = vector.broadcast %cst_109 : f32 to vector<1x32xf32>
    %285 = arith.subf %284, %277 : vector<1x32xf32>
    %286 = arith.mulf %285, %283 : vector<1x32xf32>
    %287 = tpu.concatenate %283, %286 in 0 : vector<1x32xf32>, vector<1x32xf32> -> vector<2x32xf32>
    %cst_110 = arith.constant dense<0.000000e+00> : vector<2x128xf32>
    %288 = tpu.matmul %287, %1, %cst_110 {dimension_numbers = #tpu.dot_dimension_numbers<[1], [0], [0], [1], [0, 0, 1, 1], [], []>} : vector<2x32xf32>, vector<32x128xf32>, vector<2x128xf32> -> vector<2x128xf32>
    %289 = vector.extract_strided_slice %288 {offsets = [0, 0], sizes = [1, 128], strides = [1, 1]} : vector<2x128xf32> to vector<1x128xf32>
    %290 = vector.broadcast %289 : vector<1x128xf32> to vector<4x128xf32>
    %291 = arith.mulf %267, %290 : vector<4x128xf32>
    %292 = vector.extract_strided_slice %288 {offsets = [1, 0], sizes = [1, 128], strides = [1, 1]} : vector<2x128xf32> to vector<1x128xf32>
    %293 = vector.broadcast %292 : vector<1x128xf32> to vector<4x128xf32>
    %294 = arith.addf %291, %293 : vector<4x128xf32>
    %295 = arith.addf %294, %198 : vector<4x128xf32>
    %c0_111 = arith.constant 0 : index
    %c0_112 = arith.constant 0 : index
    %c0_113 = arith.constant 0 : index
    %296 = vector.load %arg5[%c0_111, %c0_112, %c0_113] : memref<1x4x128xf32, #tpu.memory_space<vmem>>, vector<1x4x128xf32>
    %297 = vector.shape_cast %296 : vector<1x4x128xf32> to vector<4x128xf32>
    %298 = vector.shape_cast %295 : vector<4x128xf32> to vector<1x4x128xf32>
    tpu.vector_store %arg5[%c0_111, %c0_112, %c0_113], %298 {strides = array<i32>} : memref<1x4x128xf32, #tpu.memory_space<vmem>>, vector<1x4x128xf32>,
    return
  }
  func.func @transform_0(%arg0: i32) -> (i32, i32, i32) {
    %c0_i32 = arith.constant 0 : i32
    %c0_i32_0 = arith.constant 0 : i32
    %c0_i32_1 = arith.constant 0 : i32
    return %arg0, %c0_i32, %c0_i32_0 : i32, i32, i32
  }
  func.func @transform_1(%arg0: i32) -> (i32, i32, i32) {
    %c0_i32 = arith.constant 0 : i32
    %c0_i32_0 = arith.constant 0 : i32
    %c0_i32_1 = arith.constant 0 : i32
    %c0_i32_2 = arith.constant 0 : i32
    return %c0_i32, %c0_i32_0, %c0_i32_1 : i32, i32, i32
  }
  func.func @transform_2(%arg0: i32) -> (i32, i32) {
    %c0_i32 = arith.constant 0 : i32
    %c0_i32_0 = arith.constant 0 : i32
    %c0_i32_1 = arith.constant 0 : i32
    return %c0_i32, %c0_i32_0 : i32, i32
  }
  func.func @transform_3(%arg0: i32) -> (i32, i32) {
    %c0_i32 = arith.constant 0 : i32
    %c0_i32_0 = arith.constant 0 : i32
    %c0_i32_1 = arith.constant 0 : i32
    return %c0_i32, %c0_i32_0 : i32, i32
  }
  func.func @transform_4(%arg0: i32) -> (i32, i32, i32) {
    %c0_i32 = arith.constant 0 : i32
    %c0_i32_0 = arith.constant 0 : i32
    %c0_i32_1 = arith.constant 0 : i32
    return %arg0, %c0_i32, %c0_i32_0 : i32, i32, i32
  }
}

</mosaic_0001>

<bundles_post_ra>
// kernel: tile.49
= control target key start
LH: loop header
LB: loop body
LE: loop exit
PB: predicated region body
PF: predicated region fallthrough
CT: control target
= control target key end

     0   :  { %vm6_vm0 = vcmask 1043458   ;;  %vm10_vm1 = vcmask 1045508   ;;  %vm14_vm2 = vcmask 1047558   ;;  %s19_s6 = smov 3  ;;  %s22_s7 = smov 12  ;;  %vm16_vm3 = vcmask 64512   ;;  %s736_s0 = inlined_call_operand.vmem [shape: f32[8,16,8], index: 0, kind: input, shape index: {}]   ;;  %s737_s1 = inlined_call_operand.vmem [shape: f32[8,128], index: 1, kind: output, shape index: {}]  }
   0x1   :  { %v348_v0 = vld [vmem:[%s736_s0 + $0xf] ss:$16 sm:%s19_s6]   ;;  %s27_s12 = smov 48  ;;  %s32_s13 = smov 192  ;;  %vm38_vm4 = vcmask 1048512   ;;  %vm60_vm5 = vcmask 982912  }
   0x2   :  { %v349_v1 = vld [vmem:[%s736_s0 + $0xf] ss:$16 sm:%s22_s7]   ;;  %s63_s18 = smov 3  ;;  %s66_s21 = smov 12  ;;  %vm82_vm6 = vcmask 917312   ;;  %vm104_vm7 = vcmask 851712  }
   0x3   :  { %v25_v2 = vsel %vm6_vm0, %v349_v1, %v348_v0  ;;  %v350_v3 = vld [vmem:[%s736_s0 + $0xf] ss:$16 sm:%s27_s12]   ;;  %v356_v6 = vld [vmem:[%s736_s0 + $0xd] ss:$16 sm:%s63_s18]   ;;  %s71_s22 = smov 48  ;;  %s76_s27 = smov 192 }
   0x4   :  { %v351_v4 = vld [vmem:[%s736_s0 + $0xf] ss:$16 sm:%s32_s13]   ;;  %v30_v5 = vsel %vm10_vm1, %v350_v3, %v25_v2  ;;  %v357_v8 = vld [vmem:[%s736_s0 + $0xd] ss:$16 sm:%s66_s21]   ;;  %s423_s28 = smov 120   ;;  %s41_s2 = smov 3 }
   0x5   :  { %v35_v7 = vsel %vm14_vm2, %v351_v4, %v30_v5  ;;  %v358_v9 = vld [vmem:[%s736_s0 + $0xd] ss:$16 sm:%s71_s22]   ;;  %v69_v10 = vsel %vm6_vm0, %v357_v8, %v356_v6  ;;  %s44_s3 = smov 12  ;;  %v352_v13 = vld [vmem:[%s736_s0 + $0xe] ss:$16 sm:%s41_s2]   ;;  %s49_s8 = smov 48 }
   0x6   :  { %36 = vrot.lane.b32.xlu0 %v35_v7, %s423_s28  ;;  %v359_v11 = vld [vmem:[%s736_s0 + $0xd] ss:$16 sm:%s76_s27]   ;;  %v74_v12 = vsel %vm10_vm1, %v358_v9, %v69_v10  ;;  %s54_s9 = smov 192  ;;  %s85_s14 = smov 3  ;;  %vm126_vm8 = vcmask 786112   ;;  %vm148_vm9 = vcmask 720512  }
   0x7   :  { %v353_v14 = vld [vmem:[%s736_s0 + $0xe] ss:$16 sm:%s44_s3]   ;;  %v79_v15 = vsel %vm14_vm2, %v359_v11, %v74_v12  ;;  %s424_s15 = smov 104   ;;  %v360_v20 = vld [vmem:[%s736_s0 + $0xc] ss:$16 sm:%s85_s14]   ;;  %s88_s18 = smov 12 }
   0x8   :  { %v47_v16 = vsel %vm6_vm0, %v353_v14, %v352_v13  ;;  %v354_v17 = vld [vmem:[%s736_s0 + $0xe] ss:$16 sm:%s49_s8]   ;;  %80 = vrot.lane.b32.xlu1 %v79_v15, %s424_s15  ;;  %s93_s19 = smov 48  ;;  %s98_s24 = smov 192  ;;  %vm170_vm10 = vcmask 654912   ;;  %vm192_vm11 = vcmask 589312  }
   0x9   :  { %v355_v18 = vld [vmem:[%s736_s0 + $0xe] ss:$16 sm:%s54_s9]   ;;  %v52_v19 = vsel %vm10_vm1, %v354_v17, %v47_v16  ;;  %v361_v22 = vld [vmem:[%s736_s0 + $0xc] ss:$16 sm:%s88_s18]   ;;  %s425_s25 = smov 112   ;;  %s107_s28 = smov 3 }
   0xa   :  { %v57_v21 = vsel %vm14_vm2, %v355_v18, %v52_v19  ;;  %v362_v23 = vld [vmem:[%s736_s0 + $0xc] ss:$16 sm:%s93_s19]   ;;  %v91_v24 = vsel %vm6_vm0, %v361_v22, %v360_v20  ;;  %s110_s29 = smov 12  ;;  %v364_v27 = vld [vmem:[%s736_s0 + $0xb] ss:$16 sm:%s107_s28]   ;;  %s115_s5 = smov 48 }
   0xb   :  { %58 = vrot.lane.b32.xlu0 %v57_v21, %s425_s25  ;;  %v363_v25 = vld [vmem:[%s736_s0 + $0xc] ss:$16 sm:%s98_s24]   ;;  %v96_v26 = vsel %vm10_vm1, %v362_v23, %v91_v24  ;;  %s120_s6 = smov 192  ;;  %s129_s11 = smov 3  ;;  %vm214_vm12 = vcmask 523712   ;;  %vm236_vm13 = vcmask 458112  }
   0xc   :  { %v365_v28 = vld [vmem:[%s736_s0 + $0xb] ss:$16 sm:%s110_s29]   ;;  %v101_v29 = vsel %vm14_vm2, %v363_v25, %v96_v26  ;;  %s426_s12 = smov 96   ;;  %v368_v34 = vld [vmem:[%s736_s0 + $0xa] ss:$16 sm:%s129_s11]   ;;  %s132_s15 = smov 12 }
   0xd   :  { %v113_v30 = vsel %vm6_vm0, %v365_v28, %v364_v27  ;;  %v366_v31 = vld [vmem:[%s736_s0 + $0xb] ss:$16 sm:%s115_s5]   ;;  %102 = vrot.lane.b32.xlu1 %v101_v29, %s426_s12  ;;  %s137_s16 = smov 48  ;;  %s142_s21 = smov 192  ;;  %vm258_vm14 = vcmask 392512   ;;  %vm280_vm15 = vcmask 326912  }
   0xe   :  { %v367_v32 = vld [vmem:[%s736_s0 + $0xb] ss:$16 sm:%s120_s6]   ;;  %v118_v33 = vsel %vm10_vm1, %v366_v31, %v113_v30  ;;  %v369_v36 = vld [vmem:[%s736_s0 + $0xa] ss:$16 sm:%s132_s15]   ;;  %s427_s22 = smov 88   ;;  %s151_s25 = smov 3 }
   0xf   :  { %v123_v35 = vsel %vm14_vm2, %v367_v32, %v118_v33  ;;  %v370_v37 = vld [vmem:[%s736_s0 + $0xa] ss:$16 sm:%s137_s16]   ;;  %v135_v38 = vsel %vm6_vm0, %v369_v36, %v368_v34  ;;  %s154_s26 = smov 12  ;;  %v372_v41 = vld [vmem:[%s736_s0 + $0x9] ss:$16 sm:%s151_s25]   ;;  %s159_s2 = smov 48 }
  0x10   :  { %124 = vrot.lane.b32.xlu0 %v123_v35, %s427_s22  ;;  %v371_v39 = vld [vmem:[%s736_s0 + $0xa] ss:$16 sm:%s142_s21]   ;;  %v140_v40 = vsel %vm10_vm1, %v370_v37, %v135_v38  ;;  %s164_s3 = smov 192  ;;  %s173_s8 = smov 3 }
  0x11   :  { %v373_v42 = vld [vmem:[%s736_s0 + $0x9] ss:$16 sm:%s154_s26]   ;;  %v145_v43 = vsel %vm14_vm2, %v371_v39, %v140_v40  ;;  %s428_s9 = smov 80   ;;  %v376_v48 = vld [vmem:[%s736_s0 + $0x8] ss:$16 sm:%s173_s8]   ;;  %s176_s12 = smov 12 }
  0x12   :  { %v157_v44 = vsel %vm6_vm0, %v373_v42, %v372_v41  ;;  %v374_v45 = vld [vmem:[%s736_s0 + $0x9] ss:$16 sm:%s159_s2]   ;;  %146 = vrot.lane.b32.xlu1 %v145_v43, %s428_s9  ;;  %s181_s13 = smov 48  ;;  %s186_s18 = smov 192 }
  0x13   :  { %v375_v46 = vld [vmem:[%s736_s0 + $0x9] ss:$16 sm:%s164_s3]   ;;  %v162_v47 = vsel %vm10_vm1, %v374_v45, %v157_v44  ;;  %v377_v50 = vld [vmem:[%s736_s0 + $0x8] ss:$16 sm:%s176_s12]   ;;  %s429_s19 = smov 72   ;;  %s195_s22 = smov 3 }
  0x14   :  { %v167_v49 = vsel %vm14_vm2, %v375_v46, %v162_v47  ;;  %v378_v51 = vld [vmem:[%s736_s0 + $0x8] ss:$16 sm:%s181_s13]   ;;  %v179_v52 = vsel %vm6_vm0, %v377_v50, %v376_v48  ;;  %s198_s23 = smov 12  ;;  %v380_v55 = vld [vmem:[%s736_s0 + $0x7] ss:$16 sm:%s195_s22]   ;;  %s203_s28 = smov 48 }
  0x15   :  { %168 = vrot.lane.b32.xlu0 %v167_v49, %s429_s19  ;;  %v379_v53 = vld [vmem:[%s736_s0 + $0x8] ss:$16 sm:%s186_s18]   ;;  %v184_v54 = vsel %vm10_vm1, %v378_v51, %v179_v52  ;;  %s208_s29 = smov 192  ;;  %s217_s5 = smov 3 }
  0x16   :  { %v381_v56 = vld [vmem:[%s736_s0 + $0x7] ss:$16 sm:%s198_s23]   ;;  %v189_v57 = vsel %vm14_vm2, %v379_v53, %v184_v54  ;;  %s430_s6 = smov 64   ;;  %v384_v62 = vld [vmem:[%s736_s0 + $0x6] ss:$16 sm:%s217_s5]   ;;  %s220_s9 = smov 12 }
  0x17   :  { %v201_v58 = vsel %vm6_vm0, %v381_v56, %v380_v55  ;;  %v382_v59 = vld [vmem:[%s736_s0 + $0x7] ss:$16 sm:%s203_s28]   ;;  %190 = vrot.lane.b32.xlu1 %v189_v57, %s430_s6  ;;  %s225_s10 = smov 48  ;;  %s230_s15 = smov 192 }
  0x18   :  { %v383_v60 = vld [vmem:[%s736_s0 + $0x7] ss:$16 sm:%s208_s29]   ;;  %v206_v61 = vsel %vm10_vm1, %v382_v59, %v201_v58  ;;  %v385_v0 = vld [vmem:[%s736_s0 + $0x6] ss:$16 sm:%s220_s9]   ;;  %s431_s16 = smov 56   ;;  %s239_s19 = smov 3 }
  0x19   :  { %v211_v63 = vsel %vm14_vm2, %v383_v60, %v206_v61  ;;  %v386_v1 = vld [vmem:[%s736_s0 + $0x6] ss:$16 sm:%s225_s10]   ;;  %v223_v2 = vsel %vm6_vm0, %v385_v0, %v384_v62  ;;  %s242_s20 = smov 12  ;;  %v388_v5 = vld [vmem:[%s736_s0 + $0x5] ss:$16 sm:%s239_s19]   ;;  %s247_s25 = smov 48 }
  0x1a   :  { %212 = vrot.lane.b32.xlu0 %v211_v63, %s431_s16  ;;  %v387_v3 = vld [vmem:[%s736_s0 + $0x6] ss:$16 sm:%s230_s15]   ;;  %v228_v4 = vsel %vm10_vm1, %v386_v1, %v223_v2  ;;  %s252_s26 = smov 192  ;;  %s261_s2 = smov 3 }
  0x1b   :  { %v389_v6 = vld [vmem:[%s736_s0 + $0x5] ss:$16 sm:%s242_s20]   ;;  %v233_v7 = vsel %vm14_vm2, %v387_v3, %v228_v4  ;;  %s432_s3 = smov 48   ;;  %v392_v12 = vld [vmem:[%s736_s0 + $0x4] ss:$16 sm:%s261_s2]   ;;  %s264_s6 = smov 12 }
  0x1c   :  { %v245_v8 = vsel %vm6_vm0, %v389_v6, %v388_v5  ;;  %v390_v9 = vld [vmem:[%s736_s0 + $0x5] ss:$16 sm:%s247_s25]   ;;  %234 = vrot.lane.b32.xlu1 %v233_v7, %s432_s3  ;;  %s269_s7 = smov 48  ;;  %s274_s12 = smov 192 }
  0x1d   :  { %v391_v10 = vld [vmem:[%s736_s0 + $0x5] ss:$16 sm:%s252_s26]   ;;  %v250_v11 = vsel %vm10_vm1, %v390_v9, %v245_v8  ;;  %v393_v14 = vld [vmem:[%s736_s0 + $0x4] ss:$16 sm:%s264_s6]   ;;  %s433_s13 = smov 40   ;;  %s283_s16 = smov 3 }
  0x1e   :  { %v255_v13 = vsel %vm14_vm2, %v391_v10, %v250_v11  ;;  %v394_v15 = vld [vmem:[%s736_s0 + $0x4] ss:$16 sm:%s269_s7]   ;;  %v267_v16 = vsel %vm6_vm0, %v393_v14, %v392_v12  ;;  %s286_s17 = smov 12  ;;  %v396_v19 = vld [vmem:[%s736_s0 + $0x3] ss:$16 sm:%s283_s16]   ;;  %s291_s22 = smov 48 }
  0x1f   :  { %256 = vrot.lane.b32.xlu0 %v255_v13, %s433_s13  ;;  %v395_v17 = vld [vmem:[%s736_s0 + $0x4] ss:$16 sm:%s274_s12]   ;;  %v272_v18 = vsel %vm10_vm1, %v394_v15, %v267_v16  ;;  %s296_s23 = smov 192  ;;  %s305_s28 = smov 3 }
  0x20   :  { %v397_v20 = vld [vmem:[%s736_s0 + $0x3] ss:$16 sm:%s286_s17]   ;;  %v277_v21 = vsel %vm14_vm2, %v395_v17, %v272_v18  ;;  %s434_s29 = smov 32   ;;  %v400_v26 = vld [vmem:[%s736_s0 + $0x2] ss:$16 sm:%s305_s28]   ;;  %s308_s3 = smov 12 }
  0x21   :  { %v289_v22 = vsel %vm6_vm0, %v397_v20, %v396_v19  ;;  %v398_v23 = vld [vmem:[%s736_s0 + $0x3] ss:$16 sm:%s291_s22]   ;;  %278 = vrot.lane.b32.xlu1 %v277_v21, %s434_s29  ;;  %s313_s4 = smov 48  ;;  %s318_s9 = smov 192 }
  0x22   :  { %v399_v24 = vld [vmem:[%s736_s0 + $0x3] ss:$16 sm:%s296_s23]   ;;  %v294_v25 = vsel %vm10_vm1, %v398_v23, %v289_v22  ;;  %v401_v28 = vld [vmem:[%s736_s0 + $0x2] ss:$16 sm:%s308_s3]   ;;  %s435_s10 = smov 24   ;;  %s327_s13 = smov 3 }
  0x23   :  { %v299_v27 = vsel %vm14_vm2, %v399_v24, %v294_v25  ;;  %v402_v29 = vld [vmem:[%s736_s0 + $0x2] ss:$16 sm:%s313_s4]   ;;  %v311_v30 = vsel %vm6_vm0, %v401_v28, %v400_v26  ;;  %s330_s14 = smov 12  ;;  %v404_v33 = vld [vmem:[%s736_s0 + $0x1] ss:$16 sm:%s327_s13]   ;;  %s335_s19 = smov 48 }
  0x24   :  { %300 = vrot.lane.b32.xlu0 %v299_v27, %s435_s10  ;;  %v403_v31 = vld [vmem:[%s736_s0 + $0x2] ss:$16 sm:%s318_s9]   ;;  %v316_v32 = vsel %vm10_vm1, %v402_v29, %v311_v30  ;;  %s340_s20 = smov 192  ;;  %s2_s25 = smov 3 }
  0x25   :  { %v405_v34 = vld [vmem:[%s736_s0 + $0x1] ss:$16 sm:%s330_s14]   ;;  %v321_v35 = vsel %vm14_vm2, %v403_v31, %v316_v32  ;;  %s436_s26 = smov 16   ;;  %s4_s27 = smov 12  ;;  %v3_v40 = vld [vmem:[%s736_s0] ss:$16 sm:%s2_s25]  }
  0x26   :  { %v333_v36 = vsel %vm6_vm0, %v405_v34, %v404_v33  ;;  %v406_v37 = vld [vmem:[%s736_s0 + $0x1] ss:$16 sm:%s335_s19]   ;;  %322 = vrot.lane.b32.xlu1 %v321_v35, %s436_s26  ;;  %s8_s28 = smov 48  ;;  %s12_s2 = smov 192 }
  0x27   :  { %v407_v38 = vld [vmem:[%s736_s0 + $0x1] ss:$16 sm:%s340_s20]   ;;  %v338_v39 = vsel %vm10_vm1, %v406_v37, %v333_v36  ;;  %v5_v42 = vld [vmem:[%s736_s0] ss:$16 sm:%s4_s27]   ;;  %s437_s7 = smov 8  }
  0x28   :  { %v343_v41 = vsel %vm14_vm2, %v407_v38, %v338_v39  ;;  %v9_v43 = vld [vmem:[%s736_s0] ss:$16 sm:%s8_s28]   ;;  %v7_v44 = vsel %vm6_vm0, %v5_v42, %v3_v40  ;;  %vm302_vm0 = vcmask 261312  }
  0x29   :  { %344 = vrot.lane.b32.xlu0 %v343_v41, %s437_s7  ;;  %v13_v45 = vld [vmem:[%s736_s0] ss:$16 sm:%s12_s2]   ;;  %v11_v46 = vsel %vm10_vm1, %v9_v43, %v7_v44  ;;  %vm324_vm1 = vcmask 195712  }
  0x2a   :  { %v15_v47 = vsel %vm14_vm2, %v13_v45, %v11_v46  ;;  %vm346_vm2 = vcmask 130112  }
  0x2b   :  { %17 = vst.msk [vmem:[%s737_s1] sm:$0xff] %vm16_vm3, %v15_v47  }
  0x78   :  { %v37_v48 = vpop.permute.xlu0 %36  }
  0x79   :  { %39 = vst.msk [vmem:[%s737_s1] sm:$0xff] %vm38_vm4, %v37_v48  }
  0x7a   :  { %v81_v49 = vpop.permute.xlu1 %80  }
  0x7d   :  { %v59_v50 = vpop.permute.xlu0 %58  }
  0x7e   :  { %61 = vst.msk [vmem:[%s737_s1] sm:$0xff] %vm60_vm5, %v59_v50  }
  0x7f   :  { %83 = vst.msk [vmem:[%s737_s1] sm:$0xff] %vm82_vm6, %v81_v49   ;;  %v103_v51 = vpop.permute.xlu1 %102  }
  0x80   :  { %105 = vst.msk [vmem:[%s737_s1] sm:$0xff] %vm104_vm7, %v103_v51  }
  0x82   :  { %v125_v52 = vpop.permute.xlu0 %124  }
  0x83   :  { %127 = vst.msk [vmem:[%s737_s1] sm:$0xff] %vm126_vm8, %v125_v52  }
  0x84   :  { %v147_v53 = vpop.permute.xlu1 %146  }
  0x85   :  { %149 = vst.msk [vmem:[%s737_s1] sm:$0xff] %vm148_vm9, %v147_v53  }
  0x87   :  { %v169_v54 = vpop.permute.xlu0 %168  }
  0x88   :  { %171 = vst.msk [vmem:[%s737_s1] sm:$0xff] %vm170_vm10, %v169_v54  }
  0x89   :  { %v191_v55 = vpop.permute.xlu1 %190  }
  0x8a   :  { %193 = vst.msk [vmem:[%s737_s1] sm:$0xff] %vm192_vm11, %v191_v55  }
  0x8c   :  { %v213_v56 = vpop.permute.xlu0 %212  }
  0x8d   :  { %215 = vst.msk [vmem:[%s737_s1] sm:$0xff] %vm214_vm12, %v213_v56  }
  0x8e   :  { %v235_v57 = vpop.permute.xlu1 %234  }
  0x8f   :  { %237 = vst.msk [vmem:[%s737_s1] sm:$0xff] %vm236_vm13, %v235_v57  }
  0x91   :  { %v257_v58 = vpop.permute.xlu0 %256  }
  0x92   :  { %259 = vst.msk [vmem:[%s737_s1] sm:$0xff] %vm258_vm14, %v257_v58  }
  0x93   :  { %v279_v59 = vpop.permute.xlu1 %278  }
  0x94   :  { %281 = vst.msk [vmem:[%s737_s1] sm:$0xff] %vm280_vm15, %v279_v59  }
  0x96   :  { %v301_v60 = vpop.permute.xlu0 %300  }
  0x97   :  { %303 = vst.msk [vmem:[%s737_s1] sm:$0xff] %vm302_vm0, %v301_v60  }
  0x98   :  { %v323_v61 = vpop.permute.xlu1 %322  }
  0x99   :  { %325 = vst.msk [vmem:[%s737_s1] sm:$0xff] %vm324_vm1, %v323_v61  }
  0x9b   :  { %v345_v62 = vpop.permute.xlu0 %344  }
  0x9c   :  { %347 = vst.msk [vmem:[%s737_s1] sm:$0xff] %vm346_vm2, %v345_v62  }

// kernel: encoder_forward.4
= control target key start
LH: loop header
LB: loop body
LE: loop exit
PB: predicated region body
PF: predicated region fallthrough
CT: control target
= control target key end

     0   :  { %s1518_s15 = smov 0   ;;  %s1775_s0 = inlined_call_operand.vmem [shape: f32[2,16,64], index: 0, kind: input, shape index: {}]   ;;  %s1776_s1 = inlined_call_operand.vmem [shape: bf16[7,64,128], index: 1, kind: input, shape index: {}]   ;;  %s1777_s2 = inlined_call_operand.vmem [shape: f32[128,8], index: 2, kind: input, shape index: {}]   ;;  %s1778_s3 = inlined_call_operand.vmem [shape: f32[8,128], index: 3, kind: input, shape index: {}]   ;;  %s1779_s4 = inlined_call_operand.vmem [shape: bf16[2,16,128], index: 4, kind: output, shape index: {}]  }
   0x1 LB: > { %s1111_s16 = sadd.s32 4294967295, %s1488_s15   ;;  %p1115_p0 = scmp.ge.s32.totalorder %s1488_s15, 1  ;;  %s1488_s15 = sphi %s1518_s15, %s14_s15  }
   0x2   : > { %p162_p1 = scmp.lt.s32.totalorder %s1488_s15, 3 }
   0x4   : > { %p163_p2 = pnand %p1115_p0, %p162_p1 }
   0x5   : > { %v1452_v0 = vld [vmem:[%s1776_s1 + $0x40] sm:$0xff] (!%p163_p2)   ;;  %v1490_v1 = vmov (!%p163_p2), 0.0   ;;  %v1453_v2 = vld [vmem:[%s1776_s1 + $0x48] sm:$0xff] (!%p163_p2)   ;;  %vm1491_vm0 = vmmov (!%p163_p2), 0   ;;  %p188_p3 = scmp.lt.s32.totalorder (!%p163_p2), %s1111_s16, 1  ;;  %v1454_v3 = vld [vmem:[%s1776_s1 + $0x50] sm:$0xff] (!%p163_p2)  }
   0x6   : > { %166 = sbr.rel (%p163_p2) target bundleno = 792 (0x318), region = 36  ;;  %1295 = vmatprep.subr.bf16.mxu0 (!%p163_p2), %v1490_v1  ;;  %1271 = vmatprep.subr.bf16.mxu1 (!%p163_p2), %v1490_v1  ;;  %v1455_v4 = vld [vmem:[%s1776_s1 + $0x58] sm:$0xff] (!%p163_p2)   ;;  %vm221_vm1 = vcmask (!%p163_p2), 1040384   ;;  %vm222_vm2 = vsmask.f32 (!%p163_p2), 256  ;;  %vm230_vm3 = vcmask (!%p163_p2), 1041408  }
   0x7   : > { %1296 = vmatpush3.bf16.msra.mxu0 (!%p163_p2), %v1452_v0  ;;  %1303 = vmatprep.mubr.msk.bf16.mxu0 (!%p163_p2), %vm1491_vm0, %v1490_v1  ;;  %vm231_vm4 = vsmask.f32 (!%p163_p2), 1280  ;;  %vm241_vm5 = vsmask.f32 (!%p163_p2), 2304  ;;  %vm223_vm6 = vmand (!%p163_p2), %vm221_vm1, %vm222_vm2  ;;  %vm240_vm7 = vcmask (!%p163_p2), 1042432   ;;  %v1460_v10 = vld [vmem:[%s1776_s1 + $0x20] sm:$0xff] (!%p163_p2)  }
   0x8   : > { %1297 = vmatprep.subr.bf16.mxu0 (!%p163_p2), %v1490_v1  ;;  %1279 = vmatprep.mubr.msk.bf16.mxu1 (!%p163_p2), %vm1491_vm0, %v1490_v1  ;;  %vm232_vm8 = vmand (!%p163_p2), %vm230_vm3, %vm231_vm4  ;;  %v1462_v18 = vld [vmem:[%s1776_s1 + $0x28] sm:$0xff] (!%p163_p2)   ;;  %v1464_v25 = vld [vmem:[%s1776_s1 + $0x30] sm:$0xff] (!%p163_p2)   ;;  %vm474_vm10 = vcmask (!%p163_p2), 1046528   ;;  %vm360_vm11 = vcmask (!%p163_p2), 523264   ;;  %vm323_vm12 = vsmask.f32 (!%p163_p2), 7424 }
   0x9   : > { %1272 = vmatpush3.bf16.msra.mxu1 (!%p163_p2), %v1460_v10  ;;  %vm242_vm9 = vmand (!%p163_p2), %vm240_vm7, %vm241_vm5  ;;  %v1456_v31 = vld [vmem:[%s1776_s1 + $0x60] sm:$0xff] (!%p163_p2)   ;;  %v1466_v34 = vld [vmem:[%s1776_s1 + $0x38] sm:$0xff] (!%p163_p2)   ;;  %vm780_vm13 = vcmask (!%p163_p2), 1044480   ;;  %vm548_vm14 = vsmask.f32 (!%p163_p2), 6400  ;;  %vm628_vm15 = vcmask (!%p163_p2), 1045504  }
   0xa   : > { %1273 = vmatprep.subr.bf16.mxu1 (!%p163_p2), %v1490_v1  ;;  %v1457_v38 = vld [vmem:[%s1776_s1 + $0x68] sm:$0xff] (!%p163_p2)   ;;  %v1468_v42 = vld [vmem:[%s1776_s1] sm:$0xff] (!%p163_p2)   ;;  %v1458_v43 = vld [vmem:[%s1776_s1 + $0x70] sm:$0xff] (!%p163_p2)   ;;  %vm702_vm2 = vsmask.f32 (!%p163_p2), 5376 }
   0xb   : > { %1298 = vmatpush3.bf16.msra.mxu0 (!%p163_p2), %v1453_v2  ;;  %v1470_v48 = vld [vmem:[%s1776_s1 + $0x8] sm:$0xff] (!%p163_p2)   ;;  %v1459_v51 = vld [vmem:[%s1776_s1 + $0x78] sm:$0xff] (!%p163_p2)   ;;  %v1472_v55 = vld [vmem:[%s1776_s1 + $0x10] sm:$0xff] (!%p163_p2)  }
   0xc   : > { %1299 = vmatprep.subr.bf16.mxu0 (!%p163_p2), %v1490_v1  ;;  %v1461_v57 = vld [vmem:[%s1776_s1 + $0x80] sm:$0xff] (!%p163_p2)   ;;  %v1474_v58 = vld [vmem:[%s1776_s1 + $0x18] sm:$0xff] (!%p163_p2)   ;;  %v1463_v59 = vld [vmem:[%s1776_s1 + $0x88] sm:$0xff] (!%p163_p2)  }
   0xd   : > { %s1781_s16 = smov (!%p188_p3, %s1111_s16), 1  ;;  %1274 = vmatpush3.bf16.msra.mxu1 %v1462_v18  ;;  %v1465_v60 = vld [vmem:[%s1776_s1 + $0x90] sm:$0xff]   ;;  %v1467_v61 = vld [vmem:[%s1776_s1 + $0x98] sm:$0xff]   ;;  %v1469_v2 = vld [vmem:[%s1776_s1 + $0xa0] sm:$0xff]  }
   0xe   : > { %s1208_s23 = sshll.u32 %s1781_s16, 4  ;;  %1275 = vmatprep.subr.bf16.mxu1 %v1490_v1  ;;  %v307_v18 = vld [vmem:[%s1777_s2 + $0x8] sm:$0xff]  ;;  %s1209_s13 = sshll.u32 %s1781_s16, 3 }
   0xf   : > { %s192_s26 = scalar_lea.vmem %s1775_s0, %s1208_s23  ;;  %1300 = vmatpush3.bf16.msra.mxu0 %v1454_v3  ;;  %v1471_v3 = vld [vmem:[%s1776_s1 + $0xa8] sm:$0xff]   ;;  %s197_s18 = scalar_lea.vmem %s1779_s4, %s1209_s13 }
  0x10   : > { %v199_v5 = vld [vmem:[%s192_s26] sm:$0xff]  ;;  %v200_v6 = vld [vmem:[%s192_s26 + $0x8] sm:$0xff]  ;;  %1301 = vmatprep.subr.bf16.mxu0 %v1490_v1 }
  0x11   : > { %v201_v7 = vpack.c.bf16 %v200_v6, %v199_v5  ;;  %1276 = vmatpush3.bf16.msra.mxu1 %v1464_v25  ;;  %v311_v25 = vld [vmem:[%s1777_s2 + $0x28] sm:$0xff] }
  0x12   : > { %1277 = vmatprep.subr.bf16.mxu1 %v1490_v1 }
  0x13   : > { %v203_v8 = vshrl.u32 %v201_v7, 16  ;;  %v207_v9 = vshll.u32 %v201_v7, 16  ;;  %1302 = vmatpush3.bf16.msra.mxu0 %v1455_v4  ;;  %v1473_v4 = vld [vmem:[%s1776_s1 + $0xb0] sm:$0xff]  }
  0x14   : > { %1307 = vmatprep.subr.bf16.mxu0 %v1490_v1 }
  0x15   : > { %v205_v11 = vrot.slane %v203_v8, 1  ;;  %v209_v12 = vrot.slane %v207_v9, 1  ;;  %v211_v13 = vrot.slane %v203_v8, 7  ;;  %v212_v14 = vrot.slane %v203_v8, 6  ;;  %1278 = vmatpush3.bf16.msra.mxu1 %v1466_v34  ;;  %v317_v34 = vld [vmem:[%s1777_s2 + $0x58] sm:$0xff] }
  0x16   : > { %v213_v15 = vrot.slane %v207_v9, 7  ;;  %v216_v16 = vrot.slane %v207_v9, 6  ;;  %v218_v17 = vrot.slane %v203_v8, 4  ;;  %v219_v21 = vrot.slane %v207_v9, 4  ;;  %1283 = vmatprep.subr.bf16.mxu1 %v1490_v1  ;;  %v1475_v9 = vld [vmem:[%s1776_s1 + $0xb8] sm:$0xff]  }
  0x17   : > { %v224_v19 = vsel %vm223_vm6, %v205_v11, %v209_v12 }
  0x18   : > { %v214_v20 = vor.u32 %v213_v15, %v212_v14  ;;  %v228_v22 = vsel %vm221_vm1, %v224_v19, %v211_v13  ;;  %v1476_v13 = vld [vmem:[%s1776_s1 + $0xc0] sm:$0xff]   ;;  %v1477_v14 = vld [vmem:[%s1776_s1 + $0xc8] sm:$0xff]   ;;  %v1478_v15 = vld [vmem:[%s1776_s1 + $0xd0] sm:$0xff]  }
  0x19   : > { %v308_v19 = vld [vmem:[%s1777_s2 + $0x10] sm:$0xff] }
  0x1a   : > { %v1567_v23 = vsel %vm232_vm8, %v228_v22, %v214_v20  ;;  %v234_v24 = vsel %vm232_vm8, %v214_v20, %v216_v16  ;;  %v1479_v16 = vld [vmem:[%s1776_s1 + $0xd8] sm:$0xff]   ;;  %v1492_v20 = vmov 0.0|0.0  }
  0x1b   : > { %v238_v26 = vsel %vm230_vm3, %v234_v24, %v218_v17  ;;  %v475_v27 = vrot.slane %v1567_v23, 1  ;;  %v1578_v29 = vshll.u32 %v1567_v23, 16  ;;  %v1588_v33 = vshrl.u32 %v1567_v23, 16  ;;  %v306_v17 = vld [vmem:[%s1777_s2] sm:$0xff]  ;;  %v309_v22 = vld [vmem:[%s1777_s2 + $0x18] sm:$0xff] }
  0x1c   : > { %v1575_v28 = vsel %vm242_vm9, %v238_v26, %v219_v21  ;;  %v781_v49 = vrot.slane %v1567_v23, 3  ;;  %v629_v62 = vrot.slane %v1567_v23, 2  ;;  %v1396_v21 = vpack.c.bf16 %v307_v18, %v306_v17  ;;  %v310_v24 = vld [vmem:[%s1777_s2 + $0x20] sm:$0xff] }
  0x1d   : > { %v476_v30 = vrot.slane %v1575_v28, 1  ;;  %v1585_v32 = vshll.u32 %v1575_v28, 16  ;;  %v329_v35 = vrot.slane %v1578_v29, 1  ;;  %v552_v39 = vshrl.u32 %v1575_v28, 16 }
  0x1e   : > { %v549_v44 = vrot.slane %v1588_v33, 1  ;;  %v550_v45 = vrot.slane %v1578_v29, 2  ;;  %v782_v50 = vrot.slane %v1575_v28, 3  ;;  %v630_v63 = vrot.slane %v1575_v28, 2  ;;  %v313_v28 = vld [vmem:[%s1777_s2 + $0x38] sm:$0xff] }
  0x1f   : > { %v477_v36 = vsel %vm474_vm10, %v475_v27, %v476_v30  ;;  %v334_v37 = vrot.slane %v1585_v32, 1  ;;  %v330_v40 = vor.u32 %v329_v35, %v1588_v33  ;;  %v554_v46 = vrot.slane %v552_v39, 1  ;;  %v312_v27 = vld [vmem:[%s1777_s2 + $0x30] sm:$0xff]  ;;  %v314_v30 = vld [vmem:[%s1777_s2 + $0x40] sm:$0xff] }
  0x20   : > { %1304 = vmatmul.mubr.msk.bf16.vlgmr.msra.gmra.mrb[0].mxu0 %vm360_vm11, %v477_v36  ;;  %v555_v47 = vrot.slane %v1585_v32, 2  ;;  %v551_v52 = vor.u32 %v550_v45, %v549_v44  ;;  %v1631_v54 = vsel %vm780_vm13, %v781_v49, %v782_v50  ;;  %v631_v0 = vsel %vm628_vm15, %v629_v62, %v630_v63  ;;  %v318_v36 = vld [vmem:[%s1777_s2 + $0x60] sm:$0xff] }
  0x21   : > { %1308 = vmatpush3.bf16.msra.mxu0 %v1456_v31  ;;  %1315 = vmatprep.mubr.msk.bf16.mxu0 %vm1491_vm0, %v1490_v1  ;;  %v335_v41 = vsel %vm323_vm12, %v330_v40, %v334_v37  ;;  %v703_v5 = vrot.slane %v1588_v33, 2  ;;  %v704_v6 = vrot.slane %v1578_v29, 3  ;;  %v706_v7 = vrot.slane %v552_v39, 2  ;;  %v315_v31 = vld [vmem:[%s1777_s2 + $0x48] sm:$0xff]  ;;  %v316_v33 = vld [vmem:[%s1777_s2 + $0x50] sm:$0xff]  ;;  %v321_v40 = vld [vmem:[%s1777_s2 + $0x78] sm:$0xff] }
  0x22   : > { %1309 = vmatprep.subr.bf16.mxu0 %v1490_v1  ;;  %1280 = vmatmul.mubr.msk.bf16.vlgmr.msra.gmra.mrb[0].mxu1 %vm360_vm11, %v335_v41  ;;  %v556_v53 = vor.u32 %v555_v47, %v554_v46  ;;  %v707_v8 = vrot.slane %v1585_v32, 3  ;;  %v1402_v26 = vpack.c.bf16 %v311_v25, %v310_v24  ;;  %v1405_v29 = vpack.c.bf16 %v313_v28, %v312_v27  ;;  %v319_v37 = vld [vmem:[%s1777_s2 + $0x68] sm:$0xff]  ;;  %v320_v39 = vld [vmem:[%s1777_s2 + $0x70] sm:$0xff] }
  0x23   : > { %1284 = vmatpush3.bf16.msra.mxu1 %v1468_v42  ;;  %1291 = vmatprep.mubr.msk.bf16.mxu1 %vm1491_vm0, %v1490_v1  ;;  %v705_v10 = vor.u32 %v704_v6, %v703_v5  ;;  %v1408_v32 = vpack.c.bf16 %v315_v31, %v314_v30  ;;  %v1411_v35 = vpack.c.bf16 %v317_v34, %v316_v33  ;;  %v322_v6 = vld [vmem:[%s1778_s3] sm:$0xff] }
  0x24   : > { %1285 = vmatprep.subr.bf16.mxu1 %v1490_v1  ;;  %v557_v56 = vsel %vm548_vm14, %v551_v52, %v556_v53  ;;  %v708_v11 = vor.u32 %v707_v8, %v706_v7  ;;  %v1417_v41 = vpack.c.bf16 %v321_v40, %v320_v39 }
  0x25   : > { %1310 = vmatpush3.bf16.msra.mxu0 %v1457_v38  ;;  %v1414_v38 = vpack.c.bf16 %v319_v37, %v318_v36 }
  0x26   : > { %1311 = vmatprep.subr.bf16.mxu0 %v1490_v1  ;;  %v709_v12 = vsel %vm702_vm2, %v705_v10, %v708_v11 }
  0x27   : > { %1286 = vmatpush3.bf16.msra.mxu1 %v1470_v48 }
  0x28   : > { %1287 = vmatprep.subr.bf16.mxu1 %v1490_v1 }
  0x29   : > { %1312 = vmatpush3.bf16.msra.mxu0 %v1458_v43 }
  0x2a   : > { %1313 = vmatprep.subr.bf16.mxu0 %v1490_v1 }
  0x2b   : > { %1288 = vmatpush3.bf16.msra.mxu1 %v1472_v55 }
  0x2c   : > { %1289 = vmatprep.subr.bf16.mxu1 %v1490_v1 }
  0x2d   : > { %1314 = vmatpush3.bf16.msra.mxu0 %v1459_v51 }
  0x2e   : > { %1319 = vmatprep.subr.bf16.mxu0 %v1490_v1 }
  0x2f   : > { %1290 = vmatpush3.bf16.msra.mxu1 %v1474_v58 }
  0x30   : > { %1316 = vmatmul.mubr.msk.bf16.vlgmr.msra.gmra.mrb[0].mxu0 %vm360_vm11, %v557_v56  ;;  %1395 = vmatprep.subr.bf16.mxu1 %v1492_v20 }
  0x31   : > { %1320 = vmatpush3.bf16.msra.mxu0 %v1461_v57  ;;  %1327 = vmatprep.mubr.msk.bf16.mxu0 %vm1491_vm0, %v1490_v1 }
  0x32   : > { %1321 = vmatprep.subr.bf16.mxu0 %v1490_v1  ;;  %1292 = vmatmul.mubr.msk.bf16.vlgmr.msra.gmra.mrb[0].mxu1 %vm360_vm11, %v1567_v23  ;;  %v1399_v23 = vpack.c.bf16 %v309_v22, %v308_v19  ;;  %v1032_v19 = vlaneseq }
  0x33   : > { %1387 = vmatprep.mubr.msk.f32.mxu1 %vm1491_vm0, %v1490_v1  ;;  %1397 = vmatpush3.bf16.msra.mxu1 %v1396_v21 }
  0x34   : > { %1398 = vmatprep.subr.bf16.mxu1 %v1492_v20 }
  0x35   : > { %1322 = vmatpush3.bf16.msra.mxu0 %v1463_v59 }
  0x36   : > { %1323 = vmatprep.subr.bf16.mxu0 %v1490_v1 }
  0x37   : > { %1400 = vmatpush3.bf16.msra.mxu1 %v1399_v23 }
  0x38   : > { %1401 = vmatprep.subr.bf16.mxu1 %v1492_v20 }
  0x39   : > { %1324 = vmatpush3.bf16.msra.mxu0 %v1465_v60 }
  0x3a   : > { %1325 = vmatprep.subr.bf16.mxu0 %v1490_v1 }
  0x3b   : > { %1403 = vmatpush3.bf16.msra.mxu1 %v1402_v26 }
  0x3c   : > { %1404 = vmatprep.subr.bf16.mxu1 %v1492_v20 }
  0x3d   : > { %1326 = vmatpush3.bf16.msra.mxu0 %v1467_v61 }
  0x3e   : > { %1331 = vmatprep.subr.bf16.mxu0 %v1490_v1 }
  0x3f   : > { %1406 = vmatpush3.bf16.msra.mxu1 %v1405_v29 }
  0x40   : > { %1328 = vmatmul.mubr.msk.bf16.vlgmr.msra.gmra.mrb[0].mxu0 %vm360_vm11, %v631_v0  ;;  %1407 = vmatprep.subr.bf16.mxu1 %v1492_v20 }
  0x41   : > { %1332 = vmatpush3.bf16.msra.mxu0 %v1469_v2  ;;  %1339 = vmatprep.mubr.msk.bf16.mxu0 %vm1491_vm0, %v1490_v1 }
  0x42   : > { %1333 = vmatprep.subr.bf16.mxu0 %v1490_v1 }
  0x43   : > { %1409 = vmatpush3.bf16.msra.mxu1 %v1408_v32 }
  0x44   : > { %1410 = vmatprep.subr.bf16.mxu1 %v1492_v20 }
  0x45   : > { %1334 = vmatpush3.bf16.msra.mxu0 %v1471_v3 }
  0x46   : > { %1335 = vmatprep.subr.bf16.mxu0 %v1490_v1 }
  0x47   : > { %1412 = vmatpush3.bf16.msra.mxu1 %v1411_v35 }
  0x48   : > { %1413 = vmatprep.subr.bf16.mxu1 %v1492_v20 }
  0x49   : > { %1336 = vmatpush3.bf16.msra.mxu0 %v1473_v4 }
  0x4a   : > { %1337 = vmatprep.subr.bf16.mxu0 %v1490_v1 }
  0x4b   : > { %1415 = vmatpush3.bf16.msra.mxu1 %v1414_v38 }
  0x4c   : > { %1416 = vmatprep.subr.bf16.mxu1 %v1492_v20  ;;  %v1033_v20 = vshrl.u32 %v1032_v19, 7 }
  0x4d   : > { %1338 = vmatpush3.bf16.msra.mxu0 %v1475_v9 }
  0x4e   : > { %1343 = vmatprep.subr.bf16.mxu0 %v1490_v1  ;;  %v1034_v21 = vsub.s32 0, %v1033_v20  ;;  %v1040_v22 = vsub.s32 1, %v1033_v20 }
  0x4f   : > { %1418 = vmatpush3.bf16.msra.mxu1 %v1417_v41 }
  0x50   : > { %1340 = vmatmul.mubr.msk.bf16.vlgmr.msra.gmra.mrb[0].mxu0 %vm360_vm11, %v709_v12  ;;  %1390 = vmatprep.subr.mxu1 %v1490_v1 }
  0x51   : > { %1344 = vmatpush3.bf16.msra.mxu0 %v1476_v13  ;;  %1351 = vmatprep.mubr.msk.bf16.mxu0 %vm1491_vm0, %v1490_v1 }
  0x52   : > { %1345 = vmatprep.subr.bf16.mxu0 %v1490_v1 }
  0x55   : > { %1346 = vmatpush3.bf16.msra.mxu0 %v1477_v14 }
  0x56   : > { %1347 = vmatprep.subr.bf16.mxu0 %v1490_v1 }
  0x59   : > { %1348 = vmatpush3.bf16.msra.mxu0 %v1478_v15 }
  0x5a   : > { %1349 = vmatprep.subr.bf16.mxu0 %v1490_v1 }
  0x5d   : > { %1350 = vmatpush3.bf16.msra.mxu0 %v1479_v16 }
  0x60   : > { %1352 = vmatmul.mubr.msk.bf16.vlgmr.msra.gmra.mrb[0].mxu0 %vm360_vm11, %v1631_v54 }
 0x105   : > { %v465_v42 = vpop.f32.mrb[0].mxu1 }
 0x106   : > { %v1293_v43 = vpop.f32.mrb[1].mxu1 }
 0x107   : > { %v468_v44 = vpop.f32.mrb[2].mxu1 }
 0x108   : > { %v1294_v45 = vpop.f32.mrb[3].mxu1 }
 0x133   : > { %v845_v46 = vpop.f32.mrb[0].mxu0 }
 0x134   : > { %v1419_v47 = vadd.f32 %v845_v46, %v465_v42  ;;  %v1353_v48 = vpop.f32.mrb[1].mxu0 }
 0x135   : > { %v848_v49 = vpop.f32.mrb[2].mxu0 }
 0x136   : > { %v1420_v50 = vadd.f32 %v848_v49, %v468_v44  ;;  %v1354_v51 = vpop.f32.mrb[3].mxu0  ;;  %v861_v52 = vmul.f32 %v1419_v47, %v1419_v47 }
 0x138   : > { %v854_v53 = vadd.f32 %v1420_v50, %v1419_v47  ;;  %v862_v54 = vmul.f32 %v1420_v50, %v1420_v50 }
 0x13a   : > { %v855_v55 = vrot.slane %v854_v53, 4  ;;  %v863_v56 = vadd.f32 %v862_v54, %v861_v52 }
 0x13c   : > { %v856_v57 = vadd.f32 %v855_v55, %v854_v53  ;;  %v864_v58 = vrot.slane %v863_v56, 4 }
 0x13e   : > { %v857_v59 = vrot.slane %v856_v57, 2  ;;  %v865_v60 = vadd.f32 %v864_v58, %v863_v56 }
 0x140   : > { %v858_v61 = vadd.f32 %v857_v59, %v856_v57  ;;  %v866_v62 = vrot.slane %v865_v60, 2 }
 0x142   : > { %v859_v63 = vrot.slane %v858_v61, 1  ;;  %v867_v0 = vadd.f32 %v866_v62, %v865_v60 }
 0x144   : > { %v868_v2 = vrot.slane %v867_v0, 1  ;;  %v860_v3 = vadd.f32 %v859_v63, %v858_v61 }
 0x146   : > { %v869_v4 = vadd.f32 %v868_v2, %v867_v0 }
 0x148   : > { %v870_v5 = vsel %vm221_vm1, %v860_v3, %v869_v4 }
 0x149   : > { %1388 = vmatmul.mubr.f32.vlgmr.msra.gmra.mrb[4].mxu1 %v870_v5 }
 0x14a   : > { %1392 = vmatprep.mubr.msk.f32.mxu1 %vm1491_vm0, %v1490_v1  ;;  %1391 = vmatpush3.msra.mxu1 %v322_v6  ;;  %vm958_vm0 = vcmask 64512  }
 0x21c   : > { %v937_v7 = vpop.f32.mrb[4].mxu1 }
 0x21d   : > { %v941_v8 = vmul.f32 0.00390625, %v937_v7  ;;  %v1389_v9 = vpop.f32.mrb[5].mxu1 }
 0x21f   : > { %v942_v10 = vmul.f32 %v941_v8, %v941_v8  ;;  %v949_v15 = vsub.f32 0.0, %v941_v8 }
 0x221   : > { %v944_v11 = vrot.slane %v942_v10, 7 }
 0x223   : > { %v946_v12 = vsub.f32 %v941_v8, %v944_v11 }
 0x225   : > { %v947_v13 = vadd.f32 1e-05, %v946_v12 }
 0x227   : > { %1480 = vrsqrt.f32 %v947_v13 }
 0x231   : > { %v1481_v14 = vpop.eup %1480 }
 0x232   : > { %v951_v16 = vrot.slane %v1481_v14, 1 }
 0x234   : > { %v953_v17 = vmul.f32 %v951_v16, %v949_v15 }
 0x236   : > { %v955_v18 = vrot.slane %v953_v17, 7 }
 0x238   : > { %v957_v1 = vsel %vm221_vm1, %v951_v16, %v955_v18 }
 0x239   : > { %1393 = vmatmul.mubr.msk.f32.vlgmr.msra.gmra.mrb[6].mxu1 %vm958_vm0, %v957_v1 }
 0x30c   : > { %v1028_v23 = vpop.f32.mrb[6].mxu1 }
 0x30d   : > { %v1035_v24 = vrot.slane %v1028_v23, %v1034_v21  ;;  %v1394_v25 = vpop.f32.mrb[7].mxu1  ;;  %v1041_v28 = vrot.slane %v1028_v23, %v1040_v22 }
 0x30f   : > { %v1036_v26 = vmul.f32 %v1419_v47, %v1035_v24  ;;  %v1037_v27 = vmul.f32 %v1420_v50, %v1035_v24 }
 0x311   : > { %v1042_v29 = vadd.f32 %v1041_v28, %v1036_v26  ;;  %v1043_v30 = vadd.f32 %v1041_v28, %v1037_v27 }
 0x313   : > { %v1044_v31 = vmax.f32 %v1042_v29, 0.0  ;;  %v1045_v32 = vmax.f32 %v1043_v30, 0.0 }
 0x315   : > { %v1215_v33 = vpack.c.bf16 %v1045_v32, %v1044_v31 }
 0x317   : > { %1216 = vst [vmem:[%s197_s18] sm:$0xff] %v1215_v33  }
 0x318 PF: > { %s14_s15 = sadd.s32 1, %s1488_s15  }
 0x319   : > { %p11_p4 = scmp.ge.s32.totalorder %s14_s15, 4  }
 0x31b   :  { %13 = sbr.rel (!%p11_p4) target bundleno = 1 (0x1), region = 72 }

// kernel: squeeze.7
= control target key start
LH: loop header
LB: loop body
LE: loop exit
PB: predicated region body
PF: predicated region fallthrough
CT: control target
= control target key end

     0   :  { %vm2051_vm0 = vcmask 1047556   ;;  %s4462_s18 = smov 112   ;;  %s4465_s21 = smov 64   ;;  %vm2053_vm1 = vcmask 130048   ;;  %vm2198_vm2 = vcmask 1048448   ;;  %vm2373_vm3 = vcmask 917248   ;;  %s5007_s0 = inlined_call_operand.vmem [shape: bf16[1,16,8,8,16], index: 0, kind: input, shape index: {}]   ;;  %s5008_s1 = inlined_call_operand.vmem [shape: bf16[128,128], index: 1, kind: output, shape index: {}]  }
   0x1   :  { %v4149_v0 = vld [vmem:[%s5007_s0 + $0x98] sm:$0xff]   ;;  %v4150_v1 = vld [vmem:[%s5007_s0 + $0x90] sm:$0xff]   ;;  %v4151_v2 = vld [vmem:[%s5007_s0 + $0x88] sm:$0xff]   ;;  %s4466_s22 = smov 48   ;;  %s4467_s23 = smov 32   ;;  %vm2548_vm4 = vcmask 786048  }
   0x2   :  { %v3987_v3 = vunpack.c.l.bf16 %v4149_v0  ;;  %v3988_v4 = vunpack.c.h.bf16 %v4149_v0  ;;  %v3991_v5 = vunpack.c.l.bf16 %v4150_v1  ;;  %v3992_v6 = vunpack.c.h.bf16 %v4150_v1  ;;  %v4152_v7 = vld [vmem:[%s5007_s0 + $0x80] sm:$0xff]   ;;  %v4165_v8 = vld [vmem:[%s5007_s0 + $0x18] sm:$0xff]   ;;  %v4166_v9 = vld [vmem:[%s5007_s0 + $0x10] sm:$0xff]   ;;  %s4468_s24 = smov 16  }
   0x3   :  { %v3995_v10 = vunpack.c.l.bf16 %v4151_v2  ;;  %v3996_v11 = vunpack.c.h.bf16 %v4151_v2  ;;  %v3999_v12 = vunpack.c.l.bf16 %v4152_v7  ;;  %v4000_v13 = vunpack.c.h.bf16 %v4152_v7  ;;  %v4167_v14 = vld [vmem:[%s5007_s0 + $0x8] sm:$0xff]   ;;  %v4062_v15 = vld [vmem:[%s5007_s0] sm:$0xff]   ;;  %v4145_v16 = vld [vmem:[%s5007_s0 + $0xb8] sm:$0xff]  }
   0x4   :  { %1428 = vst [vmem:[#allocation1 + $0x138] sm:$0xff] %v3988_v4  ;;  %1444 = vst [vmem:[#allocation1 + $0x130] sm:$0xff] %v3987_v3  ;;  %v4051_v17 = vunpack.c.l.bf16 %v4165_v8  ;;  %v4052_v18 = vunpack.c.h.bf16 %v4165_v8  ;;  %v4055_v19 = vunpack.c.l.bf16 %v4166_v9  ;;  %v4056_v20 = vunpack.c.h.bf16 %v4166_v9  ;;  %v4146_v21 = vld [vmem:[%s5007_s0 + $0xb0] sm:$0xff]   ;;  %v4147_v22 = vld [vmem:[%s5007_s0 + $0xa8] sm:$0xff]  }
   0x5   :  { %1460 = vst [vmem:[#allocation1 + $0x128] sm:$0xff] %v3992_v6  ;;  %1476 = vst [vmem:[#allocation1 + $0x120] sm:$0xff] %v3991_v5  ;;  %v4148_v23 = vld [vmem:[%s5007_s0 + $0xa0] sm:$0xff]   ;;  %v4059_v24 = vunpack.c.l.bf16 %v4167_v14  ;;  %v4060_v25 = vunpack.c.h.bf16 %v4167_v14  ;;  %v4063_v26 = vunpack.c.l.bf16 %v4062_v15  ;;  %v4064_v27 = vunpack.c.h.bf16 %v4062_v15  ;;  %v4161_v28 = vld [vmem:[%s5007_s0 + $0x38] sm:$0xff]  }
   0x6   :  { %1492 = vst [vmem:[#allocation1 + $0x118] sm:$0xff] %v3996_v11  ;;  %1508 = vst [vmem:[#allocation1 + $0x110] sm:$0xff] %v3995_v10  ;;  %v4162_v29 = vld [vmem:[%s5007_s0 + $0x30] sm:$0xff]   ;;  %v3971_v30 = vunpack.c.l.bf16 %v4145_v16  ;;  %v3972_v31 = vunpack.c.h.bf16 %v4145_v16  ;;  %v3975_v32 = vunpack.c.l.bf16 %v4146_v21  ;;  %v3976_v33 = vunpack.c.h.bf16 %v4146_v21  ;;  %v4163_v34 = vld [vmem:[%s5007_s0 + $0x28] sm:$0xff]  }
   0x7   :  { %1524 = vst [vmem:[#allocation1 + $0x108] sm:$0xff] %v4000_v13  ;;  %1540 = vst [vmem:[#allocation1 + $0x100] sm:$0xff] %v3999_v12  ;;  %v4164_v35 = vld [vmem:[%s5007_s0 + $0x20] sm:$0xff]   ;;  %v3979_v36 = vunpack.c.l.bf16 %v4147_v22  ;;  %v3980_v37 = vunpack.c.h.bf16 %v4147_v22  ;;  %v3983_v38 = vunpack.c.l.bf16 %v4148_v23  ;;  %v3984_v39 = vunpack.c.h.bf16 %v4148_v23  ;;  %v4117_v40 = vld [vmem:[%s5007_s0 + $0x198] sm:$0xff]  }
   0x8   :  { %1940 = vst [vmem:[#allocation1 + $0x38] sm:$0xff] %v4052_v18  ;;  %1956 = vst [vmem:[#allocation1 + $0x30] sm:$0xff] %v4051_v17  ;;  %v4118_v41 = vld [vmem:[%s5007_s0 + $0x190] sm:$0xff]   ;;  %v4035_v42 = vunpack.c.l.bf16 %v4161_v28  ;;  %v4036_v43 = vunpack.c.h.bf16 %v4161_v28  ;;  %v4039_v44 = vunpack.c.l.bf16 %v4162_v29  ;;  %v4040_v45 = vunpack.c.h.bf16 %v4162_v29  ;;  %v4119_v46 = vld [vmem:[%s5007_s0 + $0x188] sm:$0xff]  }
   0x9   :  { %1972 = vst [vmem:[#allocation1 + $0x28] sm:$0xff] %v4056_v20  ;;  %1988 = vst [vmem:[#allocation1 + $0x20] sm:$0xff] %v4055_v19  ;;  %v4120_v47 = vld [vmem:[%s5007_s0 + $0x180] sm:$0xff]   ;;  %v4043_v48 = vunpack.c.l.bf16 %v4163_v34  ;;  %v4044_v49 = vunpack.c.h.bf16 %v4163_v34  ;;  %v4047_v50 = vunpack.c.l.bf16 %v4164_v35  ;;  %v4048_v51 = vunpack.c.h.bf16 %v4164_v35  ;;  %v4133_v52 = vld [vmem:[%s5007_s0 + $0x118] sm:$0xff]  }
   0xa   :  { %2004 = vst [vmem:[#allocation1 + $0x18] sm:$0xff] %v4060_v25  ;;  %2020 = vst [vmem:[#allocation1 + $0x10] sm:$0xff] %v4059_v24  ;;  %v4134_v53 = vld [vmem:[%s5007_s0 + $0x110] sm:$0xff]   ;;  %v3859_v54 = vunpack.c.l.bf16 %v4117_v40  ;;  %v3860_v55 = vunpack.c.h.bf16 %v4117_v40  ;;  %v3863_v56 = vunpack.c.l.bf16 %v4118_v41  ;;  %v3864_v57 = vunpack.c.h.bf16 %v4118_v41  ;;  %v4135_v58 = vld [vmem:[%s5007_s0 + $0x108] sm:$0xff]  }
   0xb   :  { %2035 = vst [vmem:[#allocation1 + $0x8] sm:$0xff] %v4064_v27  ;;  %2048 = vst [vmem:[#allocation1] sm:$0xff] %v4063_v26  ;;  %v4136_v59 = vld [vmem:[%s5007_s0 + $0x100] sm:$0xff]   ;;  %v3867_v61 = vunpack.c.l.bf16 %v4119_v46  ;;  %v3868_v62 = vunpack.c.h.bf16 %v4119_v46  ;;  %v3871_v63 = vunpack.c.l.bf16 %v4120_v47  ;;  %v3872_v0 = vunpack.c.h.bf16 %v4120_v47  ;;  %v4113_v1 = vld [vmem:[%s5007_s0 + $0x1b8] sm:$0xff]  }
   0xc   :  { %1300 = vst [vmem:[#allocation1 + $0x178] sm:$0xff] %v3972_v31  ;;  %1316 = vst [vmem:[#allocation1 + $0x170] sm:$0xff] %v3971_v30  ;;  %v2203_v60 = vld [vmem:[#allocation1 + $0x107] ss:$8 sm:$0xf0]   ;;  %v3923_v4 = vunpack.c.l.bf16 %v4133_v52  ;;  %v3924_v5 = vunpack.c.h.bf16 %v4133_v52  ;;  %v3927_v6 = vunpack.c.l.bf16 %v4134_v53  ;;  %v3928_v7 = vunpack.c.h.bf16 %v4134_v53 }
   0xd   :  { %1332 = vst [vmem:[#allocation1 + $0x168] sm:$0xff] %v3976_v33  ;;  %1348 = vst [vmem:[#allocation1 + $0x160] sm:$0xff] %v3975_v32  ;;  %v4114_v2 = vld [vmem:[%s5007_s0 + $0x1b0] sm:$0xff]   ;;  %v4115_v8 = vld [vmem:[%s5007_s0 + $0x1a8] sm:$0xff]   ;;  %v3931_v11 = vunpack.c.l.bf16 %v4135_v58  ;;  %v3932_v12 = vunpack.c.h.bf16 %v4135_v58  ;;  %v3935_v13 = vunpack.c.l.bf16 %v4136_v59  ;;  %v3936_v17 = vunpack.c.h.bf16 %v4136_v59 }
   0xe   :  { %1364 = vst [vmem:[#allocation1 + $0x158] sm:$0xff] %v3980_v37  ;;  %1380 = vst [vmem:[#allocation1 + $0x150] sm:$0xff] %v3979_v36  ;;  %v2201_v3 = vld [vmem:[#allocation1 + $0x107] ss:$8 sm:$0xf]   ;;  %v3843_v18 = vunpack.c.l.bf16 %v4113_v1  ;;  %v3844_v19 = vunpack.c.h.bf16 %v4113_v1  ;;  %v3847_v20 = vunpack.c.l.bf16 %v4114_v2  ;;  %v3848_v24 = vunpack.c.h.bf16 %v4114_v2 }
   0xf   :  { %1396 = vst [vmem:[#allocation1 + $0x148] sm:$0xff] %v3984_v39  ;;  %1412 = vst [vmem:[#allocation1 + $0x140] sm:$0xff] %v3983_v38  ;;  %v2205_v10 = vsel %vm2051_vm0, %v2203_v60, %v2201_v3  ;;  %v4116_v14 = vld [vmem:[%s5007_s0 + $0x1a0] sm:$0xff]   ;;  %v4129_v15 = vld [vmem:[%s5007_s0 + $0x138] sm:$0xff]   ;;  %v3851_v25 = vunpack.c.l.bf16 %v4115_v8  ;;  %v3852_v26 = vunpack.c.h.bf16 %v4115_v8  ;;  %vm2723_vm5 = vcmask 654848  }
  0x10   :  { %1812 = vst [vmem:[#allocation1 + $0x78] sm:$0xff] %v4036_v43  ;;  %1828 = vst [vmem:[#allocation1 + $0x70] sm:$0xff] %v4035_v42  ;;  %v2193_v9 = vld [vmem:[#allocation1 + $0x7] ss:$8 sm:$0xf0]   ;;  %v3855_v31 = vunpack.c.l.bf16 %v4116_v14  ;;  %v3856_v32 = vunpack.c.h.bf16 %v4116_v14  ;;  %v3907_v33 = vunpack.c.l.bf16 %v4129_v15  ;;  %v3908_v38 = vunpack.c.h.bf16 %v4129_v15 }
  0x11   :  { %1844 = vst [vmem:[#allocation1 + $0x68] sm:$0xff] %v4040_v45  ;;  %1860 = vst [vmem:[#allocation1 + $0x60] sm:$0xff] %v4039_v44  ;;  %v4130_v21 = vld [vmem:[%s5007_s0 + $0x130] sm:$0xff]   ;;  %v4131_v27 = vld [vmem:[%s5007_s0 + $0x128] sm:$0xff]   ;;  %vm2898_vm6 = vcmask 523648   ;;  %vm3073_vm7 = vcmask 392448  }
  0x12   :  { %1876 = vst [vmem:[#allocation1 + $0x58] sm:$0xff] %v4044_v49  ;;  %1892 = vst [vmem:[#allocation1 + $0x50] sm:$0xff] %v4043_v48  ;;  %v2191_v16 = vld [vmem:[#allocation1 + $0x7] ss:$8 sm:$0xf]   ;;  %v3911_v39 = vunpack.c.l.bf16 %v4130_v21  ;;  %v3912_v40 = vunpack.c.h.bf16 %v4130_v21  ;;  %v3915_v43 = vunpack.c.l.bf16 %v4131_v27  ;;  %v3916_v44 = vunpack.c.h.bf16 %v4131_v27 }
  0x13   :  { %1908 = vst [vmem:[#allocation1 + $0x48] sm:$0xff] %v4048_v51  ;;  %1924 = vst [vmem:[#allocation1 + $0x40] sm:$0xff] %v4047_v50  ;;  %v2195_v22 = vsel %vm2051_vm0, %v2193_v9, %v2191_v16  ;;  %v4132_v28 = vld [vmem:[%s5007_s0 + $0x120] sm:$0xff]   ;;  %v4141_v34 = vld [vmem:[%s5007_s0 + $0xd8] sm:$0xff]   ;;  %vm3248_vm8 = vcmask 261248  }
  0x14   :  { %404 = vst [vmem:[#allocation1 + $0x338] sm:$0xff] %v3860_v55  ;;  %420 = vst [vmem:[#allocation1 + $0x330] sm:$0xff] %v3859_v54  ;;  %v2247_v23 = vld [vmem:[#allocation1 + $0x147] ss:$8 sm:$0xf0]   ;;  %v4182_v29 = vpack.i.bf16 %v2205_v10, %v2195_v22  ;;  %v3919_v45 = vunpack.c.l.bf16 %v4132_v28  ;;  %v3920_v46 = vunpack.c.h.bf16 %v4132_v28  ;;  %v3955_v51 = vunpack.c.l.bf16 %v4141_v34 }
  0x15   :  { %436 = vst [vmem:[#allocation1 + $0x328] sm:$0xff] %v3864_v57  ;;  %452 = vst [vmem:[#allocation1 + $0x320] sm:$0xff] %v3863_v56  ;;  %v4142_v35 = vld [vmem:[%s5007_s0 + $0xd0] sm:$0xff]   ;;  %v4143_v41 = vld [vmem:[%s5007_s0 + $0xc8] sm:$0xff]   ;;  %v3956_v52 = vunpack.c.h.bf16 %v4141_v34 }
  0x16   :  { %468 = vst [vmem:[#allocation1 + $0x318] sm:$0xff] %v3868_v62  ;;  %484 = vst [vmem:[#allocation1 + $0x310] sm:$0xff] %v3867_v61  ;;  %v2245_v30 = vld [vmem:[#allocation1 + $0x147] ss:$8 sm:$0xf]   ;;  %4183 = vrot.lane.b32.xlu0 %v4182_v29, %s4462_s18  ;;  %v3959_v53 = vunpack.c.l.bf16 %v4142_v35  ;;  %v3960_v58 = vunpack.c.h.bf16 %v4142_v35  ;;  %v3963_v59 = vunpack.c.l.bf16 %v4143_v41  ;;  %v3964_v60 = vunpack.c.h.bf16 %v4143_v41 }
  0x17   :  { %500 = vst [vmem:[#allocation1 + $0x308] sm:$0xff] %v3872_v0  ;;  %516 = vst [vmem:[#allocation1 + $0x300] sm:$0xff] %v3871_v63  ;;  %v2249_v37 = vsel %vm2051_vm0, %v2247_v23, %v2245_v30  ;;  %v4144_v47 = vld [vmem:[%s5007_s0 + $0xc0] sm:$0xff]   ;;  %v4157_v48 = vld [vmem:[%s5007_s0 + $0x58] sm:$0xff]  }
  0x18   :  { %916 = vst [vmem:[#allocation1 + $0x238] sm:$0xff] %v3924_v5  ;;  %932 = vst [vmem:[#allocation1 + $0x230] sm:$0xff] %v3923_v4  ;;  %v2236_v36 = vld [vmem:[#allocation1 + $0x47] ss:$8 sm:$0xf0]   ;;  %v3967_v1 = vunpack.c.l.bf16 %v4144_v47  ;;  %v3968_v2 = vunpack.c.h.bf16 %v4144_v47  ;;  %v4019_v3 = vunpack.c.l.bf16 %v4157_v48  ;;  %v4020_v5 = vunpack.c.h.bf16 %v4157_v48 }
  0x19   :  { %948 = vst [vmem:[#allocation1 + $0x228] sm:$0xff] %v3928_v7  ;;  %964 = vst [vmem:[#allocation1 + $0x220] sm:$0xff] %v3927_v6  ;;  %v4158_v54 = vld [vmem:[%s5007_s0 + $0x50] sm:$0xff]   ;;  %v4159_v55 = vld [vmem:[%s5007_s0 + $0x48] sm:$0xff]  }
  0x1a   :  { %980 = vst [vmem:[#allocation1 + $0x218] sm:$0xff] %v3932_v12  ;;  %996 = vst [vmem:[#allocation1 + $0x210] sm:$0xff] %v3931_v11  ;;  %v2234_v42 = vld [vmem:[#allocation1 + $0x47] ss:$8 sm:$0xf]   ;;  %v4023_v6 = vunpack.c.l.bf16 %v4158_v54  ;;  %v4024_v7 = vunpack.c.h.bf16 %v4158_v54  ;;  %v4027_v8 = vunpack.c.l.bf16 %v4159_v55  ;;  %v4028_v12 = vunpack.c.h.bf16 %v4159_v55 }
  0x1b   :  { %1028 = vst [vmem:[#allocation1 + $0x200] sm:$0xff] %v3935_v13  ;;  %1012 = vst [vmem:[#allocation1 + $0x208] sm:$0xff] %v3936_v17  ;;  %v2238_v49 = vsel %vm2051_vm0, %v2236_v36, %v2234_v42  ;;  %v4160_v61 = vld [vmem:[%s5007_s0 + $0x40] sm:$0xff]   ;;  %v4109_v62 = vld [vmem:[%s5007_s0 + $0x1d8] sm:$0xff]  }
  0x1c   :  { %276 = vst [vmem:[#allocation1 + $0x378] sm:$0xff] %v3844_v19  ;;  %292 = vst [vmem:[#allocation1 + $0x370] sm:$0xff] %v3843_v18  ;;  %v2225_v50 = vld [vmem:[#allocation1 + $0x307] ss:$8 sm:$0xf0]   ;;  %v4192_v56 = vpack.i.bf16 %v2249_v37, %v2238_v49  ;;  %v4031_v13 = vunpack.c.l.bf16 %v4160_v61  ;;  %v4032_v14 = vunpack.c.h.bf16 %v4160_v61  ;;  %v3827_v15 = vunpack.c.l.bf16 %v4109_v62 }
  0x1d   :  { %324 = vst [vmem:[#allocation1 + $0x360] sm:$0xff] %v3847_v20  ;;  %308 = vst [vmem:[#allocation1 + $0x368] sm:$0xff] %v3848_v24  ;;  %v4110_v4 = vld [vmem:[%s5007_s0 + $0x1d0] sm:$0xff]   ;;  %v4111_v9 = vld [vmem:[%s5007_s0 + $0x1c8] sm:$0xff]   ;;  %v3828_v19 = vunpack.c.h.bf16 %v4109_v62 }
  0x1e   :  { %340 = vst [vmem:[#allocation1 + $0x358] sm:$0xff] %v3852_v26  ;;  %356 = vst [vmem:[#allocation1 + $0x350] sm:$0xff] %v3851_v25  ;;  %v2223_v57 = vld [vmem:[#allocation1 + $0x307] ss:$8 sm:$0xf]   ;;  %4193 = vrot.lane.b32.xlu1 %v4192_v56, %s4462_s18  ;;  %v3831_v20 = vunpack.c.l.bf16 %v4110_v4  ;;  %v3832_v21 = vunpack.c.h.bf16 %v4110_v4  ;;  %v3835_v26 = vunpack.c.l.bf16 %v4111_v9  ;;  %v3836_v27 = vunpack.c.h.bf16 %v4111_v9 }
  0x1f   :  { %372 = vst [vmem:[#allocation1 + $0x348] sm:$0xff] %v3856_v32  ;;  %388 = vst [vmem:[#allocation1 + $0x340] sm:$0xff] %v3855_v31  ;;  %v2227_v0 = vsel %vm2051_vm0, %v2225_v50, %v2223_v57  ;;  %v4112_v10 = vld [vmem:[%s5007_s0 + $0x1c0] sm:$0xff]   ;;  %v4125_v16 = vld [vmem:[%s5007_s0 + $0x158] sm:$0xff]  }
  0x20   :  { %804 = vst [vmem:[#allocation1 + $0x270] sm:$0xff] %v3907_v33  ;;  %788 = vst [vmem:[#allocation1 + $0x278] sm:$0xff] %v3908_v38  ;;  %v2214_v63 = vld [vmem:[#allocation1 + $0x207] ss:$8 sm:$0xf0]   ;;  %v3839_v28 = vunpack.c.l.bf16 %v4112_v10  ;;  %v3840_v33 = vunpack.c.h.bf16 %v4112_v10  ;;  %v3891_v34 = vunpack.c.l.bf16 %v4125_v16  ;;  %v3892_v35 = vunpack.c.h.bf16 %v4125_v16 }
  0x21   :  { %820 = vst [vmem:[#allocation1 + $0x268] sm:$0xff] %v3912_v40  ;;  %836 = vst [vmem:[#allocation1 + $0x260] sm:$0xff] %v3911_v39  ;;  %v4126_v22 = vld [vmem:[%s5007_s0 + $0x150] sm:$0xff]   ;;  %v4127_v23 = vld [vmem:[%s5007_s0 + $0x148] sm:$0xff]  }
  0x22   :  { %852 = vst [vmem:[#allocation1 + $0x258] sm:$0xff] %v3916_v44  ;;  %868 = vst [vmem:[#allocation1 + $0x250] sm:$0xff] %v3915_v43  ;;  %v2212_v11 = vld [vmem:[#allocation1 + $0x207] ss:$8 sm:$0xf]   ;;  %v3895_v38 = vunpack.c.l.bf16 %v4126_v22  ;;  %v3896_v39 = vunpack.c.h.bf16 %v4126_v22  ;;  %v3899_v40 = vunpack.c.l.bf16 %v4127_v23  ;;  %v3900_v41 = vunpack.c.h.bf16 %v4127_v23 }
  0x23   :  { %884 = vst [vmem:[#allocation1 + $0x248] sm:$0xff] %v3920_v46  ;;  %900 = vst [vmem:[#allocation1 + $0x240] sm:$0xff] %v3919_v45  ;;  %v2216_v17 = vsel %vm2051_vm0, %v2214_v63, %v2212_v11  ;;  %v4128_v29 = vld [vmem:[%s5007_s0 + $0x140] sm:$0xff]   ;;  %v4137_v30 = vld [vmem:[%s5007_s0 + $0xf8] sm:$0xff]  }
  0x24   :  { %1172 = vst [vmem:[#allocation1 + $0x1b8] sm:$0xff] %v3956_v52  ;;  %1188 = vst [vmem:[#allocation1 + $0x1b0] sm:$0xff] %v3955_v51  ;;  %v2269_v18 = vld [vmem:[#allocation1 + $0x347] ss:$8 sm:$0xf0]   ;;  %v4187_v24 = vpack.i.bf16 %v2227_v0, %v2216_v17  ;;  %v3903_v45 = vunpack.c.l.bf16 %v4128_v29  ;;  %v3904_v46 = vunpack.c.h.bf16 %v4128_v29  ;;  %v3939_v47 = vunpack.c.l.bf16 %v4137_v30 }
  0x25   :  { %1220 = vst [vmem:[#allocation1 + $0x1a0] sm:$0xff] %v3959_v53  ;;  %1204 = vst [vmem:[#allocation1 + $0x1a8] sm:$0xff] %v3960_v58  ;;  %v4138_v36 = vld [vmem:[%s5007_s0 + $0xf0] sm:$0xff]   ;;  %v4139_v42 = vld [vmem:[%s5007_s0 + $0xe8] sm:$0xff]   ;;  %v3940_v52 = vunpack.c.h.bf16 %v4137_v30 }
  0x26   :  { %1236 = vst [vmem:[#allocation1 + $0x198] sm:$0xff] %v3964_v60  ;;  %1252 = vst [vmem:[#allocation1 + $0x190] sm:$0xff] %v3963_v59  ;;  %v2267_v25 = vld [vmem:[#allocation1 + $0x347] ss:$8 sm:$0xf]   ;;  %4188 = vrot.lane.b32.xlu0 %v4187_v24, %s4462_s18  ;;  %v3943_v53 = vunpack.c.l.bf16 %v4138_v36  ;;  %v3944_v54 = vunpack.c.h.bf16 %v4138_v36  ;;  %v3947_v58 = vunpack.c.l.bf16 %v4139_v42  ;;  %v3948_v59 = vunpack.c.h.bf16 %v4139_v42 }
  0x27   :  { %1268 = vst [vmem:[#allocation1 + $0x188] sm:$0xff] %v3968_v2  ;;  %1284 = vst [vmem:[#allocation1 + $0x180] sm:$0xff] %v3967_v1  ;;  %v2271_v32 = vsel %vm2051_vm0, %v2269_v18, %v2267_v25  ;;  %v4140_v43 = vld [vmem:[%s5007_s0 + $0xe0] sm:$0xff]   ;;  %v4153_v48 = vld [vmem:[%s5007_s0 + $0x78] sm:$0xff]  }
  0x28   :  { %1700 = vst [vmem:[#allocation1 + $0xb0] sm:$0xff] %v4019_v3  ;;  %1684 = vst [vmem:[#allocation1 + $0xb8] sm:$0xff] %v4020_v5  ;;  %v2258_v31 = vld [vmem:[#allocation1 + $0x247] ss:$8 sm:$0xf0]   ;;  %v3951_v60 = vunpack.c.l.bf16 %v4140_v43  ;;  %v3952_v61 = vunpack.c.h.bf16 %v4140_v43  ;;  %v4003_v1 = vunpack.c.l.bf16 %v4153_v48  ;;  %v4004_v2 = vunpack.c.h.bf16 %v4153_v48 }
  0x29   :  { %1716 = vst [vmem:[#allocation1 + $0xa8] sm:$0xff] %v4024_v7  ;;  %1732 = vst [vmem:[#allocation1 + $0xa0] sm:$0xff] %v4023_v6  ;;  %v4154_v49 = vld [vmem:[%s5007_s0 + $0x70] sm:$0xff]   ;;  %v4155_v55 = vld [vmem:[%s5007_s0 + $0x68] sm:$0xff]  }
  0x2a   :  { %1764 = vst [vmem:[#allocation1 + $0x90] sm:$0xff] %v4027_v8  ;;  %1748 = vst [vmem:[#allocation1 + $0x98] sm:$0xff] %v4028_v12  ;;  %v2256_v37 = vld [vmem:[#allocation1 + $0x247] ss:$8 sm:$0xf]   ;;  %v4007_v3 = vunpack.c.l.bf16 %v4154_v49  ;;  %v4008_v7 = vunpack.c.h.bf16 %v4154_v49  ;;  %v4011_v8 = vunpack.c.l.bf16 %v4155_v55  ;;  %v4012_v9 = vunpack.c.h.bf16 %v4155_v55 }
  0x2b   :  { %1780 = vst [vmem:[#allocation1 + $0x88] sm:$0xff] %v4032_v14  ;;  %1796 = vst [vmem:[#allocation1 + $0x80] sm:$0xff] %v4031_v13  ;;  %v2260_v44 = vsel %vm2051_vm0, %v2258_v31, %v2256_v37  ;;  %v4156_v56 = vld [vmem:[%s5007_s0 + $0x60] sm:$0xff]   ;;  %v4105_v62 = vld [vmem:[%s5007_s0 + $0x1f8] sm:$0xff]  }
  0x2c   :  { %164 = vst [vmem:[#allocation1 + $0x3b0] sm:$0xff] %v3827_v15  ;;  %148 = vst [vmem:[#allocation1 + $0x3b8] sm:$0xff] %v3828_v19  ;;  %v4197_v50 = vpack.i.bf16 %v2271_v32, %v2260_v44  ;;  %v2291_v51 = vld [vmem:[#allocation1 + $0x187] ss:$8 sm:$0xf0]   ;;  %v4015_v10 = vunpack.c.l.bf16 %v4156_v56  ;;  %v4016_v15 = vunpack.c.h.bf16 %v4156_v56  ;;  %v3811_v16 = vunpack.c.l.bf16 %v4105_v62 }
  0x2d   :  { %180 = vst [vmem:[#allocation1 + $0x3a8] sm:$0xff] %v3832_v21  ;;  %196 = vst [vmem:[#allocation1 + $0x3a0] sm:$0xff] %v3831_v20  ;;  %v4106_v4 = vld [vmem:[%s5007_s0 + $0x1f0] sm:$0xff]   ;;  %v4107_v5 = vld [vmem:[%s5007_s0 + $0x1e8] sm:$0xff]   ;;  %v3812_v17 = vunpack.c.h.bf16 %v4105_v62 }
  0x2e   :  { %212 = vst [vmem:[#allocation1 + $0x398] sm:$0xff] %v3836_v27  ;;  %228 = vst [vmem:[#allocation1 + $0x390] sm:$0xff] %v3835_v26  ;;  %v2289_v57 = vld [vmem:[#allocation1 + $0x187] ss:$8 sm:$0xf]   ;;  %4198 = vrot.lane.b32.xlu1 %v4197_v50, %s4462_s18  ;;  %v3815_v20 = vunpack.c.l.bf16 %v4106_v4  ;;  %v3816_v21 = vunpack.c.h.bf16 %v4106_v4  ;;  %v3819_v22 = vunpack.c.l.bf16 %v4107_v5  ;;  %v3820_v26 = vunpack.c.h.bf16 %v4107_v5 }
  0x2f   :  { %260 = vst [vmem:[#allocation1 + $0x380] sm:$0xff] %v3839_v28  ;;  %244 = vst [vmem:[#allocation1 + $0x388] sm:$0xff] %v3840_v33  ;;  %v2293_v0 = vsel %vm2051_vm0, %v2291_v51, %v2289_v57  ;;  %v4108_v11 = vld [vmem:[%s5007_s0 + $0x1e0] sm:$0xff]   ;;  %v4121_v12 = vld [vmem:[%s5007_s0 + $0x178] sm:$0xff]  }
  0x30   :  { %660 = vst [vmem:[#allocation1 + $0x2b8] sm:$0xff] %v3892_v35  ;;  %676 = vst [vmem:[#allocation1 + $0x2b0] sm:$0xff] %v3891_v34  ;;  %v2280_v63 = vld [vmem:[#allocation1 + $0x87] ss:$8 sm:$0xf0]   ;;  %v3823_v27 = vunpack.c.l.bf16 %v4108_v11  ;;  %v3824_v28 = vunpack.c.h.bf16 %v4108_v11  ;;  %v3875_v29 = vunpack.c.l.bf16 %v4121_v12  ;;  %v3876_v32 = vunpack.c.h.bf16 %v4121_v12 }
  0x31   :  { %692 = vst [vmem:[#allocation1 + $0x2a8] sm:$0xff] %v3896_v39  ;;  %708 = vst [vmem:[#allocation1 + $0x2a0] sm:$0xff] %v3895_v38  ;;  %v4122_v18 = vld [vmem:[%s5007_s0 + $0x170] sm:$0xff]   ;;  %v4123_v23 = vld [vmem:[%s5007_s0 + $0x168] sm:$0xff]  }
  0x32   :  { %724 = vst [vmem:[#allocation1 + $0x298] sm:$0xff] %v3900_v41  ;;  %740 = vst [vmem:[#allocation1 + $0x290] sm:$0xff] %v3899_v40  ;;  %v2278_v6 = vld [vmem:[#allocation1 + $0x87] ss:$8 sm:$0xf]   ;;  %v3879_v33 = vunpack.c.l.bf16 %v4122_v18  ;;  %v3880_v34 = vunpack.c.h.bf16 %v4122_v18  ;;  %v3883_v36 = vunpack.c.l.bf16 %v4123_v23  ;;  %v3884_v37 = vunpack.c.h.bf16 %v4123_v23 }
  0x33   :  { %756 = vst [vmem:[#allocation1 + $0x288] sm:$0xff] %v3904_v46  ;;  %772 = vst [vmem:[#allocation1 + $0x280] sm:$0xff] %v3903_v45  ;;  %v2282_v13 = vsel %vm2051_vm0, %v2280_v63, %v2278_v6  ;;  %v4124_v24 = vld [vmem:[%s5007_s0 + $0x160] sm:$0xff]   ;;  %s4463_s0 = smov 96  }
  0x34   :  { %1060 = vst [vmem:[#allocation1 + $0x1f0] sm:$0xff] %v3939_v47  ;;  %1044 = vst [vmem:[#allocation1 + $0x1f8] sm:$0xff] %v3940_v52  ;;  %v2313_v14 = vld [vmem:[#allocation1 + $0x387] ss:$8 sm:$0xf0]   ;;  %v4202_v19 = vpack.i.bf16 %v2293_v0, %v2282_v13  ;;  %v3887_v38 = vunpack.c.l.bf16 %v4124_v24  ;;  %v3888_v39 = vunpack.c.h.bf16 %v4124_v24 }
  0x35   :  { %1076 = vst [vmem:[#allocation1 + $0x1e8] sm:$0xff] %v3944_v54  ;;  %1092 = vst [vmem:[#allocation1 + $0x1e0] sm:$0xff] %v3943_v53  ;;  %v2366_v42 = vld [vmem:[#allocation1 + $0x6] ss:$8 sm:$0xf]  }
  0x36   :  { %1108 = vst [vmem:[#allocation1 + $0x1d8] sm:$0xff] %v3948_v59  ;;  %1124 = vst [vmem:[#allocation1 + $0x1d0] sm:$0xff] %v3947_v58  ;;  %v2311_v25 = vld [vmem:[#allocation1 + $0x387] ss:$8 sm:$0xf]   ;;  %4203 = vrot.lane.b32.xlu0 %v4202_v19, %s4462_s18 }
  0x37   :  { %1140 = vst [vmem:[#allocation1 + $0x1c8] sm:$0xff] %v3952_v61  ;;  %1156 = vst [vmem:[#allocation1 + $0x1c0] sm:$0xff] %v3951_v60  ;;  %v2315_v31 = vsel %vm2051_vm0, %v2313_v14, %v2311_v25  ;;  %v2368_v45 = vld [vmem:[#allocation1 + $0x6] ss:$8 sm:$0xf0]  }
  0x38   :  { %1556 = vst [vmem:[#allocation1 + $0xf8] sm:$0xff] %v4004_v2  ;;  %1572 = vst [vmem:[#allocation1 + $0xf0] sm:$0xff] %v4003_v1  ;;  %v2302_v30 = vld [vmem:[#allocation1 + $0x287] ss:$8 sm:$0xf0]   ;;  %v2370_v59 = vsel %vm2051_vm0, %v2368_v45, %v2366_v42 }
  0x39   :  { %1604 = vst [vmem:[#allocation1 + $0xe0] sm:$0xff] %v4007_v3  ;;  %1588 = vst [vmem:[#allocation1 + $0xe8] sm:$0xff] %v4008_v7  ;;  %v2376_v46 = vld [vmem:[#allocation1 + $0x106] ss:$8 sm:$0xf]  }
  0x3a   :  { %1620 = vst [vmem:[#allocation1 + $0xd8] sm:$0xff] %v4012_v9  ;;  %1636 = vst [vmem:[#allocation1 + $0xd0] sm:$0xff] %v4011_v8  ;;  %v2300_v35 = vld [vmem:[#allocation1 + $0x287] ss:$8 sm:$0xf]  }
  0x3b   :  { %1668 = vst [vmem:[#allocation1 + $0xc0] sm:$0xff] %v4015_v10  ;;  %1652 = vst [vmem:[#allocation1 + $0xc8] sm:$0xff] %v4016_v15  ;;  %v2304_v40 = vsel %vm2051_vm0, %v2302_v30, %v2300_v35  ;;  %v2378_v47 = vld [vmem:[#allocation1 + $0x106] ss:$8 sm:$0xf0]  }
  0x3c   :  { %20 = vst [vmem:[#allocation1 + $0x3f8] sm:$0xff] %v3812_v17  ;;  %36 = vst [vmem:[#allocation1 + $0x3f0] sm:$0xff] %v3811_v16  ;;  %v2335_v41 = vld [vmem:[#allocation1 + $0x1c7] ss:$8 sm:$0xf0]   ;;  %v4207_v43 = vpack.i.bf16 %v2315_v31, %v2304_v40  ;;  %v2380_v60 = vsel %vm2051_vm0, %v2378_v47, %v2376_v46 }
  0x3d   :  { %52 = vst [vmem:[#allocation1 + $0x3e8] sm:$0xff] %v3816_v21  ;;  %68 = vst [vmem:[#allocation1 + $0x3e0] sm:$0xff] %v3815_v20  ;;  %v2387_v50 = vld [vmem:[#allocation1 + $0x206] ss:$8 sm:$0xf]   ;;  %v4222_v7 = vpack.i.bf16 %v2380_v60, %v2370_v59 }
  0x3e   :  { %100 = vst [vmem:[#allocation1 + $0x3d0] sm:$0xff] %v3819_v22  ;;  %84 = vst [vmem:[#allocation1 + $0x3d8] sm:$0xff] %v3820_v26  ;;  %v2333_v44 = vld [vmem:[#allocation1 + $0x1c7] ss:$8 sm:$0xf]   ;;  %4208 = vrot.lane.b32.xlu1 %v4207_v43, %s4462_s18 }
  0x3f   :  { %116 = vst [vmem:[#allocation1 + $0x3c8] sm:$0xff] %v3824_v28  ;;  %132 = vst [vmem:[#allocation1 + $0x3c0] sm:$0xff] %v3823_v27  ;;  %v2337_v49 = vsel %vm2051_vm0, %v2335_v41, %v2333_v44  ;;  %v2389_v51 = vld [vmem:[#allocation1 + $0x206] ss:$8 sm:$0xf0]  }
  0x40   :  { %548 = vst [vmem:[#allocation1 + $0x2f0] sm:$0xff] %v3875_v29  ;;  %532 = vst [vmem:[#allocation1 + $0x2f8] sm:$0xff] %v3876_v32  ;;  %v2324_v48 = vld [vmem:[#allocation1 + $0xc7] ss:$8 sm:$0xf0]   ;;  %v2391_v8 = vsel %vm2051_vm0, %v2389_v51, %v2387_v50 }
  0x41   :  { %564 = vst [vmem:[#allocation1 + $0x2e8] sm:$0xff] %v3880_v34  ;;  %580 = vst [vmem:[#allocation1 + $0x2e0] sm:$0xff] %v3879_v33  ;;  %v2398_v52 = vld [vmem:[#allocation1 + $0x306] ss:$8 sm:$0xf]  }
  0x42   :  { %596 = vst [vmem:[#allocation1 + $0x2d8] sm:$0xff] %v3884_v37  ;;  %612 = vst [vmem:[#allocation1 + $0x2d0] sm:$0xff] %v3883_v36  ;;  %v2400_v53 = vld [vmem:[#allocation1 + $0x306] ss:$8 sm:$0xf0]  }
  0x43   :  { %628 = vst [vmem:[#allocation1 + $0x2c8] sm:$0xff] %v3888_v39  ;;  %644 = vst [vmem:[#allocation1 + $0x2c0] sm:$0xff] %v3887_v38  ;;  %v2322_v54 = vld [vmem:[#allocation1 + $0xc7] ss:$8 sm:$0xf]   ;;  %v2402_v9 = vsel %vm2051_vm0, %v2400_v53, %v2398_v52 }
  0x44   :  { %v2409_v55 = vld [vmem:[#allocation1 + $0x46] ss:$8 sm:$0xf]   ;;  %v2326_v57 = vsel %vm2051_vm0, %v2324_v48, %v2322_v54  ;;  %v2357_v58 = vld [vmem:[#allocation1 + $0x3c7] ss:$8 sm:$0xf0]   ;;  %v4227_v19 = vpack.i.bf16 %v2402_v9, %v2391_v8 }
  0x45   :  { %v2411_v56 = vld [vmem:[#allocation1 + $0x46] ss:$8 sm:$0xf0]   ;;  %v4212_v62 = vpack.i.bf16 %v2337_v49, %v2326_v57  ;;  %v2541_v43 = vld [vmem:[#allocation1 + $0x5] ss:$8 sm:$0xf]  }
  0x46   :  { %v2420_v61 = vld [vmem:[#allocation1 + $0x146] ss:$8 sm:$0xf]   ;;  %v2355_v63 = vld [vmem:[#allocation1 + $0x3c7] ss:$8 sm:$0xf]   ;;  %v2413_v12 = vsel %vm2051_vm0, %v2411_v56, %v2409_v55 }
  0x47   :  { %v2422_v0 = vld [vmem:[#allocation1 + $0x146] ss:$8 sm:$0xf0]   ;;  %v2359_v2 = vsel %vm2051_vm0, %v2357_v58, %v2355_v63  ;;  %4213 = vrot.lane.b32.xlu0 %v4212_v62, %s4462_s18  ;;  %v2543_v44 = vld [vmem:[#allocation1 + $0x5] ss:$8 sm:$0xf0]  }
  0x48   :  { %v2346_v1 = vld [vmem:[#allocation1 + $0x2c7] ss:$8 sm:$0xf0]   ;;  %v2431_v3 = vld [vmem:[#allocation1 + $0x246] ss:$8 sm:$0xf]   ;;  %v2424_v13 = vsel %vm2051_vm0, %v2422_v0, %v2420_v61  ;;  %v2545_v55 = vsel %vm2051_vm0, %v2543_v44, %v2541_v43 }
  0x49   :  { %v2433_v4 = vld [vmem:[#allocation1 + $0x246] ss:$8 sm:$0xf0]   ;;  %v4232_v22 = vpack.i.bf16 %v2424_v13, %v2413_v12  ;;  %v2551_v45 = vld [vmem:[#allocation1 + $0x105] ss:$8 sm:$0xf]  }
  0x4a   :  { %v2442_v5 = vld [vmem:[#allocation1 + $0x346] ss:$8 sm:$0xf]   ;;  %v2344_v6 = vld [vmem:[#allocation1 + $0x2c7] ss:$8 sm:$0xf]   ;;  %v2435_v23 = vsel %vm2051_vm0, %v2433_v4, %v2431_v3 }
  0x4b   :  { %v2444_v10 = vld [vmem:[#allocation1 + $0x346] ss:$8 sm:$0xf0]   ;;  %v2348_v11 = vsel %vm2051_vm0, %v2346_v1, %v2344_v6  ;;  %4223 = vrot.lane.b32.xlu0 %v4222_v7, %s4463_s0  ;;  %v2553_v46 = vld [vmem:[#allocation1 + $0x105] ss:$8 sm:$0xf0]  }
  0x4c   :  { %v2453_v14 = vld [vmem:[#allocation1 + $0x86] ss:$8 sm:$0xf]   ;;  %v4217_v16 = vpack.i.bf16 %v2359_v2, %v2348_v11  ;;  %v2446_v24 = vsel %vm2051_vm0, %v2444_v10, %v2442_v5  ;;  %v2562_v48 = vld [vmem:[#allocation1 + $0x205] ss:$8 sm:$0xf]   ;;  %v2555_v56 = vsel %vm2051_vm0, %v2553_v46, %v2551_v45 }
  0x4d   :  { %v2455_v15 = vld [vmem:[#allocation1 + $0x86] ss:$8 sm:$0xf0]   ;;  %v4237_v33 = vpack.i.bf16 %v2446_v24, %v2435_v23  ;;  %v2564_v49 = vld [vmem:[#allocation1 + $0x205] ss:$8 sm:$0xf0]   ;;  %v4262_v0 = vpack.i.bf16 %v2555_v56, %v2545_v55 }
  0x4e   :  { %v2464_v17 = vld [vmem:[#allocation1 + $0x186] ss:$8 sm:$0xf]   ;;  %4218 = vrot.lane.b32.xlu1 %v4217_v16, %s4462_s18  ;;  %v2457_v27 = vsel %vm2051_vm0, %v2455_v15, %v2453_v14  ;;  %v2573_v53 = vld [vmem:[#allocation1 + $0x305] ss:$8 sm:$0xf]   ;;  %v2566_v1 = vsel %vm2051_vm0, %v2564_v49, %v2562_v48 }
  0x4f   :  { %v2466_v18 = vld [vmem:[#allocation1 + $0x186] ss:$8 sm:$0xf0]   ;;  %4233 = vrot.lane.b32.xlu0 %v4232_v22, %s4463_s0  ;;  %v2575_v54 = vld [vmem:[#allocation1 + $0x305] ss:$8 sm:$0xf0]  }
  0x50   :  { %v2475_v20 = vld [vmem:[#allocation1 + $0x286] ss:$8 sm:$0xf]   ;;  %v2468_v28 = vsel %vm2051_vm0, %v2466_v18, %v2464_v17  ;;  %v2584_v57 = vld [vmem:[#allocation1 + $0x45] ss:$8 sm:$0xf]   ;;  %v2577_v2 = vsel %vm2051_vm0, %v2575_v54, %v2573_v53 }
  0x51   :  { %v2477_v21 = vld [vmem:[#allocation1 + $0x286] ss:$8 sm:$0xf0]   ;;  %v4242_v36 = vpack.i.bf16 %v2468_v28, %v2457_v27  ;;  %v2586_v58 = vld [vmem:[#allocation1 + $0x45] ss:$8 sm:$0xf0]   ;;  %v4267_v11 = vpack.i.bf16 %v2577_v2, %v2566_v1 }
  0x52   :  { %v2486_v25 = vld [vmem:[#allocation1 + $0x386] ss:$8 sm:$0xf]   ;;  %4228 = vrot.lane.b32.xlu1 %v4227_v19, %s4463_s0  ;;  %v2479_v37 = vsel %vm2051_vm0, %v2477_v21, %v2475_v20  ;;  %v2595_v59 = vld [vmem:[#allocation1 + $0x145] ss:$8 sm:$0xf]   ;;  %v2588_v5 = vsel %vm2051_vm0, %v2586_v58, %v2584_v57 }
  0x53   :  { %v2488_v26 = vld [vmem:[#allocation1 + $0x386] ss:$8 sm:$0xf0]   ;;  %4243 = vrot.lane.b32.xlu0 %v4242_v36, %s4463_s0  ;;  %v2597_v60 = vld [vmem:[#allocation1 + $0x145] ss:$8 sm:$0xf0]  }
  0x54   :  { %v2497_v29 = vld [vmem:[#allocation1 + $0xc6] ss:$8 sm:$0xf]   ;;  %v2490_v38 = vsel %vm2051_vm0, %v2488_v26, %v2486_v25  ;;  %v2606_v62 = vld [vmem:[#allocation1 + $0x245] ss:$8 sm:$0xf]   ;;  %v2599_v6 = vsel %vm2051_vm0, %v2597_v60, %v2595_v59 }
  0x55   :  { %v2499_v30 = vld [vmem:[#allocation1 + $0xc6] ss:$8 sm:$0xf0]   ;;  %v4247_v47 = vpack.i.bf16 %v2490_v38, %v2479_v37  ;;  %v2608_v63 = vld [vmem:[#allocation1 + $0x245] ss:$8 sm:$0xf0]   ;;  %v4272_v14 = vpack.i.bf16 %v2599_v6, %v2588_v5 }
  0x56   :  { %v2508_v31 = vld [vmem:[#allocation1 + $0x1c6] ss:$8 sm:$0xf]   ;;  %v2501_v41 = vsel %vm2051_vm0, %v2499_v30, %v2497_v29  ;;  %4238 = vrot.lane.b32.xlu1 %v4237_v33, %s4463_s0  ;;  %v2617_v3 = vld [vmem:[#allocation1 + $0x345] ss:$8 sm:$0xf]   ;;  %v2610_v15 = vsel %vm2051_vm0, %v2608_v63, %v2606_v62 }
  0x57   :  { %v2510_v32 = vld [vmem:[#allocation1 + $0x1c6] ss:$8 sm:$0xf0]   ;;  %v2619_v4 = vld [vmem:[#allocation1 + $0x345] ss:$8 sm:$0xf0]  }
  0x58   :  { %v2519_v34 = vld [vmem:[#allocation1 + $0x2c6] ss:$8 sm:$0xf]   ;;  %v2512_v42 = vsel %vm2051_vm0, %v2510_v32, %v2508_v31  ;;  %v2628_v7 = vld [vmem:[#allocation1 + $0x85] ss:$8 sm:$0xf]   ;;  %v2621_v16 = vsel %vm2051_vm0, %v2619_v4, %v2617_v3 }
  0x59   :  { %v2521_v35 = vld [vmem:[#allocation1 + $0x2c6] ss:$8 sm:$0xf0]   ;;  %v4252_v50 = vpack.i.bf16 %v2512_v42, %v2501_v41  ;;  %v2630_v8 = vld [vmem:[#allocation1 + $0x85] ss:$8 sm:$0xf0]   ;;  %v4277_v25 = vpack.i.bf16 %v2621_v16, %v2610_v15 }
  0x5a   :  { %v2530_v39 = vld [vmem:[#allocation1 + $0x3c6] ss:$8 sm:$0xf]   ;;  %v2523_v51 = vsel %vm2051_vm0, %v2521_v35, %v2519_v34  ;;  %4248 = vrot.lane.b32.xlu1 %v4247_v47, %s4463_s0  ;;  %v2639_v9 = vld [vmem:[#allocation1 + $0x185] ss:$8 sm:$0xf]   ;;  %v2632_v19 = vsel %vm2051_vm0, %v2630_v8, %v2628_v7 }
  0x5b   :  { %v2532_v40 = vld [vmem:[#allocation1 + $0x3c6] ss:$8 sm:$0xf0]   ;;  %4253 = vrot.lane.b32.xlu0 %v4252_v50, %s4463_s0  ;;  %v2641_v10 = vld [vmem:[#allocation1 + $0x185] ss:$8 sm:$0xf0]  }
  0x5c   :  { %v2534_v52 = vsel %vm2051_vm0, %v2532_v40, %v2530_v39  ;;  %v2650_v12 = vld [vmem:[#allocation1 + $0x285] ss:$8 sm:$0xf]   ;;  %s4464_s18 = smov 80   ;;  %v2643_v20 = vsel %vm2051_vm0, %v2641_v10, %v2639_v9 }
  0x5d   :  { %v4257_v61 = vpack.i.bf16 %v2534_v52, %v2523_v51  ;;  %v2652_v13 = vld [vmem:[#allocation1 + $0x285] ss:$8 sm:$0xf0]   ;;  %v4282_v28 = vpack.i.bf16 %v2643_v20, %v2632_v19  ;;  %v2716_v35 = vld [vmem:[#allocation1 + $0x4] ss:$8 sm:$0xf]  }
  0x5e   :  { %v2661_v17 = vld [vmem:[#allocation1 + $0x385] ss:$8 sm:$0xf]   ;;  %v2654_v29 = vsel %vm2051_vm0, %v2652_v13, %v2650_v12  ;;  %v2718_v36 = vld [vmem:[#allocation1 + $0x4] ss:$8 sm:$0xf0]  }
  0x5f   :  { %4258 = vrot.lane.b32.xlu1 %v4257_v61, %s4463_s0  ;;  %4263 = vrot.lane.b32.xlu0 %v4262_v0, %s4464_s18  ;;  %v2663_v18 = vld [vmem:[#allocation1 + $0x385] ss:$8 sm:$0xf0]   ;;  %v2726_v37 = vld [vmem:[#allocation1 + $0x104] ss:$8 sm:$0xf]   ;;  %v2720_v47 = vsel %vm2051_vm0, %v2718_v36, %v2716_v35 }
  0x60   :  { %v2672_v21 = vld [vmem:[#allocation1 + $0xc5] ss:$8 sm:$0xf]   ;;  %v2665_v30 = vsel %vm2051_vm0, %v2663_v18, %v2661_v17  ;;  %v2728_v38 = vld [vmem:[#allocation1 + $0x104] ss:$8 sm:$0xf0]  }
  0x61   :  { %v2674_v22 = vld [vmem:[#allocation1 + $0xc5] ss:$8 sm:$0xf0]   ;;  %v4287_v39 = vpack.i.bf16 %v2665_v30, %v2654_v29  ;;  %v2737_v40 = vld [vmem:[#allocation1 + $0x204] ss:$8 sm:$0xf]   ;;  %v2730_v48 = vsel %vm2051_vm0, %v2728_v38, %v2726_v37 }
  0x62   :  { %v2683_v23 = vld [vmem:[#allocation1 + $0x1c5] ss:$8 sm:$0xf]   ;;  %v2676_v33 = vsel %vm2051_vm0, %v2674_v22, %v2672_v21  ;;  %v2739_v41 = vld [vmem:[#allocation1 + $0x204] ss:$8 sm:$0xf0]   ;;  %v4302_v56 = vpack.i.bf16 %v2730_v48, %v2720_v47 }
  0x63   :  { %v2685_v24 = vld [vmem:[#allocation1 + $0x1c5] ss:$8 sm:$0xf0]   ;;  %4268 = vrot.lane.b32.xlu1 %v4267_v11, %s4464_s18  ;;  %4273 = vrot.lane.b32.xlu0 %v4272_v14, %s4464_s18  ;;  %v2748_v45 = vld [vmem:[#allocation1 + $0x304] ss:$8 sm:$0xf]   ;;  %v2741_v57 = vsel %vm2051_vm0, %v2739_v41, %v2737_v40 }
  0x64   :  { %v2694_v26 = vld [vmem:[#allocation1 + $0x2c5] ss:$8 sm:$0xf]   ;;  %v2687_v34 = vsel %vm2051_vm0, %v2685_v24, %v2683_v23  ;;  %v2750_v46 = vld [vmem:[#allocation1 + $0x304] ss:$8 sm:$0xf0]  }
  0x65   :  { %v2696_v27 = vld [vmem:[#allocation1 + $0x2c5] ss:$8 sm:$0xf0]   ;;  %v4292_v42 = vpack.i.bf16 %v2687_v34, %v2676_v33  ;;  %v2759_v49 = vld [vmem:[#allocation1 + $0x44] ss:$8 sm:$0xf]   ;;  %v2752_v58 = vsel %vm2051_vm0, %v2750_v46, %v2748_v45 }
  0x66   :  { %v2705_v31 = vld [vmem:[#allocation1 + $0x3c5] ss:$8 sm:$0xf]   ;;  %v2698_v43 = vsel %vm2051_vm0, %v2696_v27, %v2694_v26  ;;  %v2761_v50 = vld [vmem:[#allocation1 + $0x44] ss:$8 sm:$0xf0]   ;;  %v4307_v3 = vpack.i.bf16 %v2752_v58, %v2741_v57 }
  0x67   :  { %v2707_v32 = vld [vmem:[#allocation1 + $0x3c5] ss:$8 sm:$0xf0]   ;;  %4278 = vrot.lane.b32.xlu1 %v4277_v25, %s4464_s18  ;;  %4283 = vrot.lane.b32.xlu0 %v4282_v28, %s4464_s18  ;;  %v2770_v51 = vld [vmem:[#allocation1 + $0x144] ss:$8 sm:$0xf]   ;;  %v2763_v61 = vsel %vm2051_vm0, %v2761_v50, %v2759_v49 }
  0x68   :  { %v2709_v44 = vsel %vm2051_vm0, %v2707_v32, %v2705_v31  ;;  %v2772_v52 = vld [vmem:[#allocation1 + $0x144] ss:$8 sm:$0xf0]   ;;  %v2891_v27 = vld [vmem:[#allocation1 + $0x3] ss:$8 sm:$0xf]  }
  0x69   :  { %v4297_v53 = vpack.i.bf16 %v2709_v44, %v2698_v43  ;;  %v2781_v54 = vld [vmem:[#allocation1 + $0x244] ss:$8 sm:$0xf]   ;;  %v2774_v62 = vsel %vm2051_vm0, %v2772_v52, %v2770_v51  ;;  %v2893_v28 = vld [vmem:[#allocation1 + $0x3] ss:$8 sm:$0xf0]  }
  0x6a   :  { %v2783_v55 = vld [vmem:[#allocation1 + $0x244] ss:$8 sm:$0xf0]   ;;  %v4312_v6 = vpack.i.bf16 %v2774_v62, %v2763_v61  ;;  %v2901_v29 = vld [vmem:[#allocation1 + $0x103] ss:$8 sm:$0xf]  }
  0x6b   :  { %4288 = vrot.lane.b32.xlu1 %v4287_v39, %s4464_s18  ;;  %4293 = vrot.lane.b32.xlu0 %v4292_v42, %s4464_s18  ;;  %v2792_v59 = vld [vmem:[#allocation1 + $0x344] ss:$8 sm:$0xf]   ;;  %v2785_v7 = vsel %vm2051_vm0, %v2783_v55, %v2781_v54  ;;  %v2903_v30 = vld [vmem:[#allocation1 + $0x103] ss:$8 sm:$0xf0]   ;;  %v2895_v39 = vsel %vm2051_vm0, %v2893_v28, %v2891_v27 }
  0x6c   :  { %v2794_v60 = vld [vmem:[#allocation1 + $0x344] ss:$8 sm:$0xf0]   ;;  %v2912_v32 = vld [vmem:[#allocation1 + $0x203] ss:$8 sm:$0xf]   ;;  %v2905_v40 = vsel %vm2051_vm0, %v2903_v30, %v2901_v29 }
  0x6d   :  { %v2803_v63 = vld [vmem:[#allocation1 + $0x84] ss:$8 sm:$0xf]   ;;  %v2796_v8 = vsel %vm2051_vm0, %v2794_v60, %v2792_v59  ;;  %v2914_v33 = vld [vmem:[#allocation1 + $0x203] ss:$8 sm:$0xf0]   ;;  %v4342_v48 = vpack.i.bf16 %v2905_v40, %v2895_v39 }
  0x6e   :  { %v2805_v0 = vld [vmem:[#allocation1 + $0x84] ss:$8 sm:$0xf0]   ;;  %v4317_v17 = vpack.i.bf16 %v2796_v8, %v2785_v7  ;;  %v2923_v37 = vld [vmem:[#allocation1 + $0x303] ss:$8 sm:$0xf]   ;;  %v2916_v49 = vsel %vm2051_vm0, %v2914_v33, %v2912_v32 }
  0x6f   :  { %v2814_v1 = vld [vmem:[#allocation1 + $0x184] ss:$8 sm:$0xf]   ;;  %4298 = vrot.lane.b32.xlu1 %v4297_v53, %s4464_s18  ;;  %4303 = vrot.lane.b32.xlu0 %v4302_v56, %s4465_s21  ;;  %v2807_v11 = vsel %vm2051_vm0, %v2805_v0, %v2803_v63  ;;  %v2925_v38 = vld [vmem:[#allocation1 + $0x303] ss:$8 sm:$0xf0]  }
  0x70   :  { %v2816_v2 = vld [vmem:[#allocation1 + $0x184] ss:$8 sm:$0xf0]   ;;  %v2934_v41 = vld [vmem:[#allocation1 + $0x43] ss:$8 sm:$0xf]   ;;  %v2927_v50 = vsel %vm2051_vm0, %v2925_v38, %v2923_v37 }
  0x71   :  { %v2825_v4 = vld [vmem:[#allocation1 + $0x284] ss:$8 sm:$0xf]   ;;  %v2818_v12 = vsel %vm2051_vm0, %v2816_v2, %v2814_v1  ;;  %v2936_v42 = vld [vmem:[#allocation1 + $0x43] ss:$8 sm:$0xf0]   ;;  %v4347_v59 = vpack.i.bf16 %v2927_v50, %v2916_v49 }
  0x72   :  { %v2827_v5 = vld [vmem:[#allocation1 + $0x284] ss:$8 sm:$0xf0]   ;;  %v4322_v20 = vpack.i.bf16 %v2818_v12, %v2807_v11  ;;  %v2945_v43 = vld [vmem:[#allocation1 + $0x143] ss:$8 sm:$0xf]   ;;  %v2938_v53 = vsel %vm2051_vm0, %v2936_v42, %v2934_v41 }
  0x73   :  { %v2836_v9 = vld [vmem:[#allocation1 + $0x384] ss:$8 sm:$0xf]   ;;  %4308 = vrot.lane.b32.xlu1 %v4307_v3, %s4465_s21  ;;  %4313 = vrot.lane.b32.xlu0 %v4312_v6, %s4465_s21  ;;  %v2829_v21 = vsel %vm2051_vm0, %v2827_v5, %v2825_v4  ;;  %v2947_v44 = vld [vmem:[#allocation1 + $0x143] ss:$8 sm:$0xf0]  }
  0x74   :  { %v2838_v10 = vld [vmem:[#allocation1 + $0x384] ss:$8 sm:$0xf0]   ;;  %v2956_v46 = vld [vmem:[#allocation1 + $0x243] ss:$8 sm:$0xf]   ;;  %v2949_v54 = vsel %vm2051_vm0, %v2947_v44, %v2945_v43 }
  0x75   :  { %v2847_v13 = vld [vmem:[#allocation1 + $0xc4] ss:$8 sm:$0xf]   ;;  %v2840_v22 = vsel %vm2051_vm0, %v2838_v10, %v2836_v9  ;;  %v2958_v47 = vld [vmem:[#allocation1 + $0x243] ss:$8 sm:$0xf0]   ;;  %v4352_v62 = vpack.i.bf16 %v2949_v54, %v2938_v53 }
  0x76   :  { %v2849_v14 = vld [vmem:[#allocation1 + $0xc4] ss:$8 sm:$0xf0]   ;;  %v4327_v31 = vpack.i.bf16 %v2840_v22, %v2829_v21  ;;  %v2967_v51 = vld [vmem:[#allocation1 + $0x343] ss:$8 sm:$0xf]   ;;  %v2960_v63 = vsel %vm2051_vm0, %v2958_v47, %v2956_v46 }
  0x77   :  { %v2858_v15 = vld [vmem:[#allocation1 + $0x1c4] ss:$8 sm:$0xf]   ;;  %v2851_v25 = vsel %vm2051_vm0, %v2849_v14, %v2847_v13  ;;  %4318 = vrot.lane.b32.xlu1 %v4317_v17, %s4465_s21  ;;  %4323 = vrot.lane.b32.xlu0 %v4322_v20, %s4465_s21  ;;  %v2969_v52 = vld [vmem:[#allocation1 + $0x343] ss:$8 sm:$0xf0]  }
  0x78   :  { %v2860_v16 = vld [vmem:[#allocation1 + $0x1c4] ss:$8 sm:$0xf0]   ;;  %v2978_v55 = vld [vmem:[#allocation1 + $0x83] ss:$8 sm:$0xf]   ;;  %v2971_v0 = vsel %vm2051_vm0, %v2969_v52, %v2967_v51 }
  0x79   :  { %v2869_v18 = vld [vmem:[#allocation1 + $0x2c4] ss:$8 sm:$0xf]   ;;  %v2862_v26 = vsel %vm2051_vm0, %v2860_v16, %v2858_v15  ;;  %v2980_v56 = vld [vmem:[#allocation1 + $0x83] ss:$8 sm:$0xf0]   ;;  %v4357_v9 = vpack.i.bf16 %v2971_v0, %v2960_v63 }
  0x7a   :  { %v2871_v19 = vld [vmem:[#allocation1 + $0x2c4] ss:$8 sm:$0xf0]   ;;  %v4332_v34 = vpack.i.bf16 %v2862_v26, %v2851_v25  ;;  %v2989_v57 = vld [vmem:[#allocation1 + $0x183] ss:$8 sm:$0xf]   ;;  %v2982_v3 = vsel %vm2051_vm0, %v2980_v56, %v2978_v55 }
  0x7b   :  { %v2880_v23 = vld [vmem:[#allocation1 + $0x3c4] ss:$8 sm:$0xf]   ;;  %v2873_v35 = vsel %vm2051_vm0, %v2871_v19, %v2869_v18  ;;  %4328 = vrot.lane.b32.xlu1 %v4327_v31, %s4465_s21  ;;  %v2991_v58 = vld [vmem:[#allocation1 + $0x183] ss:$8 sm:$0xf0]  }
  0x7c   :  { %v2882_v24 = vld [vmem:[#allocation1 + $0x3c4] ss:$8 sm:$0xf0]   ;;  %4333 = vrot.lane.b32.xlu0 %v4332_v34, %s4465_s21  ;;  %v3000_v60 = vld [vmem:[#allocation1 + $0x283] ss:$8 sm:$0xf]   ;;  %v2993_v4 = vsel %vm2051_vm0, %v2991_v58, %v2989_v57 }
  0x7d   :  { %v2884_v36 = vsel %vm2051_vm0, %v2882_v24, %v2880_v23  ;;  %v3002_v61 = vld [vmem:[#allocation1 + $0x283] ss:$8 sm:$0xf0]   ;;  %v4362_v12 = vpack.i.bf16 %v2993_v4, %v2982_v3  ;;  %v3066_v19 = vld [vmem:[#allocation1 + $0x2] ss:$8 sm:$0xf]  }
  0x7e   :  { %v4337_v45 = vpack.i.bf16 %v2884_v36, %v2873_v35  ;;  %v3011_v1 = vld [vmem:[#allocation1 + $0x383] ss:$8 sm:$0xf]   ;;  %v3004_v13 = vsel %vm2051_vm0, %v3002_v61, %v3000_v60  ;;  %v3068_v20 = vld [vmem:[#allocation1 + $0x2] ss:$8 sm:$0xf0]  }
  0x7f   :  { %v3013_v2 = vld [vmem:[#allocation1 + $0x383] ss:$8 sm:$0xf0]   ;;  %v3076_v21 = vld [vmem:[#allocation1 + $0x102] ss:$8 sm:$0xf]   ;;  %v3070_v31 = vsel %vm2051_vm0, %v3068_v20, %v3066_v19 }
  0x80   :  { %4338 = vrot.lane.b32.xlu1 %v4337_v45, %s4465_s21  ;;  %4343 = vrot.lane.b32.xlu0 %v4342_v48, %s4466_s22  ;;  %v3022_v5 = vld [vmem:[#allocation1 + $0xc3] ss:$8 sm:$0xf]   ;;  %v3015_v14 = vsel %vm2051_vm0, %v3013_v2, %v3011_v1  ;;  %v3078_v22 = vld [vmem:[#allocation1 + $0x102] ss:$8 sm:$0xf0]  }
  0x81   :  { %v3024_v6 = vld [vmem:[#allocation1 + $0xc3] ss:$8 sm:$0xf0]   ;;  %v4367_v23 = vpack.i.bf16 %v3015_v14, %v3004_v13  ;;  %v3087_v24 = vld [vmem:[#allocation1 + $0x202] ss:$8 sm:$0xf]   ;;  %v3080_v32 = vsel %vm2051_vm0, %v3078_v22, %v3076_v21 }
  0x82   :  { %v3033_v7 = vld [vmem:[#allocation1 + $0x1c3] ss:$8 sm:$0xf]   ;;  %v3026_v17 = vsel %vm2051_vm0, %v3024_v6, %v3022_v5  ;;  %v3089_v25 = vld [vmem:[#allocation1 + $0x202] ss:$8 sm:$0xf0]   ;;  %v4382_v40 = vpack.i.bf16 %v3080_v32, %v3070_v31 }
  0x83   :  { %v3035_v8 = vld [vmem:[#allocation1 + $0x1c3] ss:$8 sm:$0xf0]   ;;  %v3098_v29 = vld [vmem:[#allocation1 + $0x302] ss:$8 sm:$0xf]   ;;  %v3091_v41 = vsel %vm2051_vm0, %v3089_v25, %v3087_v24 }
  0x84   :  { %v3044_v10 = vld [vmem:[#allocation1 + $0x2c3] ss:$8 sm:$0xf]   ;;  %4348 = vrot.lane.b32.xlu1 %v4347_v59, %s4466_s22  ;;  %4353 = vrot.lane.b32.xlu0 %v4352_v62, %s4466_s22  ;;  %v3037_v18 = vsel %vm2051_vm0, %v3035_v8, %v3033_v7  ;;  %v3100_v30 = vld [vmem:[#allocation1 + $0x302] ss:$8 sm:$0xf0]  }
  0x85   :  { %v3046_v11 = vld [vmem:[#allocation1 + $0x2c3] ss:$8 sm:$0xf0]   ;;  %v4372_v26 = vpack.i.bf16 %v3037_v18, %v3026_v17  ;;  %v3109_v33 = vld [vmem:[#allocation1 + $0x42] ss:$8 sm:$0xf]   ;;  %v3102_v42 = vsel %vm2051_vm0, %v3100_v30, %v3098_v29 }
  0x86   :  { %v3055_v15 = vld [vmem:[#allocation1 + $0x3c3] ss:$8 sm:$0xf]   ;;  %v3048_v27 = vsel %vm2051_vm0, %v3046_v11, %v3044_v10  ;;  %v3111_v34 = vld [vmem:[#allocation1 + $0x42] ss:$8 sm:$0xf0]   ;;  %v4387_v51 = vpack.i.bf16 %v3102_v42, %v3091_v41 }
  0x87   :  { %v3057_v16 = vld [vmem:[#allocation1 + $0x3c3] ss:$8 sm:$0xf0]   ;;  %v3120_v35 = vld [vmem:[#allocation1 + $0x142] ss:$8 sm:$0xf]   ;;  %v3113_v45 = vsel %vm2051_vm0, %v3111_v34, %v3109_v33 }
  0x88   :  { %4358 = vrot.lane.b32.xlu1 %v4357_v9, %s4466_s22  ;;  %4363 = vrot.lane.b32.xlu0 %v4362_v12, %s4466_s22  ;;  %v3059_v28 = vsel %vm2051_vm0, %v3057_v16, %v3055_v15  ;;  %v3122_v36 = vld [vmem:[#allocation1 + $0x142] ss:$8 sm:$0xf0]   ;;  %v3241_v11 = vld [vmem:[#allocation1 + $0x1] ss:$8 sm:$0xf]  }
  0x89   :  { %v4377_v37 = vpack.i.bf16 %v3059_v28, %v3048_v27  ;;  %v3131_v38 = vld [vmem:[#allocation1 + $0x242] ss:$8 sm:$0xf]   ;;  %v3124_v46 = vsel %vm2051_vm0, %v3122_v36, %v3120_v35  ;;  %v3243_v12 = vld [vmem:[#allocation1 + $0x1] ss:$8 sm:$0xf0]  }
  0x8a   :  { %v3133_v39 = vld [vmem:[#allocation1 + $0x242] ss:$8 sm:$0xf0]   ;;  %v4392_v54 = vpack.i.bf16 %v3124_v46, %v3113_v45  ;;  %v3251_v13 = vld [vmem:[#allocation1 + $0x101] ss:$8 sm:$0xf]  }
  0x8b   :  { %v3142_v43 = vld [vmem:[#allocation1 + $0x342] ss:$8 sm:$0xf]   ;;  %v3135_v55 = vsel %vm2051_vm0, %v3133_v39, %v3131_v38  ;;  %v3253_v14 = vld [vmem:[#allocation1 + $0x101] ss:$8 sm:$0xf0]  }
  0x8c   :  { %4368 = vrot.lane.b32.xlu1 %v4367_v23, %s4466_s22  ;;  %4373 = vrot.lane.b32.xlu0 %v4372_v26, %s4466_s22  ;;  %v3144_v44 = vld [vmem:[#allocation1 + $0x342] ss:$8 sm:$0xf0]   ;;  %v3262_v16 = vld [vmem:[#allocation1 + $0x201] ss:$8 sm:$0xf]   ;;  %v3245_v23 = vsel %vm2051_vm0, %v3243_v12, %v3241_v11  ;;  %v3255_v24 = vsel %vm2051_vm0, %v3253_v14, %v3251_v13 }
  0x8d   :  { %v3153_v47 = vld [vmem:[#allocation1 + $0x82] ss:$8 sm:$0xf]   ;;  %v3146_v56 = vsel %vm2051_vm0, %v3144_v44, %v3142_v43  ;;  %v3264_v17 = vld [vmem:[#allocation1 + $0x201] ss:$8 sm:$0xf0]   ;;  %v4422_v32 = vpack.i.bf16 %v3255_v24, %v3245_v23 }
  0x8e   :  { %v3155_v48 = vld [vmem:[#allocation1 + $0x82] ss:$8 sm:$0xf0]   ;;  %v4397_v1 = vpack.i.bf16 %v3146_v56, %v3135_v55  ;;  %v3273_v21 = vld [vmem:[#allocation1 + $0x301] ss:$8 sm:$0xf]   ;;  %v3266_v33 = vsel %vm2051_vm0, %v3264_v17, %v3262_v16 }
  0x8f   :  { %v3164_v49 = vld [vmem:[#allocation1 + $0x182] ss:$8 sm:$0xf]   ;;  %v3157_v59 = vsel %vm2051_vm0, %v3155_v48, %v3153_v47  ;;  %v3275_v22 = vld [vmem:[#allocation1 + $0x301] ss:$8 sm:$0xf0]  }
  0x90   :  { %v3166_v50 = vld [vmem:[#allocation1 + $0x182] ss:$8 sm:$0xf0]   ;;  %4378 = vrot.lane.b32.xlu1 %v4377_v37, %s4466_s22  ;;  %4383 = vrot.lane.b32.xlu0 %v4382_v40, %s4467_s23  ;;  %v3284_v25 = vld [vmem:[#allocation1 + $0x41] ss:$8 sm:$0xf]   ;;  %v3277_v34 = vsel %vm2051_vm0, %v3275_v22, %v3273_v21  ;;  %v4194_v16 = vpop.permute.xlu1 %4193 }
  0x91   :  { %v3175_v52 = vld [vmem:[#allocation1 + $0x282] ss:$8 sm:$0xf]   ;;  %v3168_v60 = vsel %vm2051_vm0, %v3166_v50, %v3164_v49  ;;  %v3286_v26 = vld [vmem:[#allocation1 + $0x41] ss:$8 sm:$0xf0]   ;;  %v4427_v43 = vpack.i.bf16 %v3277_v34, %v3266_v33 }
  0x92   :  { %v3177_v53 = vld [vmem:[#allocation1 + $0x282] ss:$8 sm:$0xf0]   ;;  %v4402_v4 = vpack.i.bf16 %v3168_v60, %v3157_v59  ;;  %v3295_v27 = vld [vmem:[#allocation1 + $0x141] ss:$8 sm:$0xf]   ;;  %v3288_v37 = vsel %vm2051_vm0, %v3286_v26, %v3284_v25  ;;  %v4184_v59 = vpop.permute.xlu0 %4183 }
  0x93   :  { %v3186_v57 = vld [vmem:[#allocation1 + $0x382] ss:$8 sm:$0xf]   ;;  %v3179_v5 = vsel %vm2051_vm0, %v3177_v53, %v3175_v52  ;;  %v3297_v28 = vld [vmem:[#allocation1 + $0x141] ss:$8 sm:$0xf0]  }
  0x94   :  { %v3188_v58 = vld [vmem:[#allocation1 + $0x382] ss:$8 sm:$0xf0]   ;;  %4388 = vrot.lane.b32.xlu1 %v4387_v51, %s4467_s23  ;;  %4393 = vrot.lane.b32.xlu0 %v4392_v54, %s4467_s23  ;;  %v3306_v30 = vld [vmem:[#allocation1 + $0x241] ss:$8 sm:$0xf]   ;;  %v3299_v38 = vsel %vm2051_vm0, %v3297_v28, %v3295_v27 }
  0x95   :  { %v3197_v61 = vld [vmem:[#allocation1 + $0xc2] ss:$8 sm:$0xf]   ;;  %v3190_v6 = vsel %vm2051_vm0, %v3188_v58, %v3186_v57  ;;  %v3308_v31 = vld [vmem:[#allocation1 + $0x241] ss:$8 sm:$0xf0]   ;;  %v4432_v46 = vpack.i.bf16 %v3299_v38, %v3288_v37 }
  0x96   :  { %v3199_v62 = vld [vmem:[#allocation1 + $0xc2] ss:$8 sm:$0xf0]   ;;  %v4407_v15 = vpack.i.bf16 %v3190_v6, %v3179_v5  ;;  %v3317_v35 = vld [vmem:[#allocation1 + $0x341] ss:$8 sm:$0xf]   ;;  %v3310_v47 = vsel %vm2051_vm0, %v3308_v31, %v3306_v30  ;;  %v4186_v5 = vunpack.i.h.bf16 %v4184_v59  ;;  %v4185_v6 = vunpack.i.l.bf16 %v4184_v59 }
  0x97   :  { %v3208_v63 = vld [vmem:[#allocation1 + $0x1c2] ss:$8 sm:$0xf]   ;;  %v3201_v9 = vsel %vm2051_vm0, %v3199_v62, %v3197_v61  ;;  %v3319_v36 = vld [vmem:[#allocation1 + $0x341] ss:$8 sm:$0xf0]  }
  0x98   :  { %v3210_v0 = vld [vmem:[#allocation1 + $0x1c2] ss:$8 sm:$0xf0]   ;;  %4398 = vrot.lane.b32.xlu1 %v4397_v1, %s4467_s23  ;;  %4403 = vrot.lane.b32.xlu0 %v4402_v4, %s4467_s23  ;;  %v3328_v39 = vld [vmem:[#allocation1 + $0x81] ss:$8 sm:$0xf]   ;;  %v3321_v48 = vsel %vm2051_vm0, %v3319_v36, %v3317_v35  ;;  %v4189_v37 = vpop.permute.xlu0 %4188 }
  0x99   :  { %v3219_v2 = vld [vmem:[#allocation1 + $0x2c2] ss:$8 sm:$0xf]   ;;  %v3212_v10 = vsel %vm2051_vm0, %v3210_v0, %v3208_v63  ;;  %v3330_v40 = vld [vmem:[#allocation1 + $0x81] ss:$8 sm:$0xf0]   ;;  %v4437_v60 = vpack.i.bf16 %v3321_v48, %v3310_v47 }
  0x9a   :  { %v3221_v3 = vld [vmem:[#allocation1 + $0x2c2] ss:$8 sm:$0xf0]   ;;  %v4412_v18 = vpack.i.bf16 %v3212_v10, %v3201_v9  ;;  %v3339_v41 = vld [vmem:[#allocation1 + $0x181] ss:$8 sm:$0xf]   ;;  %v3332_v53 = vsel %vm2051_vm0, %v3330_v40, %v3328_v39 }
  0x9b   :  { %v3230_v7 = vld [vmem:[#allocation1 + $0x3c2] ss:$8 sm:$0xf]   ;;  %v3223_v19 = vsel %vm2051_vm0, %v3221_v3, %v3219_v2  ;;  %v3341_v42 = vld [vmem:[#allocation1 + $0x181] ss:$8 sm:$0xf0]  }
  0x9c   :  { %v3232_v8 = vld [vmem:[#allocation1 + $0x3c2] ss:$8 sm:$0xf0]   ;;  %4408 = vrot.lane.b32.xlu1 %v4407_v15, %s4467_s23  ;;  %4413 = vrot.lane.b32.xlu0 %v4412_v18, %s4467_s23  ;;  %v3350_v44 = vld [vmem:[#allocation1 + $0x281] ss:$8 sm:$0xf]   ;;  %v3343_v54 = vsel %vm2051_vm0, %v3341_v42, %v3339_v41  ;;  %v4191_v42 = vunpack.i.h.bf16 %v4189_v37 }
  0x9d   :  { %v3234_v20 = vsel %vm2051_vm0, %v3232_v8, %v3230_v7  ;;  %v3352_v45 = vld [vmem:[#allocation1 + $0x281] ss:$8 sm:$0xf0]   ;;  %v2049_v57 = vld [vmem:[#allocation1] ss:$8 sm:$0xf]   ;;  %v4442_v63 = vpack.i.bf16 %v3343_v54, %v3332_v53 }
  0x9e   :  { %v4417_v29 = vpack.i.bf16 %v3234_v20, %v3223_v19  ;;  %v3361_v49 = vld [vmem:[#allocation1 + $0x381] ss:$8 sm:$0xf]   ;;  %v2050_v58 = vld [vmem:[#allocation1] ss:$8 sm:$0xf0]   ;;  %v3354_v0 = vsel %vm2051_vm0, %v3352_v45, %v3350_v44  ;;  %v4196_v19 = vunpack.i.h.bf16 %v4194_v16  ;;  %v4195_v20 = vunpack.i.l.bf16 %v4194_v16 }
  0x9f   :  { %v3363_v50 = vld [vmem:[#allocation1 + $0x381] ss:$8 sm:$0xf0]   ;;  %v2052_v61 = vsel %vm2051_vm0, %v2050_v58, %v2049_v57  ;;  %v2083_v62 = vld [vmem:[#allocation1 + $0x100] ss:$8 sm:$0xf]  }
  0xa0   :  { %4418 = vrot.lane.b32.xlu1 %v4417_v29, %s4467_s23  ;;  %4423 = vrot.lane.b32.xlu0 %v4422_v32, %s4468_s24  ;;  %v3372_v51 = vld [vmem:[#allocation1 + $0xc1] ss:$8 sm:$0xf]   ;;  %2054 = vst.msk [vmem:[#allocation0] sm:$0xff] %vm2053_vm1, %v2052_v61   ;;  %v3365_v9 = vsel %vm2051_vm0, %v3363_v50, %v3361_v49  ;;  %v4199_v53 = vpop.permute.xlu1 %4198 }
  0xa1   :  { %v3374_v52 = vld [vmem:[#allocation1 + $0xc1] ss:$8 sm:$0xf0]   ;;  %v2085_v7 = vld [vmem:[#allocation1 + $0x100] ss:$8 sm:$0xf0]   ;;  %v4447_v24 = vpack.i.bf16 %v3365_v9, %v3354_v0  ;;  %v4201_v57 = vunpack.i.h.bf16 %v4199_v53  ;;  %v4200_v58 = vunpack.i.l.bf16 %v4199_v53 }
  0xa2   :  { %v3383_v55 = vld [vmem:[#allocation1 + $0x1c1] ss:$8 sm:$0xf]   ;;  %v2056_v8 = vld [vmem:[#allocation1 + $0x40] ss:$8 sm:$0xf]   ;;  %v3376_v10 = vsel %vm2051_vm0, %v3374_v52, %v3372_v51  ;;  %v2087_v12 = vsel %vm2051_vm0, %v2085_v7, %v2083_v62 }
  0xa3   :  { %v3385_v56 = vld [vmem:[#allocation1 + $0x1c1] ss:$8 sm:$0xf0]   ;;  %v2058_v13 = vld [vmem:[#allocation1 + $0x40] ss:$8 sm:$0xf0]  }
  0xa4   :  { %4428 = vrot.lane.b32.xlu1 %v4427_v43, %s4468_s24  ;;  %4433 = vrot.lane.b32.xlu0 %v4432_v46, %s4468_s24  ;;  %v3394_v1 = vld [vmem:[#allocation1 + $0x2c1] ss:$8 sm:$0xf]   ;;  %v3387_v11 = vsel %vm2051_vm0, %v3385_v56, %v3383_v55  ;;  %v2092_v14 = vld [vmem:[#allocation1 + $0x140] ss:$8 sm:$0xf]   ;;  %v2060_v15 = vsel %vm2051_vm0, %v2058_v13, %v2056_v8  ;;  %v4190_v43 = vunpack.i.l.bf16 %v4189_v37 }
  0xa5   :  { %v3396_v2 = vld [vmem:[#allocation1 + $0x2c1] ss:$8 sm:$0xf0]   ;;  %2090 = vst.msk [vmem:[#allocation0 + $0x20] sm:$0xff] %vm2053_vm1, %v2087_v12   ;;  %2063 = vst.msk [vmem:[#allocation0 + $0x8] sm:$0xff] %vm2053_vm1, %v2060_v15   ;;  %v4452_v25 = vpack.i.bf16 %v3387_v11, %v3376_v10 }
  0xa6   :  { %v3405_v3 = vld [vmem:[#allocation1 + $0x3c1] ss:$8 sm:$0xf]   ;;  %2199 = vst.msk [vmem:[#allocation0] sm:$0xff] %vm2198_vm2, %v4185_v6   ;;  %2210 = vst.msk [vmem:[#allocation0 + $0x20] sm:$0xff] %vm2198_vm2, %v4186_v5   ;;  %v3398_v29 = vsel %vm2051_vm0, %v3396_v2, %v3394_v1 }
  0xa7   :  { %v3407_v4 = vld [vmem:[#allocation1 + $0x3c1] ss:$8 sm:$0xf0]   ;;  %v2094_v17 = vld [vmem:[#allocation1 + $0x140] ss:$8 sm:$0xf0]  }
  0xa8   :  { %v2119_v18 = vld [vmem:[#allocation1 + $0x200] ss:$8 sm:$0xf]   ;;  %v2096_v21 = vsel %vm2051_vm0, %v2094_v17, %v2092_v14  ;;  %4438 = vrot.lane.b32.xlu1 %v4437_v60, %s4468_s24  ;;  %4443 = vrot.lane.b32.xlu0 %v4442_v63, %s4468_s24  ;;  %v3409_v30 = vsel %vm2051_vm0, %v3407_v4, %v3405_v3  ;;  %2243 = vst.msk [vmem:[#allocation0 + $0x8] sm:$0xff] %vm2198_vm2, %v4195_v20   ;;  %v4204_v4 = vpop.permute.xlu0 %4203 }
  0xa9   :  { %v2121_v22 = vld [vmem:[#allocation1 + $0x200] ss:$8 sm:$0xf0]   ;;  %2099 = vst.msk [vmem:[#allocation0 + $0x28] sm:$0xff] %vm2053_vm1, %v2096_v21   ;;  %v4457_v41 = vpack.i.bf16 %v3409_v30, %v3398_v29  ;;  %v4206_v5 = vunpack.i.h.bf16 %v4204_v4  ;;  %v4205_v6 = vunpack.i.l.bf16 %v4204_v4 }
  0xaa   :  { %v2155_v23 = vld [vmem:[#allocation1 + $0x300] ss:$8 sm:$0xf]   ;;  %v2123_v26 = vsel %vm2051_vm0, %v2121_v22, %v2119_v18  ;;  %2254 = vst.msk [vmem:[#allocation0 + $0x28] sm:$0xff] %vm2198_vm2, %v4196_v19  }
  0xab   :  { %v2157_v27 = vld [vmem:[#allocation1 + $0x300] ss:$8 sm:$0xf0]   ;;  %2126 = vst.msk [vmem:[#allocation0 + $0x40] sm:$0xff] %vm2053_vm1, %v2123_v26  }
  0xac   :  { %v2128_v28 = vld [vmem:[#allocation1 + $0x240] ss:$8 sm:$0xf]   ;;  %v2159_v31 = vsel %vm2051_vm0, %v2157_v27, %v2155_v23  ;;  %4448 = vrot.lane.b32.xlu1 %v4447_v24, %s4468_s24  ;;  %4453 = vrot.lane.b32.xlu0 %v4452_v25, %s4468_s24  ;;  %2221 = vst.msk [vmem:[#allocation0 + $0x40] sm:$0xff] %vm2198_vm2, %v4190_v43  }
  0xad   :  { %v2130_v32 = vld [vmem:[#allocation1 + $0x240] ss:$8 sm:$0xf0]   ;;  %2162 = vst.msk [vmem:[#allocation0 + $0x60] sm:$0xff] %vm2053_vm1, %v2159_v31  }
  0xae   :  { %v2164_v33 = vld [vmem:[#allocation1 + $0x340] ss:$8 sm:$0xf]   ;;  %v2132_v34 = vsel %vm2051_vm0, %v2130_v32, %v2128_v28  ;;  %2232 = vst.msk [vmem:[#allocation0 + $0x60] sm:$0xff] %vm2198_vm2, %v4191_v42  }
  0xaf   :  { %v2166_v35 = vld [vmem:[#allocation1 + $0x340] ss:$8 sm:$0xf0]   ;;  %2135 = vst.msk [vmem:[#allocation0 + $0x48] sm:$0xff] %vm2053_vm1, %v2132_v34  }
  0xb0   :  { %v2065_v36 = vld [vmem:[#allocation1 + $0x80] ss:$8 sm:$0xf]   ;;  %v2168_v38 = vsel %vm2051_vm0, %v2166_v35, %v2164_v33  ;;  %4458 = vrot.lane.b32.xlu1 %v4457_v41, %s4468_s24  ;;  %2265 = vst.msk [vmem:[#allocation0 + $0x48] sm:$0xff] %vm2198_vm2, %v4200_v58   ;;  %v4209_v7 = vpop.permute.xlu1 %4208 }
  0xb1   :  { %v2067_v39 = vld [vmem:[#allocation1 + $0x80] ss:$8 sm:$0xf0]   ;;  %2171 = vst.msk [vmem:[#allocation0 + $0x68] sm:$0xff] %vm2053_vm1, %v2168_v38   ;;  %v4211_v8 = vunpack.i.h.bf16 %v4209_v7  ;;  %v4210_v9 = vunpack.i.l.bf16 %v4209_v7 }
  0xb2   :  { %v2101_v40 = vld [vmem:[#allocation1 + $0x180] ss:$8 sm:$0xf]   ;;  %v2069_v44 = vsel %vm2051_vm0, %v2067_v39, %v2065_v36  ;;  %2276 = vst.msk [vmem:[#allocation0 + $0x68] sm:$0xff] %vm2198_vm2, %v4201_v57  }
  0xb3   :  { %v2103_v45 = vld [vmem:[#allocation1 + $0x180] ss:$8 sm:$0xf0]   ;;  %2072 = vst.msk [vmem:[#allocation0 + $0x10] sm:$0xff] %vm2053_vm1, %v2069_v44  }
  0xb4   :  { %v2137_v46 = vld [vmem:[#allocation1 + $0x280] ss:$8 sm:$0xf]   ;;  %v2105_v47 = vsel %vm2051_vm0, %v2103_v45, %v2101_v40  ;;  %2287 = vst.msk [vmem:[#allocation0 + $0x10] sm:$0xff] %vm2198_vm2, %v4205_v6  }
  0xb5   :  { %v2139_v48 = vld [vmem:[#allocation1 + $0x280] ss:$8 sm:$0xf0]   ;;  %2108 = vst.msk [vmem:[#allocation0 + $0x30] sm:$0xff] %vm2053_vm1, %v2105_v47  }
  0xb6   :  { %v2173_v49 = vld [vmem:[#allocation1 + $0x380] ss:$8 sm:$0xf]   ;;  %v2141_v50 = vsel %vm2051_vm0, %v2139_v48, %v2137_v46  ;;  %2298 = vst.msk [vmem:[#allocation0 + $0x30] sm:$0xff] %vm2198_vm2, %v4206_v5  }
  0xb7   :  { %v2175_v51 = vld [vmem:[#allocation1 + $0x380] ss:$8 sm:$0xf0]   ;;  %2144 = vst.msk [vmem:[#allocation0 + $0x50] sm:$0xff] %vm2053_vm1, %v2141_v50  }
  0xb8   :  { %v2074_v52 = vld [vmem:[#allocation1 + $0xc0] ss:$8 sm:$0xf]   ;;  %v2177_v54 = vsel %vm2051_vm0, %v2175_v51, %v2173_v49  ;;  %2309 = vst.msk [vmem:[#allocation0 + $0x50] sm:$0xff] %vm2198_vm2, %v4210_v9  }
  0xb9   :  { %v2076_v55 = vld [vmem:[#allocation1 + $0xc0] ss:$8 sm:$0xf0]   ;;  %2180 = vst.msk [vmem:[#allocation0 + $0x70] sm:$0xff] %vm2053_vm1, %v2177_v54   ;;  %v4214_v10 = vpop.permute.xlu0 %4213 }
  0xba   :  { %v2110_v56 = vld [vmem:[#allocation1 + $0x1c0] ss:$8 sm:$0xf]   ;;  %v2078_v59 = vsel %vm2051_vm0, %v2076_v55, %v2074_v52  ;;  %2320 = vst.msk [vmem:[#allocation0 + $0x70] sm:$0xff] %vm2198_vm2, %v4211_v8   ;;  %v4216_v11 = vunpack.i.h.bf16 %v4214_v10  ;;  %v4215_v12 = vunpack.i.l.bf16 %v4214_v10 }
  0xbb   :  { %v2112_v60 = vld [vmem:[#allocation1 + $0x1c0] ss:$8 sm:$0xf0]   ;;  %2081 = vst.msk [vmem:[#allocation0 + $0x18] sm:$0xff] %vm2053_vm1, %v2078_v59  }
  0xbc   :  { %v2146_v61 = vld [vmem:[#allocation1 + $0x2c0] ss:$8 sm:$0xf]   ;;  %v2114_v62 = vsel %vm2051_vm0, %v2112_v60, %v2110_v56  ;;  %2331 = vst.msk [vmem:[#allocation0 + $0x18] sm:$0xff] %vm2198_vm2, %v4215_v12  }
  0xbd   :  { %v2148_v63 = vld [vmem:[#allocation1 + $0x2c0] ss:$8 sm:$0xf0]   ;;  %2117 = vst.msk [vmem:[#allocation0 + $0x38] sm:$0xff] %vm2053_vm1, %v2114_v62   ;;  %v4224_v14 = vpop.permute.xlu0 %4223 }
  0xbe   :  { %v2182_v0 = vld [vmem:[#allocation1 + $0x3c0] ss:$8 sm:$0xf]   ;;  %v2150_v1 = vsel %vm2051_vm0, %v2148_v63, %v2146_v61  ;;  %2342 = vst.msk [vmem:[#allocation0 + $0x38] sm:$0xff] %vm2198_vm2, %v4216_v11   ;;  %v4226_v17 = vunpack.i.h.bf16 %v4224_v14  ;;  %v4225_v18 = vunpack.i.l.bf16 %v4224_v14 }
  0xbf   :  { %v2184_v2 = vld [vmem:[#allocation1 + $0x3c0] ss:$8 sm:$0xf0]   ;;  %2153 = vst.msk [vmem:[#allocation0 + $0x58] sm:$0xff] %vm2053_vm1, %v2150_v1  }
  0xc0   :  { %v2186_v3 = vsel %vm2051_vm0, %v2184_v2, %v2182_v0  ;;  %v4219_v13 = vpop.permute.xlu1 %4218  ;;  %2385 = vst.msk [vmem:[#allocation0 + $0x20] sm:$0xff] %vm2373_vm3, %v4226_v17   ;;  %2374 = vst.msk [vmem:[#allocation0] sm:$0xff] %vm2373_vm3, %v4225_v18  }
  0xc1   :  { %2189 = vst.msk [vmem:[#allocation0 + $0x78] sm:$0xff] %vm2053_vm1, %v2186_v3   ;;  %v4221_v15 = vunpack.i.h.bf16 %v4219_v13  ;;  %v4220_v16 = vunpack.i.l.bf16 %v4219_v13  ;;  %v4234_v20 = vpop.permute.xlu0 %4233 }
  0xc2   :  { %v4236_v23 = vunpack.i.h.bf16 %v4234_v20  ;;  %v4235_v24 = vunpack.i.l.bf16 %v4234_v20 }
  0xc3   :  { %2353 = vst.msk [vmem:[#allocation0 + $0x58] sm:$0xff] %vm2198_vm2, %v4220_v16   ;;  %2364 = vst.msk [vmem:[#allocation0 + $0x78] sm:$0xff] %vm2198_vm2, %v4221_v15  }
  0xc4   :  { %v4229_v19 = vpop.permute.xlu1 %4228  ;;  %2429 = vst.msk [vmem:[#allocation0 + $0x28] sm:$0xff] %vm2373_vm3, %v4236_v23   ;;  %2418 = vst.msk [vmem:[#allocation0 + $0x8] sm:$0xff] %vm2373_vm3, %v4235_v24  }
  0xc5   :  { %v4231_v21 = vunpack.i.h.bf16 %v4229_v19  ;;  %v4230_v22 = vunpack.i.l.bf16 %v4229_v19  ;;  %v4244_v26 = vpop.permute.xlu0 %4243 }
  0xc6   :  { %v4246_v29 = vunpack.i.h.bf16 %v4244_v26  ;;  %v4245_v30 = vunpack.i.l.bf16 %v4244_v26 }
  0xc7   :  { %2407 = vst.msk [vmem:[#allocation0 + $0x60] sm:$0xff] %vm2373_vm3, %v4231_v21   ;;  %2396 = vst.msk [vmem:[#allocation0 + $0x40] sm:$0xff] %vm2373_vm3, %v4230_v22  }
  0xc8   :  { %v4239_v25 = vpop.permute.xlu1 %4238  ;;  %2462 = vst.msk [vmem:[#allocation0 + $0x10] sm:$0xff] %vm2373_vm3, %v4245_v30   ;;  %2473 = vst.msk [vmem:[#allocation0 + $0x30] sm:$0xff] %vm2373_vm3, %v4246_v29  }
  0xc9   :  { %v4241_v27 = vunpack.i.h.bf16 %v4239_v25  ;;  %v4240_v28 = vunpack.i.l.bf16 %v4239_v25 }
  0xcb   :  { %2451 = vst.msk [vmem:[#allocation0 + $0x68] sm:$0xff] %vm2373_vm3, %v4241_v27   ;;  %2440 = vst.msk [vmem:[#allocation0 + $0x48] sm:$0xff] %vm2373_vm3, %v4240_v28  }
  0xcc   :  { %v4249_v31 = vpop.permute.xlu1 %4248 }
  0xcd   :  { %v4254_v32 = vpop.permute.xlu0 %4253  ;;  %v4251_v33 = vunpack.i.h.bf16 %v4249_v31  ;;  %v4250_v34 = vunpack.i.l.bf16 %v4249_v31 }
  0xce   :  { %v4256_v35 = vunpack.i.h.bf16 %v4254_v32  ;;  %v4255_v36 = vunpack.i.l.bf16 %v4254_v32 }
  0xcf   :  { %2495 = vst.msk [vmem:[#allocation0 + $0x70] sm:$0xff] %vm2373_vm3, %v4251_v33   ;;  %2484 = vst.msk [vmem:[#allocation0 + $0x50] sm:$0xff] %vm2373_vm3, %v4250_v34  }
  0xd0   :  { %2506 = vst.msk [vmem:[#allocation0 + $0x18] sm:$0xff] %vm2373_vm3, %v4255_v36   ;;  %2517 = vst.msk [vmem:[#allocation0 + $0x38] sm:$0xff] %vm2373_vm3, %v4256_v35  }
  0xd1   :  { %v4259_v37 = vpop.permute.xlu1 %4258  ;;  %v4264_v38 = vpop.permute.xlu0 %4263 }
  0xd2   :  { %v4261_v39 = vunpack.i.h.bf16 %v4259_v37  ;;  %v4260_v40 = vunpack.i.l.bf16 %v4259_v37  ;;  %v4266_v41 = vunpack.i.h.bf16 %v4264_v38  ;;  %v4265_v42 = vunpack.i.l.bf16 %v4264_v38 }
  0xd4   :  { %2528 = vst.msk [vmem:[#allocation0 + $0x58] sm:$0xff] %vm2373_vm3, %v4260_v40   ;;  %2539 = vst.msk [vmem:[#allocation0 + $0x78] sm:$0xff] %vm2373_vm3, %v4261_v39  }
  0xd5   :  { %2549 = vst.msk [vmem:[#allocation0] sm:$0xff] %vm2548_vm4, %v4265_v42   ;;  %2560 = vst.msk [vmem:[#allocation0 + $0x20] sm:$0xff] %vm2548_vm4, %v4266_v41   ;;  %v4269_v43 = vpop.permute.xlu1 %4268  ;;  %v4274_v44 = vpop.permute.xlu0 %4273 }
  0xd6   :  { %v4271_v45 = vunpack.i.h.bf16 %v4269_v43  ;;  %v4270_v46 = vunpack.i.l.bf16 %v4269_v43  ;;  %v4276_v47 = vunpack.i.h.bf16 %v4274_v44  ;;  %v4275_v48 = vunpack.i.l.bf16 %v4274_v44 }
  0xd8   :  { %2571 = vst.msk [vmem:[#allocation0 + $0x40] sm:$0xff] %vm2548_vm4, %v4270_v46   ;;  %2582 = vst.msk [vmem:[#allocation0 + $0x60] sm:$0xff] %vm2548_vm4, %v4271_v45  }
  0xd9   :  { %2593 = vst.msk [vmem:[#allocation0 + $0x8] sm:$0xff] %vm2548_vm4, %v4275_v48   ;;  %2604 = vst.msk [vmem:[#allocation0 + $0x28] sm:$0xff] %vm2548_vm4, %v4276_v47   ;;  %v4279_v49 = vpop.permute.xlu1 %4278  ;;  %v4284_v50 = vpop.permute.xlu0 %4283 }
  0xda   :  { %v4281_v51 = vunpack.i.h.bf16 %v4279_v49  ;;  %v4280_v52 = vunpack.i.l.bf16 %v4279_v49  ;;  %v4286_v53 = vunpack.i.h.bf16 %v4284_v50  ;;  %v4285_v54 = vunpack.i.l.bf16 %v4284_v50 }
  0xdc   :  { %2615 = vst.msk [vmem:[#allocation0 + $0x48] sm:$0xff] %vm2548_vm4, %v4280_v52   ;;  %2626 = vst.msk [vmem:[#allocation0 + $0x68] sm:$0xff] %vm2548_vm4, %v4281_v51  }
  0xdd   :  { %2637 = vst.msk [vmem:[#allocation0 + $0x10] sm:$0xff] %vm2548_vm4, %v4285_v54   ;;  %2648 = vst.msk [vmem:[#allocation0 + $0x30] sm:$0xff] %vm2548_vm4, %v4286_v53   ;;  %v4289_v55 = vpop.permute.xlu1 %4288  ;;  %v4294_v56 = vpop.permute.xlu0 %4293 }
  0xde   :  { %v4291_v57 = vunpack.i.h.bf16 %v4289_v55  ;;  %v4290_v58 = vunpack.i.l.bf16 %v4289_v55  ;;  %v4296_v59 = vunpack.i.h.bf16 %v4294_v56  ;;  %v4295_v60 = vunpack.i.l.bf16 %v4294_v56 }
  0xe0   :  { %2659 = vst.msk [vmem:[#allocation0 + $0x50] sm:$0xff] %vm2548_vm4, %v4290_v58   ;;  %2670 = vst.msk [vmem:[#allocation0 + $0x70] sm:$0xff] %vm2548_vm4, %v4291_v57  }
  0xe1   :  { %2681 = vst.msk [vmem:[#allocation0 + $0x18] sm:$0xff] %vm2548_vm4, %v4295_v60   ;;  %2692 = vst.msk [vmem:[#allocation0 + $0x38] sm:$0xff] %vm2548_vm4, %v4296_v59   ;;  %v4299_v61 = vpop.permute.xlu1 %4298  ;;  %v4304_v62 = vpop.permute.xlu0 %4303 }
  0xe2   :  { %v4301_v63 = vunpack.i.h.bf16 %v4299_v61  ;;  %v4300_v0 = vunpack.i.l.bf16 %v4299_v61  ;;  %v4306_v1 = vunpack.i.h.bf16 %v4304_v62  ;;  %v4305_v2 = vunpack.i.l.bf16 %v4304_v62 }
  0xe4   :  { %2703 = vst.msk [vmem:[#allocation0 + $0x58] sm:$0xff] %vm2548_vm4, %v4300_v0   ;;  %2714 = vst.msk [vmem:[#allocation0 + $0x78] sm:$0xff] %vm2548_vm4, %v4301_v63  }
  0xe5   :  { %2724 = vst.msk [vmem:[#allocation0] sm:$0xff] %vm2723_vm5, %v4305_v2   ;;  %2735 = vst.msk [vmem:[#allocation0 + $0x20] sm:$0xff] %vm2723_vm5, %v4306_v1   ;;  %v4309_v3 = vpop.permute.xlu1 %4308  ;;  %v4314_v4 = vpop.permute.xlu0 %4313 }
  0xe6   :  { %v4311_v5 = vunpack.i.h.bf16 %v4309_v3  ;;  %v4310_v6 = vunpack.i.l.bf16 %v4309_v3  ;;  %v4316_v7 = vunpack.i.h.bf16 %v4314_v4  ;;  %v4315_v8 = vunpack.i.l.bf16 %v4314_v4 }
  0xe8   :  { %2746 = vst.msk [vmem:[#allocation0 + $0x40] sm:$0xff] %vm2723_vm5, %v4310_v6   ;;  %2757 = vst.msk [vmem:[#allocation0 + $0x60] sm:$0xff] %vm2723_vm5, %v4311_v5  }
  0xe9   :  { %2768 = vst.msk [vmem:[#allocation0 + $0x8] sm:$0xff] %vm2723_vm5, %v4315_v8   ;;  %2779 = vst.msk [vmem:[#allocation0 + $0x28] sm:$0xff] %vm2723_vm5, %v4316_v7   ;;  %v4319_v9 = vpop.permute.xlu1 %4318  ;;  %v4324_v10 = vpop.permute.xlu0 %4323 }
  0xea   :  { %v4321_v11 = vunpack.i.h.bf16 %v4319_v9  ;;  %v4320_v12 = vunpack.i.l.bf16 %v4319_v9  ;;  %v4326_v13 = vunpack.i.h.bf16 %v4324_v10  ;;  %v4325_v14 = vunpack.i.l.bf16 %v4324_v10 }
  0xec   :  { %2790 = vst.msk [vmem:[#allocation0 + $0x48] sm:$0xff] %vm2723_vm5, %v4320_v12   ;;  %2801 = vst.msk [vmem:[#allocation0 + $0x68] sm:$0xff] %vm2723_vm5, %v4321_v11  }
  0xed   :  { %2812 = vst.msk [vmem:[#allocation0 + $0x10] sm:$0xff] %vm2723_vm5, %v4325_v14   ;;  %2823 = vst.msk [vmem:[#allocation0 + $0x30] sm:$0xff] %vm2723_vm5, %v4326_v13   ;;  %v4329_v15 = vpop.permute.xlu1 %4328 }
  0xee   :  { %v4334_v16 = vpop.permute.xlu0 %4333  ;;  %v4331_v17 = vunpack.i.h.bf16 %v4329_v15  ;;  %v4330_v18 = vunpack.i.l.bf16 %v4329_v15 }
  0xef   :  { %v4336_v19 = vunpack.i.h.bf16 %v4334_v16  ;;  %v4335_v20 = vunpack.i.l.bf16 %v4334_v16 }
  0xf0   :  { %2834 = vst.msk [vmem:[#allocation0 + $0x50] sm:$0xff] %vm2723_vm5, %v4330_v18   ;;  %2845 = vst.msk [vmem:[#allocation0 + $0x70] sm:$0xff] %vm2723_vm5, %v4331_v17  }
  0xf1   :  { %2856 = vst.msk [vmem:[#allocation0 + $0x18] sm:$0xff] %vm2723_vm5, %v4335_v20   ;;  %2867 = vst.msk [vmem:[#allocation0 + $0x38] sm:$0xff] %vm2723_vm5, %v4336_v19  }
  0xf2   :  { %v4339_v21 = vpop.permute.xlu1 %4338  ;;  %v4344_v22 = vpop.permute.xlu0 %4343 }
  0xf3   :  { %v4341_v23 = vunpack.i.h.bf16 %v4339_v21  ;;  %v4340_v24 = vunpack.i.l.bf16 %v4339_v21  ;;  %v4346_v25 = vunpack.i.h.bf16 %v4344_v22  ;;  %v4345_v26 = vunpack.i.l.bf16 %v4344_v22 }
  0xf5   :  { %2878 = vst.msk [vmem:[#allocation0 + $0x58] sm:$0xff] %vm2723_vm5, %v4340_v24   ;;  %2889 = vst.msk [vmem:[#allocation0 + $0x78] sm:$0xff] %vm2723_vm5, %v4341_v23  }
  0xf6   :  { %2899 = vst.msk [vmem:[#allocation0] sm:$0xff] %vm2898_vm6, %v4345_v26   ;;  %2910 = vst.msk [vmem:[#allocation0 + $0x20] sm:$0xff] %vm2898_vm6, %v4346_v25   ;;  %v4349_v27 = vpop.permute.xlu1 %4348  ;;  %v4354_v28 = vpop.permute.xlu0 %4353 }
  0xf7   :  { %v4351_v29 = vunpack.i.h.bf16 %v4349_v27  ;;  %v4350_v30 = vunpack.i.l.bf16 %v4349_v27  ;;  %v4356_v31 = vunpack.i.h.bf16 %v4354_v28  ;;  %v4355_v32 = vunpack.i.l.bf16 %v4354_v28 }
  0xf9   :  { %2921 = vst.msk [vmem:[#allocation0 + $0x40] sm:$0xff] %vm2898_vm6, %v4350_v30   ;;  %2932 = vst.msk [vmem:[#allocation0 + $0x60] sm:$0xff] %vm2898_vm6, %v4351_v29  }
  0xfa   :  { %2943 = vst.msk [vmem:[#allocation0 + $0x8] sm:$0xff] %vm2898_vm6, %v4355_v32   ;;  %2954 = vst.msk [vmem:[#allocation0 + $0x28] sm:$0xff] %vm2898_vm6, %v4356_v31   ;;  %v4359_v33 = vpop.permute.xlu1 %4358  ;;  %v4364_v34 = vpop.permute.xlu0 %4363 }
  0xfb   :  { %v4361_v35 = vunpack.i.h.bf16 %v4359_v33  ;;  %v4360_v36 = vunpack.i.l.bf16 %v4359_v33  ;;  %v4366_v37 = vunpack.i.h.bf16 %v4364_v34  ;;  %v4365_v38 = vunpack.i.l.bf16 %v4364_v34 }
  0xfd   :  { %2965 = vst.msk [vmem:[#allocation0 + $0x48] sm:$0xff] %vm2898_vm6, %v4360_v36   ;;  %2976 = vst.msk [vmem:[#allocation0 + $0x68] sm:$0xff] %vm2898_vm6, %v4361_v35  }
  0xfe   :  { %2987 = vst.msk [vmem:[#allocation0 + $0x10] sm:$0xff] %vm2898_vm6, %v4365_v38   ;;  %2998 = vst.msk [vmem:[#allocation0 + $0x30] sm:$0xff] %vm2898_vm6, %v4366_v37   ;;  %v4369_v39 = vpop.permute.xlu1 %4368  ;;  %v4374_v40 = vpop.permute.xlu0 %4373 }
  0xff   :  { %v4371_v41 = vunpack.i.h.bf16 %v4369_v39  ;;  %v4370_v42 = vunpack.i.l.bf16 %v4369_v39  ;;  %v4376_v43 = vunpack.i.h.bf16 %v4374_v40  ;;  %v4375_v44 = vunpack.i.l.bf16 %v4374_v40 }
 0x101   :  { %3009 = vst.msk [vmem:[#allocation0 + $0x50] sm:$0xff] %vm2898_vm6, %v4370_v42   ;;  %3020 = vst.msk [vmem:[#allocation0 + $0x70] sm:$0xff] %vm2898_vm6, %v4371_v41  }
 0x102   :  { %3031 = vst.msk [vmem:[#allocation0 + $0x18] sm:$0xff] %vm2898_vm6, %v4375_v44   ;;  %3042 = vst.msk [vmem:[#allocation0 + $0x38] sm:$0xff] %vm2898_vm6, %v4376_v43   ;;  %v4379_v45 = vpop.permute.xlu1 %4378  ;;  %v4384_v46 = vpop.permute.xlu0 %4383 }
 0x103   :  { %v4381_v47 = vunpack.i.h.bf16 %v4379_v45  ;;  %v4380_v48 = vunpack.i.l.bf16 %v4379_v45  ;;  %v4386_v49 = vunpack.i.h.bf16 %v4384_v46  ;;  %v4385_v50 = vunpack.i.l.bf16 %v4384_v46 }
 0x105   :  { %3053 = vst.msk [vmem:[#allocation0 + $0x58] sm:$0xff] %vm2898_vm6, %v4380_v48   ;;  %3064 = vst.msk [vmem:[#allocation0 + $0x78] sm:$0xff] %vm2898_vm6, %v4381_v47  }
 0x106   :  { %3074 = vst.msk [vmem:[#allocation0] sm:$0xff] %vm3073_vm7, %v4385_v50   ;;  %3085 = vst.msk [vmem:[#allocation0 + $0x20] sm:$0xff] %vm3073_vm7, %v4386_v49   ;;  %v4389_v51 = vpop.permute.xlu1 %4388  ;;  %v4394_v52 = vpop.permute.xlu0 %4393 }
 0x107   :  { %v4391_v53 = vunpack.i.h.bf16 %v4389_v51  ;;  %v4390_v54 = vunpack.i.l.bf16 %v4389_v51  ;;  %v4396_v55 = vunpack.i.h.bf16 %v4394_v52  ;;  %v4395_v56 = vunpack.i.l.bf16 %v4394_v52 }
 0x109   :  { %3096 = vst.msk [vmem:[#allocation0 + $0x40] sm:$0xff] %vm3073_vm7, %v4390_v54   ;;  %3107 = vst.msk [vmem:[#allocation0 + $0x60] sm:$0xff] %vm3073_vm7, %v4391_v53  }
 0x10a   :  { %3118 = vst.msk [vmem:[#allocation0 + $0x8] sm:$0xff] %vm3073_vm7, %v4395_v56   ;;  %3129 = vst.msk [vmem:[#allocation0 + $0x28] sm:$0xff] %vm3073_vm7, %v4396_v55   ;;  %v4399_v57 = vpop.permute.xlu1 %4398  ;;  %v4404_v58 = vpop.permute.xlu0 %4403 }
 0x10b   :  { %v4401_v59 = vunpack.i.h.bf16 %v4399_v57  ;;  %v4400_v60 = vunpack.i.l.bf16 %v4399_v57  ;;  %v4406_v61 = vunpack.i.h.bf16 %v4404_v58  ;;  %v4405_v62 = vunpack.i.l.bf16 %v4404_v58 }
 0x10d   :  { %3140 = vst.msk [vmem:[#allocation0 + $0x48] sm:$0xff] %vm3073_vm7, %v4400_v60   ;;  %3151 = vst.msk [vmem:[#allocation0 + $0x68] sm:$0xff] %vm3073_vm7, %v4401_v59  }
 0x10e   :  { %3162 = vst.msk [vmem:[#allocation0 + $0x10] sm:$0xff] %vm3073_vm7, %v4405_v62   ;;  %3173 = vst.msk [vmem:[#allocation0 + $0x30] sm:$0xff] %vm3073_vm7, %v4406_v61   ;;  %v4409_v63 = vpop.permute.xlu1 %4408  ;;  %v4414_v0 = vpop.permute.xlu0 %4413 }
 0x10f   :  { %v4411_v1 = vunpack.i.h.bf16 %v4409_v63  ;;  %v4410_v2 = vunpack.i.l.bf16 %v4409_v63  ;;  %v4416_v3 = vunpack.i.h.bf16 %v4414_v0  ;;  %v4415_v4 = vunpack.i.l.bf16 %v4414_v0 }
 0x111   :  { %3184 = vst.msk [vmem:[#allocation0 + $0x50] sm:$0xff] %vm3073_vm7, %v4410_v2   ;;  %3195 = vst.msk [vmem:[#allocation0 + $0x70] sm:$0xff] %vm3073_vm7, %v4411_v1  }
 0x112   :  { %3206 = vst.msk [vmem:[#allocation0 + $0x18] sm:$0xff] %vm3073_vm7, %v4415_v4   ;;  %3217 = vst.msk [vmem:[#allocation0 + $0x38] sm:$0xff] %vm3073_vm7, %v4416_v3   ;;  %v4419_v5 = vpop.permute.xlu1 %4418  ;;  %v4424_v6 = vpop.permute.xlu0 %4423 }
 0x113   :  { %v4421_v7 = vunpack.i.h.bf16 %v4419_v5  ;;  %v4420_v8 = vunpack.i.l.bf16 %v4419_v5  ;;  %v4426_v9 = vunpack.i.h.bf16 %v4424_v6  ;;  %v4425_v10 = vunpack.i.l.bf16 %v4424_v6 }
 0x115   :  { %3228 = vst.msk [vmem:[#allocation0 + $0x58] sm:$0xff] %vm3073_vm7, %v4420_v8   ;;  %3239 = vst.msk [vmem:[#allocation0 + $0x78] sm:$0xff] %vm3073_vm7, %v4421_v7  }
 0x116   :  { %3249 = vst.msk [vmem:[#allocation0] sm:$0xff] %vm3248_vm8, %v4425_v10   ;;  %3260 = vst.msk [vmem:[#allocation0 + $0x20] sm:$0xff] %vm3248_vm8, %v4426_v9   ;;  %v4429_v11 = vpop.permute.xlu1 %4428  ;;  %v4434_v12 = vpop.permute.xlu0 %4433 }
 0x117   :  { %v4431_v13 = vunpack.i.h.bf16 %v4429_v11  ;;  %v4430_v14 = vunpack.i.l.bf16 %v4429_v11  ;;  %v4436_v15 = vunpack.i.h.bf16 %v4434_v12  ;;  %v4435_v16 = vunpack.i.l.bf16 %v4434_v12 }
 0x119   :  { %3271 = vst.msk [vmem:[#allocation0 + $0x40] sm:$0xff] %vm3248_vm8, %v4430_v14   ;;  %3282 = vst.msk [vmem:[#allocation0 + $0x60] sm:$0xff] %vm3248_vm8, %v4431_v13  }
 0x11a   :  { %3293 = vst.msk [vmem:[#allocation0 + $0x8] sm:$0xff] %vm3248_vm8, %v4435_v16   ;;  %3304 = vst.msk [vmem:[#allocation0 + $0x28] sm:$0xff] %vm3248_vm8, %v4436_v15   ;;  %v4439_v17 = vpop.permute.xlu1 %4438  ;;  %v4444_v18 = vpop.permute.xlu0 %4443 }
 0x11b   :  { %v4441_v19 = vunpack.i.h.bf16 %v4439_v17  ;;  %v4440_v20 = vunpack.i.l.bf16 %v4439_v17  ;;  %v4446_v21 = vunpack.i.h.bf16 %v4444_v18  ;;  %v4445_v22 = vunpack.i.l.bf16 %v4444_v18 }
 0x11d   :  { %3315 = vst.msk [vmem:[#allocation0 + $0x48] sm:$0xff] %vm3248_vm8, %v4440_v20   ;;  %3326 = vst.msk [vmem:[#allocation0 + $0x68] sm:$0xff] %vm3248_vm8, %v4441_v19   ;;  %v3419_v29 = vld [vmem:[#allocation0] sm:$0xff] }
 0x11e   :  { %3337 = vst.msk [vmem:[#allocation0 + $0x10] sm:$0xff] %vm3248_vm8, %v4445_v22   ;;  %3348 = vst.msk [vmem:[#allocation0 + $0x30] sm:$0xff] %vm3248_vm8, %v4446_v21   ;;  %v4449_v23 = vpop.permute.xlu1 %4448  ;;  %v4454_v24 = vpop.permute.xlu0 %4453  ;;  %v3444_v31 = vld [vmem:[#allocation0 + $0x20] sm:$0xff] }
 0x11f   :  { %v4451_v25 = vunpack.i.h.bf16 %v4449_v23  ;;  %v4450_v26 = vunpack.i.l.bf16 %v4449_v23  ;;  %v4456_v27 = vunpack.i.h.bf16 %v4454_v24  ;;  %v4455_v28 = vunpack.i.l.bf16 %v4454_v24 }
 0x120   :  { %v3472_v36 = vld [vmem:[#allocation0 + $0x40] sm:$0xff] }
 0x121   :  { %v3424_v30 = vld [vmem:[#allocation0 + $0x8] sm:$0xff]  ;;  %3359 = vst.msk [vmem:[#allocation0 + $0x50] sm:$0xff] %vm3248_vm8, %v4450_v26   ;;  %3370 = vst.msk [vmem:[#allocation0 + $0x70] sm:$0xff] %vm3248_vm8, %v4451_v25   ;;  %v3500_v39 = vld [vmem:[#allocation0 + $0x60] sm:$0xff] }
 0x122   :  { %v3451_v32 = vld [vmem:[#allocation0 + $0x28] sm:$0xff]  ;;  %v4068_v33 = vpack.c.bf16 %v3424_v30, %v3419_v29  ;;  %3381 = vst.msk [vmem:[#allocation0 + $0x18] sm:$0xff] %vm3248_vm8, %v4455_v28   ;;  %3392 = vst.msk [vmem:[#allocation0 + $0x38] sm:$0xff] %vm3248_vm8, %v4456_v27   ;;  %v4459_v35 = vpop.permute.xlu1 %4458 }
 0x123   :  { %v4078_v34 = vpack.c.bf16 %v3451_v32, %v3444_v31  ;;  %v4461_v37 = vunpack.i.h.bf16 %v4459_v35  ;;  %v4460_v38 = vunpack.i.l.bf16 %v4459_v35 }
 0x124   :  { %4069 = vst [vmem:[%s5008_s1] sm:$0xff] %v4068_v33   ;;  %v3479_v40 = vld [vmem:[#allocation0 + $0x48] sm:$0xff] }
 0x125   :  { %v3507_v41 = vld [vmem:[#allocation0 + $0x68] sm:$0xff]  ;;  %4169 = vst [vmem:[%s5008_s1 + $0x10] sm:$0xff] %v4078_v34   ;;  %v4088_v42 = vpack.c.bf16 %v3479_v40, %v3472_v36  ;;  %3403 = vst.msk [vmem:[#allocation0 + $0x58] sm:$0xff] %vm3248_vm8, %v4460_v38   ;;  %v3430_v44 = vld [vmem:[#allocation0 + $0x10] sm:$0xff] }
 0x126   :  { %v4098_v43 = vpack.c.bf16 %v3507_v41, %v3500_v39  ;;  %3414 = vst.msk [vmem:[#allocation0 + $0x78] sm:$0xff] %vm3248_vm8, %v4461_v37   ;;  %v3458_v46 = vld [vmem:[#allocation0 + $0x30] sm:$0xff] }
 0x127   :  { %4171 = vst [vmem:[%s5008_s1 + $0x20] sm:$0xff] %v4088_v42  }
 0x128   :  { %4173 = vst [vmem:[%s5008_s1 + $0x30] sm:$0xff] %v4098_v43   ;;  %v3486_v50 = vld [vmem:[#allocation0 + $0x50] sm:$0xff] }
 0x129   :  { %v3437_v45 = vld [vmem:[#allocation0 + $0x18] sm:$0xff]  ;;  %v3514_v51 = vld [vmem:[#allocation0 + $0x70] sm:$0xff] }
 0x12a   :  { %v4073_v47 = vpack.c.bf16 %v3437_v45, %v3430_v44  ;;  %v3465_v48 = vld [vmem:[#allocation0 + $0x38] sm:$0xff] }
 0x12b   :  { %v4083_v49 = vpack.c.bf16 %v3465_v48, %v3458_v46 }
 0x12c   :  { %4168 = vst [vmem:[%s5008_s1 + $0x8] sm:$0xff] %v4073_v47   ;;  %v3493_v52 = vld [vmem:[#allocation0 + $0x58] sm:$0xff] }
 0x12d   :  { %4170 = vst [vmem:[%s5008_s1 + $0x18] sm:$0xff] %v4083_v49   ;;  %v3521_v53 = vld [vmem:[#allocation0 + $0x78] sm:$0xff]  ;;  %v4093_v54 = vpack.c.bf16 %v3493_v52, %v3486_v50 }
 0x12e   :  { %v4103_v55 = vpack.c.bf16 %v3521_v53, %v3514_v51 }
 0x12f   :  { %4172 = vst [vmem:[%s5008_s1 + $0x28] sm:$0xff] %v4093_v54  }
 0x130   :  { %4174 = vst [vmem:[%s5008_s1 + $0x38] sm:$0xff] %v4103_v55  }

// kernel: tile.59
= control target key start
LH: loop header
LB: loop body
LE: loop exit
PB: predicated region body
PF: predicated region fallthrough
CT: control target
= control target key end

     0   :  { %vm4_vm0 = vcmask 1047556   ;;  %s209_s14 = smov 96   ;;  %s210_s19 = smov 112   ;;  %vm6_vm1 = vcmask 130048   ;;  %vm25_vm2 = vcmask 1048448   ;;  %vm46_vm3 = vcmask 917248   ;;  %s388_s0 = inlined_call_operand.vmem [shape: f32[16,8,16], index: 0, kind: input, shape index: {}]   ;;  %s389_s1 = inlined_call_operand.vmem [shape: f32[16,128], index: 1, kind: output, shape index: {}]  }
   0x1   :  { %v172_v0 = vld [vmem:[%s388_s0 + $0x6] ss:$8 sm:$0xf]   ;;  %v167_v3 = vld [vmem:[%s388_s0 + $0x7] ss:$8 sm:$0xf]  }
   0x2   :  { %v173_v1 = vld [vmem:[%s388_s0 + $0x6] ss:$8 sm:$0xf0]   ;;  %v168_v4 = vld [vmem:[%s388_s0 + $0x7] ss:$8 sm:$0xf0]  }
   0x3   :  { %v43_v2 = vsel %vm4_vm0, %v173_v1, %v172_v0  ;;  %v22_v5 = vsel %vm4_vm0, %v168_v4, %v167_v3  ;;  %v174_v6 = vld [vmem:[%s388_s0 + $0x46] ss:$8 sm:$0xf]   ;;  %v169_v9 = vld [vmem:[%s388_s0 + $0x47] ss:$8 sm:$0xf]  }
   0x4   :  { %44 = vrot.lane.b32.xlu1 %v43_v2, %s209_s14  ;;  %v175_v7 = vld [vmem:[%s388_s0 + $0x46] ss:$8 sm:$0xf0]   ;;  %23 = vrot.lane.b32.xlu0 %v22_v5, %s210_s19  ;;  %v170_v10 = vld [vmem:[%s388_s0 + $0x47] ss:$8 sm:$0xf0]  }
   0x5   :  { %v53_v8 = vsel %vm4_vm0, %v175_v7, %v174_v6  ;;  %v32_v11 = vsel %vm4_vm0, %v170_v10, %v169_v9  ;;  %v179_v12 = vld [vmem:[%s388_s0 + $0x45] ss:$8 sm:$0xf]   ;;  %v184_v18 = vld [vmem:[%s388_s0 + $0x44] ss:$8 sm:$0xf]  }
   0x6   :  { %v180_v13 = vld [vmem:[%s388_s0 + $0x45] ss:$8 sm:$0xf0]   ;;  %v185_v19 = vld [vmem:[%s388_s0 + $0x44] ss:$8 sm:$0xf0]  }
   0x7   :  { %v177_v14 = vld [vmem:[%s388_s0 + $0x5] ss:$8 sm:$0xf]   ;;  %v74_v16 = vsel %vm4_vm0, %v180_v13, %v179_v12  ;;  %v182_v20 = vld [vmem:[%s388_s0 + $0x4] ss:$8 sm:$0xf]   ;;  %v95_v22 = vsel %vm4_vm0, %v185_v19, %v184_v18 }
   0x8   :  { %54 = vrot.lane.b32.xlu1 %v53_v8, %s209_s14  ;;  %v178_v15 = vld [vmem:[%s388_s0 + $0x5] ss:$8 sm:$0xf0]   ;;  %33 = vrot.lane.b32.xlu0 %v32_v11, %s210_s19  ;;  %v183_v21 = vld [vmem:[%s388_s0 + $0x4] ss:$8 sm:$0xf0]  }
   0x9   :  { %v64_v17 = vsel %vm4_vm0, %v178_v15, %v177_v14  ;;  %s211_s11 = smov 80   ;;  %v85_v23 = vsel %vm4_vm0, %v183_v21, %v182_v20  ;;  %v189_v24 = vld [vmem:[%s388_s0 + $0x43] ss:$8 sm:$0xf]   ;;  %s212_s20 = smov 64   ;;  %vm67_vm4 = vcmask 786048  }
   0xa   :  { %v190_v25 = vld [vmem:[%s388_s0 + $0x43] ss:$8 sm:$0xf0]   ;;  %v194_v28 = vld [vmem:[%s388_s0 + $0x42] ss:$8 sm:$0xf]  }
   0xb   :  { %v187_v26 = vld [vmem:[%s388_s0 + $0x3] ss:$8 sm:$0xf]   ;;  %v195_v29 = vld [vmem:[%s388_s0 + $0x42] ss:$8 sm:$0xf0]   ;;  %v116_v30 = vsel %vm4_vm0, %v190_v25, %v189_v24 }
   0xc   :  { %75 = vrot.lane.b32.xlu1 %v74_v16, %s211_s11  ;;  %65 = vrot.lane.b32.xlu0 %v64_v17, %s211_s11  ;;  %v188_v27 = vld [vmem:[%s388_s0 + $0x3] ss:$8 sm:$0xf0]   ;;  %v192_v31 = vld [vmem:[%s388_s0 + $0x2] ss:$8 sm:$0xf]   ;;  %v137_v40 = vsel %vm4_vm0, %v195_v29, %v194_v28 }
   0xd   :  { %v2_v32 = vld [vmem:[%s388_s0] ss:$8 sm:$0xf]   ;;  %v106_v33 = vsel %vm4_vm0, %v188_v27, %v187_v26  ;;  %v193_v36 = vld [vmem:[%s388_s0 + $0x2] ss:$8 sm:$0xf0]  }
   0xe   :  { %v3_v34 = vld [vmem:[%s388_s0] ss:$8 sm:$0xf0]   ;;  %s213_s8 = smov 48   ;;  %v127_v41 = vsel %vm4_vm0, %v193_v36, %v192_v31  ;;  %s215_s21 = smov 16   ;;  %vm88_vm5 = vcmask 654848  }
   0xf   :  { %v164_v35 = vld [vmem:[%s388_s0 + $0x40] ss:$8 sm:$0xf]   ;;  %v5_v37 = vsel %vm4_vm0, %v3_v34, %v2_v32  ;;  %v199_v42 = vld [vmem:[%s388_s0 + $0x41] ss:$8 sm:$0xf]  }
  0x10   :  { %96 = vrot.lane.b32.xlu1 %v95_v22, %s212_s20  ;;  %86 = vrot.lane.b32.xlu0 %v85_v23, %s212_s20  ;;  %v165_v38 = vld [vmem:[%s388_s0 + $0x40] ss:$8 sm:$0xf0]   ;;  %7 = vst.msk [vmem:[%s389_s1] sm:$0xff] %vm6_vm1, %v5_v37   ;;  %vm109_vm6 = vcmask 523648   ;;  %vm130_vm7 = vcmask 392448  }
  0x11   :  { %v13_v39 = vsel %vm4_vm0, %v165_v38, %v164_v35  ;;  %v200_v43 = vld [vmem:[%s388_s0 + $0x41] ss:$8 sm:$0xf0]   ;;  %vm151_vm8 = vcmask 261248  }
  0x12   :  { %166 = vst.msk [vmem:[%s389_s1 + $0x8] sm:$0xff] %vm6_vm1, %v13_v39   ;;  %v197_v44 = vld [vmem:[%s388_s0 + $0x1] ss:$8 sm:$0xf]   ;;  %v158_v46 = vsel %vm4_vm0, %v200_v43, %v199_v42 }
  0x13   :  { %v198_v45 = vld [vmem:[%s388_s0 + $0x1] ss:$8 sm:$0xf0]   ;;  %s214_s0 = smov 32  }
  0x14   :  { %117 = vrot.lane.b32.xlu1 %v116_v30, %s213_s8  ;;  %107 = vrot.lane.b32.xlu0 %v106_v33, %s213_s8  ;;  %v148_v47 = vsel %vm4_vm0, %v198_v45, %v197_v44 }
  0x18   :  { %138 = vrot.lane.b32.xlu1 %v137_v40, %s214_s0  ;;  %128 = vrot.lane.b32.xlu0 %v127_v41, %s214_s0 }
  0x1c   :  { %159 = vrot.lane.b32.xlu1 %v158_v46, %s215_s21  ;;  %149 = vrot.lane.b32.xlu0 %v148_v47, %s215_s21 }
  0x76   :  { %v45_v48 = vpop.permute.xlu1 %44   ;;  %v24_v49 = vpop.permute.xlu0 %23  }
  0x77   :  { %26 = vst.msk [vmem:[%s389_s1] sm:$0xff] %vm25_vm2, %v24_v49  }
  0x78   :  { %47 = vst.msk [vmem:[%s389_s1] sm:$0xff] %vm46_vm3, %v45_v48  }
  0x7a   :  { %v55_v50 = vpop.permute.xlu1 %54   ;;  %v34_v51 = vpop.permute.xlu0 %33  }
  0x7b   :  { %171 = vst.msk [vmem:[%s389_s1 + $0x8] sm:$0xff] %vm25_vm2, %v34_v51  }
  0x7c   :  { %176 = vst.msk [vmem:[%s389_s1 + $0x8] sm:$0xff] %vm46_vm3, %v55_v50  }
  0x7e   :  { %v76_v52 = vpop.permute.xlu1 %75   ;;  %v66_v53 = vpop.permute.xlu0 %65  }
  0x7f   :  { %181 = vst.msk [vmem:[%s389_s1 + $0x8] sm:$0xff] %vm67_vm4, %v76_v52   ;;  %68 = vst.msk [vmem:[%s389_s1] sm:$0xff] %vm67_vm4, %v66_v53  }
  0x82   :  { %v97_v54 = vpop.permute.xlu1 %96   ;;  %v87_v55 = vpop.permute.xlu0 %86  }
  0x83   :  { %186 = vst.msk [vmem:[%s389_s1 + $0x8] sm:$0xff] %vm88_vm5, %v97_v54   ;;  %89 = vst.msk [vmem:[%s389_s1] sm:$0xff] %vm88_vm5, %v87_v55  }
  0x86   :  { %v118_v56 = vpop.permute.xlu1 %117   ;;  %v108_v57 = vpop.permute.xlu0 %107  }
  0x87   :  { %191 = vst.msk [vmem:[%s389_s1 + $0x8] sm:$0xff] %vm109_vm6, %v118_v56   ;;  %110 = vst.msk [vmem:[%s389_s1] sm:$0xff] %vm109_vm6, %v108_v57  }
  0x8a   :  { %v139_v58 = vpop.permute.xlu1 %138   ;;  %v129_v59 = vpop.permute.xlu0 %128  }
  0x8b   :  { %196 = vst.msk [vmem:[%s389_s1 + $0x8] sm:$0xff] %vm130_vm7, %v139_v58   ;;  %131 = vst.msk [vmem:[%s389_s1] sm:$0xff] %vm130_vm7, %v129_v59  }
  0x8e   :  { %v160_v60 = vpop.permute.xlu1 %159   ;;  %v150_v61 = vpop.permute.xlu0 %149  }
  0x8f   :  { %201 = vst.msk [vmem:[%s389_s1 + $0x8] sm:$0xff] %vm151_vm8, %v160_v60   ;;  %152 = vst.msk [vmem:[%s389_s1] sm:$0xff] %vm151_vm8, %v150_v61  }

// kernel: encoder_forward.5
= control target key start
LH: loop header
LB: loop body
LE: loop exit
PB: predicated region body
PF: predicated region fallthrough
CT: control target
= control target key end

     0   :  { %s1404_s15 = smov 0   ;;  %s1632_s0 = inlined_call_operand.vmem [shape: bf16[2,8,256], index: 0, kind: input, shape index: {}]   ;;  %s1633_s1 = inlined_call_operand.vmem [shape: bf16[3,256,128], index: 1, kind: input, shape index: {}]   ;;  %s1634_s2 = inlined_call_operand.vmem [shape: f32[128,16], index: 2, kind: input, shape index: {}]   ;;  %s1635_s3 = inlined_call_operand.vmem [shape: f32[16,128], index: 3, kind: input, shape index: {}]   ;;  %s1636_s4 = inlined_call_operand.vmem [shape: bf16[2,8,128], index: 4, kind: output, shape index: {}]  }
   0x1 LB: > { %s1024_s16 = sadd.s32 4294967295, %s1374_s15   ;;  %p1028_p0 = scmp.ge.s32.totalorder %s1374_s15, 1  ;;  %s1374_s15 = sphi %s1404_s15, %s14_s15  }
   0x2   : > { %p162_p1 = scmp.lt.s32.totalorder %s1374_s15, 3 }
   0x4   : > { %p163_p2 = pnand %p1028_p0, %p162_p1 }
   0x5   : > { %v1316_v0 = vld [vmem:[%s1633_s1 + $0xc0] sm:$0xff] (!%p163_p2)   ;;  %v1320_v4 = vld [vmem:[%s1633_s1 + $0xc8] sm:$0xff] (!%p163_p2)   ;;  %v1324_v8 = vld [vmem:[%s1633_s1 + $0xd0] sm:$0xff] (!%p163_p2)   ;;  %p187_p3 = scmp.lt.s32.totalorder (!%p163_p2), %s1024_s16, 1  ;;  %vm225_vm0 = vcmask (!%p163_p2), 1040384   ;;  %vm230_vm3 = vcmask (!%p163_p2), 1044480  }
   0x6   : > { %166 = sbr.rel (%p163_p2) target bundleno = 766 (0x2fe), region = 36  ;;  %v1317_v1 = vld [vmem:[%s1633_s1 + $0x40] sm:$0xff] (!%p163_p2)   ;;  %1150 = vmatprep.subr.bf16.mxu0 (!%p163_p2), %v1316_v0  ;;  %v1321_v5 = vld [vmem:[%s1633_s1 + $0x48] sm:$0xff] (!%p163_p2)   ;;  %v1325_v9 = vld [vmem:[%s1633_s1 + $0x50] sm:$0xff] (!%p163_p2)   ;;  %vm226_vm1 = vsmask.f32 (!%p163_p2), 256 }
   0x7   : > { %v1318_v2 = vld [vmem:[%s1633_s1 + $0x80] sm:$0xff] (!%p163_p2)   ;;  %1172 = vmatprep.subr.bf16.mxu1 (!%p163_p2), %v1317_v1  ;;  %v1322_v6 = vld [vmem:[%s1633_s1 + $0x88] sm:$0xff] (!%p163_p2)   ;;  %v1326_v10 = vld [vmem:[%s1633_s1 + $0x90] sm:$0xff] (!%p163_p2)   ;;  %vm231_vm2 = vsmask.f32 (!%p163_p2), 4352  ;;  %vm1377_vm6 = vmmov (!%p163_p2), 0  }
   0x8   : > { %v1319_v3 = vld [vmem:[%s1633_s1] sm:$0xff] (!%p163_p2)   ;;  %1151 = vmatpush3.bf16.msra.mxu0 (!%p163_p2), %v1318_v2  ;;  %v1323_v7 = vld [vmem:[%s1633_s1 + $0x8] sm:$0xff] (!%p163_p2)   ;;  %v1327_v11 = vld [vmem:[%s1633_s1 + $0x10] sm:$0xff] (!%p163_p2)   ;;  %vm884_vm7 = vcmask (!%p163_p2), 130048  }
   0x9   : > { %1173 = vmatpush3.bf16.msra.mxu1 (!%p163_p2), %v1319_v3  ;;  %1152 = vmatprep.subr.bf16.mxu0 (!%p163_p2), %v1320_v4  ;;  %v1328_v12 = vld [vmem:[%s1633_s1 + $0xd8] sm:$0xff] (!%p163_p2)   ;;  %v1332_v16 = vld [vmem:[%s1633_s1 + $0xe0] sm:$0xff] (!%p163_p2)   ;;  %v1336_v20 = vld [vmem:[%s1633_s1 + $0xe8] sm:$0xff] (!%p163_p2)  }
   0xa   : > { %1174 = vmatprep.subr.bf16.mxu1 (!%p163_p2), %v1321_v5  ;;  %v1329_v13 = vld [vmem:[%s1633_s1 + $0x58] sm:$0xff] (!%p163_p2)   ;;  %v1333_v17 = vld [vmem:[%s1633_s1 + $0x60] sm:$0xff] (!%p163_p2)   ;;  %v1337_v21 = vld [vmem:[%s1633_s1 + $0x68] sm:$0xff] (!%p163_p2)  }
   0xb   : > { %v1330_v14 = vld [vmem:[%s1633_s1 + $0x98] sm:$0xff] (!%p163_p2)   ;;  %v1334_v18 = vld [vmem:[%s1633_s1 + $0xa0] sm:$0xff] (!%p163_p2)   ;;  %v1338_v22 = vld [vmem:[%s1633_s1 + $0xa8] sm:$0xff] (!%p163_p2)  }
   0xc   : > { %1153 = vmatpush3.bf16.msra.mxu0 (!%p163_p2), %v1322_v6  ;;  %v1331_v15 = vld [vmem:[%s1633_s1 + $0x18] sm:$0xff] (!%p163_p2)   ;;  %v1335_v19 = vld [vmem:[%s1633_s1 + $0x20] sm:$0xff] (!%p163_p2)   ;;  %v1339_v23 = vld [vmem:[%s1633_s1 + $0x28] sm:$0xff] (!%p163_p2)  }
   0xd   : > { %1175 = vmatpush3.bf16.msra.mxu1 %v1323_v7  ;;  %1154 = vmatprep.subr.bf16.mxu0 %v1324_v8  ;;  %s1638_s16 = smov (!%p187_p3, %s1024_s16), 1  ;;  %v1340_v24 = vld [vmem:[%s1633_s1 + $0xf0] sm:$0xff]   ;;  %v1344_v28 = vld [vmem:[%s1633_s1 + $0xf8] sm:$0xff]   ;;  %v1350_v33 = vld [vmem:[%s1633_s1 + $0x140] sm:$0xff]  }
   0xe   : > { %1176 = vmatprep.subr.bf16.mxu1 %v1325_v9  ;;  %v1341_v25 = vld [vmem:[%s1633_s1 + $0x70] sm:$0xff]   ;;  %s1149_s23 = sshll.u32 %s1638_s16, 3  ;;  %v1345_v29 = vld [vmem:[%s1633_s1 + $0x78] sm:$0xff]   ;;  %vm227_vm4 = vmand %vm225_vm0, %vm226_vm1  ;;  %s1031_s7 = sshll.u32 %s1638_s16, 2 }
   0xf   : > { %v1342_v26 = vld [vmem:[%s1633_s1 + $0xb0] sm:$0xff]   ;;  %s191_s6 = scalar_lea.vmem %s1632_s0, %s1149_s23  ;;  %v1346_v30 = vld [vmem:[%s1633_s1 + $0xb8] sm:$0xff]   ;;  %vm232_vm5 = vmand %vm230_vm3, %vm231_vm2  ;;  %s195_s10 = scalar_lea.vmem %s1636_s4, %s1031_s7 }
  0x10   : > { %1155 = vmatpush3.bf16.msra.mxu0 %v1326_v10  ;;  %v1343_v27 = vld [vmem:[%s1633_s1 + $0x30] sm:$0xff]   ;;  %v1347_v31 = vld [vmem:[%s1633_s1 + $0x38] sm:$0xff]   ;;  %v197_v32 = vld [vmem:[%s191_s6] sm:$0xff] }
  0x11   : > { %1177 = vmatpush3.bf16.msra.mxu1 %v1327_v11  ;;  %1156 = vmatprep.subr.bf16.mxu0 %v1328_v12  ;;  %v1032_v34 = vcombine.low %v197_v32, %v197_v32  ;;  %v1033_v35 = vcombine.high %v197_v32, %v197_v32  ;;  %v1351_v58 = vld [vmem:[%s1633_s1 + $0x100] sm:$0xff]   ;;  %v1352_v60 = vld [vmem:[%s1633_s1 + $0x148] sm:$0xff]   ;;  %v1354_v62 = vld [vmem:[%s1633_s1 + $0x150] sm:$0xff]   ;;  %v1378_v32 = vmov 0.0  }
  0x12   : > { %1178 = vmatprep.subr.bf16.mxu1 %v1329_v13  ;;  %v1353_v61 = vld [vmem:[%s1633_s1 + $0x108] sm:$0xff]   ;;  %v1355_v63 = vld [vmem:[%s1633_s1 + $0x110] sm:$0xff]   ;;  %v1356_v0 = vld [vmem:[%s1633_s1 + $0x158] sm:$0xff]  }
  0x13   : > { %v213_v36 = vshrl.u32 %v1033_v35, 16  ;;  %v216_v37 = vshll.u32 %v1033_v35, 16  ;;  %v206_v38 = vshrl.u32 %v1032_v34, 16  ;;  %v209_v39 = vshll.u32 %v1032_v34, 16  ;;  %v1357_v1 = vld [vmem:[%s1633_s1 + $0x118] sm:$0xff]   ;;  %v1358_v2 = vld [vmem:[%s1633_s1 + $0x160] sm:$0xff]  }
  0x14   : > { %1157 = vmatpush3.bf16.msra.mxu0 %v1330_v14  ;;  %v222_v42 = vrot.slane %v1033_v35, 7  ;;  %v221_v43 = vrot.slane %v1032_v34, 7  ;;  %v1359_v3 = vld [vmem:[%s1633_s1 + $0x120] sm:$0xff]   ;;  %v1360_v4 = vld [vmem:[%s1633_s1 + $0x168] sm:$0xff]   ;;  %v1362_v6 = vld [vmem:[%s1633_s1 + $0x170] sm:$0xff]   ;;  %v1376_v14 = vmov 0.0|0.0  }
  0x15   : > { %1179 = vmatpush3.bf16.msra.mxu1 %v1331_v15  ;;  %1158 = vmatprep.subr.bf16.mxu0 %v1332_v16  ;;  %v215_v40 = vrot.slane %v213_v36, 7  ;;  %v208_v41 = vrot.slane %v206_v38, 7  ;;  %v1361_v5 = vld [vmem:[%s1633_s1 + $0x128] sm:$0xff]   ;;  %v1363_v7 = vld [vmem:[%s1633_s1 + $0x130] sm:$0xff]   ;;  %v1364_v8 = vld [vmem:[%s1633_s1 + $0x178] sm:$0xff]  }
  0x16   : > { %1180 = vmatprep.subr.bf16.mxu1 %v1333_v17  ;;  %v1365_v9 = vld [vmem:[%s1633_s1 + $0x138] sm:$0xff]   ;;  %v333_v11 = vld [vmem:[%s1634_s2] sm:$0xff]  ;;  %v334_v12 = vld [vmem:[%s1634_s2 + $0x8] sm:$0xff] }
  0x17   : > { %v218_v44 = vor.u32 %v216_v37, %v215_v40  ;;  %v211_v45 = vor.u32 %v209_v39, %v208_v41  ;;  %v335_v13 = vld [vmem:[%s1634_s2 + $0x10] sm:$0xff]  ;;  %v1279_v15 = vpack.c.bf16 %v334_v12, %v333_v11  ;;  %v336_v16 = vld [vmem:[%s1634_s2 + $0x18] sm:$0xff] }
  0x18   : > { %1159 = vmatpush3.bf16.msra.mxu0 %v1334_v18  ;;  %v1282_v17 = vpack.c.bf16 %v336_v16, %v335_v13  ;;  %v337_v18 = vld [vmem:[%s1634_s2 + $0x20] sm:$0xff] }
  0x19   : > { %1181 = vmatpush3.bf16.msra.mxu1 %v1335_v19  ;;  %1160 = vmatprep.subr.bf16.mxu0 %v1336_v20  ;;  %v229_v46 = vsel %vm227_vm4, %v1033_v35, %v218_v44  ;;  %v228_v47 = vsel %vm227_vm4, %v1032_v34, %v211_v45  ;;  %v338_v19 = vld [vmem:[%s1634_s2 + $0x28] sm:$0xff]  ;;  %v347_v34 = vld [vmem:[%s1634_s2 + $0x70] sm:$0xff]  ;;  %v348_v35 = vld [vmem:[%s1634_s2 + $0x78] sm:$0xff] }
  0x1a   : > { %1182 = vmatprep.subr.bf16.mxu1 %v1337_v21  ;;  %v234_v48 = vsel %vm232_vm5, %v229_v46, %v222_v42  ;;  %v233_v49 = vsel %vm232_vm5, %v228_v47, %v221_v43  ;;  %v1285_v20 = vpack.c.bf16 %v338_v19, %v337_v18  ;;  %v339_v21 = vld [vmem:[%s1634_s2 + $0x30] sm:$0xff]  ;;  %v1300_v36 = vpack.c.bf16 %v348_v35, %v347_v34 }
  0x1b   : > { %v359_v50 = vshrl.u32 %v234_v48, 16  ;;  %v361_v51 = vshll.u32 %v234_v48, 16  ;;  %631 = vmatprep.mubr.bf16.mxu1 %v234_v48  ;;  %v352_v52 = vshrl.u32 %v233_v49, 16  ;;  %v354_v53 = vshll.u32 %v233_v49, 16 }
  0x1c   : > { %1161 = vmatpush3.bf16.msra.mxu0 %v1338_v22  ;;  %v642_v59 = vrot.slane %v234_v48, 1  ;;  %v641_v10 = vrot.slane %v233_v49, 1  ;;  %v340_v22 = vld [vmem:[%s1634_s2 + $0x38] sm:$0xff] }
  0x1d   : > { %1183 = vmatpush3.bf16.msra.mxu1 %v1339_v23  ;;  %1162 = vmatprep.subr.bf16.mxu0 %v1340_v24  ;;  %v363_v54 = vrot.slane %v361_v51, 1  ;;  %v356_v55 = vrot.slane %v354_v53, 1  ;;  %v1288_v23 = vpack.c.bf16 %v340_v22, %v339_v21  ;;  %v341_v24 = vld [vmem:[%s1634_s2 + $0x40] sm:$0xff] }
  0x1e   : > { %1184 = vmatprep.subr.bf16.mxu1 %v1341_v25  ;;  %v342_v25 = vld [vmem:[%s1634_s2 + $0x48] sm:$0xff] }
  0x1f   : > { %v364_v56 = vor.u32 %v363_v54, %v359_v50  ;;  %v357_v57 = vor.u32 %v356_v55, %v352_v52 }
  0x20   : > { %1163 = vmatpush3.bf16.msra.mxu0 %v1342_v26  ;;  %v1291_v26 = vpack.c.bf16 %v342_v25, %v341_v24 }
  0x21   : > { %1185 = vmatpush3.bf16.msra.mxu1 %v1343_v27  ;;  %1164 = vmatprep.subr.bf16.mxu0 %v1344_v28  ;;  %v343_v27 = vld [vmem:[%s1634_s2 + $0x50] sm:$0xff]  ;;  %v344_v28 = vld [vmem:[%s1634_s2 + $0x58] sm:$0xff] }
  0x22   : > { %1186 = vmatprep.subr.bf16.mxu1 %v1345_v29  ;;  %495 = vmatprep.mubr.bf16.mxu0 %v364_v56  ;;  %v1294_v29 = vpack.c.bf16 %v344_v28, %v343_v27 }
  0x24   : > { %1165 = vmatpush3.bf16.msra.mxu0 %v1346_v30  ;;  %v345_v30 = vld [vmem:[%s1634_s2 + $0x60] sm:$0xff] }
  0x25   : > { %1187 = vmatpush3.bf16.msra.mxu1 %v1347_v31  ;;  %1194 = vmatprep.subr.bf16.mxu0 %v1350_v33  ;;  %v346_v31 = vld [vmem:[%s1634_s2 + $0x68] sm:$0xff] }
  0x26   : > { %1278 = vmatprep.subr.bf16.mxu1 %v1376_v14  ;;  %v1297_v33 = vpack.c.bf16 %v346_v31, %v345_v30 }
  0x27   : > { %496 = vmatmul.mubr.bf16.vlgmr.msra.gmra.mrb[0].mxu0 %v357_v57 }
  0x28   : > { %632 = vmatmul.mubr.bf16.vlgmr.msra.gmra.mrb[0].mxu1 %v233_v49  ;;  %1195 = vmatpush3.bf16.msra.mxu0 %v1351_v58 }
  0x29   : > { %773 = vmatprep.mubr.bf16.mxu0 %v642_v59  ;;  %1196 = vmatprep.subr.bf16.mxu0 %v1352_v60 }
  0x2a   : > { %1280 = vmatpush3.bf16.msra.mxu1 %v1279_v15  ;;  %1268 = vmatprep.mubr.msk.f32.mxu1 %vm1377_vm6, %v1378_v32 }
  0x2b   : > { %1281 = vmatprep.subr.bf16.mxu1 %v1376_v14 }
  0x2c   : > { %1197 = vmatpush3.bf16.msra.mxu0 %v1353_v61 }
  0x2d   : > { %1198 = vmatprep.subr.bf16.mxu0 %v1354_v62 }
  0x2e   : > { %1283 = vmatpush3.bf16.msra.mxu1 %v1282_v17 }
  0x2f   : > { %1284 = vmatprep.subr.bf16.mxu1 %v1376_v14 }
  0x30   : > { %1199 = vmatpush3.bf16.msra.mxu0 %v1355_v63 }
  0x31   : > { %1200 = vmatprep.subr.bf16.mxu0 %v1356_v0 }
  0x32   : > { %1286 = vmatpush3.bf16.msra.mxu1 %v1285_v20  ;;  %v958_v20 = vlaneseq }
  0x33   : > { %1287 = vmatprep.subr.bf16.mxu1 %v1376_v14 }
  0x34   : > { %1201 = vmatpush3.bf16.msra.mxu0 %v1357_v1  ;;  %v959_v21 = vshrl.u32 %v958_v20, 7 }
  0x35   : > { %1202 = vmatprep.subr.bf16.mxu0 %v1358_v2 }
  0x36   : > { %1289 = vmatpush3.bf16.msra.mxu1 %v1288_v23  ;;  %v960_v22 = vsub.s32 0, %v959_v21  ;;  %v965_v23 = vsub.s32 1, %v959_v21 }
  0x37   : > { %1290 = vmatprep.subr.bf16.mxu1 %v1376_v14 }
  0x38   : > { %1203 = vmatpush3.bf16.msra.mxu0 %v1359_v3 }
  0x39   : > { %1204 = vmatprep.subr.bf16.mxu0 %v1360_v4  ;;  %v349_v4 = vld [vmem:[%s1635_s3] sm:$0xff] }
  0x3a   : > { %1292 = vmatpush3.bf16.msra.mxu1 %v1291_v26 }
  0x3b   : > { %1293 = vmatprep.subr.bf16.mxu1 %v1376_v14 }
  0x3c   : > { %1205 = vmatpush3.bf16.msra.mxu0 %v1361_v5  ;;  %v350_v5 = vld [vmem:[%s1635_s3 + $0x8] sm:$0xff] }
  0x3d   : > { %1206 = vmatprep.subr.bf16.mxu0 %v1362_v6  ;;  %v1303_v6 = vpack.c.bf16 %v350_v5, %v349_v4 }
  0x3e   : > { %1295 = vmatpush3.bf16.msra.mxu1 %v1294_v29 }
  0x3f   : > { %1296 = vmatprep.subr.bf16.mxu1 %v1376_v14 }
  0x40   : > { %1207 = vmatpush3.bf16.msra.mxu0 %v1363_v7 }
  0x41   : > { %1208 = vmatprep.subr.bf16.mxu0 %v1364_v8 }
  0x42   : > { %1298 = vmatpush3.bf16.msra.mxu1 %v1297_v33 }
  0x43   : > { %1299 = vmatprep.subr.bf16.mxu1 %v1376_v14 }
  0x44   : > { %1209 = vmatpush3.bf16.msra.mxu0 %v1365_v9 }
  0x46   : > { %1301 = vmatpush3.bf16.msra.mxu1 %v1300_v36 }
  0x47   : > { %774 = vmatmul.mubr.bf16.vlgmr.msra.gmra.mrb[4].mxu0 %v641_v10  ;;  %1302 = vmatprep.subr.bf16.mxu1 %v1376_v14 }
  0xfa   : > { %v1166_v42 = vpop.f32.mrb[0].mxu0 }
  0xfb   : > { %v1188_v37 = vpop.f32.mrb[0].mxu1  ;;  %v1167_v43 = vpop.f32.mrb[1].mxu0 }
  0xfc   : > { %v1189_v38 = vpop.f32.mrb[1].mxu1  ;;  %v1168_v44 = vadd.f32 %v1167_v43, %v1166_v42  ;;  %v1169_v45 = vpop.f32.mrb[2].mxu0 }
  0xfd   : > { %v1190_v39 = vadd.f32 %v1189_v38, %v1188_v37  ;;  %v1191_v40 = vpop.f32.mrb[2].mxu1  ;;  %v1170_v46 = vpop.f32.mrb[3].mxu0 }
  0xfe   : > { %v1192_v41 = vpop.f32.mrb[3].mxu1 }
  0xff   : > { %v634_v47 = vadd.f32 %v1190_v39, %v1168_v44 }
 0x11a   : > { %v1210_v48 = vpop.f32.mrb[4].mxu0 }
 0x11b   : > { %v1211_v49 = vpop.f32.mrb[5].mxu0 }
 0x11c   : > { %v1212_v50 = vadd.f32 %v1211_v49, %v1210_v48  ;;  %v1213_v51 = vpop.f32.mrb[6].mxu0 }
 0x11d   : > { %v1214_v52 = vpop.f32.mrb[7].mxu0 }
 0x11e   : > { %v781_v53 = vadd.f32 %v1212_v50, %v634_v47 }
 0x120   : > { %v782_v54 = vrot.slane %v781_v53, 4  ;;  %v788_v55 = vmul.f32 %v781_v53, %v781_v53 }
 0x122   : > { %v783_v56 = vadd.f32 %v782_v54, %v781_v53  ;;  %v789_v57 = vrot.slane %v788_v55, 4 }
 0x124   : > { %v784_v58 = vrot.slane %v783_v56, 2  ;;  %v790_v59 = vadd.f32 %v789_v57, %v788_v55 }
 0x126   : > { %v785_v60 = vadd.f32 %v784_v58, %v783_v56  ;;  %v791_v61 = vrot.slane %v790_v59, 2 }
 0x128   : > { %v786_v62 = vrot.slane %v785_v60, 1  ;;  %v792_v63 = vadd.f32 %v791_v61, %v790_v59 }
 0x12a   : > { %v793_v0 = vrot.slane %v792_v63, 1  ;;  %v787_v1 = vadd.f32 %v786_v62, %v785_v60 }
 0x12c   : > { %v794_v2 = vadd.f32 %v793_v0, %v792_v63 }
 0x12e   : > { %v796_v3 = vsel %vm225_vm0, %v787_v1, %v794_v2 }
 0x12f   : > { %1269 = vmatmul.mubr.f32.vlgmr.msra.gmra.mrb[4].mxu1 %v796_v3 }
 0x130   : > { %1275 = vmatprep.mubr.msk.f32.mxu1 %vm1377_vm6, %v1378_v32  ;;  %1304 = vmatpush3.bf16.msra.mxu1 %v1303_v6 }
 0x202   : > { %v863_v7 = vpop.f32.mrb[4].mxu1 }
 0x203   : > { %v867_v8 = vmul.f32 0.015625, %v863_v7  ;;  %v1270_v9 = vpop.f32.mrb[5].mxu1 }
 0x205   : > { %v868_v10 = vmul.f32 %v867_v8, %v867_v8  ;;  %v875_v15 = vsub.f32 0.0, %v867_v8 }
 0x207   : > { %v870_v11 = vrot.slane %v868_v10, 7 }
 0x209   : > { %v872_v12 = vsub.f32 %v867_v8, %v870_v11 }
 0x20b   : > { %v873_v13 = vadd.f32 1e-05, %v872_v12 }
 0x20d   : > { %1366 = vrsqrt.f32 %v873_v13 }
 0x217   : > { %v1367_v14 = vpop.eup %1366 }
 0x218   : > { %v877_v16 = vrot.slane %v1367_v14, 1 }
 0x21a   : > { %v879_v17 = vmul.f32 %v877_v16, %v875_v15 }
 0x21c   : > { %v881_v18 = vrot.slane %v879_v17, 7 }
 0x21e   : > { %v883_v19 = vsel %vm225_vm0, %v877_v16, %v881_v18 }
 0x21f   : > { %1276 = vmatmul.mubr.msk.f32.vlgmr.msra.gmra.mrb[6].mxu1 %vm884_vm7, %v883_v19 }
 0x2f2   : > { %v954_v24 = vpop.f32.mrb[6].mxu1 }
 0x2f3   : > { %v961_v25 = vrot.slane %v954_v24, %v960_v22  ;;  %v1277_v26 = vpop.f32.mrb[7].mxu1  ;;  %v966_v28 = vrot.slane %v954_v24, %v965_v23 }
 0x2f5   : > { %v962_v27 = vmul.f32 %v961_v25, %v781_v53 }
 0x2f7   : > { %v967_v29 = vadd.f32 %v966_v28, %v962_v27 }
 0x2f9   : > { %v968_v30 = vmax.f32 %v967_v29, 0.0 }
 0x2fb   : > { %v969_v31 = vpack.c.bf16 %v968_v30, %v968_v30 }
 0x2fd   : > { %970 = vst [vmem:[%s195_s10] sm:$0xf] %v969_v31 }
 0x2fe PF: > { %s14_s15 = sadd.s32 1, %s1374_s15  }
 0x2ff   : > { %p11_p4 = scmp.ge.s32.totalorder %s14_s15, 4  }
 0x301   :  { %13 = sbr.rel (!%p11_p4) target bundleno = 1 (0x1), region = 68 }

// kernel: squeeze.3
= control target key start
LH: loop header
LB: loop body
LE: loop exit
PB: predicated region body
PF: predicated region fallthrough
CT: control target
= control target key end

     0   :  { %vm2051_vm0 = vcmask 1047556   ;;  %s3279_s27 = smov 96   ;;  %vm2053_vm1 = vcmask 261120   ;;  %s3281_s23 = smov 32   ;;  %vm2198_vm2 = vcmask 1048320   ;;  %vm2373_vm3 = vcmask 785920   ;;  %s3619_s0 = inlined_call_operand.vmem [shape: bf16[1,8,16,4,32], index: 0, kind: input, shape index: {}]   ;;  %s3620_s1 = inlined_call_operand.vmem [shape: bf16[128,128], index: 1, kind: output, shape index: {}]  }
   0x1   :  { %v3055_v0 = vld [vmem:[%s3619_s0 + $0x4e] sm:$0xff]   ;;  %v3056_v1 = vld [vmem:[%s3619_s0 + $0x46] sm:$0xff]   ;;  %v3062_v6 = vld [vmem:[%s3619_s0 + $0x40] sm:$0x3]  ;;  %vm2548_vm4 = vcmask 523520  }
   0x2   :  { %v3301_v2 = vld [vmem:[%s3619_s0 + $0x26] ss:$28 sps:$4 sm:$0xff]   ;;  %v1425_v3 = vunpack.c.l.bf16 %v3055_v0  ;;  %v1441_v4 = vunpack.c.h.bf16 %v3056_v1  ;;  %v1473_v5 = vunpack.c.l.bf16 %v3056_v1  ;;  %v3087_v7 = vld [vmem:[%s3619_s0 + $0xe] sm:$0xff]   ;;  %v1537_v10 = vunpack.c.l.bf16 %v3062_v6  ;;  %v2045_v12 = vld [vmem:[%s3619_s0] sm:$0x3] }
   0x3   :  { %v3088_v8 = vld [vmem:[%s3619_s0 + $0x6] sm:$0xff]   ;;  %v1505_v9 = vunpack.c.h.bf16 %v3301_v2  ;;  %v3324_v13 = vld [vmem:[%s3619_s0 + $0x5e] sm:$0xff]   ;;  %v1937_v14 = vunpack.c.l.bf16 %v3087_v7  ;;  %v3048_v17 = vld [vmem:[%s3619_s0 + $0x56] sm:$0xff]   ;;  %v2046_v19 = vunpack.c.l.bf16 %v2045_v12  ;;  %v1377_v25 = vunpack.c.h.bf16 %v3055_v0 }
   0x4   :  { %v3316_v11 = vld [vmem:[%s3619_s0 + $0x2] ss:$228 sps:$4 sm:$0xff]   ;;  %1428 = vst [vmem:[#allocation1 + $0x138] ss:$8 sps:$4 sm:$0xff] %v1425_v3   ;;  %1444 = vst [vmem:[#allocation1 + $0x128] ss:$8 sps:$4 sm:$0xff] %v1441_v4   ;;  %v1953_v15 = vunpack.c.h.bf16 %v3088_v8  ;;  %v1985_v16 = vunpack.c.l.bf16 %v3088_v8  ;;  %v1297_v22 = vunpack.c.l.bf16 %v3324_v13  ;;  %v1313_v23 = vunpack.c.h.bf16 %v3048_v17 }
   0x5   :  { %1476 = vst [vmem:[#allocation1 + $0x118] ss:$8 sps:$4 sm:$0xff] %v1473_v5   ;;  %1508 = vst [vmem:[#allocation1 + $0x108] ss:$8 sps:$4 sm:$0xff] %v1505_v9   ;;  %v2017_v18 = vunpack.c.l.bf16 %v3316_v11  ;;  %v3333_v20 = vld [vmem:[%s3619_s0 + $0x1e] sm:$0xff]   ;;  %v3080_v21 = vld [vmem:[%s3619_s0 + $0x16] sm:$0xff]   ;;  %v1345_v24 = vunpack.c.l.bf16 %v3048_v17  ;;  %v1889_v33 = vunpack.c.h.bf16 %v3087_v7  ;;  %v1249_v13 = vunpack.c.h.bf16 %v3324_v13 }
   0x6   :  { %1540 = vst [vmem:[#allocation1 + $0x100] sm:$0xf] %v1537_v10  ;;  %1940 = vst [vmem:[#allocation1 + $0x38] ss:$8 sps:$4 sm:$0xff] %v1937_v14   ;;  %v3342_v26 = vld [vmem:[%s3619_s0 + $0xce] sm:$0xff]   ;;  %v2992_v27 = vld [vmem:[%s3619_s0 + $0xc6] sm:$0xff]   ;;  %v1809_v28 = vunpack.c.l.bf16 %v3333_v20  ;;  %v1825_v29 = vunpack.c.h.bf16 %v3080_v21  ;;  %v1857_v30 = vunpack.c.l.bf16 %v3080_v21  ;;  %v1729_v2 = vunpack.c.l.bf16 %v3301_v2 }
   0x7   :  { %1956 = vst [vmem:[#allocation1 + $0x28] ss:$8 sps:$4 sm:$0xff] %v1953_v15   ;;  %1988 = vst [vmem:[#allocation1 + $0x18] ss:$8 sps:$4 sm:$0xff] %v1985_v16   ;;  %v3351_v31 = vld [vmem:[%s3619_s0 + $0xa6] ss:$28 sps:$4 sm:$0xff]   ;;  %v401_v36 = vunpack.c.l.bf16 %v3342_v26  ;;  %v417_v37 = vunpack.c.h.bf16 %v2992_v27  ;;  %v449_v38 = vunpack.c.l.bf16 %v2992_v27  ;;  %v353_v61 = vunpack.c.h.bf16 %v3342_v26 }
   0x8   :  { %2020 = vst [vmem:[#allocation1 + $0x8] ss:$8 sps:$4 sm:$0xff] %v2017_v18   ;;  %2048 = vst [vmem:[#allocation1] sm:$0xf] %v2046_v19  ;;  %v3359_v34 = vld [vmem:[%s3619_s0 + $0x8e] sm:$0xff]   ;;  %v3024_v35 = vld [vmem:[%s3619_s0 + $0x86] sm:$0xff]   ;;  %v481_v41 = vunpack.c.h.bf16 %v3351_v31  ;;  %v1761_v20 = vunpack.c.h.bf16 %v3333_v20  ;;  %v193_v11 = vunpack.c.h.bf16 %v3316_v11  ;;  %v705_v31 = vunpack.c.l.bf16 %v3351_v31 }
   0x9   :  { %1300 = vst [vmem:[#allocation1 + $0x178] ss:$8 sps:$4 sm:$0xff] %v1297_v22   ;;  %1316 = vst [vmem:[#allocation1 + $0x168] ss:$8 sps:$4 sm:$0xff] %v1313_v23   ;;  %v3028_v39 = vld [vmem:[%s3619_s0 + $0x7e] sm:$0xff]   ;;  %v2984_v44 = vld [vmem:[%s3619_s0 + $0xd6] sm:$0xff]   ;;  %v913_v46 = vunpack.c.l.bf16 %v3359_v34  ;;  %v929_v47 = vunpack.c.h.bf16 %v3024_v35  ;;  %v961_v48 = vunpack.c.l.bf16 %v3024_v35  ;;  %v865_v9 = vunpack.c.h.bf16 %v3359_v34 }
   0xa   :  { %1348 = vst [vmem:[#allocation1 + $0x158] ss:$8 sps:$4 sm:$0xff] %v1345_v24   ;;  %v2998_v32 = vld [vmem:[%s3619_s0 + $0x32] ss:$142 sps:$2 sm:$0xf]   ;;  %v993_v51 = vunpack.c.h.bf16 %v3028_v39  ;;  %v1025_v54 = vunpack.c.l.bf16 %v3028_v39  ;;  %v289_v56 = vunpack.c.h.bf16 %v2984_v44  ;;  %v3016_v57 = vld [vmem:[%s3619_s0 + $0x96] sm:$0xff]   ;;  %v321_v60 = vunpack.c.l.bf16 %v2984_v44 }
   0xb   :  { %1380 = vst [vmem:[#allocation1 + $0x148] ss:$8 sps:$4 sm:$0xff] %v1377_v25   ;;  %1812 = vst [vmem:[#allocation1 + $0x78] ss:$8 sps:$4 sm:$0xff] %v1809_v28   ;;  %v513_v42 = vunpack.c.l.bf16 %v2998_v32  ;;  %v3372_v43 = vld [vmem:[%s3619_s0 + $0xde] sm:$0xff]   ;;  %v3394_v1 = vld [vmem:[%s3619_s0 + $0x6e] sm:$0xff]   ;;  %v801_v6 = vunpack.c.h.bf16 %v3016_v57  ;;  %v833_v7 = vunpack.c.l.bf16 %v3016_v57 }
   0xc   :  { %1828 = vst [vmem:[#allocation1 + $0x68] ss:$8 sps:$4 sm:$0xff] %v1825_v29   ;;  %1860 = vst [vmem:[#allocation1 + $0x58] ss:$8 sps:$4 sm:$0xff] %v1857_v30   ;;  %v3382_v52 = vld [vmem:[%s3619_s0 + $0x9e] sm:$0xff]   ;;  %v273_v55 = vunpack.c.l.bf16 %v3372_v43  ;;  %v3040_v3 = vld [vmem:[%s3619_s0 + $0x66] sm:$0xff]   ;;  %v1169_v15 = vunpack.c.l.bf16 %v3394_v1 }
   0xd   :  { %v2203_v40 = vld [vmem:[#allocation1 + $0x103] ss:$8 sm:$0xf0]   ;;  %1892 = vst [vmem:[#allocation1 + $0x48] ss:$8 sps:$4 sm:$0xff] %v1889_v33   ;;  %v785_v0 = vunpack.c.l.bf16 %v3382_v52  ;;  %v1185_v16 = vunpack.c.h.bf16 %v3040_v3  ;;  %v1217_v19 = vunpack.c.l.bf16 %v3040_v3 }
   0xe   :  { %v2201_v45 = vld [vmem:[#allocation1 + $0x103] ss:$8 sm:$0xf]   ;;  %404 = vst [vmem:[#allocation1 + $0x338] ss:$8 sps:$4 sm:$0xff] %v401_v36   ;;  %v225_v36 = vunpack.c.h.bf16 %v3372_v43 }
   0xf   :  { %420 = vst [vmem:[#allocation1 + $0x328] ss:$8 sps:$4 sm:$0xff] %v417_v37   ;;  %452 = vst [vmem:[#allocation1 + $0x318] ss:$8 sps:$4 sm:$0xff] %v449_v38   ;;  %v2205_v50 = vsel %vm2051_vm0, %v2203_v40, %v2201_v45  ;;  %v3071_v10 = vld [vmem:[%s3619_s0 + $0x2a] sm:$0xff]   ;;  %v3032_v40 = vld [vmem:[%s3619_s0 + $0x76] sm:$0xff]  }
  0x10   :  { %v2193_v49 = vld [vmem:[#allocation1 + $0x3] ss:$8 sm:$0xf0]   ;;  %484 = vst [vmem:[#allocation1 + $0x308] ss:$8 sps:$4 sm:$0xff] %v481_v41   ;;  %v1681_v24 = vunpack.c.h.bf16 %v3071_v10  ;;  %v1697_v25 = vunpack.c.l.bf16 %v3071_v10 }
  0x11   :  { %516 = vst [vmem:[#allocation1 + $0xc8] ss:$568 sps:$4 sm:$0xff] %v513_v42   ;;  %v2191_v53 = vld [vmem:[#allocation1 + $0x3] ss:$8 sm:$0xf]   ;;  %v737_v42 = vunpack.c.h.bf16 %v3382_v52  ;;  %v1121_v52 = vunpack.c.h.bf16 %v3394_v1 }
  0x12   :  { %916 = vst [vmem:[#allocation1 + $0x238] ss:$8 sps:$4 sm:$0xff] %v913_v46   ;;  %932 = vst [vmem:[#allocation1 + $0x228] ss:$8 sps:$4 sm:$0xff] %v929_v47   ;;  %v2195_v58 = vsel %vm2051_vm0, %v2193_v49, %v2191_v53  ;;  %v2975_v21 = vld [vmem:[%s3619_s0 + $0xea] sm:$0xff]   ;;  %v3063_v44 = vld [vmem:[%s3619_s0 + $0x38] sm:$0xff]   ;;  %v1057_v49 = vunpack.c.h.bf16 %v3032_v40 }
  0x13   :  { %964 = vst [vmem:[#allocation1 + $0x218] ss:$8 sps:$4 sm:$0xff] %v961_v48   ;;  %v2247_v59 = vld [vmem:[#allocation1 + $0x143] ss:$8 sm:$0xf0]   ;;  %v3159_v62 = vpack.i.bf16 %v2205_v50, %v2195_v58  ;;  %v145_v27 = vunpack.c.h.bf16 %v2975_v21  ;;  %v161_v33 = vunpack.c.l.bf16 %v2975_v21  ;;  %v1089_v50 = vunpack.c.l.bf16 %v3032_v40 }
  0x14   :  { %996 = vst [vmem:[#allocation1 + $0x208] ss:$8 sps:$4 sm:$0xff] %v993_v51   ;;  %v2245_v63 = vld [vmem:[#allocation1 + $0x143] ss:$8 sm:$0xf]  }
  0x15   :  { %1028 = vst [vmem:[#allocation1 + $0x1f8] ss:$8 sps:$4 sm:$0xff] %v1025_v54   ;;  %276 = vst [vmem:[#allocation1 + $0x378] ss:$8 sps:$4 sm:$0xff] %v273_v55   ;;  %v2249_v5 = vsel %vm2051_vm0, %v2247_v59, %v2245_v63  ;;  %3160 = vrot.lane.b32.xlu0 %v3159_v62, %s3279_s27  ;;  %v3007_v28 = vld [vmem:[%s3619_s0 + $0xaa] sm:$0xff]   ;;  %v2967_v53 = vld [vmem:[%s3619_s0 + $0xf8] sm:$0xff]   ;;  %v1553_v55 = vunpack.c.h.bf16 %v3063_v44 }
  0x16   :  { %292 = vst [vmem:[#allocation1 + $0x368] ss:$8 sps:$4 sm:$0xff] %v289_v56   ;;  %v2236_v4 = vld [vmem:[#allocation1 + $0x43] ss:$8 sm:$0xf0]   ;;  %v657_v38 = vunpack.c.h.bf16 %v3007_v28  ;;  %v673_v39 = vunpack.c.l.bf16 %v3007_v28  ;;  %v1585_v56 = vunpack.c.l.bf16 %v3063_v44  ;;  %v17_v63 = vunpack.c.h.bf16 %v2967_v53 }
  0x17   :  { %324 = vst [vmem:[#allocation1 + $0x358] ss:$8 sps:$4 sm:$0xff] %v321_v60   ;;  %356 = vst [vmem:[#allocation1 + $0x348] ss:$8 sps:$4 sm:$0xff] %v353_v61   ;;  %v3067_v45 = vld [vmem:[%s3619_s0 + $0x34] sm:$0xf]  }
  0x18   :  { %v2234_v8 = vld [vmem:[#allocation1 + $0x43] ss:$8 sm:$0xf]   ;;  %788 = vst [vmem:[#allocation1 + $0x278] ss:$8 sps:$4 sm:$0xff] %v785_v0   ;;  %v1617_v59 = vunpack.c.l.bf16 %v3067_v45 }
  0x19   :  { %v2238_v12 = vsel %vm2051_vm0, %v2236_v4, %v2234_v8  ;;  %v2225_v14 = vld [vmem:[#allocation1 + $0x303] ss:$8 sm:$0xf0]   ;;  %804 = vst [vmem:[#allocation1 + $0x268] ss:$8 sps:$4 sm:$0xff] %v801_v6  }
  0x1a   :  { %836 = vst [vmem:[#allocation1 + $0x258] ss:$8 sps:$4 sm:$0xff] %v833_v7   ;;  %v3169_v17 = vpack.i.bf16 %v2249_v5, %v2238_v12  ;;  %v2223_v18 = vld [vmem:[#allocation1 + $0x303] ss:$8 sm:$0xf]   ;;  %v49_v5 = vunpack.c.l.bf16 %v2967_v53 }
  0x1b   :  { %868 = vst [vmem:[#allocation1 + $0x248] ss:$8 sps:$4 sm:$0xff] %v865_v9   ;;  %v2214_v22 = vld [vmem:[#allocation1 + $0x203] ss:$8 sm:$0xf0]   ;;  %v2227_v23 = vsel %vm2051_vm0, %v2225_v14, %v2223_v18 }
  0x1c   :  { %1172 = vst [vmem:[#allocation1 + $0x1b8] ss:$8 sps:$4 sm:$0xff] %v1169_v15   ;;  %1188 = vst [vmem:[#allocation1 + $0x1a8] ss:$8 sps:$4 sm:$0xff] %v1185_v16   ;;  %3170 = vrot.lane.b32.xlu1 %v3169_v17, %s3279_s27  ;;  %v2971_v57 = vld [vmem:[%s3619_s0 + $0xf4] sm:$0xf]  }
  0x1d   :  { %1220 = vst [vmem:[#allocation1 + $0x198] ss:$8 sps:$4 sm:$0xff] %v1217_v19   ;;  %1252 = vst [vmem:[#allocation1 + $0x188] ss:$8 sps:$4 sm:$0xff] %v1249_v13   ;;  %v2973_v60 = vld [vmem:[%s3619_s0 + $0xf2] sm:$0x3]  ;;  %v81_v6 = vunpack.c.l.bf16 %v2971_v57 }
  0x1e   :  { %v2212_v26 = vld [vmem:[#allocation1 + $0x203] ss:$8 sm:$0xf]   ;;  %1684 = vst [vmem:[#allocation1 + $0xb8] ss:$8 sps:$4 sm:$0xff] %v1681_v24   ;;  %v113_v9 = vunpack.c.l.bf16 %v2973_v60 }
  0x1f   :  { %v2216_v29 = vsel %vm2051_vm0, %v2214_v22, %v2212_v26  ;;  %v2267_v30 = vld [vmem:[#allocation1 + $0x343] ss:$8 sm:$0xf]   ;;  %1700 = vst [vmem:[#allocation1 + $0xa8] ss:$8 sps:$4 sm:$0xff] %v1697_v25  }
  0x20   :  { %v2269_v32 = vld [vmem:[#allocation1 + $0x343] ss:$8 sm:$0xf0]   ;;  %1732 = vst [vmem:[#allocation1 + $0x98] ss:$8 sps:$4 sm:$0xff] %v1729_v2   ;;  %v3164_v34 = vpack.i.bf16 %v2227_v23, %v2216_v29 }
  0x21   :  { %v2271_v35 = vsel %vm2051_vm0, %v2269_v32, %v2267_v30  ;;  %1764 = vst [vmem:[#allocation1 + $0x88] ss:$8 sps:$4 sm:$0xff] %v1761_v20   ;;  %148 = vst [vmem:[#allocation1 + $0x3b8] ss:$8 sps:$4 sm:$0xff] %v145_v27   ;;  %v2999_v0 = vld [vmem:[%s3619_s0 + $0xb8] sm:$0xff]  }
  0x22   :  { %v2258_v37 = vld [vmem:[#allocation1 + $0x243] ss:$8 sm:$0xf0]   ;;  %164 = vst [vmem:[#allocation1 + $0x3a8] ss:$8 sps:$4 sm:$0xff] %v161_v33   ;;  %3165 = vrot.lane.b32.xlu0 %v3164_v34, %s3279_s27  ;;  %v529_v14 = vunpack.c.h.bf16 %v2999_v0  ;;  %v561_v15 = vunpack.c.l.bf16 %v2999_v0 }
  0x23   :  { %196 = vst [vmem:[#allocation1 + $0x398] ss:$8 sps:$4 sm:$0xff] %v193_v11   ;;  %v2256_v41 = vld [vmem:[#allocation1 + $0x243] ss:$8 sm:$0xf]  }
  0x24   :  { %228 = vst [vmem:[#allocation1 + $0x388] ss:$8 sps:$4 sm:$0xff] %v225_v36   ;;  %v2260_v43 = vsel %vm2051_vm0, %v2258_v37, %v2256_v41  ;;  %660 = vst [vmem:[#allocation1 + $0x2b8] ss:$8 sps:$4 sm:$0xff] %v657_v38   ;;  %v3003_v1 = vld [vmem:[%s3619_s0 + $0xb4] sm:$0xf]  }
  0x25   :  { %676 = vst [vmem:[#allocation1 + $0x2a8] ss:$8 sps:$4 sm:$0xff] %v673_v39   ;;  %v3174_v46 = vpack.i.bf16 %v2271_v35, %v2260_v43  ;;  %v2289_v47 = vld [vmem:[#allocation1 + $0x183] ss:$8 sm:$0xf]   ;;  %v593_v17 = vunpack.c.l.bf16 %v3003_v1 }
  0x26   :  { %v2291_v48 = vld [vmem:[#allocation1 + $0x183] ss:$8 sm:$0xf0]   ;;  %708 = vst [vmem:[#allocation1 + $0x298] ss:$8 sps:$4 sm:$0xff] %v705_v31  }
  0x27   :  { %740 = vst [vmem:[#allocation1 + $0x288] ss:$8 sps:$4 sm:$0xff] %v737_v42   ;;  %v2293_v51 = vsel %vm2051_vm0, %v2291_v48, %v2289_v47  ;;  %3175 = vrot.lane.b32.xlu1 %v3174_v46, %s3279_s27  ;;  %v2280_v54 = vld [vmem:[#allocation1 + $0x83] ss:$8 sm:$0xf0]  }
  0x28   :  { %1060 = vst [vmem:[#allocation1 + $0x1e8] ss:$8 sps:$4 sm:$0xff] %v1057_v49   ;;  %1092 = vst [vmem:[#allocation1 + $0x1d8] ss:$8 sps:$4 sm:$0xff] %v1089_v50   ;;  %v3005_v7 = vld [vmem:[%s3619_s0 + $0xb2] sm:$0x3] }
  0x29   :  { %v2278_v58 = vld [vmem:[#allocation1 + $0x83] ss:$8 sm:$0xf]   ;;  %1124 = vst [vmem:[#allocation1 + $0x1c8] ss:$8 sps:$4 sm:$0xff] %v1121_v52   ;;  %v625_v18 = vunpack.c.l.bf16 %v3005_v7  ;;  %s3280_s0 = smov 64  }
  0x2a   :  { %v2282_v61 = vsel %vm2051_vm0, %v2280_v54, %v2278_v58  ;;  %v2313_v62 = vld [vmem:[#allocation1 + $0x383] ss:$8 sm:$0xf0]   ;;  %1556 = vst [vmem:[#allocation1 + $0xf0] ss:$8 sps:$4 sm:$0xff] %v1553_v55  }
  0x2b   :  { %1588 = vst [vmem:[#allocation1 + $0xe0] ss:$8 sps:$4 sm:$0xff] %v1585_v56   ;;  %v3179_v3 = vpack.i.bf16 %v2293_v51, %v2282_v61  ;;  %v2311_v4 = vld [vmem:[#allocation1 + $0x383] ss:$8 sm:$0xf]  }
  0x2c   :  { %1620 = vst [vmem:[#allocation1 + $0xd0] ss:$8 sps:$4 sm:$0xff] %v1617_v59   ;;  %v2315_v8 = vsel %vm2051_vm0, %v2313_v62, %v2311_v4  ;;  %20 = vst [vmem:[#allocation1 + $0x3f0] ss:$8 sps:$4 sm:$0xff] %v17_v63  }
  0x2d   :  { %3180 = vrot.lane.b32.xlu0 %v3179_v3, %s3279_s27  ;;  %v2302_v12 = vld [vmem:[#allocation1 + $0x283] ss:$8 sm:$0xf0]   ;;  %52 = vst [vmem:[#allocation1 + $0x3e0] ss:$8 sps:$4 sm:$0xff] %v49_v5  }
  0x2e   :  { %v2300_v10 = vld [vmem:[#allocation1 + $0x283] ss:$8 sm:$0xf]   ;;  %84 = vst [vmem:[#allocation1 + $0x3d0] ss:$8 sps:$4 sm:$0xff] %v81_v6  }
  0x2f   :  { %v2304_v16 = vsel %vm2051_vm0, %v2302_v12, %v2300_v10  ;;  %116 = vst [vmem:[#allocation1 + $0x3c8] sm:$0xf] %v113_v9  ;;  %v2366_v19 = vld [vmem:[#allocation1 + $0x2] ss:$8 sm:$0xf]  }
  0x30   :  { %v2368_v13 = vld [vmem:[#allocation1 + $0x2] ss:$8 sm:$0xf0]   ;;  %v3184_v21 = vpack.i.bf16 %v2315_v8, %v2304_v16  ;;  %v2335_v22 = vld [vmem:[#allocation1 + $0x1c3] ss:$8 sm:$0xf0]  }
  0x31   :  { %532 = vst [vmem:[#allocation1 + $0x2f0] ss:$8 sps:$4 sm:$0xff] %v529_v14   ;;  %564 = vst [vmem:[#allocation1 + $0x2e0] ss:$8 sps:$4 sm:$0xff] %v561_v15   ;;  %v2370_v29 = vsel %vm2051_vm0, %v2368_v13, %v2366_v19 }
  0x32   :  { %v2376_v23 = vld [vmem:[#allocation1 + $0x102] ss:$8 sm:$0xf]   ;;  %v2333_v24 = vld [vmem:[#allocation1 + $0x1c3] ss:$8 sm:$0xf]   ;;  %3185 = vrot.lane.b32.xlu1 %v3184_v21, %s3279_s27 }
  0x33   :  { %596 = vst [vmem:[#allocation1 + $0x2d0] ss:$8 sps:$4 sm:$0xff] %v593_v17   ;;  %628 = vst [vmem:[#allocation1 + $0x2c8] sm:$0xf] %v625_v18  ;;  %v2337_v26 = vsel %vm2051_vm0, %v2335_v22, %v2333_v24 }
  0x34   :  { %v2378_v25 = vld [vmem:[#allocation1 + $0x102] ss:$8 sm:$0xf0]   ;;  %v2324_v2 = vld [vmem:[#allocation1 + $0xc3] ss:$8 sm:$0xf0]  }
  0x35   :  { %v2322_v20 = vld [vmem:[#allocation1 + $0xc3] ss:$8 sm:$0xf]   ;;  %v2409_v27 = vld [vmem:[#allocation1 + $0x42] ss:$8 sm:$0xf]   ;;  %v2380_v30 = vsel %vm2051_vm0, %v2378_v25, %v2376_v23 }
  0x36   :  { %v2326_v28 = vsel %vm2051_vm0, %v2324_v2, %v2322_v20  ;;  %v2389_v32 = vld [vmem:[#allocation1 + $0x202] ss:$8 sm:$0xf0]   ;;  %v2357_v37 = vld [vmem:[#allocation1 + $0x3c3] ss:$8 sm:$0xf0]   ;;  %v3199_v42 = vpack.i.bf16 %v2380_v30, %v2370_v29 }
  0x37   :  { %v2398_v33 = vld [vmem:[#allocation1 + $0x302] ss:$8 sm:$0xf]   ;;  %v3189_v36 = vpack.i.bf16 %v2337_v26, %v2326_v28  ;;  %v2355_v39 = vld [vmem:[#allocation1 + $0x3c3] ss:$8 sm:$0xf]  }
  0x38   :  { %v2400_v11 = vld [vmem:[#allocation1 + $0x302] ss:$8 sm:$0xf0]   ;;  %v2346_v41 = vld [vmem:[#allocation1 + $0x2c3] ss:$8 sm:$0xf0]   ;;  %v2359_v31 = vsel %vm2051_vm0, %v2357_v37, %v2355_v39 }
  0x39   :  { %v2411_v34 = vld [vmem:[#allocation1 + $0x42] ss:$8 sm:$0xf0]   ;;  %3190 = vrot.lane.b32.xlu0 %v3189_v36, %s3279_s27  ;;  %v2402_v52 = vsel %vm2051_vm0, %v2400_v11, %v2398_v33  ;;  %v2541_v10 = vld [vmem:[#allocation1 + $0x1] ss:$8 sm:$0xf]  }
  0x3a   :  { %v2420_v35 = vld [vmem:[#allocation1 + $0x142] ss:$8 sm:$0xf]   ;;  %v2344_v44 = vld [vmem:[#allocation1 + $0x2c3] ss:$8 sm:$0xf]   ;;  %v2413_v45 = vsel %vm2051_vm0, %v2411_v34, %v2409_v27 }
  0x3b   :  { %v2422_v38 = vld [vmem:[#allocation1 + $0x142] ss:$8 sm:$0xf0]   ;;  %v2348_v50 = vsel %vm2051_vm0, %v2346_v41, %v2344_v44  ;;  %v2543_v12 = vld [vmem:[#allocation1 + $0x1] ss:$8 sm:$0xf0]  }
  0x3c   :  { %v2387_v40 = vld [vmem:[#allocation1 + $0x202] ss:$8 sm:$0xf]   ;;  %v2424_v46 = vsel %vm2051_vm0, %v2422_v38, %v2420_v35  ;;  %v3194_v55 = vpack.i.bf16 %v2359_v31, %v2348_v50  ;;  %v2551_v18 = vld [vmem:[#allocation1 + $0x101] ss:$8 sm:$0xf]   ;;  %v2545_v26 = vsel %vm2051_vm0, %v2543_v12, %v2541_v10 }
  0x3d   :  { %v2464_v43 = vld [vmem:[#allocation1 + $0x182] ss:$8 sm:$0xf]   ;;  %v2391_v51 = vsel %vm2051_vm0, %v2389_v32, %v2387_v40  ;;  %3200 = vrot.lane.b32.xlu0 %v3199_v42, %s3280_s0  ;;  %v3209_v58 = vpack.i.bf16 %v2424_v46, %v2413_v45  ;;  %v2553_v22 = vld [vmem:[#allocation1 + $0x101] ss:$8 sm:$0xf0]  }
  0x3e   :  { %v2431_v47 = vld [vmem:[#allocation1 + $0x242] ss:$8 sm:$0xf]   ;;  %3195 = vrot.lane.b32.xlu1 %v3194_v55, %s3279_s27  ;;  %v3204_v59 = vpack.i.bf16 %v2402_v52, %v2391_v51  ;;  %v2555_v20 = vsel %vm2051_vm0, %v2553_v22, %v2551_v18  ;;  %v2562_v27 = vld [vmem:[#allocation1 + $0x201] ss:$8 sm:$0xf]  }
  0x3f   :  { %v2433_v48 = vld [vmem:[#allocation1 + $0x242] ss:$8 sm:$0xf0]   ;;  %v2564_v28 = vld [vmem:[#allocation1 + $0x201] ss:$8 sm:$0xf0]   ;;  %v3239_v37 = vpack.i.bf16 %v2555_v20, %v2545_v26 }
  0x40   :  { %v2455_v49 = vld [vmem:[#allocation1 + $0x82] ss:$8 sm:$0xf0]   ;;  %v2435_v3 = vsel %vm2051_vm0, %v2433_v48, %v2431_v47  ;;  %v2584_v29 = vld [vmem:[#allocation1 + $0x41] ss:$8 sm:$0xf]   ;;  %v2566_v50 = vsel %vm2051_vm0, %v2564_v28, %v2562_v27 }
  0x41   :  { %v2453_v53 = vld [vmem:[#allocation1 + $0x82] ss:$8 sm:$0xf]   ;;  %3210 = vrot.lane.b32.xlu0 %v3209_v58, %s3280_s0  ;;  %v2586_v30 = vld [vmem:[#allocation1 + $0x41] ss:$8 sm:$0xf0]  }
  0x42   :  { %v2466_v54 = vld [vmem:[#allocation1 + $0x182] ss:$8 sm:$0xf0]   ;;  %v2457_v60 = vsel %vm2051_vm0, %v2455_v49, %v2453_v53  ;;  %3205 = vrot.lane.b32.xlu1 %v3204_v59, %s3280_s0  ;;  %v2595_v11 = vld [vmem:[#allocation1 + $0x141] ss:$8 sm:$0xf]  }
  0x43   :  { %v2442_v56 = vld [vmem:[#allocation1 + $0x342] ss:$8 sm:$0xf]   ;;  %v2468_v61 = vsel %vm2051_vm0, %v2466_v54, %v2464_v43  ;;  %v2597_v34 = vld [vmem:[#allocation1 + $0x141] ss:$8 sm:$0xf0]   ;;  %v2588_v43 = vsel %vm2051_vm0, %v2586_v30, %v2584_v29 }
  0x44   :  { %v2444_v57 = vld [vmem:[#allocation1 + $0x342] ss:$8 sm:$0xf0]   ;;  %v3219_v9 = vpack.i.bf16 %v2468_v61, %v2457_v60  ;;  %v2573_v35 = vld [vmem:[#allocation1 + $0x301] ss:$8 sm:$0xf]   ;;  %v2599_v44 = vsel %vm2051_vm0, %v2597_v34, %v2595_v11 }
  0x45   :  { %v2486_v62 = vld [vmem:[#allocation1 + $0x382] ss:$8 sm:$0xf]   ;;  %v2446_v4 = vsel %vm2051_vm0, %v2444_v57, %v2442_v56  ;;  %v2575_v36 = vld [vmem:[#allocation1 + $0x301] ss:$8 sm:$0xf0]   ;;  %v3249_v58 = vpack.i.bf16 %v2599_v44, %v2588_v43 }
  0x46   :  { %v2488_v63 = vld [vmem:[#allocation1 + $0x382] ss:$8 sm:$0xf0]   ;;  %v3214_v14 = vpack.i.bf16 %v2446_v4, %v2435_v3  ;;  %3220 = vrot.lane.b32.xlu0 %v3219_v9, %s3280_s0  ;;  %v2628_v38 = vld [vmem:[#allocation1 + $0x81] ss:$8 sm:$0xf]   ;;  %v2577_v51 = vsel %vm2051_vm0, %v2575_v36, %v2573_v35 }
  0x47   :  { %v2508_v0 = vld [vmem:[#allocation1 + $0x1c2] ss:$8 sm:$0xf]   ;;  %v2490_v13 = vsel %vm2051_vm0, %v2488_v63, %v2486_v62  ;;  %v2630_v39 = vld [vmem:[#allocation1 + $0x81] ss:$8 sm:$0xf0]   ;;  %v3244_v3 = vpack.i.bf16 %v2577_v51, %v2566_v50 }
  0x48   :  { %v2510_v1 = vld [vmem:[#allocation1 + $0x1c2] ss:$8 sm:$0xf0]   ;;  %3215 = vrot.lane.b32.xlu1 %v3214_v14, %s3280_s0  ;;  %v2639_v40 = vld [vmem:[#allocation1 + $0x181] ss:$8 sm:$0xf]   ;;  %v2632_v4 = vsel %vm2051_vm0, %v2630_v39, %v2628_v38 }
  0x49   :  { %v2497_v5 = vld [vmem:[#allocation1 + $0xc2] ss:$8 sm:$0xf]   ;;  %v2512_v16 = vsel %vm2051_vm0, %v2510_v1, %v2508_v0  ;;  %v2641_v41 = vld [vmem:[#allocation1 + $0x181] ss:$8 sm:$0xf0]  }
  0x4a   :  { %v2499_v6 = vld [vmem:[#allocation1 + $0xc2] ss:$8 sm:$0xf0]   ;;  %v2049_v31 = vld [vmem:[#allocation1] ss:$8 sm:$0xf]  }
  0x4b   :  { %v2475_v7 = vld [vmem:[#allocation1 + $0x282] ss:$8 sm:$0xf]   ;;  %v2501_v15 = vsel %vm2051_vm0, %v2499_v6, %v2497_v5  ;;  %v2606_v45 = vld [vmem:[#allocation1 + $0x241] ss:$8 sm:$0xf]   ;;  %v2643_v5 = vsel %vm2051_vm0, %v2641_v41, %v2639_v40 }
  0x4c   :  { %v2477_v8 = vld [vmem:[#allocation1 + $0x282] ss:$8 sm:$0xf0]   ;;  %v3229_v25 = vpack.i.bf16 %v2512_v16, %v2501_v15  ;;  %v2608_v46 = vld [vmem:[#allocation1 + $0x241] ss:$8 sm:$0xf0]  }
  0x4d   :  { %v2532_v17 = vld [vmem:[#allocation1 + $0x3c2] ss:$8 sm:$0xf0]   ;;  %v2479_v19 = vsel %vm2051_vm0, %v2477_v8, %v2475_v7  ;;  %v2617_v47 = vld [vmem:[#allocation1 + $0x341] ss:$8 sm:$0xf]   ;;  %v2610_v15 = vsel %vm2051_vm0, %v2608_v46, %v2606_v45 }
  0x4e   :  { %v2530_v21 = vld [vmem:[#allocation1 + $0x3c2] ss:$8 sm:$0xf]   ;;  %v3224_v2 = vpack.i.bf16 %v2490_v13, %v2479_v19  ;;  %3230 = vrot.lane.b32.xlu0 %v3229_v25, %s3280_s0  ;;  %v2619_v48 = vld [vmem:[#allocation1 + $0x341] ss:$8 sm:$0xf0]  }
  0x4f   :  { %v2519_v23 = vld [vmem:[#allocation1 + $0x2c2] ss:$8 sm:$0xf]   ;;  %v2534_v33 = vsel %vm2051_vm0, %v2532_v17, %v2530_v21  ;;  %v2050_v49 = vld [vmem:[#allocation1] ss:$8 sm:$0xf0]   ;;  %v2621_v16 = vsel %vm2051_vm0, %v2619_v48, %v2617_v47 }
  0x50   :  { %v2521_v24 = vld [vmem:[#allocation1 + $0x2c2] ss:$8 sm:$0xf0]   ;;  %3225 = vrot.lane.b32.xlu1 %v3224_v2, %s3280_s0  ;;  %v2052_v52 = vsel %vm2051_vm0, %v2050_v49, %v2049_v31  ;;  %v2083_v53 = vld [vmem:[#allocation1 + $0x100] ss:$8 sm:$0xf]   ;;  %v3254_v26 = vpack.i.bf16 %v2621_v16, %v2610_v15 }
  0x51   :  { %v2523_v32 = vsel %vm2051_vm0, %v2521_v24, %v2519_v23  ;;  %v2085_v54 = vld [vmem:[#allocation1 + $0x100] ss:$8 sm:$0xf0]   ;;  %2054 = vst.msk [vmem:[#allocation0] sm:$0xff] %vm2053_vm1, %v2052_v52   ;;  %v3259_v23 = vpack.i.bf16 %v2643_v5, %v2632_v4 }
  0x52   :  { %v3234_v42 = vpack.i.bf16 %v2534_v33, %v2523_v32  ;;  %v2087_v55 = vsel %vm2051_vm0, %v2085_v54, %v2083_v53  ;;  %v2056_v56 = vld [vmem:[#allocation1 + $0x40] ss:$8 sm:$0xf]   ;;  %3240 = vrot.lane.b32.xlu0 %v3239_v37, %s3281_s23  ;;  %v2672_v59 = vld [vmem:[#allocation1 + $0xc1] ss:$8 sm:$0xf]  }
  0x53   :  { %v2058_v57 = vld [vmem:[#allocation1 + $0x40] ss:$8 sm:$0xf0]   ;;  %v2674_v60 = vld [vmem:[#allocation1 + $0xc1] ss:$8 sm:$0xf0]  }
  0x54   :  { %v2683_v61 = vld [vmem:[#allocation1 + $0x1c1] ss:$8 sm:$0xf]   ;;  %2090 = vst.msk [vmem:[#allocation0 + $0x20] sm:$0xff] %vm2053_vm1, %v2087_v55   ;;  %v2060_v63 = vsel %vm2051_vm0, %v2058_v57, %v2056_v56  ;;  %3235 = vrot.lane.b32.xlu1 %v3234_v42, %s3280_s0  ;;  %v2676_v20 = vsel %vm2051_vm0, %v2674_v60, %v2672_v59 }
  0x55   :  { %v2685_v62 = vld [vmem:[#allocation1 + $0x1c1] ss:$8 sm:$0xf0]   ;;  %v2092_v0 = vld [vmem:[#allocation1 + $0x140] ss:$8 sm:$0xf]  }
  0x56   :  { %v2094_v1 = vld [vmem:[#allocation1 + $0x140] ss:$8 sm:$0xf0]   ;;  %v2650_v6 = vld [vmem:[#allocation1 + $0x281] ss:$8 sm:$0xf]   ;;  %3250 = vrot.lane.b32.xlu0 %v3249_v58, %s3281_s23  ;;  %v2687_v27 = vsel %vm2051_vm0, %v2685_v62, %v2683_v61 }
  0x57   :  { %v2652_v7 = vld [vmem:[#allocation1 + $0x281] ss:$8 sm:$0xf0]   ;;  %2063 = vst.msk [vmem:[#allocation0 + $0x8] sm:$0xff] %vm2053_vm1, %v2060_v63   ;;  %v2096_v10 = vsel %vm2051_vm0, %v2094_v1, %v2092_v0  ;;  %v3269_v42 = vpack.i.bf16 %v2687_v27, %v2676_v20 }
  0x58   :  { %v2661_v8 = vld [vmem:[#allocation1 + $0x381] ss:$8 sm:$0xf]   ;;  %v2119_v12 = vld [vmem:[#allocation1 + $0x200] ss:$8 sm:$0xf]   ;;  %3245 = vrot.lane.b32.xlu1 %v3244_v3, %s3281_s23  ;;  %v2654_v35 = vsel %vm2051_vm0, %v2652_v7, %v2650_v6 }
  0x59   :  { %v2663_v9 = vld [vmem:[#allocation1 + $0x381] ss:$8 sm:$0xf0]   ;;  %v2121_v14 = vld [vmem:[#allocation1 + $0x200] ss:$8 sm:$0xf0]  }
  0x5a   :  { %2099 = vst.msk [vmem:[#allocation0 + $0x28] sm:$0xff] %vm2053_vm1, %v2096_v10   ;;  %v2123_v17 = vsel %vm2051_vm0, %v2121_v14, %v2119_v12  ;;  %v2155_v18 = vld [vmem:[#allocation1 + $0x300] ss:$8 sm:$0xf]   ;;  %v2665_v36 = vsel %vm2051_vm0, %v2663_v9, %v2661_v8  ;;  %3260 = vrot.lane.b32.xlu0 %v3259_v23, %s3281_s23 }
  0x5b   :  { %v2157_v19 = vld [vmem:[#allocation1 + $0x300] ss:$8 sm:$0xf0]   ;;  %2126 = vst.msk [vmem:[#allocation0 + $0x40] sm:$0xff] %vm2053_vm1, %v2123_v17   ;;  %v3264_v46 = vpack.i.bf16 %v2665_v36, %v2654_v35 }
  0x5c   :  { %v2159_v13 = vsel %vm2051_vm0, %v2157_v19, %v2155_v18  ;;  %v2128_v21 = vld [vmem:[#allocation1 + $0x240] ss:$8 sm:$0xf]   ;;  %v2694_v28 = vld [vmem:[#allocation1 + $0x2c1] ss:$8 sm:$0xf]   ;;  %3255 = vrot.lane.b32.xlu1 %v3254_v26, %s3281_s23 }
  0x5d   :  { %v2130_v22 = vld [vmem:[#allocation1 + $0x240] ss:$8 sm:$0xf0]   ;;  %2162 = vst.msk [vmem:[#allocation0 + $0x60] sm:$0xff] %vm2053_vm1, %v2159_v13  }
  0x5e   :  { %v2132_v24 = vsel %vm2051_vm0, %v2130_v22, %v2128_v21  ;;  %v2164_v25 = vld [vmem:[#allocation1 + $0x340] ss:$8 sm:$0xf]   ;;  %v2696_v29 = vld [vmem:[#allocation1 + $0x2c1] ss:$8 sm:$0xf0]   ;;  %3270 = vrot.lane.b32.xlu0 %v3269_v42, %s3281_s23 }
  0x5f   :  { %v2166_v2 = vld [vmem:[#allocation1 + $0x340] ss:$8 sm:$0xf0]   ;;  %v2705_v30 = vld [vmem:[#allocation1 + $0x3c1] ss:$8 sm:$0xf]   ;;  %v2698_v50 = vsel %vm2051_vm0, %v2696_v29, %v2694_v28 }
  0x60   :  { %v2707_v32 = vld [vmem:[#allocation1 + $0x3c1] ss:$8 sm:$0xf0]   ;;  %2135 = vst.msk [vmem:[#allocation0 + $0x48] sm:$0xff] %vm2053_vm1, %v2132_v24   ;;  %v2168_v33 = vsel %vm2051_vm0, %v2166_v2, %v2164_v25  ;;  %3265 = vrot.lane.b32.xlu1 %v3264_v46, %s3281_s23 }
  0x61   :  { %v2065_v11 = vld [vmem:[#allocation1 + $0x80] ss:$8 sm:$0xf]   ;;  %2171 = vst.msk [vmem:[#allocation0 + $0x68] sm:$0xff] %vm2053_vm1, %v2168_v33   ;;  %v2709_v51 = vsel %vm2051_vm0, %v2707_v32, %v2705_v30 }
  0x62   :  { %v2067_v34 = vld [vmem:[#allocation1 + $0x80] ss:$8 sm:$0xf0]   ;;  %v3274_v61 = vpack.i.bf16 %v2709_v51, %v2698_v50 }
  0x63   :  { %v2069_v37 = vsel %vm2051_vm0, %v2067_v34, %v2065_v11  ;;  %v2101_v38 = vld [vmem:[#allocation1 + $0x180] ss:$8 sm:$0xf]  }
  0x64   :  { %v2103_v39 = vld [vmem:[#allocation1 + $0x180] ss:$8 sm:$0xf0]   ;;  %2072 = vst.msk [vmem:[#allocation0 + $0x10] sm:$0xff] %vm2053_vm1, %v2069_v37   ;;  %3275 = vrot.lane.b32.xlu1 %v3274_v61, %s3281_s23 }
  0x65   :  { %v2105_v40 = vsel %vm2051_vm0, %v2103_v39, %v2101_v38  ;;  %v2137_v41 = vld [vmem:[#allocation1 + $0x280] ss:$8 sm:$0xf]  }
  0x66   :  { %v2139_v31 = vld [vmem:[#allocation1 + $0x280] ss:$8 sm:$0xf0]   ;;  %2108 = vst.msk [vmem:[#allocation0 + $0x30] sm:$0xff] %vm2053_vm1, %v2105_v40  }
  0x67   :  { %v2141_v43 = vsel %vm2051_vm0, %v2139_v31, %v2137_v41  ;;  %v2173_v44 = vld [vmem:[#allocation1 + $0x380] ss:$8 sm:$0xf]  }
  0x68   :  { %v2175_v45 = vld [vmem:[#allocation1 + $0x380] ss:$8 sm:$0xf0]   ;;  %2144 = vst.msk [vmem:[#allocation0 + $0x50] sm:$0xff] %vm2053_vm1, %v2141_v43  }
  0x69   :  { %v2177_v47 = vsel %vm2051_vm0, %v2175_v45, %v2173_v44  ;;  %v2074_v48 = vld [vmem:[#allocation1 + $0xc0] ss:$8 sm:$0xf]  }
  0x6a   :  { %v2076_v49 = vld [vmem:[#allocation1 + $0xc0] ss:$8 sm:$0xf0]   ;;  %2180 = vst.msk [vmem:[#allocation0 + $0x70] sm:$0xff] %vm2053_vm1, %v2177_v47  }
  0x6b   :  { %v2078_v52 = vsel %vm2051_vm0, %v2076_v49, %v2074_v48  ;;  %v2110_v53 = vld [vmem:[#allocation1 + $0x1c0] ss:$8 sm:$0xf]  }
  0x6c   :  { %v2112_v54 = vld [vmem:[#allocation1 + $0x1c0] ss:$8 sm:$0xf0]   ;;  %2081 = vst.msk [vmem:[#allocation0 + $0x18] sm:$0xff] %vm2053_vm1, %v2078_v52  }
  0x6d   :  { %v2114_v55 = vsel %vm2051_vm0, %v2112_v54, %v2110_v53  ;;  %v2146_v56 = vld [vmem:[#allocation1 + $0x2c0] ss:$8 sm:$0xf]  }
  0x6e   :  { %v2148_v57 = vld [vmem:[#allocation1 + $0x2c0] ss:$8 sm:$0xf0]   ;;  %2117 = vst.msk [vmem:[#allocation0 + $0x38] sm:$0xff] %vm2053_vm1, %v2114_v55  }
  0x6f   :  { %v2150_v58 = vsel %vm2051_vm0, %v2148_v57, %v2146_v56  ;;  %v2182_v59 = vld [vmem:[#allocation1 + $0x3c0] ss:$8 sm:$0xf]  }
  0x70   :  { %v2184_v60 = vld [vmem:[#allocation1 + $0x3c0] ss:$8 sm:$0xf0]   ;;  %2153 = vst.msk [vmem:[#allocation0 + $0x58] sm:$0xff] %vm2053_vm1, %v2150_v58  }
  0x71   :  { %v2186_v62 = vsel %vm2051_vm0, %v2184_v60, %v2182_v59 }
  0x72   :  { %2189 = vst.msk [vmem:[#allocation0 + $0x78] sm:$0xff] %vm2053_vm1, %v2186_v62  }
  0x87   :  { %v3161_v63 = vpop.permute.xlu0 %3160 }
  0x88   :  { %v3163_v0 = vunpack.i.h.bf16 %v3161_v63  ;;  %v3162_v1 = vunpack.i.l.bf16 %v3161_v63 }
  0x8a   :  { %2199 = vst.msk [vmem:[#allocation0] sm:$0xff] %vm2198_vm2, %v3162_v1   ;;  %2210 = vst.msk [vmem:[#allocation0 + $0x20] sm:$0xff] %vm2198_vm2, %v3163_v0  }
  0x8e   :  { %v3171_v3 = vpop.permute.xlu1 %3170 }
  0x8f   :  { %v3173_v4 = vunpack.i.h.bf16 %v3171_v3  ;;  %v3172_v5 = vunpack.i.l.bf16 %v3171_v3 }
  0x91   :  { %2243 = vst.msk [vmem:[#allocation0 + $0x8] sm:$0xff] %vm2198_vm2, %v3172_v5   ;;  %2254 = vst.msk [vmem:[#allocation0 + $0x28] sm:$0xff] %vm2198_vm2, %v3173_v4  }
  0x94   :  { %v3166_v6 = vpop.permute.xlu0 %3165 }
  0x95   :  { %v3168_v7 = vunpack.i.h.bf16 %v3166_v6  ;;  %v3167_v8 = vunpack.i.l.bf16 %v3166_v6 }
  0x97   :  { %2221 = vst.msk [vmem:[#allocation0 + $0x40] sm:$0xff] %vm2198_vm2, %v3167_v8   ;;  %2232 = vst.msk [vmem:[#allocation0 + $0x60] sm:$0xff] %vm2198_vm2, %v3168_v7  }
  0x99   :  { %v3176_v9 = vpop.permute.xlu1 %3175 }
  0x9a   :  { %v3178_v10 = vunpack.i.h.bf16 %v3176_v9  ;;  %v3177_v12 = vunpack.i.l.bf16 %v3176_v9 }
  0x9c   :  { %2265 = vst.msk [vmem:[#allocation0 + $0x48] sm:$0xff] %vm2198_vm2, %v3177_v12   ;;  %2276 = vst.msk [vmem:[#allocation0 + $0x68] sm:$0xff] %vm2198_vm2, %v3178_v10  }
  0x9f   :  { %v3181_v14 = vpop.permute.xlu0 %3180 }
  0xa0   :  { %v3183_v15 = vunpack.i.h.bf16 %v3181_v14  ;;  %v3182_v16 = vunpack.i.l.bf16 %v3181_v14 }
  0xa2   :  { %2298 = vst.msk [vmem:[#allocation0 + $0x30] sm:$0xff] %vm2198_vm2, %v3183_v15   ;;  %2287 = vst.msk [vmem:[#allocation0 + $0x10] sm:$0xff] %vm2198_vm2, %v3182_v16  }
  0xa4   :  { %v3186_v17 = vpop.permute.xlu1 %3185 }
  0xa5   :  { %v3188_v18 = vunpack.i.h.bf16 %v3186_v17  ;;  %v3187_v19 = vunpack.i.l.bf16 %v3186_v17 }
  0xa7   :  { %2309 = vst.msk [vmem:[#allocation0 + $0x50] sm:$0xff] %vm2198_vm2, %v3187_v19   ;;  %2320 = vst.msk [vmem:[#allocation0 + $0x70] sm:$0xff] %vm2198_vm2, %v3188_v18  }
  0xab   :  { %v3191_v13 = vpop.permute.xlu0 %3190 }
  0xac   :  { %v3193_v21 = vunpack.i.h.bf16 %v3191_v13  ;;  %v3192_v22 = vunpack.i.l.bf16 %v3191_v13 }
  0xae   :  { %2342 = vst.msk [vmem:[#allocation0 + $0x38] sm:$0xff] %vm2198_vm2, %v3193_v21   ;;  %2331 = vst.msk [vmem:[#allocation0 + $0x18] sm:$0xff] %vm2198_vm2, %v3192_v22  }
  0xaf   :  { %v3201_v23 = vpop.permute.xlu0 %3200 }
  0xb0   :  { %v3196_v24 = vpop.permute.xlu1 %3195  ;;  %v3203_v25 = vunpack.i.h.bf16 %v3201_v23  ;;  %v3202_v2 = vunpack.i.l.bf16 %v3201_v23 }
  0xb1   :  { %v3198_v26 = vunpack.i.h.bf16 %v3196_v24  ;;  %v3197_v20 = vunpack.i.l.bf16 %v3196_v24 }
  0xb2   :  { %2385 = vst.msk [vmem:[#allocation0 + $0x20] sm:$0xff] %vm2373_vm3, %v3203_v25   ;;  %2374 = vst.msk [vmem:[#allocation0] sm:$0xff] %vm2373_vm3, %v3202_v2  }
  0xb3   :  { %2353 = vst.msk [vmem:[#allocation0 + $0x58] sm:$0xff] %vm2198_vm2, %v3197_v20   ;;  %2364 = vst.msk [vmem:[#allocation0 + $0x78] sm:$0xff] %vm2198_vm2, %v3198_v26   ;;  %v3211_v27 = vpop.permute.xlu0 %3210 }
  0xb4   :  { %v3206_v28 = vpop.permute.xlu1 %3205  ;;  %v3213_v29 = vunpack.i.h.bf16 %v3211_v27  ;;  %v3212_v30 = vunpack.i.l.bf16 %v3211_v27 }
  0xb5   :  { %v3208_v32 = vunpack.i.h.bf16 %v3206_v28  ;;  %v3207_v33 = vunpack.i.l.bf16 %v3206_v28 }
  0xb6   :  { %2429 = vst.msk [vmem:[#allocation0 + $0x28] sm:$0xff] %vm2373_vm3, %v3213_v29   ;;  %2418 = vst.msk [vmem:[#allocation0 + $0x8] sm:$0xff] %vm2373_vm3, %v3212_v30  }
  0xb7   :  { %2407 = vst.msk [vmem:[#allocation0 + $0x60] sm:$0xff] %vm2373_vm3, %v3208_v32   ;;  %2396 = vst.msk [vmem:[#allocation0 + $0x40] sm:$0xff] %vm2373_vm3, %v3207_v33  }
  0xb8   :  { %v3221_v11 = vpop.permute.xlu0 %3220 }
  0xb9   :  { %v3223_v35 = vunpack.i.h.bf16 %v3221_v11  ;;  %v3222_v36 = vunpack.i.l.bf16 %v3221_v11 }
  0xba   :  { %v3216_v34 = vpop.permute.xlu1 %3215 }
  0xbb   :  { %v3218_v37 = vunpack.i.h.bf16 %v3216_v34  ;;  %v3217_v38 = vunpack.i.l.bf16 %v3216_v34  ;;  %2462 = vst.msk [vmem:[#allocation0 + $0x10] sm:$0xff] %vm2373_vm3, %v3222_v36   ;;  %2473 = vst.msk [vmem:[#allocation0 + $0x30] sm:$0xff] %vm2373_vm3, %v3223_v35  }
  0xbd   :  { %2451 = vst.msk [vmem:[#allocation0 + $0x68] sm:$0xff] %vm2373_vm3, %v3218_v37   ;;  %2440 = vst.msk [vmem:[#allocation0 + $0x48] sm:$0xff] %vm2373_vm3, %v3217_v38  }
  0xc0   :  { %v3231_v39 = vpop.permute.xlu0 %3230 }
  0xc1   :  { %v3233_v41 = vunpack.i.h.bf16 %v3231_v39  ;;  %v3232_v31 = vunpack.i.l.bf16 %v3231_v39 }
  0xc2   :  { %v3226_v40 = vpop.permute.xlu1 %3225 }
  0xc3   :  { %v3228_v42 = vunpack.i.h.bf16 %v3226_v40  ;;  %v3227_v43 = vunpack.i.l.bf16 %v3226_v40  ;;  %2506 = vst.msk [vmem:[#allocation0 + $0x18] sm:$0xff] %vm2373_vm3, %v3232_v31   ;;  %2517 = vst.msk [vmem:[#allocation0 + $0x38] sm:$0xff] %vm2373_vm3, %v3233_v41  }
  0xc4   :  { %v3241_v44 = vpop.permute.xlu0 %3240 }
  0xc5   :  { %2495 = vst.msk [vmem:[#allocation0 + $0x70] sm:$0xff] %vm2373_vm3, %v3228_v42   ;;  %2484 = vst.msk [vmem:[#allocation0 + $0x50] sm:$0xff] %vm2373_vm3, %v3227_v43   ;;  %v3243_v46 = vunpack.i.h.bf16 %v3241_v44  ;;  %v3242_v47 = vunpack.i.l.bf16 %v3241_v44 }
  0xc6   :  { %v3236_v45 = vpop.permute.xlu1 %3235 }
  0xc7   :  { %v3238_v48 = vunpack.i.h.bf16 %v3236_v45  ;;  %v3237_v49 = vunpack.i.l.bf16 %v3236_v45  ;;  %2549 = vst.msk [vmem:[#allocation0] sm:$0xff] %vm2548_vm4, %v3242_v47   ;;  %2560 = vst.msk [vmem:[#allocation0 + $0x20] sm:$0xff] %vm2548_vm4, %v3243_v46  }
  0xc8   :  { %v3251_v50 = vpop.permute.xlu0 %3250 }
  0xc9   :  { %2528 = vst.msk [vmem:[#allocation0 + $0x58] sm:$0xff] %vm2373_vm3, %v3237_v49   ;;  %2539 = vst.msk [vmem:[#allocation0 + $0x78] sm:$0xff] %vm2373_vm3, %v3238_v48   ;;  %v3253_v52 = vunpack.i.h.bf16 %v3251_v50  ;;  %v3252_v53 = vunpack.i.l.bf16 %v3251_v50 }
  0xca   :  { %v3246_v51 = vpop.permute.xlu1 %3245 }
  0xcb   :  { %v3248_v54 = vunpack.i.h.bf16 %v3246_v51  ;;  %v3247_v55 = vunpack.i.l.bf16 %v3246_v51  ;;  %2593 = vst.msk [vmem:[#allocation0 + $0x8] sm:$0xff] %vm2548_vm4, %v3252_v53   ;;  %2604 = vst.msk [vmem:[#allocation0 + $0x28] sm:$0xff] %vm2548_vm4, %v3253_v52  }
  0xcc   :  { %v3261_v56 = vpop.permute.xlu0 %3260 }
  0xcd   :  { %2571 = vst.msk [vmem:[#allocation0 + $0x40] sm:$0xff] %vm2548_vm4, %v3247_v55   ;;  %2582 = vst.msk [vmem:[#allocation0 + $0x60] sm:$0xff] %vm2548_vm4, %v3248_v54   ;;  %v3263_v58 = vunpack.i.h.bf16 %v3261_v56  ;;  %v3262_v59 = vunpack.i.l.bf16 %v3261_v56 }
  0xce   :  { %v3256_v57 = vpop.permute.xlu1 %3255  ;;  %v2719_v63 = vld [vmem:[#allocation0] sm:$0xff] }
  0xcf   :  { %v3258_v60 = vunpack.i.h.bf16 %v3256_v57  ;;  %v3257_v61 = vunpack.i.l.bf16 %v3256_v57  ;;  %2637 = vst.msk [vmem:[#allocation0 + $0x10] sm:$0xff] %vm2548_vm4, %v3262_v59   ;;  %2648 = vst.msk [vmem:[#allocation0 + $0x30] sm:$0xff] %vm2548_vm4, %v3263_v58   ;;  %v2744_v4 = vld [vmem:[#allocation0 + $0x20] sm:$0xff] }
  0xd0   :  { %v3271_v62 = vpop.permute.xlu0 %3270 }
  0xd1   :  { %2615 = vst.msk [vmem:[#allocation0 + $0x48] sm:$0xff] %vm2548_vm4, %v3257_v61   ;;  %2626 = vst.msk [vmem:[#allocation0 + $0x68] sm:$0xff] %vm2548_vm4, %v3258_v60   ;;  %v3273_v1 = vunpack.i.h.bf16 %v3271_v62  ;;  %v3272_v3 = vunpack.i.l.bf16 %v3271_v62 }
  0xd2   :  { %v3266_v0 = vpop.permute.xlu1 %3265  ;;  %v2724_v5 = vld [vmem:[#allocation0 + $0x8] sm:$0xff] }
  0xd3   :  { %v2751_v6 = vld [vmem:[#allocation0 + $0x28] sm:$0xff]  ;;  %v3268_v7 = vunpack.i.h.bf16 %v3266_v0  ;;  %v3267_v8 = vunpack.i.l.bf16 %v3266_v0  ;;  %v3112_v9 = vpack.c.bf16 %v2724_v5, %v2719_v63  ;;  %2681 = vst.msk [vmem:[#allocation0 + $0x18] sm:$0xff] %vm2548_vm4, %v3272_v3   ;;  %2692 = vst.msk [vmem:[#allocation0 + $0x38] sm:$0xff] %vm2548_vm4, %v3273_v1  }
  0xd4   :  { %v3122_v10 = vpack.c.bf16 %v2751_v6, %v2744_v4  ;;  %v2772_v14 = vld [vmem:[#allocation0 + $0x40] sm:$0xff] }
  0xd5   :  { %2659 = vst.msk [vmem:[#allocation0 + $0x50] sm:$0xff] %vm2548_vm4, %v3267_v8   ;;  %2670 = vst.msk [vmem:[#allocation0 + $0x70] sm:$0xff] %vm2548_vm4, %v3268_v7   ;;  %v2800_v17 = vld [vmem:[#allocation0 + $0x60] sm:$0xff] }
  0xd6   :  { %3113 = vst [vmem:[%s3620_s1] sm:$0xff] %v3112_v9   ;;  %3150 = vst [vmem:[%s3620_s1 + $0x10] sm:$0xff] %v3122_v10   ;;  %v3276_v12 = vpop.permute.xlu1 %3275  ;;  %v2730_v22 = vld [vmem:[#allocation0 + $0x10] sm:$0xff] }
  0xd7   :  { %v3278_v15 = vunpack.i.h.bf16 %v3276_v12  ;;  %v3277_v16 = vunpack.i.l.bf16 %v3276_v12  ;;  %v2758_v23 = vld [vmem:[#allocation0 + $0x30] sm:$0xff] }
  0xd8   :  { %v2779_v18 = vld [vmem:[#allocation0 + $0x48] sm:$0xff] }
  0xd9   :  { %v2807_v19 = vld [vmem:[#allocation0 + $0x68] sm:$0xff]  ;;  %v3132_v13 = vpack.c.bf16 %v2779_v18, %v2772_v14  ;;  %2703 = vst.msk [vmem:[#allocation0 + $0x58] sm:$0xff] %vm2548_vm4, %v3277_v16   ;;  %2714 = vst.msk [vmem:[#allocation0 + $0x78] sm:$0xff] %vm2548_vm4, %v3278_v15  }
  0xda   :  { %v3142_v21 = vpack.c.bf16 %v2807_v19, %v2800_v17  ;;  %v2737_v24 = vld [vmem:[#allocation0 + $0x18] sm:$0xff] }
  0xdb   :  { %3152 = vst [vmem:[%s3620_s1 + $0x20] sm:$0xff] %v3132_v13   ;;  %v2765_v25 = vld [vmem:[#allocation0 + $0x38] sm:$0xff]  ;;  %v3117_v2 = vpack.c.bf16 %v2737_v24, %v2730_v22 }
  0xdc   :  { %3154 = vst [vmem:[%s3620_s1 + $0x30] sm:$0xff] %v3142_v21   ;;  %v3127_v26 = vpack.c.bf16 %v2765_v25, %v2758_v23  ;;  %v2786_v20 = vld [vmem:[#allocation0 + $0x50] sm:$0xff] }
  0xdd   :  { %3149 = vst [vmem:[%s3620_s1 + $0x8] sm:$0xff] %v3117_v2   ;;  %v2814_v27 = vld [vmem:[#allocation0 + $0x70] sm:$0xff] }
  0xde   :  { %3151 = vst [vmem:[%s3620_s1 + $0x18] sm:$0xff] %v3127_v26  }
  0xe0   :  { %v2793_v28 = vld [vmem:[#allocation0 + $0x58] sm:$0xff] }
  0xe1   :  { %v2821_v29 = vld [vmem:[#allocation0 + $0x78] sm:$0xff]  ;;  %v3137_v30 = vpack.c.bf16 %v2793_v28, %v2786_v20 }
  0xe2   :  { %v3147_v32 = vpack.c.bf16 %v2821_v29, %v2814_v27 }
  0xe3   :  { %3153 = vst [vmem:[%s3620_s1 + $0x28] sm:$0xff] %v3137_v30  }
  0xe4   :  { %3155 = vst [vmem:[%s3620_s1 + $0x38] sm:$0xff] %v3147_v32  }

// kernel: tile.69
= control target key start
LH: loop header
LB: loop body
LE: loop exit
PB: predicated region body
PF: predicated region fallthrough
CT: control target
= control target key end

     0   :  { %vm162_vm0 = vcmask 1047556   ;;  %s398_s10 = smov 96   ;;  %vm164_vm1 = vcmask 261120   ;;  %s400_s21 = smov 32   ;;  %vm201_vm2 = vcmask 1048320   ;;  %vm244_vm3 = vcmask 785920   ;;  %s579_s0 = inlined_call_operand.vmem [shape: f32[32,4,32], index: 0, kind: input, shape index: {}]   ;;  %s580_s1 = inlined_call_operand.vmem [shape: f32[32,128], index: 1, kind: output, shape index: {}]  }
   0x1   :  { %v376_v0 = vld [vmem:[%s579_s0 + $0x1c] sm:$0xf]  ;;  %v377_v1 = vld [vmem:[%s579_s0 + $0x18] sm:$0xf]  ;;  %v378_v2 = vld [vmem:[%s579_s0 + $0x14] sm:$0xf] }
   0x2   :  { %128 = vst [vmem:[#allocation0 + $0x38] sm:$0xf] %v376_v0  ;;  %133 = vst [vmem:[#allocation0 + $0x30] sm:$0xf] %v377_v1  ;;  %v379_v3 = vld [vmem:[%s579_s0 + $0x10] sm:$0xf] }
   0x3   :  { %138 = vst [vmem:[#allocation0 + $0x28] sm:$0xf] %v378_v2  ;;  %v380_v4 = vld [vmem:[%s579_s0 + $0xc] sm:$0xf]  ;;  %v381_v5 = vld [vmem:[%s579_s0 + $0x8] sm:$0xf] }
   0x4   :  { %143 = vst [vmem:[#allocation0 + $0x20] sm:$0xf] %v379_v3  ;;  %148 = vst [vmem:[#allocation0 + $0x18] sm:$0xf] %v380_v4  ;;  %v382_v6 = vld [vmem:[%s579_s0 + $0x4] sm:$0xf] }
   0x5   :  { %153 = vst [vmem:[#allocation0 + $0x10] sm:$0xf] %v381_v5  ;;  %v158_v7 = vld [vmem:[%s579_s0] sm:$0xf]  ;;  %157 = vst [vmem:[#allocation0 + $0x8] sm:$0xf] %v382_v6 }
   0x6   :  { %159 = vst [vmem:[#allocation0] sm:$0xf] %v158_v7  ;;  %v360_v8 = vld [vmem:[%s579_s0 + $0x5c] sm:$0xf]  ;;  %v361_v9 = vld [vmem:[%s579_s0 + $0x58] sm:$0xf] }
   0x7   :  { %v362_v10 = vld [vmem:[%s579_s0 + $0x54] sm:$0xf]  ;;  %48 = vst [vmem:[#allocation0 + $0xb8] sm:$0xf] %v360_v8  ;;  %53 = vst [vmem:[#allocation0 + $0xb0] sm:$0xf] %v361_v9 }
   0x8   :  { %58 = vst [vmem:[#allocation0 + $0xa8] sm:$0xf] %v362_v10  ;;  %v363_v11 = vld [vmem:[%s579_s0 + $0x50] sm:$0xf]  ;;  %v364_v12 = vld [vmem:[%s579_s0 + $0x4c] sm:$0xf] }
   0x9   :  { %v365_v13 = vld [vmem:[%s579_s0 + $0x48] sm:$0xf]  ;;  %63 = vst [vmem:[#allocation0 + $0xa0] sm:$0xf] %v363_v11  ;;  %68 = vst [vmem:[#allocation0 + $0x98] sm:$0xf] %v364_v12 }
   0xa   :  { %73 = vst [vmem:[#allocation0 + $0x90] sm:$0xf] %v365_v13  ;;  %v366_v14 = vld [vmem:[%s579_s0 + $0x44] sm:$0xf]  ;;  %v367_v15 = vld [vmem:[%s579_s0 + $0x40] sm:$0xf] }
   0xb   :  { %v368_v16 = vld [vmem:[%s579_s0 + $0x3c] sm:$0xf]  ;;  %78 = vst [vmem:[#allocation0 + $0x88] sm:$0xf] %v366_v14  ;;  %83 = vst [vmem:[#allocation0 + $0x80] sm:$0xf] %v367_v15 }
   0xc   :  { %88 = vst [vmem:[#allocation0 + $0x78] sm:$0xf] %v368_v16  ;;  %v369_v17 = vld [vmem:[%s579_s0 + $0x38] sm:$0xf]  ;;  %v370_v18 = vld [vmem:[%s579_s0 + $0x34] sm:$0xf] }
   0xd   :  { %v371_v19 = vld [vmem:[%s579_s0 + $0x30] sm:$0xf]  ;;  %93 = vst [vmem:[#allocation0 + $0x70] sm:$0xf] %v369_v17  ;;  %98 = vst [vmem:[#allocation0 + $0x68] sm:$0xf] %v370_v18 }
   0xe   :  { %103 = vst [vmem:[#allocation0 + $0x60] sm:$0xf] %v371_v19  ;;  %v372_v20 = vld [vmem:[%s579_s0 + $0x2c] sm:$0xf]  ;;  %v373_v21 = vld [vmem:[%s579_s0 + $0x28] sm:$0xf] }
   0xf   :  { %v374_v22 = vld [vmem:[%s579_s0 + $0x24] sm:$0xf]  ;;  %108 = vst [vmem:[#allocation0 + $0x58] sm:$0xf] %v372_v20  ;;  %113 = vst [vmem:[#allocation0 + $0x50] sm:$0xf] %v373_v21 }
  0x10   :  { %118 = vst [vmem:[#allocation0 + $0x48] sm:$0xf] %v374_v22  ;;  %v375_v23 = vld [vmem:[%s579_s0 + $0x20] sm:$0xf]  ;;  %v352_v24 = vld [vmem:[%s579_s0 + $0x7c] sm:$0xf] }
  0x11   :  { %v353_v25 = vld [vmem:[%s579_s0 + $0x78] sm:$0xf]  ;;  %123 = vst [vmem:[#allocation0 + $0x40] sm:$0xf] %v375_v23  ;;  %8 = vst [vmem:[#allocation0 + $0xf8] sm:$0xf] %v352_v24 }
  0x12   :  { %v196_v26 = vld [vmem:[#allocation0 + $0x3] ss:$8 sm:$0xf0]   ;;  %13 = vst [vmem:[#allocation0 + $0xf0] sm:$0xf] %v353_v25  ;;  %vm287_vm4 = vcmask 523520  }
  0x13   :  { %v354_v27 = vld [vmem:[%s579_s0 + $0x74] sm:$0xf]  ;;  %v194_v28 = vld [vmem:[#allocation0 + $0x3] ss:$8 sm:$0xf]  }
  0x14   :  { %18 = vst [vmem:[#allocation0 + $0xe8] sm:$0xf] %v354_v27  ;;  %v355_v29 = vld [vmem:[%s579_s0 + $0x70] sm:$0xf]  ;;  %v198_v30 = vsel %vm162_vm0, %v196_v26, %v194_v28  ;;  %v356_v31 = vld [vmem:[%s579_s0 + $0x6c] sm:$0xf] }
  0x15   :  { %23 = vst [vmem:[#allocation0 + $0xe0] sm:$0xf] %v355_v29  ;;  %v357_v32 = vld [vmem:[%s579_s0 + $0x68] sm:$0xf]  ;;  %v358_v33 = vld [vmem:[%s579_s0 + $0x64] sm:$0xf]  ;;  %199 = vrot.lane.b32.xlu0 %v198_v30, %s398_s10 }
  0x16   :  { %v217_v34 = vld [vmem:[#allocation0 + $0x83] ss:$8 sm:$0xf0]   ;;  %28 = vst [vmem:[#allocation0 + $0xd8] sm:$0xf] %v356_v31 }
  0x17   :  { %33 = vst [vmem:[#allocation0 + $0xd0] sm:$0xf] %v357_v32  ;;  %38 = vst [vmem:[#allocation0 + $0xc8] sm:$0xf] %v358_v33  ;;  %v359_v35 = vld [vmem:[%s579_s0 + $0x60] sm:$0xf] }
  0x18   :  { %v215_v36 = vld [vmem:[#allocation0 + $0x83] ss:$8 sm:$0xf]   ;;  %43 = vst [vmem:[#allocation0 + $0xc0] sm:$0xf] %v359_v35  ;;  %s399_s0 = smov 64  }
  0x19   :  { %v219_v37 = vsel %vm162_vm0, %v217_v34, %v215_v36  ;;  %v206_v38 = vld [vmem:[#allocation0 + $0x43] ss:$8 sm:$0xf0]   ;;  %v237_v39 = vld [vmem:[#allocation0 + $0x2] ss:$8 sm:$0xf]  }
  0x1a   :  { %220 = vrot.lane.b32.xlu1 %v219_v37, %s398_s10  ;;  %v204_v40 = vld [vmem:[#allocation0 + $0x43] ss:$8 sm:$0xf]   ;;  %v239_v41 = vld [vmem:[#allocation0 + $0x2] ss:$8 sm:$0xf0]  }
  0x1b   :  { %v208_v42 = vsel %vm162_vm0, %v206_v38, %v204_v40  ;;  %v249_v44 = vld [vmem:[#allocation0 + $0x42] ss:$8 sm:$0xf0]   ;;  %v241_v45 = vsel %vm162_vm0, %v239_v41, %v237_v39  ;;  %v280_v52 = vld [vmem:[#allocation0 + $0x1] ss:$8 sm:$0xf]  }
  0x1c   :  { %209 = vrot.lane.b32.xlu0 %v208_v42, %s398_s10  ;;  %v228_v43 = vld [vmem:[#allocation0 + $0xc3] ss:$8 sm:$0xf0]   ;;  %v247_v46 = vld [vmem:[#allocation0 + $0x42] ss:$8 sm:$0xf]  }
  0x1d   :  { %v258_v47 = vld [vmem:[#allocation0 + $0x82] ss:$8 sm:$0xf]   ;;  %v251_v53 = vsel %vm162_vm0, %v249_v44, %v247_v46  ;;  %v282_v55 = vld [vmem:[#allocation0 + $0x1] ss:$8 sm:$0xf0]  }
  0x1e   :  { %v260_v49 = vld [vmem:[#allocation0 + $0x82] ss:$8 sm:$0xf0]   ;;  %v160_v56 = vld [vmem:[#allocation0] ss:$8 sm:$0xf]   ;;  %v284_v4 = vsel %vm162_vm0, %v282_v55, %v280_v52 }
  0x1f   :  { %v226_v48 = vld [vmem:[#allocation0 + $0xc3] ss:$8 sm:$0xf]   ;;  %v271_v51 = vld [vmem:[#allocation0 + $0xc2] ss:$8 sm:$0xf0]   ;;  %v262_v54 = vsel %vm162_vm0, %v260_v49, %v258_v47 }
  0x20   :  { %v230_v50 = vsel %vm162_vm0, %v228_v43, %v226_v48  ;;  %242 = vrot.lane.b32.xlu0 %v241_v45, %s399_s0  ;;  %v269_v57 = vld [vmem:[#allocation0 + $0xc2] ss:$8 sm:$0xf]   ;;  %v161_v58 = vld [vmem:[#allocation0] ss:$8 sm:$0xf0]  }
  0x21   :  { %231 = vrot.lane.b32.xlu1 %v230_v50, %s398_s10  ;;  %v163_v59 = vsel %vm162_vm0, %v161_v58, %v160_v56  ;;  %v176_v60 = vld [vmem:[#allocation0 + $0x80] ss:$8 sm:$0xf]   ;;  %v290_v62 = vld [vmem:[#allocation0 + $0x41] ss:$8 sm:$0xf]   ;;  %v273_v3 = vsel %vm162_vm0, %v271_v51, %v269_v57 }
  0x22   :  { %v178_v61 = vld [vmem:[#allocation0 + $0x80] ss:$8 sm:$0xf0]   ;;  %v292_v63 = vld [vmem:[#allocation0 + $0x41] ss:$8 sm:$0xf0]  }
  0x23   :  { %165 = vst.msk [vmem:[%s580_s1] sm:$0xff] %vm164_vm1, %v163_v59   ;;  %v180_v0 = vsel %vm162_vm0, %v178_v61, %v176_v60  ;;  %v167_v1 = vld [vmem:[#allocation0 + $0x40] ss:$8 sm:$0xf]   ;;  %v294_v11 = vsel %vm162_vm0, %v292_v63, %v290_v62 }
  0x24   :  { %263 = vrot.lane.b32.xlu0 %v262_v54, %s399_s0  ;;  %v169_v2 = vld [vmem:[#allocation0 + $0x40] ss:$8 sm:$0xf0]   ;;  %384 = vst.msk [vmem:[%s580_s1 + $0x10] sm:$0xff] %vm164_vm1, %v180_v0  }
  0x25   :  { %252 = vrot.lane.b32.xlu1 %v251_v53, %s399_s0  ;;  %v171_v5 = vsel %vm162_vm0, %v169_v2, %v167_v1  ;;  %v185_v6 = vld [vmem:[#allocation0 + $0xc0] ss:$8 sm:$0xf]   ;;  %v301_v8 = vld [vmem:[#allocation0 + $0x81] ss:$8 sm:$0xf]  }
  0x26   :  { %v187_v7 = vld [vmem:[#allocation0 + $0xc0] ss:$8 sm:$0xf0]   ;;  %v303_v9 = vld [vmem:[#allocation0 + $0x81] ss:$8 sm:$0xf0]  }
  0x27   :  { %383 = vst.msk [vmem:[%s580_s1 + $0x8] sm:$0xff] %vm164_vm1, %v171_v5   ;;  %v189_v10 = vsel %vm162_vm0, %v187_v7, %v185_v6  ;;  %v305_v12 = vsel %vm162_vm0, %v303_v9, %v301_v8  ;;  %v312_v13 = vld [vmem:[#allocation0 + $0xc1] ss:$8 sm:$0xf]  }
  0x28   :  { %385 = vst.msk [vmem:[%s580_s1 + $0x18] sm:$0xff] %vm164_vm1, %v189_v10   ;;  %285 = vrot.lane.b32.xlu0 %v284_v4, %s400_s21  ;;  %v314_v14 = vld [vmem:[#allocation0 + $0xc1] ss:$8 sm:$0xf0]  }
  0x29   :  { %274 = vrot.lane.b32.xlu1 %v273_v3, %s399_s0  ;;  %v316_v15 = vsel %vm162_vm0, %v314_v14, %v312_v13 }
  0x2c   :  { %306 = vrot.lane.b32.xlu0 %v305_v12, %s400_s21 }
  0x2d   :  { %295 = vrot.lane.b32.xlu1 %v294_v11, %s400_s21 }
  0x31   :  { %317 = vrot.lane.b32.xlu1 %v316_v15, %s400_s21 }
  0x87   :  { %v200_v16 = vpop.permute.xlu0 %199  }
  0x88   :  { %202 = vst.msk [vmem:[%s580_s1] sm:$0xff] %vm201_vm2, %v200_v16  }
  0x8c   :  { %v221_v17 = vpop.permute.xlu1 %220  }
  0x8d   :  { %387 = vst.msk [vmem:[%s580_s1 + $0x10] sm:$0xff] %vm201_vm2, %v221_v17  }
  0x8e   :  { %v210_v18 = vpop.permute.xlu0 %209  }
  0x8f   :  { %386 = vst.msk [vmem:[%s580_s1 + $0x8] sm:$0xff] %vm201_vm2, %v210_v18  }
  0x92   :  { %v243_v20 = vpop.permute.xlu0 %242  }
  0x93   :  { %v232_v19 = vpop.permute.xlu1 %231   ;;  %245 = vst.msk [vmem:[%s580_s1] sm:$0xff] %vm244_vm3, %v243_v20  }
  0x94   :  { %388 = vst.msk [vmem:[%s580_s1 + $0x18] sm:$0xff] %vm201_vm2, %v232_v19  }
  0x96   :  { %v264_v22 = vpop.permute.xlu0 %263  }
  0x97   :  { %v253_v21 = vpop.permute.xlu1 %252   ;;  %390 = vst.msk [vmem:[%s580_s1 + $0x10] sm:$0xff] %vm244_vm3, %v264_v22  }
  0x98   :  { %389 = vst.msk [vmem:[%s580_s1 + $0x8] sm:$0xff] %vm244_vm3, %v253_v21  }
  0x9a   :  { %v286_v24 = vpop.permute.xlu0 %285  }
  0x9b   :  { %v275_v23 = vpop.permute.xlu1 %274   ;;  %288 = vst.msk [vmem:[%s580_s1] sm:$0xff] %vm287_vm4, %v286_v24  }
  0x9c   :  { %391 = vst.msk [vmem:[%s580_s1 + $0x18] sm:$0xff] %vm244_vm3, %v275_v23  }
  0x9e   :  { %v307_v26 = vpop.permute.xlu0 %306  }
  0x9f   :  { %v296_v25 = vpop.permute.xlu1 %295   ;;  %393 = vst.msk [vmem:[%s580_s1 + $0x10] sm:$0xff] %vm287_vm4, %v307_v26  }
  0xa0   :  { %392 = vst.msk [vmem:[%s580_s1 + $0x8] sm:$0xff] %vm287_vm4, %v296_v25  }
  0xa3   :  { %v318_v27 = vpop.permute.xlu1 %317  }
  0xa4   :  { %394 = vst.msk [vmem:[%s580_s1 + $0x18] sm:$0xff] %vm287_vm4, %v318_v27  }

// kernel: encoder_forward.6
= control target key start
LH: loop header
LB: loop body
LE: loop exit
PB: predicated region body
PF: predicated region fallthrough
CT: control target
= control target key end

     0   :  { %s1419_s15 = smov 0   ;;  %s1661_s0 = inlined_call_operand.vmem [shape: bf16[2,4,256], index: 0, kind: input, shape index: {}]   ;;  %s1662_s1 = inlined_call_operand.vmem [shape: bf16[3,256,128], index: 1, kind: input, shape index: {}]   ;;  %s1663_s2 = inlined_call_operand.vmem [shape: f32[128,32], index: 2, kind: input, shape index: {}]   ;;  %s1664_s3 = inlined_call_operand.vmem [shape: f32[32,128], index: 3, kind: input, shape index: {}]   ;;  %s1665_s4 = inlined_call_operand.vmem [shape: bf16[2,4,128], index: 4, kind: output, shape index: {}]  }
   0x1 LB: > { %s1033_s16 = sadd.s32 4294967295, %s1389_s15   ;;  %p1037_p0 = scmp.ge.s32.totalorder %s1389_s15, 1  ;;  %s1389_s15 = sphi %s1419_s15, %s14_s15  }
   0x2   : > { %p162_p1 = scmp.lt.s32.totalorder %s1389_s15, 3 }
   0x4   : > { %p163_p2 = pnand %p1037_p0, %p162_p1 }
   0x5   : > { %v1333_v0 = vld [vmem:[%s1662_s1 + $0xc0] sm:$0xff] (!%p163_p2)   ;;  %v1337_v4 = vld [vmem:[%s1662_s1 + $0xc8] sm:$0xff] (!%p163_p2)   ;;  %v1341_v8 = vld [vmem:[%s1662_s1 + $0xd0] sm:$0xff] (!%p163_p2)   ;;  %p187_p3 = scmp.lt.s32.totalorder (!%p163_p2), %s1033_s16, 1  ;;  %vm229_vm0 = vcmask (!%p163_p2), 1040384   ;;  %vm234_vm2 = vcmask (!%p163_p2), 1042432  }
   0x6   : > { %166 = sbr.rel (%p163_p2) target bundleno = 767 (0x2ff), region = 36  ;;  %v1334_v1 = vld [vmem:[%s1662_s1 + $0x40] sm:$0xff] (!%p163_p2)   ;;  %1158 = vmatprep.subr.bf16.mxu0 (!%p163_p2), %v1333_v0  ;;  %v1338_v5 = vld [vmem:[%s1662_s1 + $0x48] sm:$0xff] (!%p163_p2)   ;;  %v1342_v9 = vld [vmem:[%s1662_s1 + $0x50] sm:$0xff] (!%p163_p2)   ;;  %vm230_vm1 = vsmask.f32 (!%p163_p2), 256 }
   0x7   : > { %v1335_v2 = vld [vmem:[%s1662_s1 + $0x80] sm:$0xff] (!%p163_p2)   ;;  %1180 = vmatprep.subr.bf16.mxu1 (!%p163_p2), %v1334_v1  ;;  %v1339_v6 = vld [vmem:[%s1662_s1 + $0x88] sm:$0xff] (!%p163_p2)   ;;  %v1343_v10 = vld [vmem:[%s1662_s1 + $0x90] sm:$0xff] (!%p163_p2)   ;;  %vm235_vm3 = vsmask.f32 (!%p163_p2), 2304  ;;  %vm1392_vm6 = vmmov (!%p163_p2), 0  }
   0x8   : > { %v1336_v3 = vld [vmem:[%s1662_s1] sm:$0xff] (!%p163_p2)   ;;  %1159 = vmatpush3.bf16.msra.mxu0 (!%p163_p2), %v1335_v2  ;;  %v1340_v7 = vld [vmem:[%s1662_s1 + $0x8] sm:$0xff] (!%p163_p2)   ;;  %v1344_v11 = vld [vmem:[%s1662_s1 + $0x10] sm:$0xff] (!%p163_p2)   ;;  %vm788_vm7 = vcmask (!%p163_p2), 1043456   ;;  %vm893_vm8 = vcmask (!%p163_p2), 261120  }
   0x9   : > { %1181 = vmatpush3.bf16.msra.mxu1 (!%p163_p2), %v1336_v3  ;;  %1160 = vmatprep.subr.bf16.mxu0 (!%p163_p2), %v1337_v4  ;;  %v1345_v12 = vld [vmem:[%s1662_s1 + $0xd8] sm:$0xff] (!%p163_p2)   ;;  %v1349_v16 = vld [vmem:[%s1662_s1 + $0xe0] sm:$0xff] (!%p163_p2)   ;;  %v1353_v20 = vld [vmem:[%s1662_s1 + $0xe8] sm:$0xff] (!%p163_p2)  }
   0xa   : > { %1182 = vmatprep.subr.bf16.mxu1 (!%p163_p2), %v1338_v5  ;;  %v1346_v13 = vld [vmem:[%s1662_s1 + $0x58] sm:$0xff] (!%p163_p2)   ;;  %v1350_v17 = vld [vmem:[%s1662_s1 + $0x60] sm:$0xff] (!%p163_p2)   ;;  %v1354_v21 = vld [vmem:[%s1662_s1 + $0x68] sm:$0xff] (!%p163_p2)  }
   0xb   : > { %v1347_v14 = vld [vmem:[%s1662_s1 + $0x98] sm:$0xff] (!%p163_p2)   ;;  %v1351_v18 = vld [vmem:[%s1662_s1 + $0xa0] sm:$0xff] (!%p163_p2)   ;;  %v1355_v22 = vld [vmem:[%s1662_s1 + $0xa8] sm:$0xff] (!%p163_p2)  }
   0xc   : > { %1161 = vmatpush3.bf16.msra.mxu0 (!%p163_p2), %v1339_v6  ;;  %v1348_v15 = vld [vmem:[%s1662_s1 + $0x18] sm:$0xff] (!%p163_p2)   ;;  %v1352_v19 = vld [vmem:[%s1662_s1 + $0x20] sm:$0xff] (!%p163_p2)   ;;  %v1356_v23 = vld [vmem:[%s1662_s1 + $0x28] sm:$0xff] (!%p163_p2)  }
   0xd   : > { %1183 = vmatpush3.bf16.msra.mxu1 %v1340_v7  ;;  %1162 = vmatprep.subr.bf16.mxu0 %v1341_v8  ;;  %s1667_s16 = smov (!%p187_p3, %s1033_s16), 1  ;;  %v1357_v24 = vld [vmem:[%s1662_s1 + $0xf0] sm:$0xff]   ;;  %v1361_v28 = vld [vmem:[%s1662_s1 + $0xf8] sm:$0xff]   ;;  %v1365_v36 = vld [vmem:[%s1662_s1 + $0x140] sm:$0xff]  }
   0xe   : > { %1184 = vmatprep.subr.bf16.mxu1 %v1342_v9  ;;  %v1358_v25 = vld [vmem:[%s1662_s1 + $0x70] sm:$0xff]   ;;  %s1157_s23 = sshll.u32 %s1667_s16, 2  ;;  %v1362_v29 = vld [vmem:[%s1662_s1 + $0x78] sm:$0xff]   ;;  %vm231_vm4 = vmand %vm229_vm0, %vm230_vm1  ;;  %s1040_s11 = sshll.u32 %s1667_s16, 1 }
   0xf   : > { %v1359_v26 = vld [vmem:[%s1662_s1 + $0xb0] sm:$0xff]   ;;  %s191_s6 = scalar_lea.vmem %s1661_s0, %s1157_s23  ;;  %v1363_v30 = vld [vmem:[%s1662_s1 + $0xb8] sm:$0xff]   ;;  %vm236_vm5 = vmand %vm234_vm2, %vm235_vm3  ;;  %s195_s14 = scalar_lea.vmem %s1665_s4, %s1040_s11 }
  0x10   : > { %1163 = vmatpush3.bf16.msra.mxu0 %v1343_v10  ;;  %v1360_v27 = vld [vmem:[%s1662_s1 + $0x30] sm:$0xff]   ;;  %v1364_v31 = vld [vmem:[%s1662_s1 + $0x38] sm:$0xff]   ;;  %v1041_v32 = vld.sshfl [vmem:[%s191_s6] sm:$0x33 pattern:$0x76325410] }
  0x11   : > { %1185 = vmatpush3.bf16.msra.mxu1 %v1344_v11  ;;  %1164 = vmatprep.subr.bf16.mxu0 %v1345_v12  ;;  %v206_v33 = vcombine.high %v1041_v32, %v1041_v32  ;;  %v210_v34 = vshrl.u32 %v1041_v32, 16  ;;  %v213_v35 = vshll.u32 %v1041_v32, 16  ;;  %v225_v40 = vrot.slane %v1041_v32, 7  ;;  %v1366_v57 = vld [vmem:[%s1662_s1 + $0x100] sm:$0xff]   ;;  %v1367_v59 = vld [vmem:[%s1662_s1 + $0x148] sm:$0xff]   ;;  %v1369_v61 = vld [vmem:[%s1662_s1 + $0x150] sm:$0xff]  }
  0x12   : > { %1186 = vmatprep.subr.bf16.mxu1 %v1346_v13  ;;  %v1368_v60 = vld [vmem:[%s1662_s1 + $0x108] sm:$0xff]   ;;  %v1370_v62 = vld [vmem:[%s1662_s1 + $0x110] sm:$0xff]   ;;  %v1371_v63 = vld [vmem:[%s1662_s1 + $0x158] sm:$0xff]   ;;  %v1391_v13 = vmov 0.0|0.0  }
  0x13   : > { %v217_v37 = vshrl.u32 %v206_v33, 16  ;;  %v220_v38 = vshll.u32 %v206_v33, 16  ;;  %v212_v39 = vrot.slane %v210_v34, 7  ;;  %v226_v43 = vrot.slane %v206_v33, 7  ;;  %v1372_v0 = vld [vmem:[%s1662_s1 + $0x118] sm:$0xff]   ;;  %v1373_v1 = vld [vmem:[%s1662_s1 + $0x160] sm:$0xff]  }
  0x14   : > { %1165 = vmatpush3.bf16.msra.mxu0 %v1347_v14  ;;  %v1374_v2 = vld [vmem:[%s1662_s1 + $0x120] sm:$0xff]   ;;  %v1375_v3 = vld [vmem:[%s1662_s1 + $0x168] sm:$0xff]   ;;  %v1377_v5 = vld [vmem:[%s1662_s1 + $0x170] sm:$0xff]   ;;  %v1393_v34 = vmov 0.0  }
  0x15   : > { %1187 = vmatpush3.bf16.msra.mxu1 %v1348_v15  ;;  %1166 = vmatprep.subr.bf16.mxu0 %v1349_v16  ;;  %v219_v41 = vrot.slane %v217_v37, 7  ;;  %v215_v42 = vor.u32 %v213_v35, %v212_v39  ;;  %v1376_v4 = vld [vmem:[%s1662_s1 + $0x128] sm:$0xff]   ;;  %v1378_v6 = vld [vmem:[%s1662_s1 + $0x130] sm:$0xff]   ;;  %v1379_v7 = vld [vmem:[%s1662_s1 + $0x178] sm:$0xff]  }
  0x16   : > { %1188 = vmatprep.subr.bf16.mxu1 %v1350_v17  ;;  %v1380_v8 = vld [vmem:[%s1662_s1 + $0x138] sm:$0xff]   ;;  %v337_v10 = vld [vmem:[%s1663_s2] sm:$0xff]  ;;  %v338_v11 = vld [vmem:[%s1663_s2 + $0x8] sm:$0xff] }
  0x17   : > { %v222_v44 = vor.u32 %v220_v38, %v219_v41  ;;  %v232_v45 = vsel %vm231_vm4, %v1041_v32, %v215_v42  ;;  %v339_v12 = vld [vmem:[%s1663_s2 + $0x10] sm:$0xff]  ;;  %v1293_v14 = vpack.c.bf16 %v338_v11, %v337_v10  ;;  %v340_v15 = vld [vmem:[%s1663_s2 + $0x18] sm:$0xff]  ;;  %v341_v17 = vld [vmem:[%s1663_s2 + $0x20] sm:$0xff] }
  0x18   : > { %1167 = vmatpush3.bf16.msra.mxu0 %v1351_v18  ;;  %v237_v46 = vsel %vm236_vm5, %v232_v45, %v225_v40  ;;  %v1296_v16 = vpack.c.bf16 %v340_v15, %v339_v12  ;;  %v342_v18 = vld [vmem:[%s1663_s2 + $0x28] sm:$0xff]  ;;  %v351_v32 = vld [vmem:[%s1663_s2 + $0x70] sm:$0xff] }
  0x19   : > { %1189 = vmatpush3.bf16.msra.mxu1 %v1352_v19  ;;  %1168 = vmatprep.subr.bf16.mxu0 %v1353_v20  ;;  %v233_v47 = vsel %vm231_vm4, %v206_v33, %v222_v44  ;;  %v358_v48 = vshrl.u32 %v237_v46, 16  ;;  %v360_v49 = vshll.u32 %v237_v46, 16  ;;  %v647_v9 = vrot.slane %v237_v46, 1  ;;  %v343_v20 = vld [vmem:[%s1663_s2 + $0x30] sm:$0xff]  ;;  %v352_v33 = vld [vmem:[%s1663_s2 + $0x78] sm:$0xff] }
  0x1a   : > { %1190 = vmatprep.subr.bf16.mxu1 %v1354_v21  ;;  %v238_v50 = vsel %vm236_vm5, %v233_v47, %v226_v43  ;;  %v1299_v19 = vpack.c.bf16 %v342_v18, %v341_v17  ;;  %v344_v21 = vld [vmem:[%s1663_s2 + $0x38] sm:$0xff]  ;;  %v1314_v35 = vpack.c.bf16 %v352_v33, %v351_v32 }
  0x1b   : > { %v365_v51 = vshrl.u32 %v238_v50, 16  ;;  %v367_v52 = vshll.u32 %v238_v50, 16  ;;  %637 = vmatprep.mubr.bf16.mxu1 %v238_v50  ;;  %v362_v53 = vrot.slane %v360_v49, 1  ;;  %v648_v58 = vrot.slane %v238_v50, 1 }
  0x1c   : > { %1169 = vmatpush3.bf16.msra.mxu0 %v1355_v22  ;;  %v1302_v22 = vpack.c.bf16 %v344_v21, %v343_v20 }
  0x1d   : > { %1191 = vmatpush3.bf16.msra.mxu1 %v1356_v23  ;;  %1170 = vmatprep.subr.bf16.mxu0 %v1357_v24  ;;  %v369_v54 = vrot.slane %v367_v52, 1  ;;  %v363_v55 = vor.u32 %v362_v53, %v358_v48  ;;  %v345_v23 = vld [vmem:[%s1663_s2 + $0x40] sm:$0xff]  ;;  %v346_v24 = vld [vmem:[%s1663_s2 + $0x48] sm:$0xff] }
  0x1e   : > { %1192 = vmatprep.subr.bf16.mxu1 %v1358_v25  ;;  %v1305_v25 = vpack.c.bf16 %v346_v24, %v345_v23  ;;  %v967_v24 = vlaneseq }
  0x1f   : > { %v370_v56 = vor.u32 %v369_v54, %v365_v51 }
  0x20   : > { %1171 = vmatpush3.bf16.msra.mxu0 %v1359_v26  ;;  %v347_v26 = vld [vmem:[%s1663_s2 + $0x50] sm:$0xff] }
  0x21   : > { %1193 = vmatpush3.bf16.msra.mxu1 %v1360_v27  ;;  %1172 = vmatprep.subr.bf16.mxu0 %v1361_v28  ;;  %v348_v27 = vld [vmem:[%s1663_s2 + $0x58] sm:$0xff] }
  0x22   : > { %1194 = vmatprep.subr.bf16.mxu1 %v1362_v29  ;;  %501 = vmatprep.mubr.bf16.mxu0 %v370_v56  ;;  %v1308_v28 = vpack.c.bf16 %v348_v27, %v347_v26  ;;  %v349_v29 = vld [vmem:[%s1663_s2 + $0x60] sm:$0xff] }
  0x24   : > { %1173 = vmatpush3.bf16.msra.mxu0 %v1363_v30  ;;  %v350_v30 = vld [vmem:[%s1663_s2 + $0x68] sm:$0xff] }
  0x25   : > { %1195 = vmatpush3.bf16.msra.mxu1 %v1364_v31  ;;  %1202 = vmatprep.subr.bf16.mxu0 %v1365_v36  ;;  %v1311_v31 = vpack.c.bf16 %v350_v30, %v349_v29 }
  0x26   : > { %1292 = vmatprep.subr.bf16.mxu1 %v1391_v13 }
  0x27   : > { %502 = vmatmul.mubr.bf16.vlgmr.msra.gmra.mrb[0].mxu0 %v363_v55 }
  0x28   : > { %638 = vmatmul.mubr.bf16.vlgmr.msra.gmra.mrb[0].mxu1 %v237_v46  ;;  %1203 = vmatpush3.bf16.msra.mxu0 %v1366_v57 }
  0x29   : > { %779 = vmatprep.mubr.bf16.mxu0 %v648_v58  ;;  %1204 = vmatprep.subr.bf16.mxu0 %v1367_v59 }
  0x2a   : > { %1294 = vmatpush3.bf16.msra.mxu1 %v1293_v14  ;;  %1278 = vmatprep.mubr.msk.f32.mxu1 %vm1392_vm6, %v1393_v34 }
  0x2b   : > { %1295 = vmatprep.subr.bf16.mxu1 %v1391_v13 }
  0x2c   : > { %1205 = vmatpush3.bf16.msra.mxu0 %v1368_v60 }
  0x2d   : > { %1206 = vmatprep.subr.bf16.mxu0 %v1369_v61 }
  0x2e   : > { %1297 = vmatpush3.bf16.msra.mxu1 %v1296_v16 }
  0x2f   : > { %1298 = vmatprep.subr.bf16.mxu1 %v1391_v13 }
  0x30   : > { %1207 = vmatpush3.bf16.msra.mxu0 %v1370_v62 }
  0x31   : > { %1208 = vmatprep.subr.bf16.mxu0 %v1371_v63 }
  0x32   : > { %1300 = vmatpush3.bf16.msra.mxu1 %v1299_v19 }
  0x33   : > { %1301 = vmatprep.subr.bf16.mxu1 %v1391_v13 }
  0x34   : > { %1209 = vmatpush3.bf16.msra.mxu0 %v1372_v0 }
  0x35   : > { %1210 = vmatprep.subr.bf16.mxu0 %v1373_v1 }
  0x36   : > { %1303 = vmatpush3.bf16.msra.mxu1 %v1302_v22 }
  0x37   : > { %1304 = vmatprep.subr.bf16.mxu1 %v1391_v13 }
  0x38   : > { %1211 = vmatpush3.bf16.msra.mxu0 %v1374_v2 }
  0x39   : > { %1212 = vmatprep.subr.bf16.mxu0 %v1375_v3 }
  0x3a   : > { %1306 = vmatpush3.bf16.msra.mxu1 %v1305_v25  ;;  %v968_v25 = vshrl.u32 %v967_v24, 7 }
  0x3b   : > { %1307 = vmatprep.subr.bf16.mxu1 %v1391_v13 }
  0x3c   : > { %1213 = vmatpush3.bf16.msra.mxu0 %v1376_v4  ;;  %v969_v26 = vsub.s32 0, %v968_v25  ;;  %v974_v27 = vsub.s32 1, %v968_v25 }
  0x3d   : > { %1214 = vmatprep.subr.bf16.mxu0 %v1377_v5  ;;  %v353_v5 = vld [vmem:[%s1664_s3] sm:$0xff] }
  0x3e   : > { %1309 = vmatpush3.bf16.msra.mxu1 %v1308_v28 }
  0x3f   : > { %1310 = vmatprep.subr.bf16.mxu1 %v1391_v13 }
  0x40   : > { %1215 = vmatpush3.bf16.msra.mxu0 %v1378_v6  ;;  %v354_v6 = vld [vmem:[%s1664_s3 + $0x8] sm:$0xff] }
  0x41   : > { %1216 = vmatprep.subr.bf16.mxu0 %v1379_v7  ;;  %v1317_v7 = vpack.c.bf16 %v354_v6, %v353_v5 }
  0x42   : > { %1312 = vmatpush3.bf16.msra.mxu1 %v1311_v31 }
  0x43   : > { %1313 = vmatprep.subr.bf16.mxu1 %v1391_v13 }
  0x44   : > { %1217 = vmatpush3.bf16.msra.mxu0 %v1380_v8  ;;  %v355_v8 = vld [vmem:[%s1664_s3 + $0x10] sm:$0xff] }
  0x45   : > { %1316 = vmatprep.subr.bf16.mxu0 %v1391_v13 }
  0x46   : > { %1315 = vmatpush3.bf16.msra.mxu1 %v1314_v35 }
  0x47   : > { %780 = vmatmul.mubr.bf16.vlgmr.msra.gmra.mrb[4].mxu0 %v647_v9  ;;  %v356_v9 = vld [vmem:[%s1664_s3 + $0x18] sm:$0xff] }
  0x48   : > { %1289 = vmatprep.mubr.msk.f32.mxu0 %vm1392_vm6, %v1393_v34  ;;  %1318 = vmatpush3.bf16.msra.mxu0 %v1317_v7  ;;  %v1320_v10 = vpack.c.bf16 %v356_v9, %v355_v8 }
  0x49   : > { %1319 = vmatprep.subr.bf16.mxu0 %v1391_v13 }
  0x4c   : > { %1321 = vmatpush3.bf16.msra.mxu0 %v1320_v10 }
  0xfa   : > { %v1174_v41 = vpop.f32.mrb[0].mxu0 }
  0xfb   : > { %v1196_v36 = vpop.f32.mrb[0].mxu1  ;;  %v1175_v42 = vpop.f32.mrb[1].mxu0 }
  0xfc   : > { %v1197_v37 = vpop.f32.mrb[1].mxu1  ;;  %v1176_v43 = vadd.f32 %v1175_v42, %v1174_v41  ;;  %v1177_v44 = vpop.f32.mrb[2].mxu0 }
  0xfd   : > { %v1198_v38 = vadd.f32 %v1197_v37, %v1196_v36  ;;  %v1199_v39 = vpop.f32.mrb[2].mxu1  ;;  %v1178_v45 = vpop.f32.mrb[3].mxu0 }
  0xfe   : > { %v1200_v40 = vpop.f32.mrb[3].mxu1 }
  0xff   : > { %v640_v46 = vadd.f32 %v1198_v38, %v1176_v43 }
 0x11a   : > { %v1218_v47 = vpop.f32.mrb[4].mxu0 }
 0x11b   : > { %v1219_v48 = vpop.f32.mrb[5].mxu0 }
 0x11c   : > { %v1220_v49 = vadd.f32 %v1219_v48, %v1218_v47  ;;  %v1221_v50 = vpop.f32.mrb[6].mxu0 }
 0x11d   : > { %v1222_v51 = vpop.f32.mrb[7].mxu0 }
 0x11e   : > { %v787_v52 = vadd.f32 %v1220_v49, %v640_v46 }
 0x120   : > { %v789_v53 = vsel %vm788_vm7, %v787_v52, 0.0  ;;  %v796_v54 = vmul.f32 %v787_v52, %v787_v52 }
 0x121   : > { %v790_v55 = vrot.slane %v789_v53, 4 }
 0x122   : > { %v797_v56 = vsel %vm788_vm7, %v796_v54, 0.0 }
 0x123   : > { %v791_v57 = vadd.f32 %v790_v55, %v789_v53  ;;  %v798_v58 = vrot.slane %v797_v56, 4 }
 0x125   : > { %v792_v59 = vrot.slane %v791_v57, 2  ;;  %v799_v60 = vadd.f32 %v798_v58, %v797_v56 }
 0x127   : > { %v793_v61 = vadd.f32 %v792_v59, %v791_v57  ;;  %v800_v62 = vrot.slane %v799_v60, 2 }
 0x129   : > { %v794_v63 = vrot.slane %v793_v61, 1  ;;  %v801_v0 = vadd.f32 %v800_v62, %v799_v60 }
 0x12b   : > { %v802_v1 = vrot.slane %v801_v0, 1  ;;  %v795_v2 = vadd.f32 %v794_v63, %v793_v61 }
 0x12d   : > { %v803_v3 = vadd.f32 %v802_v1, %v801_v0 }
 0x12f   : > { %v805_v4 = vsel %vm229_vm0, %v795_v2, %v803_v3 }
 0x130   : > { %1279 = vmatmul.mubr.f32.vlgmr.msra.gmra.mrb[4].mxu1 %v805_v4 }
 0x203   : > { %v872_v11 = vpop.f32.mrb[4].mxu1 }
 0x204   : > { %v876_v12 = vmul.f32 0.0625, %v872_v11  ;;  %v1280_v14 = vpop.f32.mrb[5].mxu1 }
 0x206   : > { %v877_v15 = vmul.f32 %v876_v12, %v876_v12  ;;  %v884_v13 = vsub.f32 0.0, %v876_v12 }
 0x208   : > { %v879_v16 = vrot.slane %v877_v15, 7 }
 0x20a   : > { %v881_v17 = vsub.f32 %v876_v12, %v879_v16 }
 0x20c   : > { %v882_v18 = vadd.f32 1e-05, %v881_v17 }
 0x20e   : > { %1381 = vrsqrt.f32 %v882_v18 }
 0x218   : > { %v1382_v19 = vpop.eup %1381 }
 0x219   : > { %v886_v20 = vrot.slane %v1382_v19, 1 }
 0x21b   : > { %v888_v21 = vmul.f32 %v886_v20, %v884_v13 }
 0x21d   : > { %v890_v22 = vrot.slane %v888_v21, 7 }
 0x21f   : > { %v892_v23 = vsel %vm229_vm0, %v886_v20, %v890_v22 }
 0x220   : > { %1290 = vmatmul.mubr.msk.f32.vlgmr.msra.gmra.mrb[8].mxu0 %vm893_vm8, %v892_v23 }
 0x2f3   : > { %v963_v28 = vpop.f32.mrb[8].mxu0 }
 0x2f4   : > { %v970_v29 = vrot.slane %v963_v28, %v969_v26  ;;  %v1291_v30 = vpop.f32.mrb[9].mxu0  ;;  %v975_v32 = vrot.slane %v963_v28, %v974_v27 }
 0x2f6   : > { %v971_v31 = vmul.f32 %v970_v29, %v787_v52 }
 0x2f8   : > { %v976_v33 = vadd.f32 %v975_v32, %v971_v31 }
 0x2fa   : > { %v977_v34 = vmax.f32 %v976_v33, 0.0 }
 0x2fc   : > { %v978_v35 = vpack.c.bf16 %v977_v34, %v977_v34 }
 0x2fe   : > { %979 = vst [vmem:[%s195_s14] sm:$0x3] %v978_v35 }
 0x2ff PF: > { %s14_s15 = sadd.s32 1, %s1389_s15  }
 0x300   : > { %p11_p4 = scmp.ge.s32.totalorder %s14_s15, 4  }
 0x302   :  { %13 = sbr.rel (!%p11_p4) target bundleno = 1 (0x1), region = 68 }

// kernel: encoder_forward.7
= control target key start
LH: loop header
LB: loop body
LE: loop exit
PB: predicated region body
PF: predicated region fallthrough
CT: control target
= control target key end

     0   :  { %s5248_s15 = smov 0   ;;  %s6240_s0 = inlined_call_operand.vmem [shape: bf16[2,4,128], index: 0, kind: input, shape index: {}]   ;;  %s6241_s1 = inlined_call_operand.vmem [shape: bf16[18,128,128], index: 1, kind: input, shape index: {}]   ;;  %s6242_s2 = inlined_call_operand.vmem [shape: f32[128,32], index: 2, kind: input, shape index: {}]   ;;  %s6243_s3 = inlined_call_operand.vmem [shape: f32[32,128], index: 3, kind: input, shape index: {}]   ;;  %s6244_s4 = inlined_call_operand.vmem [shape: f32[2,4,128], index: 4, kind: output, shape index: {}]  }
   0x1 LB: > { %s3453_s16 = sadd.s32 4294967295, %s5218_s15   ;;  %p3457_p0 = scmp.ge.s32.totalorder %s5218_s15, 1  ;;  %s5218_s15 = sphi %s5248_s15, %s14_s15  }
   0x2   : > { %p161_p1 = scmp.lt.s32.totalorder %s5218_s15, 3 }
   0x4   : > { %p162_p2 = pnand %p3457_p0, %p161_p1 }
   0x5   : > { %v5054_v0 = vld [vmem:[%s6241_s1 + $0x40] sm:$0xff] (!%p162_p2)   ;;  %v5220_v1 = vmov (!%p162_p2), 0.0   ;;  %v5055_v2 = vld [vmem:[%s6241_s1 + $0x48] sm:$0xff] (!%p162_p2)   ;;  %vm5221_vm0 = vmmov (!%p162_p2), 0   ;;  %p185_p3 = scmp.lt.s32.totalorder (!%p162_p2), %s3453_s16, 1  ;;  %v220_v3 = vlaneseq (!%p162_p2)  ;;  %v5056_v4 = vld [vmem:[%s6241_s1 + $0x50] sm:$0xff] (!%p162_p2)  }
   0x6   : > { %165 = sbr.rel (%p162_p2) target bundleno = 4631 (0x1217), region = 36  ;;  %4178 = vmatprep.subr.bf16.mxu0 (!%p162_p2), %v5220_v1  ;;  %4194 = vmatprep.mubr.msk.bf16.mxu0 (!%p162_p2), %vm5221_vm0, %v5220_v1  ;;  %v5057_v6 = vld [vmem:[%s6241_s1 + $0x58] sm:$0xff] (!%p162_p2)   ;;  %v5222_v7 = vmov (!%p162_p2), 0.0|0.0   ;;  %v5058_v9 = vld [vmem:[%s6241_s1 + $0x60] sm:$0xff] (!%p162_p2)   ;;  %vm235_vm1 = vcmask (!%p162_p2), 1040384   ;;  %vm239_vm2 = vcmask (!%p162_p2), 1042432  }
   0x7   : > { %4179 = vmatpush3.bf16.msra.mxu0 (!%p162_p2), %v5054_v0  ;;  %4270 = vmatprep.mubr.msk.f32.mxu1 (!%p162_p2), %vm5221_vm0, %v5220_v1  ;;  %v5280_v5 = vshrl.u32 (!%p162_p2), %v220_v3, 7  ;;  %v5059_v10 = vld [vmem:[%s6241_s1 + $0x68] sm:$0xff] (!%p162_p2)   ;;  %vm236_vm3 = vsmask.f32 (!%p162_p2), 256  ;;  %vm240_vm4 = vsmask.f32 (!%p162_p2), 2304 }
   0x8   : > { %4180 = vmatprep.subr.bf16.mxu0 (!%p162_p2), %v5220_v1  ;;  %4814 = vmatprep.subr.bf16.mxu1 (!%p162_p2), %v5222_v7  ;;  %vm5297_vm5 = vmand (!%p162_p2), %vm235_vm1, %vm236_vm3  ;;  %v5060_v18 = vld [vmem:[%s6241_s1 + $0x70] sm:$0xff] (!%p162_p2)   ;;  %v5061_v21 = vld [vmem:[%s6241_s1 + $0x78] sm:$0xff] (!%p162_p2)   ;;  %vm569_vm7 = vcmask (!%p162_p2), 1043456   ;;  %vm674_vm8 = vcmask (!%p162_p2), 261120  }
   0x9   : > { %vm5301_vm6 = vmand (!%p162_p2), %vm239_vm2, %vm240_vm4  ;;  %v194_v24 = vld [vmem:[%s6242_s2] sm:$0xff] (!%p162_p2)  ;;  %v195_v25 = vld [vmem:[%s6242_s2 + $0x8] sm:$0xff] (!%p162_p2) }
   0xa   : > { %v196_v26 = vld [vmem:[%s6242_s2 + $0x10] sm:$0xff] (!%p162_p2)  ;;  %v5330_v28 = vpack.c.bf16 (!%p162_p2), %v195_v25, %v194_v24  ;;  %v197_v29 = vld [vmem:[%s6242_s2 + $0x18] sm:$0xff] (!%p162_p2)  ;;  %v5062_v30 = vld [vmem:[%s6241_s1] sm:$0xff] (!%p162_p2)  }
   0xb   : > { %4181 = vmatpush3.bf16.msra.mxu0 (!%p162_p2), %v5055_v2  ;;  %v198_v32 = vld [vmem:[%s6242_s2 + $0x20] sm:$0xff] (!%p162_p2)  ;;  %v199_v33 = vld [vmem:[%s6242_s2 + $0x28] sm:$0xff] (!%p162_p2)  ;;  %v5346_v35 = vpack.c.bf16 (!%p162_p2), %v197_v29, %v196_v26  ;;  %v200_v37 = vld [vmem:[%s6242_s2 + $0x30] sm:$0xff] (!%p162_p2) }
   0xc   : > { %4182 = vmatprep.subr.bf16.mxu0 (!%p162_p2), %v5220_v1  ;;  %4816 = vmatpush3.bf16.msra.mxu1 (!%p162_p2), %v5330_v28  ;;  %v5063_v36 = vld [vmem:[%s6241_s1 + $0x8] sm:$0xff] (!%p162_p2)   ;;  %v201_v38 = vld [vmem:[%s6242_s2 + $0x38] sm:$0xff] (!%p162_p2)  ;;  %v5360_v39 = vpack.c.bf16 (!%p162_p2), %v199_v33, %v198_v32  ;;  %v5064_v40 = vld [vmem:[%s6241_s1 + $0x10] sm:$0xff] (!%p162_p2)  }
   0xd   : > { %s6250_s16 = smov (!%p185_p3, %s3453_s16), 1  ;;  %4817 = vmatprep.subr.bf16.mxu1 %v5222_v7  ;;  %v5370_v41 = vpack.c.bf16 %v201_v38, %v200_v37  ;;  %v5065_v42 = vld [vmem:[%s6241_s1 + $0x18] sm:$0xff]   ;;  %v5066_v43 = vld [vmem:[%s6241_s1 + $0x20] sm:$0xff]   ;;  %v5067_v44 = vld [vmem:[%s6241_s1 + $0x28] sm:$0xff]  }
   0xe   : > { %s3458_s23 = sshll.u32 %s6250_s16, 1  ;;  %v5068_v45 = vld [vmem:[%s6241_s1 + $0x30] sm:$0xff]   ;;  %v5069_v46 = vld [vmem:[%s6241_s1 + $0x38] sm:$0xff]   ;;  %v5070_v47 = vld [vmem:[%s6241_s1 + $0x80] sm:$0xff]   ;;  %s3459_s18 = sshll.u32 %s6250_s16, 2 }
   0xf   : > { %s5278_s26 = scalar_lea.vmem %s6240_s0, %s3458_s23  ;;  %4183 = vmatpush3.bf16.msra.mxu0 %v5056_v4  ;;  %v5071_v48 = vld [vmem:[%s6241_s1 + $0x88] sm:$0xff]   ;;  %v5072_v49 = vld [vmem:[%s6241_s1 + $0x90] sm:$0xff]   ;;  %v5073_v50 = vld [vmem:[%s6241_s1 + $0x98] sm:$0xff]   ;;  %s192_s21 = scalar_lea.vmem %s6244_s4, %s3459_s18 }
  0x10   : > { %4184 = vmatprep.subr.bf16.mxu0 %v5220_v1  ;;  %v5211_v8 = vld.sshfl [vmem:[%s5278_s26] sm:$0x3 pattern:$0x76325410]  ;;  %4819 = vmatpush3.bf16.msra.mxu1 %v5346_v35  ;;  %v5075_v52 = vld [vmem:[%s6241_s1 + $0xa8] sm:$0xff]   ;;  %v5076_v53 = vld [vmem:[%s6241_s1 + $0xb0] sm:$0xff]  }
  0x11   : > { %v225_v11 = vshrl.u32 %v5211_v8, 16  ;;  %v229_v12 = vshll.u32 %v5211_v8, 16  ;;  %4820 = vmatprep.subr.bf16.mxu1 %v5222_v7  ;;  %v5074_v51 = vld [vmem:[%s6241_s1 + $0xa0] sm:$0xff]   ;;  %v5077_v54 = vld [vmem:[%s6241_s1 + $0xb8] sm:$0xff]   ;;  %v203_v56 = vld [vmem:[%s6242_s2 + $0x48] sm:$0xff] }
  0x12   : > { %v202_v55 = vld [vmem:[%s6242_s2 + $0x40] sm:$0xff]  ;;  %v204_v58 = vld [vmem:[%s6242_s2 + $0x50] sm:$0xff]  ;;  %v205_v59 = vld [vmem:[%s6242_s2 + $0x58] sm:$0xff] }
  0x13   : > { %4185 = vmatpush3.bf16.msra.mxu0 %v5057_v6  ;;  %v228_v13 = vrot.slane %v225_v11, 7  ;;  %v233_v14 = vrot.slane %v229_v12, 7  ;;  %v5450_v57 = vpack.c.bf16 %v203_v56, %v202_v55  ;;  %v5462_v60 = vpack.c.bf16 %v205_v59, %v204_v58  ;;  %v206_v61 = vld [vmem:[%s6242_s2 + $0x60] sm:$0xff]  ;;  %v207_v62 = vld [vmem:[%s6242_s2 + $0x68] sm:$0xff]  ;;  %v208_v0 = vld [vmem:[%s6242_s2 + $0x70] sm:$0xff] }
  0x14   : > { %4186 = vmatprep.subr.bf16.mxu0 %v5220_v1  ;;  %4822 = vmatpush3.bf16.msra.mxu1 %v5360_v39  ;;  %v5474_v63 = vpack.c.bf16 %v207_v62, %v206_v61  ;;  %v209_v2 = vld [vmem:[%s6242_s2 + $0x78] sm:$0xff]  ;;  %v210_v29 = vld [vmem:[%s6243_s3] sm:$0xff]  ;;  %v212_v32 = vld [vmem:[%s6243_s3 + $0x10] sm:$0xff]  ;;  %v5559_v61 = vsub.s32 0, %v5280_v5  ;;  %v5562_v62 = vsub.s32 1, %v5280_v5 }
  0x15   : > { %v231_v16 = vor.u32 %v229_v12, %v228_v13  ;;  %4823 = vmatprep.subr.bf16.mxu1 %v5222_v7  ;;  %v5483_v3 = vpack.c.bf16 %v209_v2, %v208_v0  ;;  %v213_v33 = vld [vmem:[%s6243_s3 + $0x18] sm:$0xff]  ;;  %v5082_v55 = vld [vmem:[%s6241_s1 + $0x120] sm:$0xff]   ;;  %v5083_v56 = vld [vmem:[%s6241_s1 + $0x128] sm:$0xff]  }
  0x16   : > { %v5084_v58 = vld [vmem:[%s6241_s1 + $0x130] sm:$0xff]   ;;  %v5085_v59 = vld [vmem:[%s6241_s1 + $0x138] sm:$0xff]  }
  0x17   : > { %4187 = vmatpush3.bf16.msra.mxu0 %v5058_v9  ;;  %v238_v19 = vsel %vm5297_vm5, %v225_v11, %v231_v16  ;;  %v5184_v15 = vld [vmem:[%s6241_s1 + $0x3d0] sm:$0xff]   ;;  %v5185_v17 = vld [vmem:[%s6241_s1 + $0x3d8] sm:$0xff]  }
  0x18   : > { %4188 = vmatprep.subr.bf16.mxu0 %v5220_v1  ;;  %v5313_v20 = vsel %vm5301_vm6, %v238_v19, %v233_v14  ;;  %4825 = vmatpush3.bf16.msra.mxu1 %v5370_v41 }
  0x19   : > { %v294_v22 = vshrl.u32 %v5313_v20, 16  ;;  %v296_v23 = vshll.u32 %v5313_v20, 16  ;;  %v478_v31 = vrot.slane %v5313_v20, 1  ;;  %4826 = vmatprep.subr.bf16.mxu1 %v5222_v7 }
  0x1b   : > { %4189 = vmatpush3.bf16.msra.mxu0 %v5059_v10  ;;  %v298_v27 = vrot.slane %v296_v23, 1 }
  0x1c   : > { %4190 = vmatprep.subr.bf16.mxu0 %v5220_v1  ;;  %4828 = vmatpush3.bf16.msra.mxu1 %v5450_v57 }
  0x1d   : > { %v299_v34 = vor.u32 %v298_v27, %v294_v22  ;;  %4829 = vmatprep.subr.bf16.mxu1 %v5222_v7 }
  0x1f   : > { %4191 = vmatpush3.bf16.msra.mxu0 %v5060_v18 }
  0x20   : > { %4192 = vmatprep.subr.bf16.mxu0 %v5220_v1  ;;  %4831 = vmatpush3.bf16.msra.mxu1 %v5462_v60 }
  0x21   : > { %4832 = vmatprep.subr.bf16.mxu1 %v5222_v7 }
  0x23   : > { %4193 = vmatpush3.bf16.msra.mxu0 %v5061_v21 }
  0x24   : > { %4198 = vmatprep.subr.bf16.mxu0 %v5220_v1  ;;  %4834 = vmatpush3.bf16.msra.mxu1 %v5474_v63 }
  0x25   : > { %4835 = vmatprep.subr.bf16.mxu1 %v5222_v7 }
  0x26   : > { %4195 = vmatmul.mubr.bf16.vlgmr.msra.gmra.mrb[0].mxu0 %v299_v34  ;;  %v5518_v34 = vpack.c.bf16 %v213_v33, %v212_v32  ;;  %v5092_v32 = vld [vmem:[%s6241_s1 + $0xf0] sm:$0xff]   ;;  %v5093_v33 = vld [vmem:[%s6241_s1 + $0xf8] sm:$0xff]  }
  0x27   : > { %4199 = vmatpush3.bf16.msra.mxu0 %v5062_v30  ;;  %4214 = vmatprep.mubr.msk.bf16.mxu0 %vm5221_vm0, %v5220_v1  ;;  %v211_v30 = vld [vmem:[%s6243_s3 + $0x8] sm:$0xff] }
  0x28   : > { %4200 = vmatprep.subr.bf16.mxu0 %v5220_v1  ;;  %4837 = vmatpush3.bf16.msra.mxu1 %v5483_v3 }
  0x29   : > { %4838 = vmatprep.subr.bf16.mxu1 %v5222_v7 }
  0x2b   : > { %4201 = vmatpush3.bf16.msra.mxu0 %v5063_v36 }
  0x2c   : > { %4202 = vmatprep.subr.bf16.mxu0 %v5220_v1 }
  0x2f   : > { %4203 = vmatpush3.bf16.msra.mxu0 %v5064_v40 }
  0x30   : > { %4204 = vmatprep.subr.bf16.mxu0 %v5220_v1 }
  0x33   : > { %4205 = vmatpush3.bf16.msra.mxu0 %v5065_v42 }
  0x34   : > { %4206 = vmatprep.subr.bf16.mxu0 %v5220_v1 }
  0x37   : > { %4207 = vmatpush3.bf16.msra.mxu0 %v5066_v43 }
  0x38   : > { %4208 = vmatprep.subr.bf16.mxu0 %v5220_v1 }
  0x3b   : > { %4209 = vmatpush3.bf16.msra.mxu0 %v5067_v44 }
  0x3c   : > { %4210 = vmatprep.subr.bf16.mxu0 %v5220_v1 }
  0x3f   : > { %4211 = vmatpush3.bf16.msra.mxu0 %v5068_v45 }
  0x40   : > { %4212 = vmatprep.subr.bf16.mxu0 %v5220_v1 }
  0x43   : > { %4213 = vmatpush3.bf16.msra.mxu0 %v5069_v46 }
  0x44   : > { %4218 = vmatprep.subr.bf16.mxu0 %v5220_v1 }
  0x46   : > { %4215 = vmatmul.mubr.bf16.vlgmr.msra.gmra.mrb[0].mxu0 %v5313_v20 }
  0x47   : > { %4219 = vmatpush3.bf16.msra.mxu0 %v5070_v47  ;;  %4234 = vmatprep.mubr.msk.bf16.mxu0 %vm5221_vm0, %v5220_v1 }
  0x48   : > { %4220 = vmatprep.subr.bf16.mxu0 %v5220_v1 }
  0x4b   : > { %4221 = vmatpush3.bf16.msra.mxu0 %v5071_v48 }
  0x4c   : > { %4222 = vmatprep.subr.bf16.mxu0 %v5220_v1 }
  0x4f   : > { %4223 = vmatpush3.bf16.msra.mxu0 %v5072_v49 }
  0x50   : > { %4224 = vmatprep.subr.bf16.mxu0 %v5220_v1 }
  0x53   : > { %4225 = vmatpush3.bf16.msra.mxu0 %v5073_v50  ;;  %v5078_v50 = vld [vmem:[%s6241_s1 + $0x100] sm:$0xff]  }
  0x54   : > { %4226 = vmatprep.subr.bf16.mxu0 %v5220_v1 }
  0x57   : > { %4227 = vmatpush3.bf16.msra.mxu0 %v5074_v51 }
  0x58   : > { %4228 = vmatprep.subr.bf16.mxu0 %v5220_v1 }
  0x5b   : > { %4229 = vmatpush3.bf16.msra.mxu0 %v5075_v52  ;;  %v5079_v52 = vld [vmem:[%s6241_s1 + $0x108] sm:$0xff]  }
  0x5c   : > { %4230 = vmatprep.subr.bf16.mxu0 %v5220_v1 }
  0x5f   : > { %4231 = vmatpush3.bf16.msra.mxu0 %v5076_v53  ;;  %v5080_v53 = vld [vmem:[%s6241_s1 + $0x110] sm:$0xff]  }
  0x60   : > { %4232 = vmatprep.subr.bf16.mxu0 %v5220_v1 }
  0x63   : > { %4233 = vmatpush3.bf16.msra.mxu0 %v5077_v54  ;;  %v5081_v54 = vld [vmem:[%s6241_s1 + $0x118] sm:$0xff]  }
  0x64   : > { %4844 = vmatprep.subr.bf16.mxu0 %v5222_v7 }
  0x66   : > { %4235 = vmatmul.mubr.bf16.vlgmr.msra.gmra.mrb[0].mxu0 %v478_v31  ;;  %v5508_v31 = vpack.c.bf16 %v211_v30, %v210_v29  ;;  %v5090_v29 = vld [vmem:[%s6241_s1 + $0xe0] sm:$0xff]   ;;  %v5091_v30 = vld [vmem:[%s6241_s1 + $0xe8] sm:$0xff]  }
  0x67   : > { %4846 = vmatpush3.bf16.msra.mxu0 %v5330_v28  ;;  %4376 = vmatprep.mubr.msk.f32.mxu0 %vm5221_vm0, %v5220_v1 }
  0x68   : > { %4847 = vmatprep.subr.bf16.mxu0 %v5222_v7 }
  0x6b   : > { %4849 = vmatpush3.bf16.msra.mxu0 %v5346_v35 }
  0x6c   : > { %4850 = vmatprep.subr.bf16.mxu0 %v5222_v7 }
  0x6f   : > { %4852 = vmatpush3.bf16.msra.mxu0 %v5360_v39 }
  0x70   : > { %4853 = vmatprep.subr.bf16.mxu0 %v5222_v7 }
  0x73   : > { %4855 = vmatpush3.bf16.msra.mxu0 %v5370_v41 }
  0x74   : > { %4856 = vmatprep.subr.bf16.mxu0 %v5222_v7 }
  0x77   : > { %4858 = vmatpush3.bf16.msra.mxu0 %v5450_v57 }
  0x78   : > { %4859 = vmatprep.subr.bf16.mxu0 %v5222_v7 }
  0x7b   : > { %4861 = vmatpush3.bf16.msra.mxu0 %v5462_v60 }
  0x7c   : > { %4862 = vmatprep.subr.bf16.mxu0 %v5222_v7 }
  0x7f   : > { %4864 = vmatpush3.bf16.msra.mxu0 %v5474_v63 }
  0x80   : > { %4865 = vmatprep.subr.bf16.mxu0 %v5222_v7 }
  0x83   : > { %4867 = vmatpush3.bf16.msra.mxu0 %v5483_v3 }
  0x84   : > { %4868 = vmatprep.subr.bf16.mxu0 %v5222_v7 }
 0x139   : > { %v5492_v4 = vpop.f32.mrb[0].mxu0 }
 0x13a   : > { %v570_v6 = vsel %vm569_vm7, %v5492_v4, 0.0  ;;  %v577_v8 = vmul.f32 %v5492_v4, %v5492_v4  ;;  %v4236_v9 = vpop.f32.mrb[1].mxu0 }
 0x13b   : > { %v571_v10 = vrot.slane %v570_v6, 4  ;;  %v565_v11 = vpop.f32.mrb[2].mxu0 }
 0x13c   : > { %v578_v12 = vsel %vm569_vm7, %v577_v8, 0.0  ;;  %v4237_v13 = vpop.f32.mrb[3].mxu0 }
 0x13d   : > { %v572_v14 = vadd.f32 %v571_v10, %v570_v6  ;;  %v579_v16 = vrot.slane %v578_v12, 4 }
 0x13f   : > { %v573_v18 = vrot.slane %v572_v14, 2  ;;  %v580_v19 = vadd.f32 %v579_v16, %v578_v12 }
 0x141   : > { %v574_v20 = vadd.f32 %v573_v18, %v572_v14  ;;  %v581_v21 = vrot.slane %v580_v19, 2 }
 0x143   : > { %v575_v22 = vrot.slane %v574_v20, 1  ;;  %v582_v23 = vadd.f32 %v581_v21, %v580_v19 }
 0x145   : > { %v583_v24 = vrot.slane %v582_v23, 1  ;;  %v576_v25 = vadd.f32 %v575_v22, %v574_v20 }
 0x147   : > { %v584_v26 = vadd.f32 %v583_v24, %v582_v23 }
 0x149   : > { %v586_v27 = vsel %vm235_vm1, %v576_v25, %v584_v26  ;;  %v5087_v25 = vld [vmem:[%s6241_s1 + $0xc8] sm:$0xff]   ;;  %v5088_v26 = vld [vmem:[%s6241_s1 + $0xd0] sm:$0xff]  }
 0x14a   : > { %4271 = vmatmul.mubr.f32.vlgmr.msra.gmra.mrb[0].mxu1 %v586_v27  ;;  %v5089_v27 = vld [vmem:[%s6241_s1 + $0xd8] sm:$0xff]  }
 0x14b   : > { %4281 = vmatprep.mubr.msk.f32.mxu1 %vm5221_vm0, %v5220_v1  ;;  %4840 = vmatpush3.bf16.msra.mxu1 %v5508_v31 }
 0x14c   : > { %4841 = vmatprep.subr.bf16.mxu1 %v5222_v7 }
 0x14f   : > { %4843 = vmatpush3.bf16.msra.mxu1 %v5518_v34 }
 0x150   : > { %4284 = vmatprep.subr.bf16.mxu1 %v5220_v1 }
 0x21d   : > { %v653_v36 = vpop.f32.mrb[0].mxu1 }
 0x21e   : > { %v657_v37 = vmul.f32 0.0625, %v653_v36  ;;  %v4272_v38 = vpop.f32.mrb[1].mxu1  ;;  %v5094_v36 = vld [vmem:[%s6241_s1 + $0x140] sm:$0xff]  }
 0x21f   : > { %v5096_v38 = vld [vmem:[%s6241_s1 + $0x150] sm:$0xff]  }
 0x220   : > { %v658_v40 = vmul.f32 %v657_v37, %v657_v37  ;;  %v665_v46 = vsub.f32 0.0, %v657_v37 }
 0x222   : > { %v660_v42 = vrot.slane %v658_v40, 7  ;;  %v5097_v40 = vld [vmem:[%s6241_s1 + $0x158] sm:$0xff]  }
 0x224   : > { %v662_v43 = vsub.f32 %v657_v37, %v660_v42  ;;  %v5095_v37 = vld [vmem:[%s6241_s1 + $0x148] sm:$0xff]   ;;  %v5098_v42 = vld [vmem:[%s6241_s1 + $0x160] sm:$0xff]  }
 0x226   : > { %v663_v44 = vadd.f32 1e-05, %v662_v43  ;;  %v5099_v43 = vld [vmem:[%s6241_s1 + $0x168] sm:$0xff]  }
 0x228   : > { %5198 = vrsqrt.f32 %v663_v44  ;;  %v5100_v44 = vld [vmem:[%s6241_s1 + $0x170] sm:$0xff]  }
 0x232   : > { %v5199_v45 = vpop.eup %5198 }
 0x233   : > { %v667_v47 = vrot.slane %v5199_v45, 1  ;;  %v5101_v45 = vld [vmem:[%s6241_s1 + $0x178] sm:$0xff]  }
 0x235   : > { %v669_v48 = vmul.f32 %v667_v47, %v665_v46 }
 0x237   : > { %v671_v49 = vrot.slane %v669_v48, 7 }
 0x239   : > { %v673_v51 = vsel %vm235_vm1, %v667_v47, %v671_v49 }
 0x23a   : > { %4282 = vmatmul.mubr.msk.f32.vlgmr.msra.gmra.mrb[2].mxu1 %vm674_vm8, %v673_v51 }
 0x23b   : > { %4285 = vmatpush3.bf16.msra.mxu1 %v5078_v50  ;;  %4300 = vmatprep.mubr.msk.bf16.mxu1 %vm5221_vm0, %v5220_v1 }
 0x23c   : > { %4286 = vmatprep.subr.bf16.mxu1 %v5220_v1 }
 0x23f   : > { %4287 = vmatpush3.bf16.msra.mxu1 %v5079_v52 }
 0x240   : > { %4288 = vmatprep.subr.bf16.mxu1 %v5220_v1 }
 0x243   : > { %4289 = vmatpush3.bf16.msra.mxu1 %v5080_v53 }
 0x244   : > { %4290 = vmatprep.subr.bf16.mxu1 %v5220_v1 }
 0x247   : > { %4291 = vmatpush3.bf16.msra.mxu1 %v5081_v54 }
 0x248   : > { %4292 = vmatprep.subr.bf16.mxu1 %v5220_v1 }
 0x24b   : > { %4293 = vmatpush3.bf16.msra.mxu1 %v5082_v55 }
 0x24c   : > { %4294 = vmatprep.subr.bf16.mxu1 %v5220_v1 }
 0x24f   : > { %4295 = vmatpush3.bf16.msra.mxu1 %v5083_v56 }
 0x250   : > { %4296 = vmatprep.subr.bf16.mxu1 %v5220_v1 }
 0x253   : > { %4297 = vmatpush3.bf16.msra.mxu1 %v5084_v58 }
 0x254   : > { %4298 = vmatprep.subr.bf16.mxu1 %v5220_v1 }
 0x257   : > { %4299 = vmatpush3.bf16.msra.mxu1 %v5085_v59 }
 0x258   : > { %4304 = vmatprep.subr.bf16.mxu1 %v5220_v1 }
 0x30d   : > { %v744_v0 = vpop.f32.mrb[2].mxu1 }
 0x30e   : > { %v751_v2 = vrot.slane %v744_v0, %v5559_v61  ;;  %v4283_v6 = vpop.f32.mrb[3].mxu1  ;;  %v756_v9 = vrot.slane %v744_v0, %v5562_v62 }
 0x310   : > { %v752_v8 = vmul.f32 %v751_v2, %v5492_v4  ;;  %v5086_v4 = vld [vmem:[%s6241_s1 + $0xc0] sm:$0xff]  }
 0x312   : > { %v757_v10 = vadd.f32 %v756_v9, %v752_v8 }
 0x314   : > { %v758_v11 = vmax.f32 %v757_v10, 0.0 }
 0x316   : > { %v759_v12 = vpack.c.bf16 %v758_v11, %v758_v11 }
 0x318   : > { %v761_v13 = vshrl.u32 %v759_v12, 16  ;;  %v765_v14 = vshll.u32 %v759_v12, 16 }
 0x31a   : > { %v764_v16 = vrot.slane %v761_v13, 7  ;;  %v769_v19 = vrot.slane %v765_v14, 7 }
 0x31c   : > { %v767_v18 = vor.u32 %v765_v14, %v764_v16 }
 0x31e   : > { %v771_v5 = vsel %vm5297_vm5, %v761_v13, %v767_v18 }
 0x31f   : > { %v772_v20 = vsel %vm5301_vm6, %v771_v5, %v769_v19 }
 0x320   : > { %v827_v21 = vshll.u32 %v772_v20, 16  ;;  %v825_v22 = vshrl.u32 %v772_v20, 16  ;;  %v1009_v46 = vrot.slane %v772_v20, 1 }
 0x322   : > { %v829_v23 = vrot.slane %v827_v21, 1 }
 0x324   : > { %v830_v24 = vor.u32 %v829_v23, %v825_v22 }
 0x326   : > { %4301 = vmatmul.mubr.bf16.vlgmr.msra.gmra.mrb[4].mxu1 %v830_v24 }
 0x327   : > { %4305 = vmatpush3.bf16.msra.mxu1 %v5086_v4  ;;  %4320 = vmatprep.mubr.msk.bf16.mxu1 %vm5221_vm0, %v5220_v1 }
 0x328   : > { %4306 = vmatprep.subr.bf16.mxu1 %v5220_v1 }
 0x32b   : > { %4307 = vmatpush3.bf16.msra.mxu1 %v5087_v25  ;;  %v5102_v25 = vld [vmem:[%s6241_s1 + $0x1c0] sm:$0xff]  }
 0x32c   : > { %4308 = vmatprep.subr.bf16.mxu1 %v5220_v1 }
 0x32f   : > { %4309 = vmatpush3.bf16.msra.mxu1 %v5088_v26 }
 0x330   : > { %4310 = vmatprep.subr.bf16.mxu1 %v5220_v1 }
 0x333   : > { %4311 = vmatpush3.bf16.msra.mxu1 %v5089_v27  ;;  %v5103_v27 = vld [vmem:[%s6241_s1 + $0x1c8] sm:$0xff]  }
 0x334   : > { %4312 = vmatprep.subr.bf16.mxu1 %v5220_v1 }
 0x337   : > { %4313 = vmatpush3.bf16.msra.mxu1 %v5090_v29  ;;  %v5104_v29 = vld [vmem:[%s6241_s1 + $0x1d0] sm:$0xff]  }
 0x338   : > { %4314 = vmatprep.subr.bf16.mxu1 %v5220_v1 }
 0x33b   : > { %4315 = vmatpush3.bf16.msra.mxu1 %v5091_v30  ;;  %v5105_v30 = vld [vmem:[%s6241_s1 + $0x1d8] sm:$0xff]  }
 0x33c   : > { %4316 = vmatprep.subr.bf16.mxu1 %v5220_v1 }
 0x33f   : > { %4317 = vmatpush3.bf16.msra.mxu1 %v5092_v32  ;;  %v5106_v32 = vld [vmem:[%s6241_s1 + $0x1e0] sm:$0xff]  }
 0x340   : > { %4318 = vmatprep.subr.bf16.mxu1 %v5220_v1 }
 0x343   : > { %4319 = vmatpush3.bf16.msra.mxu1 %v5093_v33  ;;  %v5107_v33 = vld [vmem:[%s6241_s1 + $0x1e8] sm:$0xff]  }
 0x344   : > { %4324 = vmatprep.subr.bf16.mxu1 %v5220_v1 }
 0x346   : > { %4321 = vmatmul.mubr.bf16.vlgmr.msra.gmra.mrb[4].mxu1 %v772_v20 }
 0x347   : > { %4325 = vmatpush3.bf16.msra.mxu1 %v5094_v36  ;;  %4340 = vmatprep.mubr.msk.bf16.mxu1 %vm5221_vm0, %v5220_v1  ;;  %v5108_v36 = vld [vmem:[%s6241_s1 + $0x1f0] sm:$0xff]  }
 0x348   : > { %4326 = vmatprep.subr.bf16.mxu1 %v5220_v1 }
 0x34b   : > { %4327 = vmatpush3.bf16.msra.mxu1 %v5095_v37  ;;  %v5109_v37 = vld [vmem:[%s6241_s1 + $0x1f8] sm:$0xff]  }
 0x34c   : > { %4328 = vmatprep.subr.bf16.mxu1 %v5220_v1 }
 0x34f   : > { %4329 = vmatpush3.bf16.msra.mxu1 %v5096_v38 }
 0x350   : > { %4330 = vmatprep.subr.bf16.mxu1 %v5220_v1 }
 0x353   : > { %4331 = vmatpush3.bf16.msra.mxu1 %v5097_v40 }
 0x354   : > { %4332 = vmatprep.subr.bf16.mxu1 %v5220_v1 }
 0x357   : > { %4333 = vmatpush3.bf16.msra.mxu1 %v5098_v42 }
 0x358   : > { %4334 = vmatprep.subr.bf16.mxu1 %v5220_v1 }
 0x35b   : > { %4335 = vmatpush3.bf16.msra.mxu1 %v5099_v43  ;;  %v5210_v43 = vld [vmem:[%s5278_s26] sm:$0x3] }
 0x35c   : > { %4336 = vmatprep.subr.bf16.mxu1 %v5220_v1 }
 0x35f   : > { %4337 = vmatpush3.bf16.msra.mxu1 %v5100_v44  ;;  %v215_v44 = vunpack.c.l.bf16 %v5210_v43 }
 0x360   : > { %4338 = vmatprep.subr.bf16.mxu1 %v5220_v1 }
 0x363   : > { %4339 = vmatpush3.bf16.msra.mxu1 %v5101_v45 }
 0x364   : > { %4874 = vmatprep.subr.bf16.mxu1 %v5222_v7 }
 0x366   : > { %4341 = vmatmul.mubr.bf16.vlgmr.msra.gmra.mrb[4].mxu1 %v1009_v46 }
 0x367   : > { %4876 = vmatpush3.bf16.msra.mxu1 %v5330_v28  ;;  %4482 = vmatprep.mubr.msk.f32.mxu1 %vm5221_vm0, %v5220_v1 }
 0x368   : > { %4877 = vmatprep.subr.bf16.mxu1 %v5222_v7 }
 0x36b   : > { %4879 = vmatpush3.bf16.msra.mxu1 %v5346_v35 }
 0x36c   : > { %4880 = vmatprep.subr.bf16.mxu1 %v5222_v7 }
 0x36f   : > { %4882 = vmatpush3.bf16.msra.mxu1 %v5360_v39 }
 0x370   : > { %4883 = vmatprep.subr.bf16.mxu1 %v5222_v7 }
 0x373   : > { %4885 = vmatpush3.bf16.msra.mxu1 %v5370_v41 }
 0x374   : > { %4886 = vmatprep.subr.bf16.mxu1 %v5222_v7 }
 0x377   : > { %4888 = vmatpush3.bf16.msra.mxu1 %v5450_v57 }
 0x378   : > { %4889 = vmatprep.subr.bf16.mxu1 %v5222_v7 }
 0x37b   : > { %4891 = vmatpush3.bf16.msra.mxu1 %v5462_v60 }
 0x37c   : > { %4892 = vmatprep.subr.bf16.mxu1 %v5222_v7 }
 0x37f   : > { %4894 = vmatpush3.bf16.msra.mxu1 %v5474_v63 }
 0x380   : > { %4895 = vmatprep.subr.bf16.mxu1 %v5222_v7 }
 0x383   : > { %4897 = vmatpush3.bf16.msra.mxu1 %v5483_v3 }
 0x384   : > { %4898 = vmatprep.subr.bf16.mxu1 %v5222_v7 }
 0x439   : > { %v5657_v47 = vpop.f32.mrb[4].mxu1 }
 0x43a   : > { %v1100_v48 = vsel %vm569_vm7, %v5657_v47, 0.0  ;;  %v1107_v49 = vmul.f32 %v5657_v47, %v5657_v47  ;;  %v4342_v50 = vpop.f32.mrb[5].mxu1 }
 0x43b   : > { %v1101_v51 = vrot.slane %v1100_v48, 4  ;;  %v1096_v52 = vpop.f32.mrb[6].mxu1 }
 0x43c   : > { %v1108_v53 = vsel %vm569_vm7, %v1107_v49, 0.0  ;;  %v4343_v54 = vpop.f32.mrb[7].mxu1 }
 0x43d   : > { %v1102_v55 = vadd.f32 %v1101_v51, %v1100_v48  ;;  %v1109_v56 = vrot.slane %v1108_v53, 4 }
 0x43f   : > { %v1103_v58 = vrot.slane %v1102_v55, 2  ;;  %v1110_v59 = vadd.f32 %v1109_v56, %v1108_v53 }
 0x441   : > { %v1104_v0 = vadd.f32 %v1103_v58, %v1102_v55  ;;  %v1111_v2 = vrot.slane %v1110_v59, 2 }
 0x443   : > { %v1105_v6 = vrot.slane %v1104_v0, 1  ;;  %v1112_v8 = vadd.f32 %v1111_v2, %v1110_v59  ;;  %v5110_v2 = vld [vmem:[%s6241_s1 + $0x180] sm:$0xff]  }
 0x445   : > { %v1113_v9 = vrot.slane %v1112_v8, 1  ;;  %v1106_v10 = vadd.f32 %v1105_v6, %v1104_v0 }
 0x447   : > { %v1114_v11 = vadd.f32 %v1113_v9, %v1112_v8  ;;  %v5111_v8 = vld [vmem:[%s6241_s1 + $0x188] sm:$0xff]   ;;  %v5112_v9 = vld [vmem:[%s6241_s1 + $0x190] sm:$0xff]  }
 0x449   : > { %v1115_v12 = vsel %vm235_vm1, %v1106_v10, %v1114_v11  ;;  %v5113_v10 = vld [vmem:[%s6241_s1 + $0x198] sm:$0xff]   ;;  %v5114_v11 = vld [vmem:[%s6241_s1 + $0x1a0] sm:$0xff]  }
 0x44a   : > { %4377 = vmatmul.mubr.f32.vlgmr.msra.gmra.mrb[4].mxu0 %v1115_v12  ;;  %v5115_v12 = vld [vmem:[%s6241_s1 + $0x1a8] sm:$0xff]  }
 0x44b   : > { %4870 = vmatpush3.bf16.msra.mxu0 %v5508_v31  ;;  %4387 = vmatprep.mubr.msk.f32.mxu0 %vm5221_vm0, %v5220_v1 }
 0x44c   : > { %4871 = vmatprep.subr.bf16.mxu0 %v5222_v7 }
 0x44f   : > { %4873 = vmatpush3.bf16.msra.mxu0 %v5518_v34 }
 0x450   : > { %4390 = vmatprep.subr.bf16.mxu0 %v5220_v1 }
 0x51d   : > { %v1182_v13 = vpop.f32.mrb[4].mxu0 }
 0x51e   : > { %v1186_v14 = vmul.f32 0.0625, %v1182_v13  ;;  %v4378_v16 = vpop.f32.mrb[5].mxu0  ;;  %v5116_v13 = vld [vmem:[%s6241_s1 + $0x1b0] sm:$0xff]  }
 0x51f   : > { %v5118_v16 = vld [vmem:[%s6241_s1 + $0x200] sm:$0xff]  }
 0x520   : > { %v1187_v18 = vmul.f32 %v1186_v14, %v1186_v14  ;;  %v1194_v22 = vsub.f32 0.0, %v1186_v14 }
 0x522   : > { %v1189_v19 = vrot.slane %v1187_v18, 7  ;;  %v5119_v18 = vld [vmem:[%s6241_s1 + $0x208] sm:$0xff]  }
 0x524   : > { %v1191_v5 = vsub.f32 %v1186_v14, %v1189_v19  ;;  %v5117_v14 = vld [vmem:[%s6241_s1 + $0x1b8] sm:$0xff]   ;;  %v5120_v19 = vld [vmem:[%s6241_s1 + $0x210] sm:$0xff]  }
 0x526   : > { %v1192_v20 = vadd.f32 1e-05, %v1191_v5  ;;  %v5121_v5 = vld [vmem:[%s6241_s1 + $0x218] sm:$0xff]  }
 0x528   : > { %5200 = vrsqrt.f32 %v1192_v20  ;;  %v5122_v20 = vld [vmem:[%s6241_s1 + $0x220] sm:$0xff]  }
 0x532   : > { %v5201_v21 = vpop.eup %5200 }
 0x533   : > { %v1196_v23 = vrot.slane %v5201_v21, 1  ;;  %v5123_v21 = vld [vmem:[%s6241_s1 + $0x228] sm:$0xff]  }
 0x535   : > { %v1198_v4 = vmul.f32 %v1196_v23, %v1194_v22  ;;  %v5124_v22 = vld [vmem:[%s6241_s1 + $0x230] sm:$0xff]  }
 0x537   : > { %v1200_v24 = vrot.slane %v1198_v4, 7 }
 0x539   : > { %v1202_v26 = vsel %vm235_vm1, %v1196_v23, %v1200_v24  ;;  %v5125_v23 = vld [vmem:[%s6241_s1 + $0x238] sm:$0xff]  }
 0x53a   : > { %4388 = vmatmul.mubr.msk.f32.vlgmr.msra.gmra.mrb[6].mxu0 %vm674_vm8, %v1202_v26 }
 0x53b   : > { %4391 = vmatpush3.bf16.msra.mxu0 %v5102_v25  ;;  %4406 = vmatprep.mubr.msk.bf16.mxu0 %vm5221_vm0, %v5220_v1 }
 0x53c   : > { %4392 = vmatprep.subr.bf16.mxu0 %v5220_v1 }
 0x53f   : > { %4393 = vmatpush3.bf16.msra.mxu0 %v5103_v27 }
 0x540   : > { %4394 = vmatprep.subr.bf16.mxu0 %v5220_v1 }
 0x543   : > { %4395 = vmatpush3.bf16.msra.mxu0 %v5104_v29 }
 0x544   : > { %4396 = vmatprep.subr.bf16.mxu0 %v5220_v1 }
 0x547   : > { %4397 = vmatpush3.bf16.msra.mxu0 %v5105_v30 }
 0x548   : > { %4398 = vmatprep.subr.bf16.mxu0 %v5220_v1 }
 0x54b   : > { %4399 = vmatpush3.bf16.msra.mxu0 %v5106_v32 }
 0x54c   : > { %4400 = vmatprep.subr.bf16.mxu0 %v5220_v1 }
 0x54f   : > { %4401 = vmatpush3.bf16.msra.mxu0 %v5107_v33 }
 0x550   : > { %4402 = vmatprep.subr.bf16.mxu0 %v5220_v1 }
 0x553   : > { %4403 = vmatpush3.bf16.msra.mxu0 %v5108_v36 }
 0x554   : > { %4404 = vmatprep.subr.bf16.mxu0 %v5220_v1 }
 0x557   : > { %4405 = vmatpush3.bf16.msra.mxu0 %v5109_v37 }
 0x558   : > { %4410 = vmatprep.subr.bf16.mxu0 %v5220_v1 }
 0x60d   : > { %v1272_v38 = vpop.f32.mrb[6].mxu0 }
 0x60e   : > { %v1279_v40 = vrot.slane %v1272_v38, %v5559_v61  ;;  %v4389_v42 = vpop.f32.mrb[7].mxu0  ;;  %v1284_v46 = vrot.slane %v1272_v38, %v5562_v62 }
 0x610   : > { %v1280_v45 = vmul.f32 %v1279_v40, %v5657_v47 }
 0x612   : > { %v1285_v48 = vadd.f32 %v1284_v46, %v1280_v45 }
 0x614   : > { %v5711_v49 = vadd.f32 %v1285_v48, %v215_v44 }
 0x616   : > { %v1287_v50 = vpack.c.bf16 %v5711_v49, %v5711_v49 }
 0x618   : > { %v1289_v51 = vshrl.u32 %v1287_v50, 16  ;;  %v1293_v52 = vshll.u32 %v1287_v50, 16 }
 0x61a   : > { %v1292_v53 = vrot.slane %v1289_v51, 7  ;;  %v1297_v55 = vrot.slane %v1293_v52, 7 }
 0x61c   : > { %v1295_v54 = vor.u32 %v1293_v52, %v1292_v53 }
 0x61e   : > { %v1299_v56 = vsel %vm5297_vm5, %v1289_v51, %v1295_v54 }
 0x61f   : > { %v1300_v58 = vsel %vm5301_vm6, %v1299_v56, %v1297_v55 }
 0x620   : > { %v1355_v47 = vshll.u32 %v1300_v58, 16  ;;  %v1353_v59 = vshrl.u32 %v1300_v58, 16  ;;  %v1537_v4 = vrot.slane %v1300_v58, 1 }
 0x622   : > { %v1357_v0 = vrot.slane %v1355_v47, 1 }
 0x624   : > { %v1358_v6 = vor.u32 %v1357_v0, %v1353_v59 }
 0x626   : > { %4407 = vmatmul.mubr.bf16.vlgmr.msra.gmra.mrb[8].mxu0 %v1358_v6 }
 0x627   : > { %4411 = vmatpush3.bf16.msra.mxu0 %v5110_v2  ;;  %4426 = vmatprep.mubr.msk.bf16.mxu0 %vm5221_vm0, %v5220_v1 }
 0x628   : > { %4412 = vmatprep.subr.bf16.mxu0 %v5220_v1 }
 0x62b   : > { %4413 = vmatpush3.bf16.msra.mxu0 %v5111_v8 }
 0x62c   : > { %4414 = vmatprep.subr.bf16.mxu0 %v5220_v1 }
 0x62f   : > { %4415 = vmatpush3.bf16.msra.mxu0 %v5112_v9  ;;  %v5126_v9 = vld [vmem:[%s6241_s1 + $0x280] sm:$0xff]  }
 0x630   : > { %4416 = vmatprep.subr.bf16.mxu0 %v5220_v1 }
 0x633   : > { %4417 = vmatpush3.bf16.msra.mxu0 %v5113_v10 }
 0x634   : > { %4418 = vmatprep.subr.bf16.mxu0 %v5220_v1 }
 0x637   : > { %4419 = vmatpush3.bf16.msra.mxu0 %v5114_v11  ;;  %v5127_v11 = vld [vmem:[%s6241_s1 + $0x288] sm:$0xff]  }
 0x638   : > { %4420 = vmatprep.subr.bf16.mxu0 %v5220_v1 }
 0x63b   : > { %4421 = vmatpush3.bf16.msra.mxu0 %v5115_v12  ;;  %v5128_v12 = vld [vmem:[%s6241_s1 + $0x290] sm:$0xff]  }
 0x63c   : > { %4422 = vmatprep.subr.bf16.mxu0 %v5220_v1 }
 0x63f   : > { %4423 = vmatpush3.bf16.msra.mxu0 %v5116_v13  ;;  %v5129_v13 = vld [vmem:[%s6241_s1 + $0x298] sm:$0xff]  }
 0x640   : > { %4424 = vmatprep.subr.bf16.mxu0 %v5220_v1 }
 0x643   : > { %4425 = vmatpush3.bf16.msra.mxu0 %v5117_v14  ;;  %v5130_v14 = vld [vmem:[%s6241_s1 + $0x2a0] sm:$0xff]  }
 0x644   : > { %4430 = vmatprep.subr.bf16.mxu0 %v5220_v1 }
 0x646   : > { %4427 = vmatmul.mubr.bf16.vlgmr.msra.gmra.mrb[8].mxu0 %v1300_v58 }
 0x647   : > { %4431 = vmatpush3.bf16.msra.mxu0 %v5118_v16  ;;  %4446 = vmatprep.mubr.msk.bf16.mxu0 %vm5221_vm0, %v5220_v1  ;;  %v5131_v16 = vld [vmem:[%s6241_s1 + $0x2a8] sm:$0xff]  }
 0x648   : > { %4432 = vmatprep.subr.bf16.mxu0 %v5220_v1 }
 0x64b   : > { %4433 = vmatpush3.bf16.msra.mxu0 %v5119_v18  ;;  %v5132_v18 = vld [vmem:[%s6241_s1 + $0x2b0] sm:$0xff]  }
 0x64c   : > { %4434 = vmatprep.subr.bf16.mxu0 %v5220_v1 }
 0x64f   : > { %4435 = vmatpush3.bf16.msra.mxu0 %v5120_v19  ;;  %v5133_v19 = vld [vmem:[%s6241_s1 + $0x2b8] sm:$0xff]  }
 0x650   : > { %4436 = vmatprep.subr.bf16.mxu0 %v5220_v1 }
 0x653   : > { %4437 = vmatpush3.bf16.msra.mxu0 %v5121_v5 }
 0x654   : > { %4438 = vmatprep.subr.bf16.mxu0 %v5220_v1 }
 0x657   : > { %4439 = vmatpush3.bf16.msra.mxu0 %v5122_v20 }
 0x658   : > { %4440 = vmatprep.subr.bf16.mxu0 %v5220_v1 }
 0x65b   : > { %4441 = vmatpush3.bf16.msra.mxu0 %v5123_v21 }
 0x65c   : > { %4442 = vmatprep.subr.bf16.mxu0 %v5220_v1 }
 0x65f   : > { %4443 = vmatpush3.bf16.msra.mxu0 %v5124_v22 }
 0x660   : > { %4444 = vmatprep.subr.bf16.mxu0 %v5220_v1 }
 0x663   : > { %4445 = vmatpush3.bf16.msra.mxu0 %v5125_v23 }
 0x664   : > { %4904 = vmatprep.subr.bf16.mxu0 %v5222_v7 }
 0x666   : > { %4447 = vmatmul.mubr.bf16.vlgmr.msra.gmra.mrb[8].mxu0 %v1537_v4 }
 0x667   : > { %4906 = vmatpush3.bf16.msra.mxu0 %v5330_v28  ;;  %4588 = vmatprep.mubr.msk.f32.mxu0 %vm5221_vm0, %v5220_v1 }
 0x668   : > { %4907 = vmatprep.subr.bf16.mxu0 %v5222_v7 }
 0x66b   : > { %4909 = vmatpush3.bf16.msra.mxu0 %v5346_v35 }
 0x66c   : > { %4910 = vmatprep.subr.bf16.mxu0 %v5222_v7 }
 0x66f   : > { %4912 = vmatpush3.bf16.msra.mxu0 %v5360_v39 }
 0x670   : > { %4913 = vmatprep.subr.bf16.mxu0 %v5222_v7 }
 0x673   : > { %4915 = vmatpush3.bf16.msra.mxu0 %v5370_v41 }
 0x674   : > { %4916 = vmatprep.subr.bf16.mxu0 %v5222_v7 }
 0x677   : > { %4918 = vmatpush3.bf16.msra.mxu0 %v5450_v57 }
 0x678   : > { %4919 = vmatprep.subr.bf16.mxu0 %v5222_v7 }
 0x67b   : > { %4921 = vmatpush3.bf16.msra.mxu0 %v5462_v60 }
 0x67c   : > { %4922 = vmatprep.subr.bf16.mxu0 %v5222_v7 }
 0x67f   : > { %4924 = vmatpush3.bf16.msra.mxu0 %v5474_v63 }
 0x680   : > { %4925 = vmatprep.subr.bf16.mxu0 %v5222_v7 }
 0x683   : > { %4927 = vmatpush3.bf16.msra.mxu0 %v5483_v3 }
 0x684   : > { %4928 = vmatprep.subr.bf16.mxu0 %v5222_v7 }
 0x739   : > { %v5805_v24 = vpop.f32.mrb[8].mxu0 }
 0x73a   : > { %v1628_v25 = vsel %vm569_vm7, %v5805_v24, 0.0  ;;  %v1635_v26 = vmul.f32 %v5805_v24, %v5805_v24  ;;  %v4448_v27 = vpop.f32.mrb[9].mxu0 }
 0x73b   : > { %v1629_v29 = vrot.slane %v1628_v25, 4  ;;  %v1624_v30 = vpop.f32.mrb[10].mxu0 }
 0x73c   : > { %v1636_v32 = vsel %vm569_vm7, %v1635_v26, 0.0  ;;  %v4449_v33 = vpop.f32.mrb[11].mxu0 }
 0x73d   : > { %v1630_v36 = vadd.f32 %v1629_v29, %v1628_v25  ;;  %v1637_v37 = vrot.slane %v1636_v32, 4 }
 0x73f   : > { %v1631_v38 = vrot.slane %v1630_v36, 2  ;;  %v1638_v40 = vadd.f32 %v1637_v37, %v1636_v32 }
 0x741   : > { %v1632_v42 = vadd.f32 %v1631_v38, %v1630_v36  ;;  %v1639_v43 = vrot.slane %v1638_v40, 2 }
 0x743   : > { %v1633_v44 = vrot.slane %v1632_v42, 1  ;;  %v1640_v45 = vadd.f32 %v1639_v43, %v1638_v40 }
 0x745   : > { %v1641_v46 = vrot.slane %v1640_v45, 1  ;;  %v1634_v48 = vadd.f32 %v1633_v44, %v1632_v42  ;;  %v5135_v44 = vld [vmem:[%s6241_s1 + $0x248] sm:$0xff]  }
 0x747   : > { %v1642_v50 = vadd.f32 %v1641_v46, %v1640_v45  ;;  %v5136_v45 = vld [vmem:[%s6241_s1 + $0x250] sm:$0xff]   ;;  %v5137_v46 = vld [vmem:[%s6241_s1 + $0x258] sm:$0xff]  }
 0x749   : > { %v1643_v51 = vsel %vm235_vm1, %v1634_v48, %v1642_v50  ;;  %v5138_v48 = vld [vmem:[%s6241_s1 + $0x260] sm:$0xff]   ;;  %v5139_v50 = vld [vmem:[%s6241_s1 + $0x268] sm:$0xff]  }
 0x74a   : > { %4483 = vmatmul.mubr.f32.vlgmr.msra.gmra.mrb[8].mxu1 %v1643_v51  ;;  %v5140_v51 = vld [vmem:[%s6241_s1 + $0x270] sm:$0xff]  }
 0x74b   : > { %4900 = vmatpush3.bf16.msra.mxu1 %v5508_v31  ;;  %4493 = vmatprep.mubr.msk.f32.mxu1 %vm5221_vm0, %v5220_v1 }
 0x74c   : > { %4901 = vmatprep.subr.bf16.mxu1 %v5222_v7 }
 0x74f   : > { %4903 = vmatpush3.bf16.msra.mxu1 %v5518_v34 }
 0x750   : > { %4496 = vmatprep.subr.bf16.mxu1 %v5220_v1 }
 0x81d   : > { %v1710_v52 = vpop.f32.mrb[8].mxu1 }
 0x81e   : > { %v1714_v53 = vmul.f32 0.0625, %v1710_v52  ;;  %v4484_v54 = vpop.f32.mrb[9].mxu1  ;;  %v5141_v52 = vld [vmem:[%s6241_s1 + $0x278] sm:$0xff]  }
 0x81f   : > { %v5143_v54 = vld [vmem:[%s6241_s1 + $0x2c8] sm:$0xff]  }
 0x820   : > { %v1715_v55 = vmul.f32 %v1714_v53, %v1714_v53  ;;  %v1722_v0 = vsub.f32 0.0, %v1714_v53 }
 0x822   : > { %v1717_v56 = vrot.slane %v1715_v55, 7  ;;  %v5144_v55 = vld [vmem:[%s6241_s1 + $0x2d0] sm:$0xff]  }
 0x824   : > { %v1719_v58 = vsub.f32 %v1714_v53, %v1717_v56  ;;  %v5142_v53 = vld [vmem:[%s6241_s1 + $0x2c0] sm:$0xff]   ;;  %v5145_v56 = vld [vmem:[%s6241_s1 + $0x2d8] sm:$0xff]  }
 0x826   : > { %v1720_v47 = vadd.f32 1e-05, %v1719_v58  ;;  %v5146_v58 = vld [vmem:[%s6241_s1 + $0x2e0] sm:$0xff]  }
 0x828   : > { %5202 = vrsqrt.f32 %v1720_v47  ;;  %v5147_v47 = vld [vmem:[%s6241_s1 + $0x2e8] sm:$0xff]  }
 0x832   : > { %v5203_v59 = vpop.eup %5202 }
 0x833   : > { %v1724_v2 = vrot.slane %v5203_v59, 1  ;;  %v5148_v59 = vld [vmem:[%s6241_s1 + $0x2f0] sm:$0xff]  }
 0x835   : > { %v1726_v6 = vmul.f32 %v1724_v2, %v1722_v0  ;;  %v5149_v0 = vld [vmem:[%s6241_s1 + $0x2f8] sm:$0xff]  }
 0x837   : > { %v1728_v8 = vrot.slane %v1726_v6, 7 }
 0x839   : > { %v1730_v10 = vsel %vm235_vm1, %v1724_v2, %v1728_v8 }
 0x83a   : > { %4494 = vmatmul.mubr.msk.f32.vlgmr.msra.gmra.mrb[10].mxu1 %vm674_vm8, %v1730_v10 }
 0x83b   : > { %4497 = vmatpush3.bf16.msra.mxu1 %v5126_v9  ;;  %4512 = vmatprep.mubr.msk.bf16.mxu1 %vm5221_vm0, %v5220_v1 }
 0x83c   : > { %4498 = vmatprep.subr.bf16.mxu1 %v5220_v1 }
 0x83f   : > { %4499 = vmatpush3.bf16.msra.mxu1 %v5127_v11 }
 0x840   : > { %4500 = vmatprep.subr.bf16.mxu1 %v5220_v1 }
 0x843   : > { %4501 = vmatpush3.bf16.msra.mxu1 %v5128_v12 }
 0x844   : > { %4502 = vmatprep.subr.bf16.mxu1 %v5220_v1 }
 0x847   : > { %4503 = vmatpush3.bf16.msra.mxu1 %v5129_v13 }
 0x848   : > { %4504 = vmatprep.subr.bf16.mxu1 %v5220_v1 }
 0x84b   : > { %4505 = vmatpush3.bf16.msra.mxu1 %v5130_v14 }
 0x84c   : > { %4506 = vmatprep.subr.bf16.mxu1 %v5220_v1 }
 0x84f   : > { %4507 = vmatpush3.bf16.msra.mxu1 %v5131_v16 }
 0x850   : > { %4508 = vmatprep.subr.bf16.mxu1 %v5220_v1 }
 0x853   : > { %4509 = vmatpush3.bf16.msra.mxu1 %v5132_v18 }
 0x854   : > { %4510 = vmatprep.subr.bf16.mxu1 %v5220_v1 }
 0x857   : > { %4511 = vmatpush3.bf16.msra.mxu1 %v5133_v19 }
 0x858   : > { %4516 = vmatprep.subr.bf16.mxu1 %v5220_v1 }
 0x90d   : > { %v1800_v5 = vpop.f32.mrb[10].mxu1 }
 0x90e   : > { %v1807_v20 = vrot.slane %v1800_v5, %v5559_v61  ;;  %v4495_v21 = vpop.f32.mrb[11].mxu1  ;;  %v1812_v23 = vrot.slane %v1800_v5, %v5562_v62 }
 0x910   : > { %v1808_v22 = vmul.f32 %v1807_v20, %v5805_v24  ;;  %v5134_v24 = vld [vmem:[%s6241_s1 + $0x240] sm:$0xff]  }
 0x912   : > { %v1813_v4 = vadd.f32 %v1812_v23, %v1808_v22 }
 0x914   : > { %v1814_v25 = vmax.f32 %v1813_v4, 0.0 }
 0x916   : > { %v1815_v26 = vpack.c.bf16 %v1814_v25, %v1814_v25 }
 0x918   : > { %v1817_v27 = vshrl.u32 %v1815_v26, 16  ;;  %v1821_v29 = vshll.u32 %v1815_v26, 16 }
 0x91a   : > { %v1820_v30 = vrot.slane %v1817_v27, 7  ;;  %v1825_v33 = vrot.slane %v1821_v29, 7 }
 0x91c   : > { %v1823_v32 = vor.u32 %v1821_v29, %v1820_v30 }
 0x91e   : > { %v1827_v36 = vsel %vm5297_vm5, %v1817_v27, %v1823_v32 }
 0x91f   : > { %v1828_v37 = vsel %vm5301_vm6, %v1827_v36, %v1825_v33 }
 0x920   : > { %v1883_v38 = vshll.u32 %v1828_v37, 16  ;;  %v1881_v40 = vshrl.u32 %v1828_v37, 16  ;;  %v2065_v2 = vrot.slane %v1828_v37, 1 }
 0x922   : > { %v1885_v42 = vrot.slane %v1883_v38, 1 }
 0x924   : > { %v1886_v43 = vor.u32 %v1885_v42, %v1881_v40 }
 0x926   : > { %4513 = vmatmul.mubr.bf16.vlgmr.msra.gmra.mrb[12].mxu1 %v1886_v43 }
 0x927   : > { %4517 = vmatpush3.bf16.msra.mxu1 %v5134_v24  ;;  %4532 = vmatprep.mubr.msk.bf16.mxu1 %vm5221_vm0, %v5220_v1 }
 0x928   : > { %4518 = vmatprep.subr.bf16.mxu1 %v5220_v1 }
 0x92b   : > { %4519 = vmatpush3.bf16.msra.mxu1 %v5135_v44 }
 0x92c   : > { %4520 = vmatprep.subr.bf16.mxu1 %v5220_v1 }
 0x92f   : > { %4521 = vmatpush3.bf16.msra.mxu1 %v5136_v45  ;;  %v5150_v45 = vld [vmem:[%s6241_s1 + $0x340] sm:$0xff]  }
 0x930   : > { %4522 = vmatprep.subr.bf16.mxu1 %v5220_v1 }
 0x933   : > { %4523 = vmatpush3.bf16.msra.mxu1 %v5137_v46 }
 0x934   : > { %4524 = vmatprep.subr.bf16.mxu1 %v5220_v1 }
 0x937   : > { %4525 = vmatpush3.bf16.msra.mxu1 %v5138_v48  ;;  %v5151_v48 = vld [vmem:[%s6241_s1 + $0x348] sm:$0xff]  }
 0x938   : > { %4526 = vmatprep.subr.bf16.mxu1 %v5220_v1 }
 0x93b   : > { %4527 = vmatpush3.bf16.msra.mxu1 %v5139_v50  ;;  %v5152_v50 = vld [vmem:[%s6241_s1 + $0x350] sm:$0xff]  }
 0x93c   : > { %4528 = vmatprep.subr.bf16.mxu1 %v5220_v1 }
 0x93f   : > { %4529 = vmatpush3.bf16.msra.mxu1 %v5140_v51  ;;  %v5153_v51 = vld [vmem:[%s6241_s1 + $0x358] sm:$0xff]  }
 0x940   : > { %4530 = vmatprep.subr.bf16.mxu1 %v5220_v1 }
 0x943   : > { %4531 = vmatpush3.bf16.msra.mxu1 %v5141_v52  ;;  %v5154_v52 = vld [vmem:[%s6241_s1 + $0x360] sm:$0xff]  }
 0x944   : > { %4536 = vmatprep.subr.bf16.mxu1 %v5220_v1 }
 0x946   : > { %4533 = vmatmul.mubr.bf16.vlgmr.msra.gmra.mrb[12].mxu1 %v1828_v37 }
 0x947   : > { %4537 = vmatpush3.bf16.msra.mxu1 %v5142_v53  ;;  %4552 = vmatprep.mubr.msk.bf16.mxu1 %vm5221_vm0, %v5220_v1  ;;  %v5155_v53 = vld [vmem:[%s6241_s1 + $0x368] sm:$0xff]  }
 0x948   : > { %4538 = vmatprep.subr.bf16.mxu1 %v5220_v1 }
 0x94b   : > { %4539 = vmatpush3.bf16.msra.mxu1 %v5143_v54  ;;  %v5156_v54 = vld [vmem:[%s6241_s1 + $0x370] sm:$0xff]  }
 0x94c   : > { %4540 = vmatprep.subr.bf16.mxu1 %v5220_v1 }
 0x94f   : > { %4541 = vmatpush3.bf16.msra.mxu1 %v5144_v55  ;;  %v5157_v55 = vld [vmem:[%s6241_s1 + $0x378] sm:$0xff]  }
 0x950   : > { %4542 = vmatprep.subr.bf16.mxu1 %v5220_v1 }
 0x953   : > { %4543 = vmatpush3.bf16.msra.mxu1 %v5145_v56 }
 0x954   : > { %4544 = vmatprep.subr.bf16.mxu1 %v5220_v1 }
 0x957   : > { %4545 = vmatpush3.bf16.msra.mxu1 %v5146_v58 }
 0x958   : > { %4546 = vmatprep.subr.bf16.mxu1 %v5220_v1 }
 0x95b   : > { %4547 = vmatpush3.bf16.msra.mxu1 %v5147_v47 }
 0x95c   : > { %4548 = vmatprep.subr.bf16.mxu1 %v5220_v1 }
 0x95f   : > { %4549 = vmatpush3.bf16.msra.mxu1 %v5148_v59 }
 0x960   : > { %4550 = vmatprep.subr.bf16.mxu1 %v5220_v1 }
 0x963   : > { %4551 = vmatpush3.bf16.msra.mxu1 %v5149_v0 }
 0x964   : > { %4934 = vmatprep.subr.bf16.mxu1 %v5222_v7 }
 0x966   : > { %4553 = vmatmul.mubr.bf16.vlgmr.msra.gmra.mrb[12].mxu1 %v2065_v2 }
 0x967   : > { %4936 = vmatpush3.bf16.msra.mxu1 %v5330_v28  ;;  %4694 = vmatprep.mubr.msk.f32.mxu1 %vm5221_vm0, %v5220_v1 }
 0x968   : > { %4937 = vmatprep.subr.bf16.mxu1 %v5222_v7 }
 0x96b   : > { %4939 = vmatpush3.bf16.msra.mxu1 %v5346_v35 }
 0x96c   : > { %4940 = vmatprep.subr.bf16.mxu1 %v5222_v7 }
 0x96f   : > { %4942 = vmatpush3.bf16.msra.mxu1 %v5360_v39 }
 0x970   : > { %4943 = vmatprep.subr.bf16.mxu1 %v5222_v7 }
 0x973   : > { %4945 = vmatpush3.bf16.msra.mxu1 %v5370_v41 }
 0x974   : > { %4946 = vmatprep.subr.bf16.mxu1 %v5222_v7 }
 0x977   : > { %4948 = vmatpush3.bf16.msra.mxu1 %v5450_v57 }
 0x978   : > { %4949 = vmatprep.subr.bf16.mxu1 %v5222_v7 }
 0x97b   : > { %4951 = vmatpush3.bf16.msra.mxu1 %v5462_v60 }
 0x97c   : > { %4952 = vmatprep.subr.bf16.mxu1 %v5222_v7 }
 0x97f   : > { %4954 = vmatpush3.bf16.msra.mxu1 %v5474_v63 }
 0x980   : > { %4955 = vmatprep.subr.bf16.mxu1 %v5222_v7 }
 0x983   : > { %4957 = vmatpush3.bf16.msra.mxu1 %v5483_v3 }
 0x984   : > { %4958 = vmatprep.subr.bf16.mxu1 %v5222_v7 }
 0xa39   : > { %v5948_v6 = vpop.f32.mrb[12].mxu1 }
 0xa3a   : > { %v2156_v8 = vsel %vm569_vm7, %v5948_v6, 0.0  ;;  %v2163_v9 = vmul.f32 %v5948_v6, %v5948_v6  ;;  %v4554_v10 = vpop.f32.mrb[13].mxu1 }
 0xa3b   : > { %v2157_v11 = vrot.slane %v2156_v8, 4  ;;  %v2152_v12 = vpop.f32.mrb[14].mxu1 }
 0xa3c   : > { %v2164_v13 = vsel %vm569_vm7, %v2163_v9, 0.0  ;;  %v4555_v14 = vpop.f32.mrb[15].mxu1 }
 0xa3d   : > { %v2158_v16 = vadd.f32 %v2157_v11, %v2156_v8  ;;  %v2165_v18 = vrot.slane %v2164_v13, 4 }
 0xa3f   : > { %v2159_v19 = vrot.slane %v2158_v16, 2  ;;  %v2166_v5 = vadd.f32 %v2165_v18, %v2164_v13 }
 0xa41   : > { %v2160_v20 = vadd.f32 %v2159_v19, %v2158_v16  ;;  %v2167_v21 = vrot.slane %v2166_v5, 2 }
 0xa43   : > { %v2161_v22 = vrot.slane %v2160_v20, 1  ;;  %v2168_v23 = vadd.f32 %v2167_v21, %v2166_v5  ;;  %v5159_v21 = vld [vmem:[%s6241_s1 + $0x308] sm:$0xff]  }
 0xa45   : > { %v2169_v4 = vrot.slane %v2168_v23, 1  ;;  %v2162_v25 = vadd.f32 %v2161_v22, %v2160_v20  ;;  %v5160_v22 = vld [vmem:[%s6241_s1 + $0x310] sm:$0xff]  }
 0xa47   : > { %v2170_v26 = vadd.f32 %v2169_v4, %v2168_v23  ;;  %v5161_v23 = vld [vmem:[%s6241_s1 + $0x318] sm:$0xff]   ;;  %v5162_v4 = vld [vmem:[%s6241_s1 + $0x320] sm:$0xff]  }
 0xa49   : > { %v2171_v27 = vsel %vm235_vm1, %v2162_v25, %v2170_v26  ;;  %v5163_v25 = vld [vmem:[%s6241_s1 + $0x328] sm:$0xff]   ;;  %v5164_v26 = vld [vmem:[%s6241_s1 + $0x330] sm:$0xff]  }
 0xa4a   : > { %4589 = vmatmul.mubr.f32.vlgmr.msra.gmra.mrb[12].mxu0 %v2171_v27  ;;  %v5165_v27 = vld [vmem:[%s6241_s1 + $0x338] sm:$0xff]  }
 0xa4b   : > { %4930 = vmatpush3.bf16.msra.mxu0 %v5508_v31  ;;  %4599 = vmatprep.mubr.msk.f32.mxu0 %vm5221_vm0, %v5220_v1 }
 0xa4c   : > { %4931 = vmatprep.subr.bf16.mxu0 %v5222_v7 }
 0xa4f   : > { %4933 = vmatpush3.bf16.msra.mxu0 %v5518_v34 }
 0xa50   : > { %4602 = vmatprep.subr.bf16.mxu0 %v5220_v1 }
 0xb1d   : > { %v2238_v29 = vpop.f32.mrb[12].mxu0 }
 0xb1e   : > { %v2242_v30 = vmul.f32 0.0625, %v2238_v29  ;;  %v4590_v32 = vpop.f32.mrb[13].mxu0  ;;  %v5166_v29 = vld [vmem:[%s6241_s1 + $0x380] sm:$0xff]  }
 0xb1f   : > { %v5168_v32 = vld [vmem:[%s6241_s1 + $0x390] sm:$0xff]  }
 0xb20   : > { %v2243_v33 = vmul.f32 %v2242_v30, %v2242_v30  ;;  %v2250_v42 = vsub.f32 0.0, %v2242_v30 }
 0xb22   : > { %v2245_v36 = vrot.slane %v2243_v33, 7  ;;  %v5169_v33 = vld [vmem:[%s6241_s1 + $0x398] sm:$0xff]  }
 0xb24   : > { %v2247_v37 = vsub.f32 %v2242_v30, %v2245_v36  ;;  %v5167_v30 = vld [vmem:[%s6241_s1 + $0x388] sm:$0xff]   ;;  %v5170_v36 = vld [vmem:[%s6241_s1 + $0x3a0] sm:$0xff]  }
 0xb26   : > { %v2248_v38 = vadd.f32 1e-05, %v2247_v37  ;;  %v5171_v37 = vld [vmem:[%s6241_s1 + $0x3a8] sm:$0xff]  }
 0xb28   : > { %5204 = vrsqrt.f32 %v2248_v38  ;;  %v5172_v38 = vld [vmem:[%s6241_s1 + $0x3b0] sm:$0xff]  }
 0xb32   : > { %v5205_v40 = vpop.eup %5204 }
 0xb33   : > { %v2252_v24 = vrot.slane %v5205_v40, 1  ;;  %v5173_v40 = vld [vmem:[%s6241_s1 + $0x3b8] sm:$0xff]  }
 0xb35   : > { %v2254_v43 = vmul.f32 %v2252_v24, %v2250_v42 }
 0xb37   : > { %v2256_v44 = vrot.slane %v2254_v43, 7 }
 0xb39   : > { %v2258_v46 = vsel %vm235_vm1, %v2252_v24, %v2256_v44 }
 0xb3a   : > { %4600 = vmatmul.mubr.msk.f32.vlgmr.msra.gmra.mrb[14].mxu0 %vm674_vm8, %v2258_v46 }
 0xb3b   : > { %4603 = vmatpush3.bf16.msra.mxu0 %v5150_v45  ;;  %4618 = vmatprep.mubr.msk.bf16.mxu0 %vm5221_vm0, %v5220_v1 }
 0xb3c   : > { %4604 = vmatprep.subr.bf16.mxu0 %v5220_v1 }
 0xb3f   : > { %4605 = vmatpush3.bf16.msra.mxu0 %v5151_v48 }
 0xb40   : > { %4606 = vmatprep.subr.bf16.mxu0 %v5220_v1 }
 0xb43   : > { %4607 = vmatpush3.bf16.msra.mxu0 %v5152_v50 }
 0xb44   : > { %4608 = vmatprep.subr.bf16.mxu0 %v5220_v1 }
 0xb47   : > { %4609 = vmatpush3.bf16.msra.mxu0 %v5153_v51 }
 0xb48   : > { %4610 = vmatprep.subr.bf16.mxu0 %v5220_v1 }
 0xb4b   : > { %4611 = vmatpush3.bf16.msra.mxu0 %v5154_v52 }
 0xb4c   : > { %4612 = vmatprep.subr.bf16.mxu0 %v5220_v1 }
 0xb4f   : > { %4613 = vmatpush3.bf16.msra.mxu0 %v5155_v53 }
 0xb50   : > { %4614 = vmatprep.subr.bf16.mxu0 %v5220_v1 }
 0xb53   : > { %4615 = vmatpush3.bf16.msra.mxu0 %v5156_v54 }
 0xb54   : > { %4616 = vmatprep.subr.bf16.mxu0 %v5220_v1 }
 0xb57   : > { %4617 = vmatpush3.bf16.msra.mxu0 %v5157_v55 }
 0xb58   : > { %4622 = vmatprep.subr.bf16.mxu0 %v5220_v1 }
 0xc0d   : > { %v2328_v56 = vpop.f32.mrb[14].mxu0 }
 0xc0e   : > { %v2335_v58 = vrot.slane %v2328_v56, %v5559_v61  ;;  %v4601_v47 = vpop.f32.mrb[15].mxu0  ;;  %v2340_v0 = vrot.slane %v2328_v56, %v5562_v62 }
 0xc10   : > { %v2336_v59 = vmul.f32 %v2335_v58, %v5948_v6 }
 0xc12   : > { %v2341_v2 = vadd.f32 %v2340_v0, %v2336_v59 }
 0xc14   : > { %v6002_v8 = vadd.f32 %v2341_v2, %v5711_v49  ;;  %v5158_v49 = vld [vmem:[%s6241_s1 + $0x300] sm:$0xff]  }
 0xc16   : > { %v2343_v9 = vpack.c.bf16 %v6002_v8, %v6002_v8 }
 0xc18   : > { %v2345_v10 = vshrl.u32 %v2343_v9, 16  ;;  %v2349_v11 = vshll.u32 %v2343_v9, 16 }
 0xc1a   : > { %v2348_v12 = vrot.slane %v2345_v10, 7  ;;  %v2353_v14 = vrot.slane %v2349_v11, 7 }
 0xc1c   : > { %v2351_v13 = vor.u32 %v2349_v11, %v2348_v12 }
 0xc1e   : > { %v2355_v16 = vsel %vm5297_vm5, %v2345_v10, %v2351_v13 }
 0xc1f   : > { %v2356_v6 = vsel %vm5301_vm6, %v2355_v16, %v2353_v14  ;;  %v5174_v16 = vld [vmem:[%s6241_s1 + $0x400] sm:$0xff]  }
 0xc20   : > { %v2411_v18 = vshll.u32 %v2356_v6, 16  ;;  %v2409_v19 = vshrl.u32 %v2356_v6, 16  ;;  %v2593_v42 = vrot.slane %v2356_v6, 1 }
 0xc22   : > { %v2413_v5 = vrot.slane %v2411_v18, 1  ;;  %v5175_v18 = vld [vmem:[%s6241_s1 + $0x408] sm:$0xff]  }
 0xc24   : > { %v2414_v20 = vor.u32 %v2413_v5, %v2409_v19  ;;  %v5176_v19 = vld [vmem:[%s6241_s1 + $0x410] sm:$0xff]   ;;  %v5177_v5 = vld [vmem:[%s6241_s1 + $0x418] sm:$0xff]  }
 0xc26   : > { %4619 = vmatmul.mubr.bf16.vlgmr.msra.gmra.mrb[16].mxu0 %v2414_v20  ;;  %v5179_v20 = vld [vmem:[%s6241_s1 + $0x428] sm:$0xff]  }
 0xc27   : > { %4623 = vmatpush3.bf16.msra.mxu0 %v5158_v49  ;;  %4638 = vmatprep.mubr.msk.bf16.mxu0 %vm5221_vm0, %v5220_v1  ;;  %v5178_v49 = vld [vmem:[%s6241_s1 + $0x420] sm:$0xff]  }
 0xc28   : > { %4624 = vmatprep.subr.bf16.mxu0 %v5220_v1 }
 0xc2b   : > { %4625 = vmatpush3.bf16.msra.mxu0 %v5159_v21  ;;  %v5180_v21 = vld [vmem:[%s6241_s1 + $0x430] sm:$0xff]  }
 0xc2c   : > { %4626 = vmatprep.subr.bf16.mxu0 %v5220_v1 }
 0xc2f   : > { %4627 = vmatpush3.bf16.msra.mxu0 %v5160_v22  ;;  %v5181_v22 = vld [vmem:[%s6241_s1 + $0x438] sm:$0xff]  }
 0xc30   : > { %4628 = vmatprep.subr.bf16.mxu0 %v5220_v1 }
 0xc33   : > { %4629 = vmatpush3.bf16.msra.mxu0 %v5161_v23 }
 0xc34   : > { %4630 = vmatprep.subr.bf16.mxu0 %v5220_v1 }
 0xc37   : > { %4631 = vmatpush3.bf16.msra.mxu0 %v5162_v4 }
 0xc38   : > { %4632 = vmatprep.subr.bf16.mxu0 %v5220_v1 }
 0xc3b   : > { %4633 = vmatpush3.bf16.msra.mxu0 %v5163_v25 }
 0xc3c   : > { %4634 = vmatprep.subr.bf16.mxu0 %v5220_v1 }
 0xc3f   : > { %4635 = vmatpush3.bf16.msra.mxu0 %v5164_v26 }
 0xc40   : > { %4636 = vmatprep.subr.bf16.mxu0 %v5220_v1 }
 0xc43   : > { %4637 = vmatpush3.bf16.msra.mxu0 %v5165_v27 }
 0xc44   : > { %4642 = vmatprep.subr.bf16.mxu0 %v5220_v1 }
 0xc46   : > { %4639 = vmatmul.mubr.bf16.vlgmr.msra.gmra.mrb[16].mxu0 %v2356_v6 }
 0xc47   : > { %4643 = vmatpush3.bf16.msra.mxu0 %v5166_v29  ;;  %4658 = vmatprep.mubr.msk.bf16.mxu0 %vm5221_vm0, %v5220_v1 }
 0xc48   : > { %4644 = vmatprep.subr.bf16.mxu0 %v5220_v1 }
 0xc4b   : > { %4645 = vmatpush3.bf16.msra.mxu0 %v5167_v30 }
 0xc4c   : > { %4646 = vmatprep.subr.bf16.mxu0 %v5220_v1 }
 0xc4f   : > { %4647 = vmatpush3.bf16.msra.mxu0 %v5168_v32 }
 0xc50   : > { %4648 = vmatprep.subr.bf16.mxu0 %v5220_v1 }
 0xc53   : > { %4649 = vmatpush3.bf16.msra.mxu0 %v5169_v33 }
 0xc54   : > { %4650 = vmatprep.subr.bf16.mxu0 %v5220_v1 }
 0xc57   : > { %4651 = vmatpush3.bf16.msra.mxu0 %v5170_v36 }
 0xc58   : > { %4652 = vmatprep.subr.bf16.mxu0 %v5220_v1 }
 0xc5b   : > { %4653 = vmatpush3.bf16.msra.mxu0 %v5171_v37 }
 0xc5c   : > { %4654 = vmatprep.subr.bf16.mxu0 %v5220_v1 }
 0xc5f   : > { %4655 = vmatpush3.bf16.msra.mxu0 %v5172_v38 }
 0xc60   : > { %4656 = vmatprep.subr.bf16.mxu0 %v5220_v1 }
 0xc63   : > { %4657 = vmatpush3.bf16.msra.mxu0 %v5173_v40 }
 0xc64   : > { %4964 = vmatprep.subr.bf16.mxu0 %v5222_v7 }
 0xc66   : > { %4659 = vmatmul.mubr.bf16.vlgmr.msra.gmra.mrb[16].mxu0 %v2593_v42 }
 0xc67   : > { %4966 = vmatpush3.bf16.msra.mxu0 %v5330_v28  ;;  %4800 = vmatprep.mubr.msk.f32.mxu0 %vm5221_vm0, %v5220_v1 }
 0xc68   : > { %4967 = vmatprep.subr.bf16.mxu0 %v5222_v7 }
 0xc6b   : > { %4969 = vmatpush3.bf16.msra.mxu0 %v5346_v35 }
 0xc6c   : > { %4970 = vmatprep.subr.bf16.mxu0 %v5222_v7 }
 0xc6f   : > { %4972 = vmatpush3.bf16.msra.mxu0 %v5360_v39 }
 0xc70   : > { %4973 = vmatprep.subr.bf16.mxu0 %v5222_v7 }
 0xc73   : > { %4975 = vmatpush3.bf16.msra.mxu0 %v5370_v41 }
 0xc74   : > { %4976 = vmatprep.subr.bf16.mxu0 %v5222_v7 }
 0xc77   : > { %4978 = vmatpush3.bf16.msra.mxu0 %v5450_v57 }
 0xc78   : > { %4979 = vmatprep.subr.bf16.mxu0 %v5222_v7 }
 0xc7b   : > { %4981 = vmatpush3.bf16.msra.mxu0 %v5462_v60 }
 0xc7c   : > { %4982 = vmatprep.subr.bf16.mxu0 %v5222_v7 }
 0xc7f   : > { %4984 = vmatpush3.bf16.msra.mxu0 %v5474_v63 }
 0xc80   : > { %4985 = vmatprep.subr.bf16.mxu0 %v5222_v7 }
 0xc83   : > { %4987 = vmatpush3.bf16.msra.mxu0 %v5483_v3 }
 0xc84   : > { %4988 = vmatprep.subr.bf16.mxu0 %v5222_v7 }
 0xd39   : > { %v6096_v28 = vpop.f32.mrb[16].mxu0 }
 0xd3a   : > { %v2684_v35 = vsel %vm569_vm7, %v6096_v28, 0.0  ;;  %v2691_v39 = vmul.f32 %v6096_v28, %v6096_v28  ;;  %v4660_v41 = vpop.f32.mrb[17].mxu0 }
 0xd3b   : > { %v2685_v57 = vrot.slane %v2684_v35, 4  ;;  %v2680_v60 = vpop.f32.mrb[18].mxu0 }
 0xd3c   : > { %v2692_v24 = vsel %vm569_vm7, %v2691_v39, 0.0  ;;  %v4661_v63 = vpop.f32.mrb[19].mxu0 }
 0xd3d   : > { %v2686_v43 = vadd.f32 %v2685_v57, %v2684_v35  ;;  %v2693_v44 = vrot.slane %v2692_v24, 4  ;;  %v5186_v63 = vld [vmem:[%s6241_s1 + $0x3e0] sm:$0xff]  }
 0xd3f   : > { %v2687_v45 = vrot.slane %v2686_v43, 2  ;;  %v2694_v3 = vadd.f32 %v2693_v44, %v2692_v24  ;;  %v5183_v24 = vld [vmem:[%s6241_s1 + $0x3c8] sm:$0xff]   ;;  %v5188_v44 = vld [vmem:[%s6241_s1 + $0x3f0] sm:$0xff]  }
 0xd41   : > { %v2688_v46 = vadd.f32 %v2687_v45, %v2686_v43  ;;  %v2695_v48 = vrot.slane %v2694_v3, 2  ;;  %v5187_v43 = vld [vmem:[%s6241_s1 + $0x3e8] sm:$0xff]   ;;  %v5189_v45 = vld [vmem:[%s6241_s1 + $0x3f8] sm:$0xff]  }
 0xd43   : > { %v2689_v50 = vrot.slane %v2688_v46, 1  ;;  %v2696_v51 = vadd.f32 %v2695_v48, %v2694_v3  ;;  %v5190_v3 = vld [vmem:[%s6241_s1 + $0x440] sm:$0xff]   ;;  %v5192_v48 = vld [vmem:[%s6241_s1 + $0x450] sm:$0xff]  }
 0xd45   : > { %v2697_v52 = vrot.slane %v2696_v51, 1  ;;  %v2690_v53 = vadd.f32 %v2689_v50, %v2688_v46  ;;  %v5191_v46 = vld [vmem:[%s6241_s1 + $0x448] sm:$0xff]   ;;  %v5193_v50 = vld [vmem:[%s6241_s1 + $0x458] sm:$0xff]  }
 0xd47   : > { %v2698_v54 = vadd.f32 %v2697_v52, %v2696_v51  ;;  %v5194_v51 = vld [vmem:[%s6241_s1 + $0x460] sm:$0xff]   ;;  %v5195_v52 = vld [vmem:[%s6241_s1 + $0x468] sm:$0xff]  }
 0xd49   : > { %v2699_v55 = vsel %vm235_vm1, %v2690_v53, %v2698_v54  ;;  %v5196_v53 = vld [vmem:[%s6241_s1 + $0x470] sm:$0xff]   ;;  %v5197_v54 = vld [vmem:[%s6241_s1 + $0x478] sm:$0xff]  }
 0xd4a   : > { %4695 = vmatmul.mubr.f32.vlgmr.msra.gmra.mrb[16].mxu1 %v2699_v55 }
 0xd4b   : > { %4960 = vmatpush3.bf16.msra.mxu1 %v5508_v31  ;;  %4705 = vmatprep.mubr.msk.f32.mxu1 %vm5221_vm0, %v5220_v1 }
 0xd4c   : > { %4961 = vmatprep.subr.bf16.mxu1 %v5222_v7 }
 0xd4f   : > { %4963 = vmatpush3.bf16.msra.mxu1 %v5518_v34 }
 0xd50   : > { %4708 = vmatprep.subr.bf16.mxu1 %v5220_v1 }
 0xe1d   : > { %v2766_v56 = vpop.f32.mrb[16].mxu1 }
 0xe1e   : > { %v2770_v58 = vmul.f32 0.0625, %v2766_v56  ;;  %v4696_v47 = vpop.f32.mrb[17].mxu1 }
 0xe20   : > { %v2771_v59 = vmul.f32 %v2770_v58, %v2770_v58  ;;  %v2778_v11 = vsub.f32 0.0, %v2770_v58 }
 0xe22   : > { %v2773_v0 = vrot.slane %v2771_v59, 7 }
 0xe24   : > { %v2775_v2 = vsub.f32 %v2770_v58, %v2773_v0 }
 0xe26   : > { %v2776_v9 = vadd.f32 1e-05, %v2775_v2 }
 0xe28   : > { %5206 = vrsqrt.f32 %v2776_v9 }
 0xe32   : > { %v5207_v10 = vpop.eup %5206 }
 0xe33   : > { %v2780_v12 = vrot.slane %v5207_v10, 1 }
 0xe35   : > { %v2782_v13 = vmul.f32 %v2780_v12, %v2778_v11 }
 0xe37   : > { %v2784_v14 = vrot.slane %v2782_v13, 7 }
 0xe39   : > { %v2786_v6 = vsel %vm235_vm1, %v2780_v12, %v2784_v14 }
 0xe3a   : > { %4706 = vmatmul.mubr.msk.f32.vlgmr.msra.gmra.mrb[18].mxu1 %vm674_vm8, %v2786_v6 }
 0xe3b   : > { %4709 = vmatpush3.bf16.msra.mxu1 %v5174_v16  ;;  %4724 = vmatprep.mubr.msk.bf16.mxu1 %vm5221_vm0, %v5220_v1 }
 0xe3c   : > { %4710 = vmatprep.subr.bf16.mxu1 %v5220_v1 }
 0xe3f   : > { %4711 = vmatpush3.bf16.msra.mxu1 %v5175_v18 }
 0xe40   : > { %4712 = vmatprep.subr.bf16.mxu1 %v5220_v1 }
 0xe43   : > { %4713 = vmatpush3.bf16.msra.mxu1 %v5176_v19 }
 0xe44   : > { %4714 = vmatprep.subr.bf16.mxu1 %v5220_v1 }
 0xe47   : > { %4715 = vmatpush3.bf16.msra.mxu1 %v5177_v5 }
 0xe48   : > { %4716 = vmatprep.subr.bf16.mxu1 %v5220_v1 }
 0xe4b   : > { %4717 = vmatpush3.bf16.msra.mxu1 %v5178_v49 }
 0xe4c   : > { %4718 = vmatprep.subr.bf16.mxu1 %v5220_v1 }
 0xe4f   : > { %4719 = vmatpush3.bf16.msra.mxu1 %v5179_v20 }
 0xe50   : > { %4720 = vmatprep.subr.bf16.mxu1 %v5220_v1 }
 0xe53   : > { %4721 = vmatpush3.bf16.msra.mxu1 %v5180_v21 }
 0xe54   : > { %4722 = vmatprep.subr.bf16.mxu1 %v5220_v1 }
 0xe57   : > { %4723 = vmatpush3.bf16.msra.mxu1 %v5181_v22 }
 0xe58   : > { %4728 = vmatprep.subr.bf16.mxu1 %v5220_v1 }
 0xf0d   : > { %v2856_v23 = vpop.f32.mrb[18].mxu1 }
 0xf0e   : > { %v2863_v4 = vrot.slane %v2856_v23, %v5559_v61  ;;  %v4707_v25 = vpop.f32.mrb[19].mxu1  ;;  %v2868_v27 = vrot.slane %v2856_v23, %v5562_v62 }
 0xf10   : > { %v2864_v26 = vmul.f32 %v2863_v4, %v6096_v28  ;;  %v5182_v28 = vld [vmem:[%s6241_s1 + $0x3c0] sm:$0xff]  }
 0xf12   : > { %v2869_v29 = vadd.f32 %v2868_v27, %v2864_v26 }
 0xf14   : > { %v2870_v30 = vmax.f32 %v2869_v29, 0.0 }
 0xf16   : > { %v2871_v32 = vpack.c.bf16 %v2870_v30, %v2870_v30 }
 0xf18   : > { %v2873_v33 = vshrl.u32 %v2871_v32, 16  ;;  %v2877_v36 = vshll.u32 %v2871_v32, 16 }
 0xf1a   : > { %v2876_v37 = vrot.slane %v2873_v33, 7  ;;  %v2881_v40 = vrot.slane %v2877_v36, 7 }
 0xf1c   : > { %v2879_v38 = vor.u32 %v2877_v36, %v2876_v37 }
 0xf1e   : > { %v2883_v42 = vsel %vm5297_vm5, %v2873_v33, %v2879_v38 }
 0xf1f   : > { %v2884_v35 = vsel %vm5301_vm6, %v2883_v42, %v2881_v40 }
 0xf20   : > { %v2939_v39 = vshll.u32 %v2884_v35, 16  ;;  %v2937_v41 = vshrl.u32 %v2884_v35, 16  ;;  %v3121_v55 = vrot.slane %v2884_v35, 1 }
 0xf22   : > { %v2941_v57 = vrot.slane %v2939_v39, 1 }
 0xf24   : > { %v2942_v60 = vor.u32 %v2941_v57, %v2937_v41 }
 0xf26   : > { %4725 = vmatmul.mubr.bf16.vlgmr.msra.gmra.mrb[20].mxu1 %v2942_v60 }
 0xf27   : > { %4729 = vmatpush3.bf16.msra.mxu1 %v5182_v28  ;;  %4744 = vmatprep.mubr.msk.bf16.mxu1 %vm5221_vm0, %v5220_v1 }
 0xf28   : > { %4730 = vmatprep.subr.bf16.mxu1 %v5220_v1 }
 0xf2b   : > { %4731 = vmatpush3.bf16.msra.mxu1 %v5183_v24 }
 0xf2c   : > { %4732 = vmatprep.subr.bf16.mxu1 %v5220_v1 }
 0xf2f   : > { %4733 = vmatpush3.bf16.msra.mxu1 %v5184_v15 }
 0xf30   : > { %4734 = vmatprep.subr.bf16.mxu1 %v5220_v1 }
 0xf33   : > { %4735 = vmatpush3.bf16.msra.mxu1 %v5185_v17 }
 0xf34   : > { %4736 = vmatprep.subr.bf16.mxu1 %v5220_v1 }
 0xf37   : > { %4737 = vmatpush3.bf16.msra.mxu1 %v5186_v63 }
 0xf38   : > { %4738 = vmatprep.subr.bf16.mxu1 %v5220_v1 }
 0xf3b   : > { %4739 = vmatpush3.bf16.msra.mxu1 %v5187_v43 }
 0xf3c   : > { %4740 = vmatprep.subr.bf16.mxu1 %v5220_v1 }
 0xf3f   : > { %4741 = vmatpush3.bf16.msra.mxu1 %v5188_v44 }
 0xf40   : > { %4742 = vmatprep.subr.bf16.mxu1 %v5220_v1 }
 0xf43   : > { %4743 = vmatpush3.bf16.msra.mxu1 %v5189_v45 }
 0xf44   : > { %4748 = vmatprep.subr.bf16.mxu1 %v5220_v1 }
 0xf46   : > { %4745 = vmatmul.mubr.bf16.vlgmr.msra.gmra.mrb[20].mxu1 %v2884_v35 }
 0xf47   : > { %4749 = vmatpush3.bf16.msra.mxu1 %v5190_v3  ;;  %4764 = vmatprep.mubr.msk.bf16.mxu1 %vm5221_vm0, %v5220_v1 }
 0xf48   : > { %4750 = vmatprep.subr.bf16.mxu1 %v5220_v1 }
 0xf4b   : > { %4751 = vmatpush3.bf16.msra.mxu1 %v5191_v46 }
 0xf4c   : > { %4752 = vmatprep.subr.bf16.mxu1 %v5220_v1 }
 0xf4f   : > { %4753 = vmatpush3.bf16.msra.mxu1 %v5192_v48 }
 0xf50   : > { %4754 = vmatprep.subr.bf16.mxu1 %v5220_v1 }
 0xf53   : > { %4755 = vmatpush3.bf16.msra.mxu1 %v5193_v50 }
 0xf54   : > { %4756 = vmatprep.subr.bf16.mxu1 %v5220_v1 }
 0xf57   : > { %4757 = vmatpush3.bf16.msra.mxu1 %v5194_v51 }
 0xf58   : > { %4758 = vmatprep.subr.bf16.mxu1 %v5220_v1 }
 0xf5b   : > { %4759 = vmatpush3.bf16.msra.mxu1 %v5195_v52 }
 0xf5c   : > { %4760 = vmatprep.subr.bf16.mxu1 %v5220_v1 }
 0xf5f   : > { %4761 = vmatpush3.bf16.msra.mxu1 %v5196_v53 }
 0xf60   : > { %4762 = vmatprep.subr.bf16.mxu1 %v5220_v1 }
 0xf63   : > { %4763 = vmatpush3.bf16.msra.mxu1 %v5197_v54 }
 0xf66   : > { %4765 = vmatmul.mubr.bf16.vlgmr.msra.gmra.mrb[20].mxu1 %v3121_v55 }
0x1039   : > { %v3205_v56 = vpop.f32.mrb[20].mxu1 }
0x103a   : > { %v3212_v58 = vsel %vm569_vm7, %v3205_v56, 0.0  ;;  %v3219_v47 = vmul.f32 %v3205_v56, %v3205_v56  ;;  %v4766_v59 = vpop.f32.mrb[21].mxu1 }
0x103b   : > { %v3213_v0 = vrot.slane %v3212_v58, 4  ;;  %v3208_v2 = vpop.f32.mrb[22].mxu1 }
0x103c   : > { %v3220_v9 = vsel %vm569_vm7, %v3219_v47, 0.0  ;;  %v4767_v10 = vpop.f32.mrb[23].mxu1 }
0x103d   : > { %v3214_v11 = vadd.f32 %v3213_v0, %v3212_v58  ;;  %v3221_v12 = vrot.slane %v3220_v9, 4 }
0x103f   : > { %v3215_v13 = vrot.slane %v3214_v11, 2  ;;  %v3222_v14 = vadd.f32 %v3221_v12, %v3220_v9 }
0x1041   : > { %v3216_v16 = vadd.f32 %v3215_v13, %v3214_v11  ;;  %v3223_v6 = vrot.slane %v3222_v14, 2 }
0x1043   : > { %v3217_v18 = vrot.slane %v3216_v16, 1  ;;  %v3224_v19 = vadd.f32 %v3223_v6, %v3222_v14 }
0x1045   : > { %v3225_v5 = vrot.slane %v3224_v19, 1  ;;  %v3218_v49 = vadd.f32 %v3217_v18, %v3216_v16 }
0x1047   : > { %v3226_v20 = vadd.f32 %v3225_v5, %v3224_v19 }
0x1049   : > { %v3227_v21 = vsel %vm235_vm1, %v3218_v49, %v3226_v20 }
0x104a   : > { %4801 = vmatmul.mubr.f32.vlgmr.msra.gmra.mrb[20].mxu0 %v3227_v21 }
0x104b   : > { %4990 = vmatpush3.bf16.msra.mxu0 %v5508_v31  ;;  %4811 = vmatprep.mubr.msk.f32.mxu0 %vm5221_vm0, %v5220_v1 }
0x104c   : > { %4991 = vmatprep.subr.bf16.mxu0 %v5222_v7 }
0x104f   : > { %4993 = vmatpush3.bf16.msra.mxu0 %v5518_v34 }
0x111d   : > { %v3294_v22 = vpop.f32.mrb[20].mxu0 }
0x111e   : > { %v3298_v23 = vmul.f32 0.0625, %v3294_v22  ;;  %v4802_v4 = vpop.f32.mrb[21].mxu0 }
0x1120   : > { %v3299_v25 = vmul.f32 %v3298_v23, %v3298_v23  ;;  %v3306_v32 = vsub.f32 0.0, %v3298_v23 }
0x1122   : > { %v3301_v26 = vrot.slane %v3299_v25, 7 }
0x1124   : > { %v3303_v27 = vsub.f32 %v3298_v23, %v3301_v26 }
0x1126   : > { %v3304_v29 = vadd.f32 1e-05, %v3303_v27 }
0x1128   : > { %5208 = vrsqrt.f32 %v3304_v29 }
0x1132   : > { %v5209_v30 = vpop.eup %5208 }
0x1133   : > { %v3308_v33 = vrot.slane %v5209_v30, 1 }
0x1135   : > { %v3310_v31 = vmul.f32 %v3308_v33, %v3306_v32 }
0x1137   : > { %v3312_v36 = vrot.slane %v3310_v31, 7 }
0x1139   : > { %v3314_v1 = vsel %vm235_vm1, %v3308_v33, %v3312_v36 }
0x113a   : > { %4812 = vmatmul.mubr.msk.f32.vlgmr.msra.gmra.mrb[22].mxu0 %vm674_vm8, %v3314_v1 }
0x120d   : > { %v3384_v7 = vpop.f32.mrb[22].mxu0 }
0x120e   : > { %v3391_v34 = vrot.slane %v3384_v7, %v5559_v61  ;;  %v4813_v37 = vpop.f32.mrb[23].mxu0  ;;  %v3396_v40 = vrot.slane %v3384_v7, %v5562_v62 }
0x1210   : > { %v3392_v38 = vmul.f32 %v3391_v34, %v3205_v56 }
0x1212   : > { %v3397_v42 = vadd.f32 %v3396_v40, %v3392_v38 }
0x1214   : > { %v3398_v35 = vadd.f32 %v3397_v42, %v6002_v8 }
0x1216   : > { %3399 = vst [vmem:[%s192_s21] sm:$0xf] %v3398_v35 }
0x1217 PF: > { %s14_s15 = sadd.s32 1, %s5218_s15  }
0x1218   : > { %p11_p4 = scmp.ge.s32.totalorder %s14_s15, 4  }
0x121a   :  { %13 = sbr.rel (!%p11_p4) target bundleno = 1 (0x1), region = 83 }

</bundles_post_ra>
